<compile_context>
chip_gen: v6e
topology: v6e:2x2x1
jax: 0.10.0
libtpu: 0.0.40
codegen_flags: <defaults>
</compile_context>

<pallas_src>
import functools

import jax
import jax.numpy as jnp
from jax.experimental import pallas as pl
from jax.experimental.pallas import tpu as pltpu

_GUARD = 16    # guard rows at each end of the flat padded scratch (never consumed
               # by valid outputs; junk rows touching them are masked to zero)
_LANE = 128    # lane-dense width for the FC head / output block


# ----------------------------------------------------------------------------
# Fused classifier kernel
# ----------------------------------------------------------------------------
def _classifier_kernel(x_ref, w_ref, scale_ref, shift_ref, mask_ref, pool_ref,
                       fcw_ref, fcb_ref, o_ref, xp_ref, *, H, W, Bs):
    Wp = W + 2
    P = (H + 2) * Wp
    span = Bs * P - 2 * Wp        # contiguous rows computed per layer (incl. the
                                  # padding rows inside the span, masked below)
    s0 = _GUARD + Wp              # first computed flat row (image 0, padded row 1)

    # Stage the already zero-padded bf16 input into the guarded flat scratch with
    # one contiguous copy (padding rows/cols come in as zeros from the wrapper).
    xp_ref[pl.ds(_GUARD, Bs * P), :] = x_ref[0]

    interior = mask_ref[...] > 0.0            # (span, 1): 1 = real pixel, 0 = padding

    for l in range(3):
        # 3x3 conv as 9 accumulating K=C dots on contiguous row windows of the
        # flattened padded activations (reshape-free, im2col-free).
        acc = None
        for t in range(9):
            dh, dw = t // 3, t % 3
            off = s0 + (dh - 1) * Wp + (dw - 1)
            tap = xp_ref[pl.ds(off, span), :]                       # (span, C) bf16
            d = jnp.dot(tap, w_ref[l * 9 + t],
                        preferred_element_type=jnp.float32)         # (span, C) f32
            acc = d if acc is None else acc + d
        y = acc * scale_ref[l] + shift_ref[l]     # folded BN (+conv bias), f32
        y = jnp.where(y > 0, y, 0.1 * y)          # LeakyReLU(0.1)
        y = jnp.where(interior, y, 0.0)           # restore zero padding for next layer
        xp_ref[pl.ds(s0, span), :] = y.astype(jnp.bfloat16)

    # AdaptiveAvgPool2d((1,1)) + View + Linear: padding rows are exactly zero, so
    # a per-image block-sum (via a tiny pooling matmul) equals the interior mean.
    feats = xp_ref[pl.ds(_GUARD, Bs * P), :].astype(jnp.float32)     # (Bs*P, C)
    pooled = jnp.dot(pool_ref[...], feats,
                     preferred_element_type=jnp.float32)             # (Bs, C)
    o_ref[0] = jnp.dot(pooled, fcw_ref[...],
                       preferred_element_type=jnp.float32) + fcb_ref[...]


def _tensorcores_per_chip():
    try:
        kind = jax.devices()[0].device_kind.lower()
    except Exception:
        return 1
    return 2 if any(tag in kind for tag in ("v7", "7x", "v4")) else 1


def class_classifier_forward(feature_nchw, params):
    """feature_nchw: (B, 64, H, W) -> logits (B, num_classes). Eval-mode BN."""
    x = jnp.transpose(feature_nchw, (0, 2, 3, 1))                    # NHWC
    B, H, W, C = x.shape
    Hp, Wp = H + 2, W + 2
    P = Hp * Wp
    n_classes = params["fc_w"].shape[1]

    # ---- chip-aware grid: only split batch across cores on 2-TC chips and only
    # when each core gets enough rows; split further only to bound VMEM. ----
    def step_bytes(bs):
        rows = bs * P + 2 * _GUARD
        return (rows * C * 2                 # bf16 padded-activation scratch
                + 2 * bs * P * C * 2         # double-buffered bf16 input block
                + 3 * bs * P * C * 4)        # f32 accumulator / epilogue temporaries

    grid_b = 1
    if _tensorcores_per_chip() >= 2 and B % 2 == 0 and (B // 2) * H * W >= 256:
        grid_b = 2
    while B % (grid_b * 2) == 0 and step_bytes(B // grid_b) > (8 << 20):
        grid_b *= 2
    Bs = B // grid_b
    span = Bs * P - 2 * Wp

    # ---- wrapper-side prep (tiny XLA ops): zero padding + bf16 cast, interior
    # mask, pooling matrix, lane-dense (128-wide) FC head. ----
    xp = jnp.pad(x.astype(jnp.bfloat16), ((0, 0), (1, 1), (1, 1), (0, 0)))
    xp = xp.reshape(grid_b, Bs * P, C)

    interior2d = jnp.zeros((Hp, Wp), jnp.float32).at[1:H + 1, 1:W + 1].set(1.0)
    mask = jnp.tile(interior2d.reshape(-1), (Bs,))[Wp:Wp + span].reshape(span, 1)

    pool = jnp.kron(jnp.eye(Bs, dtype=jnp.float32),
                    jnp.ones((1, P), jnp.float32)) * (1.0 / (H * W))  # (Bs, Bs*P)

    fcw = jnp.zeros((C, _LANE), jnp.float32).at[:, :n_classes].set(params["fc_w"])
    fcb = jnp.zeros((1, _LANE), jnp.float32).at[0, :n_classes].set(params["fc_b"])

    kernel = functools.partial(_classifier_kernel, H=H, W=W, Bs=Bs)
    vmem_limit = int(min(64 << 20, max(32 << 20, 2 * step_bytes(Bs))))

    out = pl.pallas_call(
        kernel,
        out_shape=jax.ShapeDtypeStruct((grid_b, Bs, _LANE), jnp.float32),
        grid=(grid_b,),
        in_specs=[
            pl.BlockSpec((1, Bs * P, C), lambda g: (g, 0, 0)),   # padded activations bf16
            pl.BlockSpec((27, C, C), lambda g: (0, 0, 0)),       # conv tap weights bf16
            pl.BlockSpec((3, 1, C), lambda g: (0, 0, 0)),        # folded BN scale
            pl.BlockSpec((3, 1, C), lambda g: (0, 0, 0)),        # folded BN shift
            pl.BlockSpec((span, 1), lambda g: (0, 0)),           # interior mask
            pl.BlockSpec((Bs, Bs * P), lambda g: (0, 0)),        # avg-pool matrix
            pl.BlockSpec((C, _LANE), lambda g: (0, 0)),          # fc weight (lane-padded)
            pl.BlockSpec((1, _LANE), lambda g: (0, 0)),          # fc bias   (lane-padded)
        ],
        out_specs=pl.BlockSpec((1, Bs, _LANE), lambda g: (g, 0, 0)),
        scratch_shapes=[
            pltpu.VMEM((Bs * P + 2 * _GUARD, C), jnp.bfloat16),  # flat padded activations
        ],
        compiler_params=pltpu.CompilerParams(
            dimension_semantics=("parallel",),
            vmem_limit_bytes=vmem_limit),
    )(xp, params["w"], params["scale"], params["shift"], mask, pool, fcw, fcb)
    return out.reshape(B, _LANE)[:, :n_classes]


# ----------------------------------------------------------------------------
# Synthetic parameters (PyTorch layouts) + eval-mode BN folding
# ----------------------------------------------------------------------------
def make_params(key, C=64, num_classes=10):
    keys = jax.random.split(key, 20)
    w_taps, scales, shifts, convs_ref = [], [], [], []
    idx = 0
    for _ in range(3):
        w_oihw = jax.random.normal(keys[idx], (C, C, 3, 3), jnp.float32) * 0.05; idx += 1
        b = jax.random.normal(keys[idx], (C,), jnp.float32) * 0.05; idx += 1
        gamma = jax.random.uniform(keys[idx], (C,), jnp.float32, minval=0.5, maxval=1.5); idx += 1
        beta = jax.random.normal(keys[idx], (C,), jnp.float32) * 0.1; idx += 1
        mean = jax.random.normal(keys[idx], (C,), jnp.float32) * 0.1; idx += 1
        var = jax.random.uniform(keys[idx], (C,), jnp.float32, minval=0.5, maxval=1.5); idx += 1
        scale = gamma / jnp.sqrt(var + 1e-5)
        shift = beta - mean * scale + b * scale                   # conv bias folded in
        w_hwio = jnp.transpose(w_oihw, (2, 3, 1, 0))              # (3,3,Cin,Cout)
        w_taps.append(w_hwio.reshape(9, C, C))                    # tap-major, each (Cin,Cout)
        scales.append(scale)
        shifts.append(shift)
        convs_ref.append((w_hwio, scale, shift))
    fc_w_oi = jax.random.normal(keys[idx], (num_classes, C), jnp.float32) * 0.1; idx += 1
    fc_b = jax.random.normal(keys[idx], (num_classes,), jnp.float32) * 0.1; idx += 1

    params = {
        "w": jnp.concatenate(w_taps, axis=0).astype(jnp.bfloat16),  # (27, C, C)
        "scale": jnp.stack(scales)[:, None, :],                     # (3, 1, C) f32
        "shift": jnp.stack(shifts)[:, None, :],                     # (3, 1, C) f32
        "fc_w": jnp.transpose(fc_w_oi),                             # (C, num_classes)
        "fc_b": fc_b,                                               # (num_classes,)
    }
    ref_params = {"convs": convs_ref, "fc_w": params["fc_w"], "fc_b": fc_b}
    return params, ref_params


def reference_forward(x_nchw, ref_params):
    x = jnp.transpose(x_nchw, (0, 2, 3, 1)).astype(jnp.float32)
    for w_hwio, scale, shift in ref_params["convs"]:
        y = jax.lax.conv_general_dilated(
            x, w_hwio, window_strides=(1, 1), padding="SAME",
            dimension_numbers=("NHWC", "HWIO", "NHWC"),
            precision=jax.lax.Precision.HIGHEST)
        y = y * scale + shift
        x = jnp.where(y > 0, y, 0.1 * y)
    pooled = jnp.mean(x, axis=(1, 2))
    return jnp.dot(pooled, ref_params["fc_w"],
                   precision=jax.lax.Precision.HIGHEST) + ref_params["fc_b"]


if __name__ == "__main__":
    key = jax.random.PRNGKey(0)
    pkey, xkey = jax.random.split(key)
    params, ref_params = make_params(pkey)

    # Feature map from the Digit model that Class_Classifier consumes: (B, 64, 8, 8) NCHW.
    x = jax.random.normal(xkey, (2, 64, 8, 8), jnp.float32)

    fwd = jax.jit(class_classifier_forward)
    out = fwd(x, params)
    jax.block_until_ready(out)

    assert out.shape == (2, 10), out.shape
    assert bool(jnp.all(jnp.isfinite(out)))

    ref = reference_forward(x, ref_params)
    max_err = float(jnp.max(jnp.abs(out - ref)))
    assert max_err < 0.1, f"max abs err vs f32 reference: {max_err}"
    print("KERNEL_OK")
</pallas_src>

<mosaic_0001>
module attributes {stable_mosaic.version = 11 : i64} {
  func.func @_classifier_kernel(%arg0: i32, %arg1: memref<1x200x64xbf16, #tpu.memory_space<vmem>>, %arg2: memref<27x64x64xbf16, #tpu.memory_space<vmem>>, %arg3: memref<3x1x64xf32, #tpu.memory_space<vmem>>, %arg4: memref<3x1x64xf32, #tpu.memory_space<vmem>>, %arg5: memref<180x1xf32, #tpu.memory_space<vmem>>, %arg6: memref<2x200xf32, #tpu.memory_space<vmem>>, %arg7: memref<64x128xf32, #tpu.memory_space<vmem>>, %arg8: memref<1x128xf32, #tpu.memory_space<vmem>>, %arg9: memref<1x2x128xf32, #tpu.memory_space<vmem>>, %arg10: memref<232x64xbf16, #tpu.memory_space<vmem>>) attributes {dimension_semantics = [#tpu.dimension_semantics<parallel>], iteration_bounds = array<i64: 1>, scalar_prefetch = 0 : i64, scratch_operands = 1 : i64, tpu.core_type = #tpu.core_type<tc>, window_params = [{transform_indices = @transform_0, window_bounds = array<i64: 1, 200, 64>}, {pipeline_mode = #tpu.pipeline_mode<synchronous>, transform_indices = @transform_1, window_bounds = array<i64: 27, 64, 64>}, {pipeline_mode = #tpu.pipeline_mode<synchronous>, transform_indices = @transform_2, window_bounds = array<i64: 3, 1, 64>}, {pipeline_mode = #tpu.pipeline_mode<synchronous>, transform_indices = @transform_3, window_bounds = array<i64: 3, 1, 64>}, {pipeline_mode = #tpu.pipeline_mode<synchronous>, transform_indices = @transform_4, window_bounds = array<i64: 180, 1>}, {pipeline_mode = #tpu.pipeline_mode<synchronous>, transform_indices = @transform_5, window_bounds = array<i64: 2, 200>}, {pipeline_mode = #tpu.pipeline_mode<synchronous>, transform_indices = @transform_6, window_bounds = array<i64: 64, 128>}, {pipeline_mode = #tpu.pipeline_mode<synchronous>, transform_indices = @transform_7, window_bounds = array<i64: 1, 128>}, {transform_indices = @transform_8, window_bounds = array<i64: 1, 2, 128>}]} {
    %c0 = arith.constant 0 : index
    %c0_0 = arith.constant 0 : index
    %c0_1 = arith.constant 0 : index
    %0 = vector.load %arg1[%c0, %c0_0, %c0_1] : memref<1x200x64xbf16, #tpu.memory_space<vmem>>, vector<1x200x64xbf16>
    %1 = vector.shape_cast %0 : vector<1x200x64xbf16> to vector<200x64xbf16>
    %c16 = arith.constant 16 : index
    %c0_2 = arith.constant 0 : index
    %2 = vector.load %arg10[%c16, %c0_2] : memref<232x64xbf16, #tpu.memory_space<vmem>>, vector<200x64xbf16>
    tpu.vector_store %arg10[%c16, %c0_2], %1 {strides = array<i32>} : memref<232x64xbf16, #tpu.memory_space<vmem>>, vector<200x64xbf16>,
    %c0_3 = arith.constant 0 : index
    %c0_4 = arith.constant 0 : index
    %3 = vector.load %arg5[%c0_3, %c0_4] : memref<180x1xf32, #tpu.memory_space<vmem>>, vector<180x1xf32>
    %cst = arith.constant 0.000000e+00 : f32
    %4 = vector.broadcast %cst : f32 to vector<180x1xf32>
    %5 = arith.cmpf ogt, %3, %4 : vector<180x1xf32>
    %c15 = arith.constant 15 : index
    %c0_5 = arith.constant 0 : index
    %6 = vector.load %arg10[%c15, %c0_5] : memref<232x64xbf16, #tpu.memory_space<vmem>>, vector<180x64xbf16>
    %c0_6 = arith.constant 0 : index
    %c0_7 = arith.constant 0 : index
    %c0_8 = arith.constant 0 : index
    %7 = vector.load %arg2[%c0_6, %c0_7, %c0_8] : memref<27x64x64xbf16, #tpu.memory_space<vmem>>, vector<1x64x64xbf16>
    %8 = vector.shape_cast %7 : vector<1x64x64xbf16> to vector<64x64xbf16>
    %cst_9 = arith.constant dense<0.000000e+00> : vector<180x64xf32>
    %9 = tpu.matmul %6, %8, %cst_9 {dimension_numbers = #tpu.dot_dimension_numbers<[1], [0], [0], [1], [0, 0, 1, 1], [], []>} : vector<180x64xbf16>, vector<64x64xbf16>, vector<180x64xf32> -> vector<180x64xf32>
    %c16_10 = arith.constant 16 : index
    %c0_11 = arith.constant 0 : index
    %10 = vector.load %arg10[%c16_10, %c0_11] : memref<232x64xbf16, #tpu.memory_space<vmem>>, vector<180x64xbf16>
    %c1 = arith.constant 1 : index
    %c0_12 = arith.constant 0 : index
    %c0_13 = arith.constant 0 : index
    %11 = vector.load %arg2[%c1, %c0_12, %c0_13] : memref<27x64x64xbf16, #tpu.memory_space<vmem>>, vector<1x64x64xbf16>
    %12 = vector.shape_cast %11 : vector<1x64x64xbf16> to vector<64x64xbf16>
    %cst_14 = arith.constant dense<0.000000e+00> : vector<180x64xf32>
    %13 = tpu.matmul %10, %12, %cst_14 {dimension_numbers = #tpu.dot_dimension_numbers<[1], [0], [0], [1], [0, 0, 1, 1], [], []>} : vector<180x64xbf16>, vector<64x64xbf16>, vector<180x64xf32> -> vector<180x64xf32>
    %14 = arith.addf %9, %13 : vector<180x64xf32>
    %c17 = arith.constant 17 : index
    %c0_15 = arith.constant 0 : index
    %15 = vector.load %arg10[%c17, %c0_15] : memref<232x64xbf16, #tpu.memory_space<vmem>>, vector<180x64xbf16>
    %c2 = arith.constant 2 : index
    %c0_16 = arith.constant 0 : index
    %c0_17 = arith.constant 0 : index
    %16 = vector.load %arg2[%c2, %c0_16, %c0_17] : memref<27x64x64xbf16, #tpu.memory_space<vmem>>, vector<1x64x64xbf16>
    %17 = vector.shape_cast %16 : vector<1x64x64xbf16> to vector<64x64xbf16>
    %cst_18 = arith.constant dense<0.000000e+00> : vector<180x64xf32>
    %18 = tpu.matmul %15, %17, %cst_18 {dimension_numbers = #tpu.dot_dimension_numbers<[1], [0], [0], [1], [0, 0, 1, 1], [], []>} : vector<180x64xbf16>, vector<64x64xbf16>, vector<180x64xf32> -> vector<180x64xf32>
    %19 = arith.addf %14, %18 : vector<180x64xf32>
    %c25 = arith.constant 25 : index
    %c0_19 = arith.constant 0 : index
    %20 = vector.load %arg10[%c25, %c0_19] : memref<232x64xbf16, #tpu.memory_space<vmem>>, vector<180x64xbf16>
    %c3 = arith.constant 3 : index
    %c0_20 = arith.constant 0 : index
    %c0_21 = arith.constant 0 : index
    %21 = vector.load %arg2[%c3, %c0_20, %c0_21] : memref<27x64x64xbf16, #tpu.memory_space<vmem>>, vector<1x64x64xbf16>
    %22 = vector.shape_cast %21 : vector<1x64x64xbf16> to vector<64x64xbf16>
    %cst_22 = arith.constant dense<0.000000e+00> : vector<180x64xf32>
    %23 = tpu.matmul %20, %22, %cst_22 {dimension_numbers = #tpu.dot_dimension_numbers<[1], [0], [0], [1], [0, 0, 1, 1], [], []>} : vector<180x64xbf16>, vector<64x64xbf16>, vector<180x64xf32> -> vector<180x64xf32>
    %24 = arith.addf %19, %23 : vector<180x64xf32>
    %c26 = arith.constant 26 : index
    %c0_23 = arith.constant 0 : index
    %25 = vector.load %arg10[%c26, %c0_23] : memref<232x64xbf16, #tpu.memory_space<vmem>>, vector<180x64xbf16>
    %c4 = arith.constant 4 : index
    %c0_24 = arith.constant 0 : index
    %c0_25 = arith.constant 0 : index
    %26 = vector.load %arg2[%c4, %c0_24, %c0_25] : memref<27x64x64xbf16, #tpu.memory_space<vmem>>, vector<1x64x64xbf16>
    %27 = vector.shape_cast %26 : vector<1x64x64xbf16> to vector<64x64xbf16>
    %cst_26 = arith.constant dense<0.000000e+00> : vector<180x64xf32>
    %28 = tpu.matmul %25, %27, %cst_26 {dimension_numbers = #tpu.dot_dimension_numbers<[1], [0], [0], [1], [0, 0, 1, 1], [], []>} : vector<180x64xbf16>, vector<64x64xbf16>, vector<180x64xf32> -> vector<180x64xf32>
    %29 = arith.addf %24, %28 : vector<180x64xf32>
    %c27 = arith.constant 27 : index
    %c0_27 = arith.constant 0 : index
    %30 = vector.load %arg10[%c27, %c0_27] : memref<232x64xbf16, #tpu.memory_space<vmem>>, vector<180x64xbf16>
    %c5 = arith.constant 5 : index
    %c0_28 = arith.constant 0 : index
    %c0_29 = arith.constant 0 : index
    %31 = vector.load %arg2[%c5, %c0_28, %c0_29] : memref<27x64x64xbf16, #tpu.memory_space<vmem>>, vector<1x64x64xbf16>
    %32 = vector.shape_cast %31 : vector<1x64x64xbf16> to vector<64x64xbf16>
    %cst_30 = arith.constant dense<0.000000e+00> : vector<180x64xf32>
    %33 = tpu.matmul %30, %32, %cst_30 {dimension_numbers = #tpu.dot_dimension_numbers<[1], [0], [0], [1], [0, 0, 1, 1], [], []>} : vector<180x64xbf16>, vector<64x64xbf16>, vector<180x64xf32> -> vector<180x64xf32>
    %34 = arith.addf %29, %33 : vector<180x64xf32>
    %c35 = arith.constant 35 : index
    %c0_31 = arith.constant 0 : index
    %35 = vector.load %arg10[%c35, %c0_31] : memref<232x64xbf16, #tpu.memory_space<vmem>>, vector<180x64xbf16>
    %c6 = arith.constant 6 : index
    %c0_32 = arith.constant 0 : index
    %c0_33 = arith.constant 0 : index
    %36 = vector.load %arg2[%c6, %c0_32, %c0_33] : memref<27x64x64xbf16, #tpu.memory_space<vmem>>, vector<1x64x64xbf16>
    %37 = vector.shape_cast %36 : vector<1x64x64xbf16> to vector<64x64xbf16>
    %cst_34 = arith.constant dense<0.000000e+00> : vector<180x64xf32>
    %38 = tpu.matmul %35, %37, %cst_34 {dimension_numbers = #tpu.dot_dimension_numbers<[1], [0], [0], [1], [0, 0, 1, 1], [], []>} : vector<180x64xbf16>, vector<64x64xbf16>, vector<180x64xf32> -> vector<180x64xf32>
    %39 = arith.addf %34, %38 : vector<180x64xf32>
    %c36 = arith.constant 36 : index
    %c0_35 = arith.constant 0 : index
    %40 = vector.load %arg10[%c36, %c0_35] : memref<232x64xbf16, #tpu.memory_space<vmem>>, vector<180x64xbf16>
    %c7 = arith.constant 7 : index
    %c0_36 = arith.constant 0 : index
    %c0_37 = arith.constant 0 : index
    %41 = vector.load %arg2[%c7, %c0_36, %c0_37] : memref<27x64x64xbf16, #tpu.memory_space<vmem>>, vector<1x64x64xbf16>
    %42 = vector.shape_cast %41 : vector<1x64x64xbf16> to vector<64x64xbf16>
    %cst_38 = arith.constant dense<0.000000e+00> : vector<180x64xf32>
    %43 = tpu.matmul %40, %42, %cst_38 {dimension_numbers = #tpu.dot_dimension_numbers<[1], [0], [0], [1], [0, 0, 1, 1], [], []>} : vector<180x64xbf16>, vector<64x64xbf16>, vector<180x64xf32> -> vector<180x64xf32>
    %44 = arith.addf %39, %43 : vector<180x64xf32>
    %c37 = arith.constant 37 : index
    %c0_39 = arith.constant 0 : index
    %45 = vector.load %arg10[%c37, %c0_39] : memref<232x64xbf16, #tpu.memory_space<vmem>>, vector<180x64xbf16>
    %c8 = arith.constant 8 : index
    %c0_40 = arith.constant 0 : index
    %c0_41 = arith.constant 0 : index
    %46 = vector.load %arg2[%c8, %c0_40, %c0_41] : memref<27x64x64xbf16, #tpu.memory_space<vmem>>, vector<1x64x64xbf16>
    %47 = vector.shape_cast %46 : vector<1x64x64xbf16> to vector<64x64xbf16>
    %cst_42 = arith.constant dense<0.000000e+00> : vector<180x64xf32>
    %48 = tpu.matmul %45, %47, %cst_42 {dimension_numbers = #tpu.dot_dimension_numbers<[1], [0], [0], [1], [0, 0, 1, 1], [], []>} : vector<180x64xbf16>, vector<64x64xbf16>, vector<180x64xf32> -> vector<180x64xf32>
    %49 = arith.addf %44, %48 : vector<180x64xf32>
    %c0_43 = arith.constant 0 : index
    %c0_44 = arith.constant 0 : index
    %c0_45 = arith.constant 0 : index
    %50 = vector.load %arg3[%c0_43, %c0_44, %c0_45] : memref<3x1x64xf32, #tpu.memory_space<vmem>>, vector<1x1x64xf32>
    %51 = vector.shape_cast %50 : vector<1x1x64xf32> to vector<1x64xf32>
    %52 = vector.broadcast %51 : vector<1x64xf32> to vector<180x64xf32>
    %53 = arith.mulf %49, %52 : vector<180x64xf32>
    %c0_46 = arith.constant 0 : index
    %c0_47 = arith.constant 0 : index
    %c0_48 = arith.constant 0 : index
    %54 = vector.load %arg4[%c0_46, %c0_47, %c0_48] : memref<3x1x64xf32, #tpu.memory_space<vmem>>, vector<1x1x64xf32>
    %55 = vector.shape_cast %54 : vector<1x1x64xf32> to vector<1x64xf32>
    %56 = vector.broadcast %55 : vector<1x64xf32> to vector<180x64xf32>
    %57 = arith.addf %53, %56 : vector<180x64xf32>
    %cst_49 = arith.constant 0.000000e+00 : f32
    %58 = vector.broadcast %cst_49 : f32 to vector<180x64xf32>
    %59 = arith.cmpf ogt, %57, %58 : vector<180x64xf32>
    %cst_50 = arith.constant 1.000000e-01 : f32
    %60 = vector.broadcast %cst_50 : f32 to vector<180x64xf32>
    %61 = arith.mulf %60, %57 : vector<180x64xf32>
    %62 = arith.select %59, %57, %61 : vector<180x64xi1>, vector<180x64xf32>
    %cst_51 = arith.constant 0.000000e+00 : f32
    %63 = vector.shape_cast %5 : vector<180x1xi1> to vector<180x1xi1>
    %64 = vector.broadcast %63 : vector<180x1xi1> to vector<180x64xi1>
    %65 = vector.broadcast %cst_51 : f32 to vector<180x64xf32>
    %66 = arith.select %64, %62, %65 : vector<180x64xi1>, vector<180x64xf32>
    %67 = arith.truncf %66 : vector<180x64xf32> to vector<180x64xbf16>
    %c26_52 = arith.constant 26 : index
    %c0_53 = arith.constant 0 : index
    %68 = vector.load %arg10[%c26_52, %c0_53] : memref<232x64xbf16, #tpu.memory_space<vmem>>, vector<180x64xbf16>
    tpu.vector_store %arg10[%c26_52, %c0_53], %67 {strides = array<i32>} : memref<232x64xbf16, #tpu.memory_space<vmem>>, vector<180x64xbf16>,
    %c15_54 = arith.constant 15 : index
    %c0_55 = arith.constant 0 : index
    %69 = vector.load %arg10[%c15_54, %c0_55] : memref<232x64xbf16, #tpu.memory_space<vmem>>, vector<180x64xbf16>
    %c9 = arith.constant 9 : index
    %c0_56 = arith.constant 0 : index
    %c0_57 = arith.constant 0 : index
    %70 = vector.load %arg2[%c9, %c0_56, %c0_57] : memref<27x64x64xbf16, #tpu.memory_space<vmem>>, vector<1x64x64xbf16>
    %71 = vector.shape_cast %70 : vector<1x64x64xbf16> to vector<64x64xbf16>
    %cst_58 = arith.constant dense<0.000000e+00> : vector<180x64xf32>
    %72 = tpu.matmul %69, %71, %cst_58 {dimension_numbers = #tpu.dot_dimension_numbers<[1], [0], [0], [1], [0, 0, 1, 1], [], []>} : vector<180x64xbf16>, vector<64x64xbf16>, vector<180x64xf32> -> vector<180x64xf32>
    %c16_59 = arith.constant 16 : index
    %c0_60 = arith.constant 0 : index
    %73 = vector.load %arg10[%c16_59, %c0_60] : memref<232x64xbf16, #tpu.memory_space<vmem>>, vector<180x64xbf16>
    %c10 = arith.constant 10 : index
    %c0_61 = arith.constant 0 : index
    %c0_62 = arith.constant 0 : index
    %74 = vector.load %arg2[%c10, %c0_61, %c0_62] : memref<27x64x64xbf16, #tpu.memory_space<vmem>>, vector<1x64x64xbf16>
    %75 = vector.shape_cast %74 : vector<1x64x64xbf16> to vector<64x64xbf16>
    %cst_63 = arith.constant dense<0.000000e+00> : vector<180x64xf32>
    %76 = tpu.matmul %73, %75, %cst_63 {dimension_numbers = #tpu.dot_dimension_numbers<[1], [0], [0], [1], [0, 0, 1, 1], [], []>} : vector<180x64xbf16>, vector<64x64xbf16>, vector<180x64xf32> -> vector<180x64xf32>
    %77 = arith.addf %72, %76 : vector<180x64xf32>
    %c17_64 = arith.constant 17 : index
    %c0_65 = arith.constant 0 : index
    %78 = vector.load %arg10[%c17_64, %c0_65] : memref<232x64xbf16, #tpu.memory_space<vmem>>, vector<180x64xbf16>
    %c11 = arith.constant 11 : index
    %c0_66 = arith.constant 0 : index
    %c0_67 = arith.constant 0 : index
    %79 = vector.load %arg2[%c11, %c0_66, %c0_67] : memref<27x64x64xbf16, #tpu.memory_space<vmem>>, vector<1x64x64xbf16>
    %80 = vector.shape_cast %79 : vector<1x64x64xbf16> to vector<64x64xbf16>
    %cst_68 = arith.constant dense<0.000000e+00> : vector<180x64xf32>
    %81 = tpu.matmul %78, %80, %cst_68 {dimension_numbers = #tpu.dot_dimension_numbers<[1], [0], [0], [1], [0, 0, 1, 1], [], []>} : vector<180x64xbf16>, vector<64x64xbf16>, vector<180x64xf32> -> vector<180x64xf32>
    %82 = arith.addf %77, %81 : vector<180x64xf32>
    %c25_69 = arith.constant 25 : index
    %c0_70 = arith.constant 0 : index
    %83 = vector.load %arg10[%c25_69, %c0_70] : memref<232x64xbf16, #tpu.memory_space<vmem>>, vector<180x64xbf16>
    %c12 = arith.constant 12 : index
    %c0_71 = arith.constant 0 : index
    %c0_72 = arith.constant 0 : index
    %84 = vector.load %arg2[%c12, %c0_71, %c0_72] : memref<27x64x64xbf16, #tpu.memory_space<vmem>>, vector<1x64x64xbf16>
    %85 = vector.shape_cast %84 : vector<1x64x64xbf16> to vector<64x64xbf16>
    %cst_73 = arith.constant dense<0.000000e+00> : vector<180x64xf32>
    %86 = tpu.matmul %83, %85, %cst_73 {dimension_numbers = #tpu.dot_dimension_numbers<[1], [0], [0], [1], [0, 0, 1, 1], [], []>} : vector<180x64xbf16>, vector<64x64xbf16>, vector<180x64xf32> -> vector<180x64xf32>
    %87 = arith.addf %82, %86 : vector<180x64xf32>
    %c26_74 = arith.constant 26 : index
    %c0_75 = arith.constant 0 : index
    %88 = vector.load %arg10[%c26_74, %c0_75] : memref<232x64xbf16, #tpu.memory_space<vmem>>, vector<180x64xbf16>
    %c13 = arith.constant 13 : index
    %c0_76 = arith.constant 0 : index
    %c0_77 = arith.constant 0 : index
    %89 = vector.load %arg2[%c13, %c0_76, %c0_77] : memref<27x64x64xbf16, #tpu.memory_space<vmem>>, vector<1x64x64xbf16>
    %90 = vector.shape_cast %89 : vector<1x64x64xbf16> to vector<64x64xbf16>
    %cst_78 = arith.constant dense<0.000000e+00> : vector<180x64xf32>
    %91 = tpu.matmul %88, %90, %cst_78 {dimension_numbers = #tpu.dot_dimension_numbers<[1], [0], [0], [1], [0, 0, 1, 1], [], []>} : vector<180x64xbf16>, vector<64x64xbf16>, vector<180x64xf32> -> vector<180x64xf32>
    %92 = arith.addf %87, %91 : vector<180x64xf32>
    %c27_79 = arith.constant 27 : index
    %c0_80 = arith.constant 0 : index
    %93 = vector.load %arg10[%c27_79, %c0_80] : memref<232x64xbf16, #tpu.memory_space<vmem>>, vector<180x64xbf16>
    %c14 = arith.constant 14 : index
    %c0_81 = arith.constant 0 : index
    %c0_82 = arith.constant 0 : index
    %94 = vector.load %arg2[%c14, %c0_81, %c0_82] : memref<27x64x64xbf16, #tpu.memory_space<vmem>>, vector<1x64x64xbf16>
    %95 = vector.shape_cast %94 : vector<1x64x64xbf16> to vector<64x64xbf16>
    %cst_83 = arith.constant dense<0.000000e+00> : vector<180x64xf32>
    %96 = tpu.matmul %93, %95, %cst_83 {dimension_numbers = #tpu.dot_dimension_numbers<[1], [0], [0], [1], [0, 0, 1, 1], [], []>} : vector<180x64xbf16>, vector<64x64xbf16>, vector<180x64xf32> -> vector<180x64xf32>
    %97 = arith.addf %92, %96 : vector<180x64xf32>
    %c35_84 = arith.constant 35 : index
    %c0_85 = arith.constant 0 : index
    %98 = vector.load %arg10[%c35_84, %c0_85] : memref<232x64xbf16, #tpu.memory_space<vmem>>, vector<180x64xbf16>
    %c15_86 = arith.constant 15 : index
    %c0_87 = arith.constant 0 : index
    %c0_88 = arith.constant 0 : index
    %99 = vector.load %arg2[%c15_86, %c0_87, %c0_88] : memref<27x64x64xbf16, #tpu.memory_space<vmem>>, vector<1x64x64xbf16>
    %100 = vector.shape_cast %99 : vector<1x64x64xbf16> to vector<64x64xbf16>
    %cst_89 = arith.constant dense<0.000000e+00> : vector<180x64xf32>
    %101 = tpu.matmul %98, %100, %cst_89 {dimension_numbers = #tpu.dot_dimension_numbers<[1], [0], [0], [1], [0, 0, 1, 1], [], []>} : vector<180x64xbf16>, vector<64x64xbf16>, vector<180x64xf32> -> vector<180x64xf32>
    %102 = arith.addf %97, %101 : vector<180x64xf32>
    %c36_90 = arith.constant 36 : index
    %c0_91 = arith.constant 0 : index
    %103 = vector.load %arg10[%c36_90, %c0_91] : memref<232x64xbf16, #tpu.memory_space<vmem>>, vector<180x64xbf16>
    %c16_92 = arith.constant 16 : index
    %c0_93 = arith.constant 0 : index
    %c0_94 = arith.constant 0 : index
    %104 = vector.load %arg2[%c16_92, %c0_93, %c0_94] : memref<27x64x64xbf16, #tpu.memory_space<vmem>>, vector<1x64x64xbf16>
    %105 = vector.shape_cast %104 : vector<1x64x64xbf16> to vector<64x64xbf16>
    %cst_95 = arith.constant dense<0.000000e+00> : vector<180x64xf32>
    %106 = tpu.matmul %103, %105, %cst_95 {dimension_numbers = #tpu.dot_dimension_numbers<[1], [0], [0], [1], [0, 0, 1, 1], [], []>} : vector<180x64xbf16>, vector<64x64xbf16>, vector<180x64xf32> -> vector<180x64xf32>
    %107 = arith.addf %102, %106 : vector<180x64xf32>
    %c37_96 = arith.constant 37 : index
    %c0_97 = arith.constant 0 : index
    %108 = vector.load %arg10[%c37_96, %c0_97] : memref<232x64xbf16, #tpu.memory_space<vmem>>, vector<180x64xbf16>
    %c17_98 = arith.constant 17 : index
    %c0_99 = arith.constant 0 : index
    %c0_100 = arith.constant 0 : index
    %109 = vector.load %arg2[%c17_98, %c0_99, %c0_100] : memref<27x64x64xbf16, #tpu.memory_space<vmem>>, vector<1x64x64xbf16>
    %110 = vector.shape_cast %109 : vector<1x64x64xbf16> to vector<64x64xbf16>
    %cst_101 = arith.constant dense<0.000000e+00> : vector<180x64xf32>
    %111 = tpu.matmul %108, %110, %cst_101 {dimension_numbers = #tpu.dot_dimension_numbers<[1], [0], [0], [1], [0, 0, 1, 1], [], []>} : vector<180x64xbf16>, vector<64x64xbf16>, vector<180x64xf32> -> vector<180x64xf32>
    %112 = arith.addf %107, %111 : vector<180x64xf32>
    %c1_102 = arith.constant 1 : index
    %c0_103 = arith.constant 0 : index
    %c0_104 = arith.constant 0 : index
    %113 = vector.load %arg3[%c1_102, %c0_103, %c0_104] : memref<3x1x64xf32, #tpu.memory_space<vmem>>, vector<1x1x64xf32>
    %114 = vector.shape_cast %113 : vector<1x1x64xf32> to vector<1x64xf32>
    %115 = vector.broadcast %114 : vector<1x64xf32> to vector<180x64xf32>
    %116 = arith.mulf %112, %115 : vector<180x64xf32>
    %c1_105 = arith.constant 1 : index
    %c0_106 = arith.constant 0 : index
    %c0_107 = arith.constant 0 : index
    %117 = vector.load %arg4[%c1_105, %c0_106, %c0_107] : memref<3x1x64xf32, #tpu.memory_space<vmem>>, vector<1x1x64xf32>
    %118 = vector.shape_cast %117 : vector<1x1x64xf32> to vector<1x64xf32>
    %119 = vector.broadcast %118 : vector<1x64xf32> to vector<180x64xf32>
    %120 = arith.addf %116, %119 : vector<180x64xf32>
    %cst_108 = arith.constant 0.000000e+00 : f32
    %121 = vector.broadcast %cst_108 : f32 to vector<180x64xf32>
    %122 = arith.cmpf ogt, %120, %121 : vector<180x64xf32>
    %cst_109 = arith.constant 1.000000e-01 : f32
    %123 = vector.broadcast %cst_109 : f32 to vector<180x64xf32>
    %124 = arith.mulf %123, %120 : vector<180x64xf32>
    %125 = arith.select %122, %120, %124 : vector<180x64xi1>, vector<180x64xf32>
    %cst_110 = arith.constant 0.000000e+00 : f32
    %126 = vector.shape_cast %5 : vector<180x1xi1> to vector<180x1xi1>
    %127 = vector.broadcast %126 : vector<180x1xi1> to vector<180x64xi1>
    %128 = vector.broadcast %cst_110 : f32 to vector<180x64xf32>
    %129 = arith.select %127, %125, %128 : vector<180x64xi1>, vector<180x64xf32>
    %130 = arith.truncf %129 : vector<180x64xf32> to vector<180x64xbf16>
    %c26_111 = arith.constant 26 : index
    %c0_112 = arith.constant 0 : index
    %131 = vector.load %arg10[%c26_111, %c0_112] : memref<232x64xbf16, #tpu.memory_space<vmem>>, vector<180x64xbf16>
    tpu.vector_store %arg10[%c26_111, %c0_112], %130 {strides = array<i32>} : memref<232x64xbf16, #tpu.memory_space<vmem>>, vector<180x64xbf16>,
    %c15_113 = arith.constant 15 : index
    %c0_114 = arith.constant 0 : index
    %132 = vector.load %arg10[%c15_113, %c0_114] : memref<232x64xbf16, #tpu.memory_space<vmem>>, vector<180x64xbf16>
    %c18 = arith.constant 18 : index
    %c0_115 = arith.constant 0 : index
    %c0_116 = arith.constant 0 : index
    %133 = vector.load %arg2[%c18, %c0_115, %c0_116] : memref<27x64x64xbf16, #tpu.memory_space<vmem>>, vector<1x64x64xbf16>
    %134 = vector.shape_cast %133 : vector<1x64x64xbf16> to vector<64x64xbf16>
    %cst_117 = arith.constant dense<0.000000e+00> : vector<180x64xf32>
    %135 = tpu.matmul %132, %134, %cst_117 {dimension_numbers = #tpu.dot_dimension_numbers<[1], [0], [0], [1], [0, 0, 1, 1], [], []>} : vector<180x64xbf16>, vector<64x64xbf16>, vector<180x64xf32> -> vector<180x64xf32>
    %c16_118 = arith.constant 16 : index
    %c0_119 = arith.constant 0 : index
    %136 = vector.load %arg10[%c16_118, %c0_119] : memref<232x64xbf16, #tpu.memory_space<vmem>>, vector<180x64xbf16>
    %c19 = arith.constant 19 : index
    %c0_120 = arith.constant 0 : index
    %c0_121 = arith.constant 0 : index
    %137 = vector.load %arg2[%c19, %c0_120, %c0_121] : memref<27x64x64xbf16, #tpu.memory_space<vmem>>, vector<1x64x64xbf16>
    %138 = vector.shape_cast %137 : vector<1x64x64xbf16> to vector<64x64xbf16>
    %cst_122 = arith.constant dense<0.000000e+00> : vector<180x64xf32>
    %139 = tpu.matmul %136, %138, %cst_122 {dimension_numbers = #tpu.dot_dimension_numbers<[1], [0], [0], [1], [0, 0, 1, 1], [], []>} : vector<180x64xbf16>, vector<64x64xbf16>, vector<180x64xf32> -> vector<180x64xf32>
    %140 = arith.addf %135, %139 : vector<180x64xf32>
    %c17_123 = arith.constant 17 : index
    %c0_124 = arith.constant 0 : index
    %141 = vector.load %arg10[%c17_123, %c0_124] : memref<232x64xbf16, #tpu.memory_space<vmem>>, vector<180x64xbf16>
    %c20 = arith.constant 20 : index
    %c0_125 = arith.constant 0 : index
    %c0_126 = arith.constant 0 : index
    %142 = vector.load %arg2[%c20, %c0_125, %c0_126] : memref<27x64x64xbf16, #tpu.memory_space<vmem>>, vector<1x64x64xbf16>
    %143 = vector.shape_cast %142 : vector<1x64x64xbf16> to vector<64x64xbf16>
    %cst_127 = arith.constant dense<0.000000e+00> : vector<180x64xf32>
    %144 = tpu.matmul %141, %143, %cst_127 {dimension_numbers = #tpu.dot_dimension_numbers<[1], [0], [0], [1], [0, 0, 1, 1], [], []>} : vector<180x64xbf16>, vector<64x64xbf16>, vector<180x64xf32> -> vector<180x64xf32>
    %145 = arith.addf %140, %144 : vector<180x64xf32>
    %c25_128 = arith.constant 25 : index
    %c0_129 = arith.constant 0 : index
    %146 = vector.load %arg10[%c25_128, %c0_129] : memref<232x64xbf16, #tpu.memory_space<vmem>>, vector<180x64xbf16>
    %c21 = arith.constant 21 : index
    %c0_130 = arith.constant 0 : index
    %c0_131 = arith.constant 0 : index
    %147 = vector.load %arg2[%c21, %c0_130, %c0_131] : memref<27x64x64xbf16, #tpu.memory_space<vmem>>, vector<1x64x64xbf16>
    %148 = vector.shape_cast %147 : vector<1x64x64xbf16> to vector<64x64xbf16>
    %cst_132 = arith.constant dense<0.000000e+00> : vector<180x64xf32>
    %149 = tpu.matmul %146, %148, %cst_132 {dimension_numbers = #tpu.dot_dimension_numbers<[1], [0], [0], [1], [0, 0, 1, 1], [], []>} : vector<180x64xbf16>, vector<64x64xbf16>, vector<180x64xf32> -> vector<180x64xf32>
    %150 = arith.addf %145, %149 : vector<180x64xf32>
    %c26_133 = arith.constant 26 : index
    %c0_134 = arith.constant 0 : index
    %151 = vector.load %arg10[%c26_133, %c0_134] : memref<232x64xbf16, #tpu.memory_space<vmem>>, vector<180x64xbf16>
    %c22 = arith.constant 22 : index
    %c0_135 = arith.constant 0 : index
    %c0_136 = arith.constant 0 : index
    %152 = vector.load %arg2[%c22, %c0_135, %c0_136] : memref<27x64x64xbf16, #tpu.memory_space<vmem>>, vector<1x64x64xbf16>
    %153 = vector.shape_cast %152 : vector<1x64x64xbf16> to vector<64x64xbf16>
    %cst_137 = arith.constant dense<0.000000e+00> : vector<180x64xf32>
    %154 = tpu.matmul %151, %153, %cst_137 {dimension_numbers = #tpu.dot_dimension_numbers<[1], [0], [0], [1], [0, 0, 1, 1], [], []>} : vector<180x64xbf16>, vector<64x64xbf16>, vector<180x64xf32> -> vector<180x64xf32>
    %155 = arith.addf %150, %154 : vector<180x64xf32>
    %c27_138 = arith.constant 27 : index
    %c0_139 = arith.constant 0 : index
    %156 = vector.load %arg10[%c27_138, %c0_139] : memref<232x64xbf16, #tpu.memory_space<vmem>>, vector<180x64xbf16>
    %c23 = arith.constant 23 : index
    %c0_140 = arith.constant 0 : index
    %c0_141 = arith.constant 0 : index
    %157 = vector.load %arg2[%c23, %c0_140, %c0_141] : memref<27x64x64xbf16, #tpu.memory_space<vmem>>, vector<1x64x64xbf16>
    %158 = vector.shape_cast %157 : vector<1x64x64xbf16> to vector<64x64xbf16>
    %cst_142 = arith.constant dense<0.000000e+00> : vector<180x64xf32>
    %159 = tpu.matmul %156, %158, %cst_142 {dimension_numbers = #tpu.dot_dimension_numbers<[1], [0], [0], [1], [0, 0, 1, 1], [], []>} : vector<180x64xbf16>, vector<64x64xbf16>, vector<180x64xf32> -> vector<180x64xf32>
    %160 = arith.addf %155, %159 : vector<180x64xf32>
    %c35_143 = arith.constant 35 : index
    %c0_144 = arith.constant 0 : index
    %161 = vector.load %arg10[%c35_143, %c0_144] : memref<232x64xbf16, #tpu.memory_space<vmem>>, vector<180x64xbf16>
    %c24 = arith.constant 24 : index
    %c0_145 = arith.constant 0 : index
    %c0_146 = arith.constant 0 : index
    %162 = vector.load %arg2[%c24, %c0_145, %c0_146] : memref<27x64x64xbf16, #tpu.memory_space<vmem>>, vector<1x64x64xbf16>
    %163 = vector.shape_cast %162 : vector<1x64x64xbf16> to vector<64x64xbf16>
    %cst_147 = arith.constant dense<0.000000e+00> : vector<180x64xf32>
    %164 = tpu.matmul %161, %163, %cst_147 {dimension_numbers = #tpu.dot_dimension_numbers<[1], [0], [0], [1], [0, 0, 1, 1], [], []>} : vector<180x64xbf16>, vector<64x64xbf16>, vector<180x64xf32> -> vector<180x64xf32>
    %165 = arith.addf %160, %164 : vector<180x64xf32>
    %c36_148 = arith.constant 36 : index
    %c0_149 = arith.constant 0 : index
    %166 = vector.load %arg10[%c36_148, %c0_149] : memref<232x64xbf16, #tpu.memory_space<vmem>>, vector<180x64xbf16>
    %c25_150 = arith.constant 25 : index
    %c0_151 = arith.constant 0 : index
    %c0_152 = arith.constant 0 : index
    %167 = vector.load %arg2[%c25_150, %c0_151, %c0_152] : memref<27x64x64xbf16, #tpu.memory_space<vmem>>, vector<1x64x64xbf16>
    %168 = vector.shape_cast %167 : vector<1x64x64xbf16> to vector<64x64xbf16>
    %cst_153 = arith.constant dense<0.000000e+00> : vector<180x64xf32>
    %169 = tpu.matmul %166, %168, %cst_153 {dimension_numbers = #tpu.dot_dimension_numbers<[1], [0], [0], [1], [0, 0, 1, 1], [], []>} : vector<180x64xbf16>, vector<64x64xbf16>, vector<180x64xf32> -> vector<180x64xf32>
    %170 = arith.addf %165, %169 : vector<180x64xf32>
    %c37_154 = arith.constant 37 : index
    %c0_155 = arith.constant 0 : index
    %171 = vector.load %arg10[%c37_154, %c0_155] : memref<232x64xbf16, #tpu.memory_space<vmem>>, vector<180x64xbf16>
    %c26_156 = arith.constant 26 : index
    %c0_157 = arith.constant 0 : index
    %c0_158 = arith.constant 0 : index
    %172 = vector.load %arg2[%c26_156, %c0_157, %c0_158] : memref<27x64x64xbf16, #tpu.memory_space<vmem>>, vector<1x64x64xbf16>
    %173 = vector.shape_cast %172 : vector<1x64x64xbf16> to vector<64x64xbf16>
    %cst_159 = arith.constant dense<0.000000e+00> : vector<180x64xf32>
    %174 = tpu.matmul %171, %173, %cst_159 {dimension_numbers = #tpu.dot_dimension_numbers<[1], [0], [0], [1], [0, 0, 1, 1], [], []>} : vector<180x64xbf16>, vector<64x64xbf16>, vector<180x64xf32> -> vector<180x64xf32>
    %175 = arith.addf %170, %174 : vector<180x64xf32>
    %c2_160 = arith.constant 2 : index
    %c0_161 = arith.constant 0 : index
    %c0_162 = arith.constant 0 : index
    %176 = vector.load %arg3[%c2_160, %c0_161, %c0_162] : memref<3x1x64xf32, #tpu.memory_space<vmem>>, vector<1x1x64xf32>
    %177 = vector.shape_cast %176 : vector<1x1x64xf32> to vector<1x64xf32>
    %178 = vector.broadcast %177 : vector<1x64xf32> to vector<180x64xf32>
    %179 = arith.mulf %175, %178 : vector<180x64xf32>
    %c2_163 = arith.constant 2 : index
    %c0_164 = arith.constant 0 : index
    %c0_165 = arith.constant 0 : index
    %180 = vector.load %arg4[%c2_163, %c0_164, %c0_165] : memref<3x1x64xf32, #tpu.memory_space<vmem>>, vector<1x1x64xf32>
    %181 = vector.shape_cast %180 : vector<1x1x64xf32> to vector<1x64xf32>
    %182 = vector.broadcast %181 : vector<1x64xf32> to vector<180x64xf32>
    %183 = arith.addf %179, %182 : vector<180x64xf32>
    %cst_166 = arith.constant 0.000000e+00 : f32
    %184 = vector.broadcast %cst_166 : f32 to vector<180x64xf32>
    %185 = arith.cmpf ogt, %183, %184 : vector<180x64xf32>
    %cst_167 = arith.constant 1.000000e-01 : f32
    %186 = vector.broadcast %cst_167 : f32 to vector<180x64xf32>
    %187 = arith.mulf %186, %183 : vector<180x64xf32>
    %188 = arith.select %185, %183, %187 : vector<180x64xi1>, vector<180x64xf32>
    %cst_168 = arith.constant 0.000000e+00 : f32
    %189 = vector.shape_cast %5 : vector<180x1xi1> to vector<180x1xi1>
    %190 = vector.broadcast %189 : vector<180x1xi1> to vector<180x64xi1>
    %191 = vector.broadcast %cst_168 : f32 to vector<180x64xf32>
    %192 = arith.select %190, %188, %191 : vector<180x64xi1>, vector<180x64xf32>
    %193 = arith.truncf %192 : vector<180x64xf32> to vector<180x64xbf16>
    %c26_169 = arith.constant 26 : index
    %c0_170 = arith.constant 0 : index
    %194 = vector.load %arg10[%c26_169, %c0_170] : memref<232x64xbf16, #tpu.memory_space<vmem>>, vector<180x64xbf16>
    tpu.vector_store %arg10[%c26_169, %c0_170], %193 {strides = array<i32>} : memref<232x64xbf16, #tpu.memory_space<vmem>>, vector<180x64xbf16>,
    %c16_171 = arith.constant 16 : index
    %c0_172 = arith.constant 0 : index
    %195 = vector.load %arg10[%c16_171, %c0_172] : memref<232x64xbf16, #tpu.memory_space<vmem>>, vector<200x64xbf16>
    %196 = arith.extf %195 : vector<200x64xbf16> to vector<200x64xf32>
    %c0_173 = arith.constant 0 : index
    %c0_174 = arith.constant 0 : index
    %197 = vector.load %arg6[%c0_173, %c0_174] : memref<2x200xf32, #tpu.memory_space<vmem>>, vector<2x200xf32>
    %cst_175 = arith.constant dense<0.000000e+00> : vector<2x64xf32>
    %198 = tpu.matmul %197, %196, %cst_175 {dimension_numbers = #tpu.dot_dimension_numbers<[1], [0], [0], [1], [0, 0, 1, 1], [], []>} : vector<2x200xf32>, vector<200x64xf32>, vector<2x64xf32> -> vector<2x64xf32>
    %c0_176 = arith.constant 0 : index
    %c0_177 = arith.constant 0 : index
    %199 = vector.load %arg7[%c0_176, %c0_177] : memref<64x128xf32, #tpu.memory_space<vmem>>, vector<64x128xf32>
    %cst_178 = arith.constant dense<0.000000e+00> : vector<2x128xf32>
    %200 = tpu.matmul %198, %199, %cst_178 {dimension_numbers = #tpu.dot_dimension_numbers<[1], [0], [0], [1], [0, 0, 1, 1], [], []>} : vector<2x64xf32>, vector<64x128xf32>, vector<2x128xf32> -> vector<2x128xf32>
    %c0_179 = arith.constant 0 : index
    %c0_180 = arith.constant 0 : index
    %201 = vector.load %arg8[%c0_179, %c0_180] : memref<1x128xf32, #tpu.memory_space<vmem>>, vector<1x128xf32>
    %202 = vector.broadcast %201 : vector<1x128xf32> to vector<2x128xf32>
    %203 = arith.addf %200, %202 : vector<2x128xf32>
    %c0_181 = arith.constant 0 : index
    %c0_182 = arith.constant 0 : index
    %c0_183 = arith.constant 0 : index
    %204 = vector.load %arg9[%c0_181, %c0_182, %c0_183] : memref<1x2x128xf32, #tpu.memory_space<vmem>>, vector<1x2x128xf32>
    %205 = vector.shape_cast %204 : vector<1x2x128xf32> to vector<2x128xf32>
    %206 = vector.shape_cast %203 : vector<2x128xf32> to vector<1x2x128xf32>
    tpu.vector_store %arg9[%c0_181, %c0_182, %c0_183], %206 {strides = array<i32>} : memref<1x2x128xf32, #tpu.memory_space<vmem>>, vector<1x2x128xf32>,
    return
  }
  func.func @transform_0(%arg0: i32) -> (i32, i32, i32) {
    %c0_i32 = arith.constant 0 : i32
    %c0_i32_0 = arith.constant 0 : i32
    %c0_i32_1 = arith.constant 0 : i32
    return %arg0, %c0_i32, %c0_i32_0 : i32, i32, i32
  }
  func.func @transform_1(%arg0: i32) -> (i32, i32, i32) {
    %c0_i32 = arith.constant 0 : i32
    %c0_i32_0 = arith.constant 0 : i32
    %c0_i32_1 = arith.constant 0 : i32
    %c0_i32_2 = arith.constant 0 : i32
    return %c0_i32, %c0_i32_0, %c0_i32_1 : i32, i32, i32
  }
  func.func @transform_2(%arg0: i32) -> (i32, i32, i32) {
    %c0_i32 = arith.constant 0 : i32
    %c0_i32_0 = arith.constant 0 : i32
    %c0_i32_1 = arith.constant 0 : i32
    %c0_i32_2 = arith.constant 0 : i32
    return %c0_i32, %c0_i32_0, %c0_i32_1 : i32, i32, i32
  }
  func.func @transform_3(%arg0: i32) -> (i32, i32, i32) {
    %c0_i32 = arith.constant 0 : i32
    %c0_i32_0 = arith.constant 0 : i32
    %c0_i32_1 = arith.constant 0 : i32
    %c0_i32_2 = arith.constant 0 : i32
    return %c0_i32, %c0_i32_0, %c0_i32_1 : i32, i32, i32
  }
  func.func @transform_4(%arg0: i32) -> (i32, i32) {
    %c0_i32 = arith.constant 0 : i32
    %c0_i32_0 = arith.constant 0 : i32
    %c0_i32_1 = arith.constant 0 : i32
    return %c0_i32, %c0_i32_0 : i32, i32
  }
  func.func @transform_5(%arg0: i32) -> (i32, i32) {
    %c0_i32 = arith.constant 0 : i32
    %c0_i32_0 = arith.constant 0 : i32
    %c0_i32_1 = arith.constant 0 : i32
    return %c0_i32, %c0_i32_0 : i32, i32
  }
  func.func @transform_6(%arg0: i32) -> (i32, i32) {
    %c0_i32 = arith.constant 0 : i32
    %c0_i32_0 = arith.constant 0 : i32
    %c0_i32_1 = arith.constant 0 : i32
    return %c0_i32, %c0_i32_0 : i32, i32
  }
  func.func @transform_7(%arg0: i32) -> (i32, i32) {
    %c0_i32 = arith.constant 0 : i32
    %c0_i32_0 = arith.constant 0 : i32
    %c0_i32_1 = arith.constant 0 : i32
    return %c0_i32, %c0_i32_0 : i32, i32
  }
  func.func @transform_8(%arg0: i32) -> (i32, i32, i32) {
    %c0_i32 = arith.constant 0 : i32
    %c0_i32_0 = arith.constant 0 : i32
    %c0_i32_1 = arith.constant 0 : i32
    return %arg0, %c0_i32, %c0_i32_0 : i32, i32, i32
  }
}

</mosaic_0001>

<bundles_post_ra>
// kernel: tile.5
= control target key start
LH: loop header
LB: loop body
LE: loop exit
PB: predicated region body
PF: predicated region fallthrough
CT: control target
= control target key end

     0   :  { %s85_s10 = smov 90   ;;  %s86_s11 = smov 70   ;;  %vm3_vm0 = vcmask 80896   ;;  %vm9_vm1 = vcmask 818896   ;;  %vm15_vm2 = vcmask 736896   ;;  %vm21_vm3 = vcmask 654896   ;;  %s137_s0 = inlined_call_operand.vmem [shape: f32[10,10], index: 0, kind: input, shape index: {}]   ;;  %s138_s1 = inlined_call_operand.vmem [shape: f32[100], index: 1, kind: output, shape index: {}]  }
   0x1   :  { %v67_v0 = vld [vmem:[%s137_s0 + $0x9] sm:$0x1]   ;;  %v69_v1 = vld [vmem:[%s137_s0 + $0x7] sm:$0x1]   ;;  %v68_v2 = vld [vmem:[%s137_s0 + $0x8] sm:$0x1]  }
   0x2   :  { %7 = vrot.lane.b32.xlu0 %v67_v0, %s85_s10  ;;  %19 = vrot.lane.b32.xlu1 %v69_v1, %s86_s11  ;;  %v70_v3 = vld [vmem:[%s137_s0 + $0x6] sm:$0x1]   ;;  %v2_v4 = vld [vmem:[%s137_s0] sm:$0x1]   ;;  %s87_s18 = smov 80   ;;  %s88_s19 = smov 60  }
   0x3   :  { %v71_v5 = vld [vmem:[%s137_s0 + $0x5] sm:$0x1]   ;;  %v72_v6 = vld [vmem:[%s137_s0 + $0x4] sm:$0x1]   ;;  %4 = vst.msk [vmem:[#allocation0] sm:$0x1] %vm3_vm0, %v2_v4  }
   0x4   :  { %s89_s24 = smov 50   ;;  %s90_s25 = smov 40   ;;  %v73_v7 = vld [vmem:[%s137_s0 + $0x3] sm:$0x1]   ;;  %v74_v8 = vld [vmem:[%s137_s0 + $0x2] sm:$0x1]  }
   0x5   :  { %s91_s30 = smov 30   ;;  %s92_s2 = smov 20   ;;  %v75_v9 = vld [vmem:[%s137_s0 + $0x1] sm:$0x1]   ;;  %vm27_vm4 = vcmask 572896   ;;  %vm33_vm5 = vcmask 490896  }
   0x6   :  { %13 = vrot.lane.b32.xlu0 %v68_v2, %s87_s18  ;;  %25 = vrot.lane.b32.xlu1 %v70_v3, %s88_s19  ;;  %s93_s0 = smov 10   ;;  %vm39_vm6 = vcmask 408896   ;;  %vm45_vm7 = vcmask 326896   ;;  %vm51_vm8 = vcmask 244896   ;;  %vm57_vm9 = vcmask 162896  }
   0xa   :  { %31 = vrot.lane.b32.xlu0 %v71_v5, %s89_s24  ;;  %37 = vrot.lane.b32.xlu1 %v72_v6, %s90_s25 }
   0xe   :  { %43 = vrot.lane.b32.xlu0 %v73_v7, %s91_s30  ;;  %49 = vrot.lane.b32.xlu1 %v74_v8, %s92_s2 }
  0x12   :  { %55 = vrot.lane.b32.xlu0 %v75_v9, %s93_s0 }
  0x74   :  { %v8_v10 = vpop.permute.xlu0 %7   ;;  %v20_v11 = vpop.permute.xlu1 %19  }
  0x75   :  { %10 = vst.msk [vmem:[#allocation0] sm:$0x1] %vm9_vm1, %v8_v10  }
  0x78   :  { %v14_v12 = vpop.permute.xlu0 %13   ;;  %v26_v13 = vpop.permute.xlu1 %25  }
  0x79   :  { %16 = vst.msk [vmem:[#allocation0] sm:$0x1] %vm15_vm2, %v14_v12  }
  0x7a   :  { %22 = vst.msk [vmem:[#allocation0] sm:$0x1] %vm21_vm3, %v20_v11  }
  0x7b   :  { %28 = vst.msk [vmem:[#allocation0] sm:$0x1] %vm27_vm4, %v26_v13  }
  0x7c   :  { %v32_v14 = vpop.permute.xlu0 %31   ;;  %v38_v15 = vpop.permute.xlu1 %37  }
  0x7d   :  { %34 = vst.msk [vmem:[#allocation0] sm:$0x1] %vm33_vm5, %v32_v14  }
  0x7e   :  { %40 = vst.msk [vmem:[#allocation0] sm:$0x1] %vm39_vm6, %v38_v15  }
  0x80   :  { %v44_v16 = vpop.permute.xlu0 %43   ;;  %v50_v17 = vpop.permute.xlu1 %49  }
  0x81   :  { %46 = vst.msk [vmem:[#allocation0] sm:$0x1] %vm45_vm7, %v44_v16  }
  0x82   :  { %52 = vst.msk [vmem:[#allocation0] sm:$0x1] %vm51_vm8, %v50_v17  }
  0x84   :  { %v56_v18 = vpop.permute.xlu0 %55  }
  0x85   :  { %58 = vst.msk [vmem:[#allocation0] sm:$0x1] %vm57_vm9, %v56_v18  }
  0x8c   :  { %v63_v19 = vld [vmem:[#allocation0] sm:$0x1] }
  0x8d   :  { %66 = vst [vmem:[%s138_s1] sm:$0x1] %v63_v19 }

// kernel: tile.6
= control target key start
LH: loop header
LB: loop body
LE: loop exit
PB: predicated region body
PF: predicated region fallthrough
CT: control target
= control target key end

     0   :  { %s22_s0 = inlined_call_operand.vmem [shape: f32[100], index: 0, kind: input, shape index: {}]   ;;  %s23_s1 = inlined_call_operand.vmem [shape: f32[2,100], index: 1, kind: output, shape index: {}]  }
   0x1   :  { %v4_v0 = vld [vmem:[%s22_s0] ss:$0 sm:$0xff] }
   0x2   :  { %5 = vst [vmem:[%s23_s1] sm:$0x3] %v4_v0 }

// kernel: tile.7
= control target key start
LH: loop header
LB: loop body
LE: loop exit
PB: predicated region body
PF: predicated region fallthrough
CT: control target
= control target key end

     0   :  { %vm14_vm0 = vcmask 228352   ;;  %vm8_vm1 = vcmask 818176   ;;  %vm18_vm2 = vcmask 588800   ;;  %vm21_vm3 = vcmask 1048352   ;;  %s49_s0 = inlined_call_operand.vmem [shape: f32[2,100], index: 0, kind: input, shape index: {}]   ;;  %s50_s1 = inlined_call_operand.vmem [shape: f32[200], index: 1, kind: output, shape index: {}]  }
   0x1   :  { %v5_v0 = vld [vmem:[%s49_s0] sm:$0x3]  ;;  %s32_s0 = smov 100  }
   0x2   :  { %6 = vst [vmem:[#allocation1] sm:$0x3] %v5_v0 }
   0x9   :  { %v11_v1 = vld [vmem:[#allocation1 + $0x1] sm:$0x1]   ;;  %v7_v3 = vld [vmem:[#allocation1] sm:$0x1]  }
   0xa   :  { %v13_v2 = vld [vmem:[#allocation1 + $0x1] sm:$0x1]   ;;  %9 = vst.msk [vmem:[#allocation0] sm:$0x1] %vm8_vm1, %v7_v3  }
   0xb   :  { %v15_v4 = vsel %vm14_vm0, %v13_v2, %v11_v1 }
   0xc   :  { %16 = vrot.lane.b32.xlu0 %v15_v4, %s32_s0 }
  0x7e   :  { %v17_v5 = vpop.permute.xlu0 %16  }
  0x7f   :  { %20 = vst.msk [vmem:[#allocation0 + $0x1] sm:$0x1] %vm18_vm2, %v17_v5  }
  0x80   :  { %22 = vst.msk [vmem:[#allocation0] sm:$0x1] %vm21_vm3, %v17_v5  }
  0x87   :  { %v27_v6 = vld [vmem:[#allocation0] sm:$0x3] }
  0x88   :  { %30 = vst [vmem:[%s50_s1] sm:$0x3] %v27_v6 }

// kernel: class_classifier_forward.1
= control target key start
LH: loop header
LB: loop body
LE: loop exit
PB: predicated region body
PF: predicated region fallthrough
CT: control target
= control target key end

     0   :  { %vm56_vm0 = vcmask 519168   ;;  %vm251_vm1 = vcmask 523264   ;;  %v128_v18 = vld [vmem:[#allocation2 + $0x4] sm:$0x8]  ;;  %vm430_vm2 = vsmask.f32 4352  ;;  %s17055_s0 = inlined_call_operand.vmem [shape: bf16[1,200,64], index: 0, kind: input, shape index: {}]   ;;  %s17056_s1 = inlined_call_operand.vmem [shape: bf16[27,64,64], index: 1, kind: input, shape index: {}]   ;;  %s17057_s2 = inlined_call_operand.vmem [shape: f32[3,1,64], index: 2, kind: input, shape index: {}]   ;;  %s17058_s3 = inlined_call_operand.vmem [shape: f32[3,1,64], index: 3, kind: input, shape index: {}]   ;;  %s17059_s4 = inlined_call_operand.vmem [shape: f32[180,1], index: 4, kind: input, shape index: {}]   ;;  %s17060_s5 = inlined_call_operand.vmem [shape: f32[2,200], index: 5, kind: input, shape index: {}]   ;;  %s17061_s6 = inlined_call_operand.vmem [shape: f32[64,128], index: 6, kind: input, shape index: {}]   ;;  %s17062_s7 = inlined_call_operand.vmem [shape: f32[1,128], index: 7, kind: input, shape index: {}]   ;;  %s17063_s8 = inlined_call_operand.hbm [shape: f32[1,2,128], index: 8, kind: output, shape index: {}]  }
   0x1   :  { %v12559_v0 = vld [vmem:[%s17056_s1 + $0x38] sm:$0xff]   ;;  %v12561_v2 = vld [vmem:[%s17056_s1 + $0x30] sm:$0xff]   ;;  %v12563_v4 = vld [vmem:[%s17056_s1 + $0x28] sm:$0xff]   ;;  %vm739_vm3 = vsmask.f32 7424  ;;  %vm17146_vm4 = vcmask 1046528  }
   0x2   :  { %v12560_v1 = vld [vmem:[%s17056_s1 + $0x18] sm:$0xff]   ;;  %11670 = vmatprep.subr.bf16.mxu0 %v12559_v0  ;;  %v12562_v3 = vld [vmem:[%s17056_s1 + $0x10] sm:$0xff]   ;;  %v12564_v5 = vld [vmem:[%s17056_s1 + $0x8] sm:$0xff]   ;;  %vm17094_vm5 = vsmask.f32 6400 }
   0x3   :  { %11702 = vmatprep.subr.bf16.mxu1 %v12560_v1  ;;  %11671 = vmatpush3.bf16.msra.mxu0 %v12559_v0  ;;  %v12565_v6 = vld [vmem:[%s17056_s1 + $0x20] sm:$0xff]   ;;  %v33_v10 = vld [vmem:[%s17055_s0 + $0x8] sm:$0xf]  ;;  %v34_v11 = vld [vmem:[%s17055_s0 + $0xc] sm:$0xf] }
   0x4   :  { %11703 = vmatpush3.bf16.msra.mxu1 %v12560_v1  ;;  %11672 = vmatprep.subr.bf16.mxu0 %v12561_v2  ;;  %v31_v7 = vld [vmem:[%s17055_s0] sm:$0xf]  ;;  %v32_v8 = vld [vmem:[%s17055_s0 + $0x4] sm:$0xf]  ;;  %59 = vst.msk [vmem:[#allocation2 + $0x10] sm:$0xf] %vm56_vm0, %v33_v10 }
   0x5   :  { %11704 = vmatprep.subr.bf16.mxu1 %v12562_v3  ;;  %v12566_v9 = vld [vmem:[%s17056_s1] sm:$0xff]   ;;  %57 = vst.msk [vmem:[#allocation2 + $0x8] sm:$0xf] %vm56_vm0, %v31_v7  ;;  %58 = vst.msk [vmem:[#allocation2 + $0xc] sm:$0xf] %vm56_vm0, %v32_v8  ;;  %v12569_v13 = vld [vmem:[%s17056_s1 + $0x58] sm:$0xff]  }
   0x6   :  { %60 = vst.msk [vmem:[#allocation2 + $0x14] sm:$0xf] %vm56_vm0, %v34_v11  ;;  %v35_v12 = vld [vmem:[%s17055_s0 + $0x10] sm:$0xf]  ;;  %v36_v14 = vld [vmem:[%s17055_s0 + $0x14] sm:$0xf] }
   0x7   :  { %11673 = vmatpush3.bf16.msra.mxu0 %v12561_v2  ;;  %61 = vst.msk [vmem:[#allocation2 + $0x18] sm:$0xf] %vm56_vm0, %v35_v12  ;;  %v37_v15 = vld [vmem:[%s17055_s0 + $0x18] sm:$0xf]  ;;  %62 = vst.msk [vmem:[#allocation2 + $0x1c] sm:$0xf] %vm56_vm0, %v36_v14 }
   0x8   :  { %11705 = vmatpush3.bf16.msra.mxu1 %v12562_v3  ;;  %11674 = vmatprep.subr.bf16.mxu0 %v12563_v4  ;;  %63 = vst.msk [vmem:[#allocation2 + $0x20] sm:$0xf] %vm56_vm0, %v37_v15  ;;  %v38_v16 = vld [vmem:[%s17055_s0 + $0x1c] sm:$0xf]  ;;  %v39_v17 = vld [vmem:[%s17055_s0 + $0x20] sm:$0xf] }
   0x9   :  { %11706 = vmatprep.subr.bf16.mxu1 %v12564_v5  ;;  %64 = vst.msk [vmem:[#allocation2 + $0x24] sm:$0xf] %vm56_vm0, %v38_v16  ;;  %65 = vst.msk [vmem:[#allocation2 + $0x28] sm:$0xf] %vm56_vm0, %v39_v17  ;;  %v40_v19 = vld [vmem:[%s17055_s0 + $0x24] sm:$0xf] }
   0xa   :  { %66 = vst.msk [vmem:[#allocation2 + $0x2c] sm:$0xf] %vm56_vm0, %v40_v19  ;;  %v41_v20 = vld [vmem:[%s17055_s0 + $0x28] sm:$0xf]  ;;  %v42_v21 = vld [vmem:[%s17055_s0 + $0x2c] sm:$0xf] }
   0xb   :  { %11675 = vmatpush3.bf16.msra.mxu0 %v12563_v4  ;;  %v43_v22 = vld [vmem:[%s17055_s0 + $0x30] sm:$0xf]  ;;  %67 = vst.msk [vmem:[#allocation2 + $0x30] sm:$0xf] %vm56_vm0, %v41_v20  ;;  %68 = vst.msk [vmem:[#allocation2 + $0x34] sm:$0xf] %vm56_vm0, %v42_v21 }
   0xc   :  { %11707 = vmatpush3.bf16.msra.mxu1 %v12564_v5  ;;  %11676 = vmatprep.subr.bf16.mxu0 %v12565_v6  ;;  %69 = vst.msk [vmem:[#allocation2 + $0x38] sm:$0xf] %vm56_vm0, %v43_v22  ;;  %v44_v23 = vld [vmem:[%s17055_s0 + $0x34] sm:$0xf]  ;;  %v45_v24 = vld [vmem:[%s17055_s0 + $0x38] sm:$0xf] }
   0xd   :  { %11708 = vmatprep.subr.bf16.mxu1 %v12566_v9  ;;  %v46_v25 = vld [vmem:[%s17055_s0 + $0x3c] sm:$0xf]  ;;  %v129_v26 = vld [vmem:[#allocation2 + $0x8] sm:$0xf]  ;;  %v130_v27 = vld [vmem:[#allocation2 + $0xc] sm:$0xf] }
   0xe   :  { %70 = vst.msk [vmem:[#allocation2 + $0x3c] sm:$0xf] %vm56_vm0, %v44_v23  ;;  %71 = vst.msk [vmem:[#allocation2 + $0x40] sm:$0xf] %vm56_vm0, %v45_v24  ;;  %v47_v28 = vld [vmem:[%s17055_s0 + $0x40] sm:$0xf]  ;;  %v12995_v29 = vcombine.low %v129_v26, %v130_v27  ;;  %v10221_v30 = vcombine.low %v128_v18, %v129_v26 }
   0xf   :  { %11677 = vmatpush3.bf16.msra.mxu0 %v12565_v6  ;;  %72 = vst.msk [vmem:[#allocation2 + $0x44] sm:$0xf] %vm56_vm0, %v46_v25  ;;  %v131_v31 = vld [vmem:[#allocation2 + $0x10] sm:$0xf]  ;;  %v132_v32 = vld [vmem:[#allocation2 + $0x14] sm:$0xf] }
  0x10   :  { %11709 = vmatpush3.bf16.msra.mxu1 %v12566_v9  ;;  %11734 = vmatprep.subr.bf16.mxu0 %v12569_v13  ;;  %73 = vst.msk [vmem:[#allocation2 + $0x48] sm:$0xf] %vm56_vm0, %v47_v28  ;;  %v10222_v33 = vcombine.low %v130_v27, %v131_v31  ;;  %v12998_v34 = vcombine.low %v131_v31, %v132_v32  ;;  %v133_v35 = vld [vmem:[#allocation2 + $0x18] sm:$0xf]  ;;  %v12570_v36 = vld [vmem:[%s17056_s1 + $0x50] sm:$0xff]   ;;  %v432_v37 = vshrl.u32 %v10221_v30, 16 }
  0x11   :  { %11678 = vmatprep.mubr.msk.bf16.mxu0 %vm251_vm1, %v12995_v29  ;;  %v435_v38 = vshll.u32 %v10221_v30, 16  ;;  %v134_v39 = vld [vmem:[#allocation2 + $0x1c] sm:$0xf]  ;;  %v10223_v42 = vcombine.low %v132_v32, %v133_v35  ;;  %v135_v44 = vld [vmem:[#allocation2 + $0x20] sm:$0xf]  ;;  %v12571_v49 = vld [vmem:[%s17056_s1 + $0x48] sm:$0xff]  }
  0x12   :  { %v440_v40 = vshrl.u32 %v10222_v33, 16  ;;  %v443_v41 = vshll.u32 %v10222_v33, 16  ;;  %11679 = vmatmul.mubr.msk.bf16.vlgmr.msra.gmra.mxu0 %vm251_vm1, %v12998_v34  ;;  %v13007_v43 = vcombine.low %v133_v35, %v134_v39  ;;  %v434_v45 = vrot.slane %v432_v37, 3  ;;  %v136_v48 = vld [vmem:[#allocation2 + $0x24] sm:$0xf]  ;;  %v13015_v50 = vld [vmem:[%s17056_s1 + $0x78] sm:$0xff]  }
  0x13   :  { %v437_v46 = vrot.slane %v435_v38, 4  ;;  %11735 = vmatpush3.bf16.msra.mxu0 %v12569_v13  ;;  %v10224_v47 = vcombine.low %v134_v39, %v135_v44  ;;  %v449_v53 = vshrl.u32 %v10223_v42, 16  ;;  %v452_v54 = vshll.u32 %v10223_v42, 16  ;;  %v137_v55 = vld [vmem:[#allocation2 + $0x28] sm:$0xf]  ;;  %11766 = vmatprep.subr.bf16.mxu1 %v13015_v50  ;;  %v12573_v12 = vld [vmem:[%s17056_s1 + $0x40] sm:$0xff]  }
  0x14   :  { %v442_v51 = vrot.slane %v440_v40, 3  ;;  %v445_v52 = vrot.slane %v443_v41, 4  ;;  %11682 = vmatprep.mubr.msk.bf16.mxu0 %vm251_vm1, %v13007_v43  ;;  %11736 = vmatprep.subr.bf16.mxu0 %v12570_v36  ;;  %v138_v59 = vld [vmem:[#allocation2 + $0x2c] sm:$0xf]  ;;  %v139_v60 = vld [vmem:[#allocation2 + $0x30] sm:$0xf]  ;;  %v13020_v0 = vcombine.low %v135_v44, %v136_v48  ;;  %v10225_v3 = vcombine.low %v136_v48, %v137_v55 }
  0x15   :  { %v438_v56 = vor.u32 %v437_v46, %v434_v45  ;;  %v458_v57 = vshrl.u32 %v10224_v47, 16  ;;  %v461_v58 = vshll.u32 %v10224_v47, 16  ;;  %v451_v62 = vrot.slane %v449_v53, 3  ;;  %v140_v4 = vld [vmem:[#allocation2 + $0x34] sm:$0xf]  ;;  %v12576_v47 = vld [vmem:[%s17056_s1 + $0x68] sm:$0xff]  }
  0x16   :  { %v446_v61 = vor.u32 %v445_v52, %v442_v51  ;;  %v454_v63 = vrot.slane %v452_v54, 4  ;;  %v141_v5 = vld [vmem:[#allocation2 + $0x38] sm:$0xf]  ;;  %v13023_v8 = vcombine.low %v137_v55, %v138_v59  ;;  %v10226_v9 = vcombine.low %v138_v59, %v139_v60  ;;  %v142_v10 = vld [vmem:[#allocation2 + $0x3c] sm:$0xf]  ;;  %v12574_v13 = vld [vmem:[%s17056_s1 + $0x70] sm:$0xff]  }
  0x17   :  { %v460_v1 = vrot.slane %v458_v57, 3  ;;  %v463_v2 = vrot.slane %v461_v58, 4  ;;  %11737 = vmatpush3.bf16.msra.mxu0 %v12570_v36  ;;  %v13025_v11 = vld [vmem:[#allocation2 + $0x40] sm:$0xf]  ;;  %v467_v15 = vshrl.u32 %v10225_v3, 16  ;;  %v470_v16 = vshll.u32 %v10225_v3, 16 }
  0x18   :  { %v447_v6 = vsel %vm430_vm2, %v438_v56, %v446_v61  ;;  %v455_v7 = vor.u32 %v454_v63, %v451_v62  ;;  %11738 = vmatprep.subr.bf16.mxu0 %v12571_v49  ;;  %v48_v17 = vld [vmem:[%s17055_s0 + $0x44] sm:$0xf]  ;;  %v49_v18 = vld [vmem:[%s17055_s0 + $0x48] sm:$0xf]  ;;  %v476_v20 = vshrl.u32 %v10226_v9, 16  ;;  %v479_v21 = vshll.u32 %v10226_v9, 16 }
  0x19   :  { %11710 = vmatprep.mubr.msk.bf16.mxu1 %vm251_vm1, %v447_v6  ;;  %v464_v14 = vor.u32 %v463_v2, %v460_v1  ;;  %v10227_v22 = vcombine.low %v140_v4, %v141_v5  ;;  %v144_v23 = vld [vmem:[#allocation2 + $0x44] sm:$0xf]  ;;  %v13043_v24 = vld [vmem:[#allocation2 + $0x48] sm:$0xf]  ;;  %74 = vst.msk [vmem:[#allocation2 + $0x4c] sm:$0xf] %vm56_vm0, %v48_v17  ;;  %v10228_v37 = vcombine.low %v142_v10, %v13025_v11 }
  0x1a   :  { %v456_v19 = vsel %vm430_vm2, %v446_v61, %v455_v7  ;;  %11683 = vmatmul.mubr.msk.bf16.gmra.mxu0 %vm251_vm1, %v13020_v0  ;;  %75 = vst.msk [vmem:[#allocation2 + $0x50] sm:$0xf] %vm56_vm0, %v49_v18  ;;  %v50_v25 = vld [vmem:[%s17055_s0 + $0x4c] sm:$0xf]  ;;  %v51_v26 = vld [vmem:[%s17055_s0 + $0x50] sm:$0xf]  ;;  %v13062_v39 = vcombine.low %v139_v60, %v140_v4  ;;  %v13070_v42 = vcombine.low %v141_v5, %v142_v10 }
  0x1b   :  { %11711 = vmatmul.mubr.msk.bf16.vlgmr.msra.gmra.mxu1 %vm251_vm1, %v456_v19  ;;  %v465_v27 = vsel %vm430_vm2, %v455_v7, %v464_v14  ;;  %v469_v28 = vrot.slane %v467_v15, 3  ;;  %v472_v30 = vrot.slane %v470_v16, 4  ;;  %11686 = vmatprep.mubr.msk.bf16.mxu0 %vm251_vm1, %v13023_v8  ;;  %76 = vst.msk [vmem:[#allocation2 + $0x54] sm:$0xf] %vm56_vm0, %v50_v25  ;;  %77 = vst.msk [vmem:[#allocation2 + $0x58] sm:$0xf] %vm56_vm0, %v51_v26 }
  0x1c   :  { %11714 = vmatprep.mubr.msk.bf16.mxu1 %vm251_vm1, %v465_v27  ;;  %v478_v31 = vrot.slane %v476_v20, 3  ;;  %v481_v32 = vrot.slane %v479_v21, 4  ;;  %v485_v33 = vshrl.u32 %v10227_v22, 16  ;;  %v488_v35 = vshll.u32 %v10227_v22, 16  ;;  %11739 = vmatpush3.bf16.msra.mxu0 %v12571_v49  ;;  %v52_v40 = vld [vmem:[%s17055_s0 + $0x54] sm:$0xf] }
  0x1d   :  { %v473_v36 = vor.u32 %v472_v30, %v469_v28  ;;  %11767 = vmatpush3.bf16.msra.mxu1 %v13015_v50  ;;  %11740 = vmatprep.subr.bf16.mxu0 %v12573_v12  ;;  %v53_v41 = vld [vmem:[%s17055_s0 + $0x58] sm:$0xf]  ;;  %v494_v44 = vshrl.u32 %v10228_v37, 16  ;;  %v497_v45 = vshll.u32 %v10228_v37, 16  ;;  %v10229_v46 = vcombine.low %v144_v23, %v13043_v24  ;;  %78 = vst.msk [vmem:[#allocation2 + $0x5c] sm:$0xf] %vm56_vm0, %v52_v40 }
  0x1e   :  { %v482_v38 = vor.u32 %v481_v32, %v478_v31  ;;  %11768 = vmatprep.subr.bf16.mxu1 %v12574_v13  ;;  %79 = vst.msk [vmem:[#allocation2 + $0x60] sm:$0xf] %vm56_vm0, %v53_v41  ;;  %v487_v49 = vrot.slane %v485_v33, 3  ;;  %v490_v50 = vrot.slane %v488_v35, 4  ;;  %v12577_v56 = vld [vmem:[%s17056_s1 + $0x60] sm:$0xff]   ;;  %v13092_v61 = vld [vmem:[%s17056_s1 + $0x98] sm:$0xff]   ;;  %v13095_v4 = vcombine.low %v13025_v11, %v144_v23 }
  0x1f   :  { %v474_v48 = vsel %vm430_vm2, %v464_v14, %v473_v36  ;;  %v496_v52 = vrot.slane %v494_v44, 3  ;;  %v499_v53 = vrot.slane %v497_v45, 4  ;;  %v503_v57 = vshrl.u32 %v10229_v46, 16  ;;  %v1035_v26 = vld [vmem:[#allocation2 + $0xc] sm:$0xf]  ;;  %v13130_v45 = vld [vmem:[#allocation2 + $0x14] sm:$0xff]  }
  0x20   :  { %11741 = vmatpush3.bf16.msra.mxu0 %v12573_v12  ;;  %v483_v51 = vsel %vm430_vm2, %v473_v36, %v482_v38  ;;  %v146_v54 = vld [vmem:[#allocation2 + $0x4c] sm:$0xf]  ;;  %v491_v59 = vor.u32 %v490_v50, %v487_v49  ;;  %v506_v60 = vshll.u32 %v10229_v46, 16  ;;  %v742_v17 = vshll.u32 %v12995_v29, 16  ;;  %v13116_v27 = vld [vmem:[#allocation2 + $0x10] sm:$0xf] }
  0x21   :  { %11769 = vmatpush3.bf16.msra.mxu1 %v12574_v13  ;;  %v147_v55 = vld [vmem:[#allocation2 + $0x50] sm:$0xf]  ;;  %v500_v62 = vor.u32 %v499_v53, %v496_v52  ;;  %11798 = vmatprep.subr.bf16.mxu0 %v13092_v61  ;;  %v13101_v7 = vcombine.low %v13043_v24, %v146_v54  ;;  %v505_v10 = vrot.slane %v503_v57, 3  ;;  %v740_v21 = vshrl.u32 %v12995_v29, 16  ;;  %v13137_v49 = vld [vmem:[%s17056_s1 + $0xb8] sm:$0xff]  }
  0x22   :  { %11687 = vmatmul.mubr.msk.bf16.gmra.mxu0 %vm251_vm1, %v13062_v39  ;;  %11770 = vmatprep.subr.bf16.mxu1 %v12576_v47  ;;  %v10230_v58 = vcombine.low %v146_v54, %v147_v55  ;;  %v148_v2 = vld [vmem:[#allocation2 + $0x54] sm:$0xf]  ;;  %v149_v3 = vld [vmem:[#allocation2 + $0x58] sm:$0xf]  ;;  %v492_v9 = vsel %vm430_vm2, %v482_v38, %v491_v59  ;;  %v508_v12 = vrot.slane %v506_v60, 4  ;;  %v744_v28 = vrot.slane %v742_v17, 1 }
  0x23   :  { %11715 = vmatmul.mubr.msk.bf16.gmra.mxu1 %vm251_vm1, %v474_v48  ;;  %11690 = vmatprep.mubr.msk.bf16.mxu0 %vm251_vm1, %v13070_v42  ;;  %v10231_v13 = vcombine.low %v148_v2, %v149_v3  ;;  %v501_v14 = vsel %vm430_vm2, %v491_v59, %v500_v62  ;;  %v13114_v25 = vcombine.low %v147_v55, %v148_v2  ;;  %v746_v31 = vshll.u32 %v12998_v34, 16 }
  0x24   :  { %11718 = vmatprep.mubr.msk.bf16.mxu1 %vm251_vm1, %v483_v51  ;;  %v512_v63 = vshrl.u32 %v10230_v58, 16  ;;  %v515_v1 = vshll.u32 %v10230_v58, 16  ;;  %v150_v5 = vld [vmem:[#allocation2 + $0x5c] sm:$0xf]  ;;  %v509_v18 = vor.u32 %v508_v12, %v505_v10  ;;  %v10282_v38 = vcombine.low %v1035_v26, %v13116_v27  ;;  %v12587_v26 = vld [vmem:[%s17056_s1 + $0x88] sm:$0xff]  }
  0x25   :  { %11771 = vmatpush3.bf16.msra.mxu1 %v12576_v47  ;;  %v13097_v6 = vld [vmem:[#allocation2 + $0x60] sm:$0x3]  ;;  %v521_v19 = vshrl.u32 %v10231_v13, 16  ;;  %v524_v20 = vshll.u32 %v10231_v13, 16  ;;  %v13118_v30 = vcombine.low %v149_v3, %v150_v5  ;;  %v745_v40 = vor.u32 %v744_v28, %v740_v21  ;;  %v13156_v3 = vld [vmem:[#allocation2 + $0x24] sm:$0xff]   ;;  %v13181_v21 = vld [vmem:[#allocation2 + $0x2c] sm:$0xff]  }
  0x26   :  { %11772 = vmatprep.subr.bf16.mxu1 %v12577_v56  ;;  %v514_v15 = vrot.slane %v512_v63, 3  ;;  %v517_v16 = vrot.slane %v515_v1, 4  ;;  %v10232_v11 = vcombine.low %v150_v5, %v13097_v6  ;;  %v510_v32 = vsel %vm430_vm2, %v500_v62, %v509_v18  ;;  %v13151_v62 = vld [vmem:[#allocation2 + $0x1c] sm:$0xff]  }
  0x27   :  { %v523_v33 = vrot.slane %v521_v19, 3  ;;  %v526_v35 = vrot.slane %v524_v20, 4  ;;  %v748_v41 = vrot.slane %v746_v31, 1  ;;  %v1128_v47 = vshll.u32 %v10282_v38, 16  ;;  %v54_v5 = vld [vmem:[%s17055_s0 + $0x5c] sm:$0xf] }
  0x28   :  { %v518_v22 = vor.u32 %v517_v16, %v514_v15  ;;  %v530_v23 = vshrl.u32 %v10232_v11, 16  ;;  %v533_v24 = vshll.u32 %v10232_v11, 16  ;;  %v10204_v48 = vcombine.low %v13097_v6, %v13097_v6  ;;  %80 = vst.msk [vmem:[#allocation2 + $0x64] sm:$0xf] %vm56_vm0, %v54_v5  ;;  %v12584_v19 = vld [vmem:[%s17056_s1 + $0x90] sm:$0xff]  }
  0x29   :  { %11773 = vmatpush3.bf16.msra.mxu1 %v12577_v56  ;;  %v527_v44 = vor.u32 %v526_v35, %v523_v33  ;;  %v753_v50 = vshll.u32 %v13007_v43, 16  ;;  %v749_v51 = vsel %vm739_vm3, %v745_v40, %v748_v41  ;;  %v750_v52 = vshrl.u32 %v12998_v34, 16  ;;  %v13194_v31 = vld [vmem:[#allocation2 + $0x34] sm:$0xff]  }
  0x2a   :  { %11691 = vmatmul.mubr.msk.bf16.gmra.mxu0 %vm251_vm1, %v13095_v4  ;;  %v519_v36 = vsel %vm430_vm2, %v509_v18, %v518_v22  ;;  %v532_v29 = vrot.slane %v530_v23, 3  ;;  %v535_v37 = vrot.slane %v533_v24, 4  ;;  %v1126_v54 = vshrl.u32 %v10282_v38, 16  ;;  %11830 = vmatprep.subr.bf16.mxu1 %v13137_v49 }
  0x2b   :  { %11719 = vmatmul.mubr.msk.bf16.gmra.mxu1 %vm251_vm1, %v492_v9  ;;  %11694 = vmatprep.mubr.msk.bf16.mxu0 %vm251_vm1, %v13101_v7  ;;  %v528_v53 = vsel %vm430_vm2, %v518_v22, %v527_v44  ;;  %v1133_v55 = vshll.u32 %v13130_v45, 16  ;;  %v757_v56 = vshrl.u32 %v13007_v43, 16  ;;  %v1130_v58 = vrot.slane %v1128_v47, 1 }
  0x2c   :  { %11722 = vmatprep.mubr.msk.bf16.mxu1 %vm251_vm1, %v501_v14  ;;  %v536_v46 = vor.u32 %v535_v37, %v532_v29  ;;  %v760_v59 = vshll.u32 %v13020_v0, 16  ;;  %v755_v60 = vrot.slane %v753_v50, 1  ;;  %v752_v34 = vor.u32 %v750_v52, %v748_v41 }
  0x2d   :  { %v1131_v43 = vor.u32 %v1130_v58, %v1126_v54  ;;  %v1135_v63 = vrot.slane %v1133_v55, 1  ;;  %v767_v6 = vshll.u32 %v13023_v8, 16  ;;  %v1141_v10 = vshll.u32 %v13151_v62, 16 }
  0x2e   :  { %v537_v57 = vsel %vm430_vm2, %v527_v44, %v536_v46  ;;  %v759_v1 = vor.u32 %v757_v56, %v755_v60  ;;  %v762_v2 = vrot.slane %v760_v59, 1  ;;  %v756_v9 = vsel %vm739_vm3, %v752_v34, %v755_v60  ;;  %v13234_v60 = vld [vmem:[%s17056_s1 + $0xd8] sm:$0xff]  }
  0x2f   :  { %v764_v12 = vshrl.u32 %v13020_v0, 16  ;;  %v1137_v13 = vshrl.u32 %v13130_v45, 16  ;;  %v771_v14 = vshrl.u32 %v13023_v8, 16  ;;  %v774_v15 = vshll.u32 %v13062_v39, 16 }
  0x30   :  { %v1136_v16 = vsel %vm739_vm3, %v1131_v43, %v1135_v63  ;;  %v763_v11 = vsel %vm739_vm3, %v759_v1, %v762_v2  ;;  %v1145_v17 = vshrl.u32 %v13151_v62, 16  ;;  %v1149_v18 = vshll.u32 %v13156_v3, 16  ;;  %v12597_v43 = vld [vmem:[%s17056_s1 + $0xa8] sm:$0xff]  }
  0x31   :  { %v769_v0 = vrot.slane %v767_v6, 1  ;;  %v1143_v8 = vrot.slane %v1141_v10, 1  ;;  %v766_v20 = vor.u32 %v764_v12, %v762_v2  ;;  %v1139_v22 = vor.u32 %v1137_v13, %v1135_v63 }
  0x32   :  { %11695 = vmatmul.mubr.msk.bf16.gmra.mxu0 %vm251_vm1, %v13114_v25  ;;  %v776_v24 = vrot.slane %v774_v15, 1  ;;  %v1151_v28 = vrot.slane %v1149_v18, 1  ;;  %v1153_v35 = vshrl.u32 %v13156_v3, 16  ;;  %v778_v29 = vshrl.u32 %v13062_v39, 16 }
  0x33   :  { %11723 = vmatmul.mubr.msk.bf16.gmra.mxu1 %vm251_vm1, %v510_v32  ;;  %11698 = vmatprep.mubr.msk.bf16.mxu0 %vm251_vm1, %v13118_v30  ;;  %v773_v23 = vor.u32 %v771_v14, %v769_v0  ;;  %v781_v32 = vshll.u32 %v13070_v42, 16  ;;  %v770_v33 = vsel %vm739_vm3, %v766_v20, %v769_v0  ;;  %v1144_v37 = vsel %vm739_vm3, %v1139_v22, %v1143_v8 }
  0x34   :  { %11726 = vmatprep.mubr.msk.bf16.mxu1 %vm251_vm1, %v519_v36  ;;  %v1157_v36 = vshll.u32 %v13181_v21, 16  ;;  %v785_v40 = vshrl.u32 %v13070_v42, 16  ;;  %v788_v41 = vshll.u32 %v13095_v4, 16  ;;  %v1165_v47 = vshll.u32 %v13194_v31, 16  ;;  %v12594_v42 = vld [vmem:[%s17056_s1 + $0xb0] sm:$0xff]  }
  0x35   :  { %v777_v38 = vsel %vm739_vm3, %v773_v23, %v776_v24  ;;  %v783_v39 = vrot.slane %v781_v32, 1  ;;  %v1155_v50 = vor.u32 %v1153_v35, %v1151_v28  ;;  %v780_v52 = vor.u32 %v778_v29, %v776_v24  ;;  %v13277_v29 = vld [vmem:[%s17056_s1 + $0xf8] sm:$0xff]  }
  0x36   :  { %v790_v56 = vrot.slane %v788_v41, 1  ;;  %v1167_v59 = vrot.slane %v1165_v47, 1  ;;  %v795_v34 = vshll.u32 %v13101_v7, 16  ;;  %v1169_v5 = vshrl.u32 %v13194_v31, 16 }
  0x37   :  { %v787_v54 = vor.u32 %v785_v40, %v783_v39  ;;  %v784_v1 = vsel %vm739_vm3, %v780_v52, %v783_v39  ;;  %v802_v12 = vshll.u32 %v13114_v25, 16 }
  0x38   :  { %v1171_v20 = vor.u32 %v1169_v5, %v1167_v59 }
  0x39   :  { %v791_v6 = vsel %vm739_vm3, %v787_v54, %v790_v56  ;;  %v804_v24 = vrot.slane %v802_v12, 1  ;;  %v13295_v54 = vld [vmem:[#allocation2 + $0x5c] sm:$0xff]  }
  0x3a   :  { %11699 = vmatmul.mubr.msk.bf16.gmra.mxu0 %vm251_vm1, %v10204_v48  ;;  %v12593_v48 = vld [vmem:[%s17056_s1 + $0x80] sm:$0xff]  }
  0x3b   :  { %11727 = vmatmul.mubr.msk.bf16.gmra.mxu1 %vm251_vm1, %v528_v53  ;;  %11742 = vmatprep.mubr.msk.bf16.mxu0 %vm251_vm1, %v749_v51  ;;  %v1159_v51 = vrot.slane %v1157_v36, 1  ;;  %v13221_v53 = vld [vmem:[#allocation2 + $0x3c] sm:$0xff]  }
  0x3c   :  { %11730 = vmatprep.mubr.msk.bf16.mxu1 %vm251_vm1, %v537_v57  ;;  %v13224_v57 = vld [vmem:[#allocation2 + $0x44] sm:$0xff]   ;;  %v1173_v2 = vshll.u32 %v13221_v53, 16  ;;  %v1177_v15 = vshrl.u32 %v13221_v53, 16 }
  0x3d   :  { %v1160_v63 = vsel %vm739_vm3, %v1155_v50, %v1159_v51  ;;  %v1185_v22 = vshrl.u32 %v13224_v57, 16 }
  0x42   :  { %11743 = vmatmul.mubr.msk.bf16.vlgmr.msra.gmra.mxu0 %vm251_vm1, %v756_v9  ;;  %v799_v9 = vshrl.u32 %v13101_v7, 16  ;;  %v12598_v7 = vld [vmem:[%s17056_s1 + $0xa0] sm:$0xff]  }
  0x43   :  { %11731 = vmatmul.mubr.msk.bf16.gmra.mxu1 %vm251_vm1, %v536_v46  ;;  %11799 = vmatpush3.bf16.msra.mxu0 %v13092_v61  ;;  %v1147_v61 = vor.u32 %v1145_v17, %v1143_v8  ;;  %v1161_v46 = vshrl.u32 %v13181_v21, 16  ;;  %v13262_v8 = vld [vmem:[#allocation2 + $0x54] sm:$0xff]  }
  0x44   :  { %11774 = vmatprep.mubr.msk.bf16.mxu1 %vm251_vm1, %v1136_v16  ;;  %11746 = vmatprep.mubr.msk.bf16.mxu0 %vm251_vm1, %v763_v11  ;;  %v1181_v16 = vshll.u32 %v13224_v57, 16  ;;  %v13251_v11 = vld [vmem:[#allocation2 + $0x4c] sm:$0xff]   ;;  %v1197_v40 = vshll.u32 %v13262_v8, 16 }
  0x45   :  { %11800 = vmatprep.subr.bf16.mxu0 %v12584_v19  ;;  %v1152_v44 = vsel %vm739_vm3, %v1147_v61, %v1151_v28  ;;  %v1163_v58 = vor.u32 %v1161_v46, %v1159_v51  ;;  %v1189_v32 = vshll.u32 %v13251_v11, 16  ;;  %v1193_v50 = vshrl.u32 %v13251_v11, 16 }
  0x46   :  { %v1183_v28 = vrot.slane %v1181_v16, 1 }
  0x47   :  { %11801 = vmatpush3.bf16.msra.mxu0 %v12584_v19  ;;  %v1168_v14 = vsel %vm739_vm3, %v1163_v58, %v1167_v59  ;;  %v1175_v19 = vrot.slane %v1173_v2, 1 }
  0x48   :  { %11802 = vmatprep.subr.bf16.mxu0 %v12587_v26 }
  0x49   :  { %v1179_v61 = vor.u32 %v1177_v15, %v1175_v19  ;;  %v1176_v41 = vsel %vm739_vm3, %v1171_v20, %v1175_v19 }
  0x4a   :  { %11747 = vmatmul.mubr.msk.bf16.gmra.mxu0 %vm251_vm1, %v770_v33  ;;  %v809_v33 = vshll.u32 %v13118_v30, 16 }
  0x4b   :  { %11775 = vmatmul.mubr.msk.bf16.vlgmr.msra.gmra.mxu1 %vm251_vm1, %v1144_v37  ;;  %11750 = vmatprep.mubr.msk.bf16.mxu0 %vm251_vm1, %v777_v38  ;;  %v806_v38 = vshrl.u32 %v13114_v25, 16  ;;  %v1191_v25 = vrot.slane %v1189_v32, 1 }
  0x4c   :  { %11778 = vmatprep.mubr.msk.bf16.mxu1 %vm251_vm1, %v1152_v44  ;;  %11803 = vmatpush3.bf16.msra.mxu0 %v12587_v26  ;;  %v12595_v26 = vld [vmem:[#allocation2 + $0x60] ss:$0 sps:$4 sm:$0x77]   ;;  %v811_v51 = vrot.slane %v809_v33, 1 }
  0x4d   :  { %11831 = vmatpush3.bf16.msra.mxu1 %v13137_v49  ;;  %11804 = vmatprep.subr.bf16.mxu0 %v12593_v48  ;;  %v792_v49 = vshrl.u32 %v13095_v4, 16  ;;  %v797_v4 = vrot.slane %v795_v34, 1  ;;  %v817_v39 = vshll.u32 %v12595_v26, 16  ;;  %v808_v52 = vor.u32 %v806_v38, %v804_v24  ;;  %v13300_v34 = vld [vmem:[#allocation2 + $0x64] ss:$0 sps:$4 sm:$0x77]  }
  0x4e   :  { %11832 = vmatprep.subr.bf16.mxu1 %v12594_v42  ;;  %v1213_v19 = vshll.u32 %v13300_v34, 16 }
  0x4f   :  { %v794_v0 = vor.u32 %v792_v49, %v790_v56  ;;  %v801_v23 = vor.u32 %v799_v9, %v797_v4  ;;  %v1187_v56 = vor.u32 %v1185_v22, %v1183_v28  ;;  %v819_v59 = vrot.slane %v817_v39, 1 }
  0x50   :  { %11805 = vmatpush3.bf16.msra.mxu0 %v12593_v48  ;;  %v813_v48 = vshrl.u32 %v13118_v30, 16  ;;  %v1199_v30 = vrot.slane %v1197_v40, 1  ;;  %v1205_v49 = vshll.u32 %v13295_v54, 16  ;;  %v1201_v9 = vshrl.u32 %v13262_v8, 16 }
  0x51   :  { %11833 = vmatpush3.bf16.msra.mxu1 %v12594_v42  ;;  %11862 = vmatprep.subr.bf16.mxu0 %v13234_v60  ;;  %v798_v37 = vsel %vm739_vm3, %v794_v0, %v797_v4  ;;  %v805_v44 = vsel %vm739_vm3, %v801_v23, %v804_v24  ;;  %v1184_v42 = vsel %vm739_vm3, %v1179_v61, %v1183_v28  ;;  %v821_v0 = vshrl.u32 %v12595_v26, 16  ;;  %v55_v26 = vld [vmem:[%s17055_s0 + $0x60] sm:$0xf] }
  0x52   :  { %11751 = vmatmul.mubr.msk.bf16.gmra.mxu0 %vm251_vm1, %v784_v1  ;;  %11834 = vmatprep.subr.bf16.mxu1 %v12597_v43  ;;  %v815_v58 = vor.u32 %v813_v48, %v811_v51  ;;  %v812_v1 = vsel %vm739_vm3, %v808_v52, %v811_v51  ;;  %v1207_v20 = vrot.slane %v1205_v49, 1  ;;  %v1446_v23 = vrot.slane %v13130_v45, 1  ;;  %81 = vst.msk [vmem:[#allocation2 + $0x68] sm:$0xf] %vm56_vm0, %v55_v26 }
  0x53   :  { %11779 = vmatmul.mubr.msk.bf16.gmra.mxu1 %vm251_vm1, %v1160_v63  ;;  %11754 = vmatprep.mubr.msk.bf16.mxu0 %vm251_vm1, %v791_v6  ;;  %v1431_v63 = vld [vmem:[#allocation2 + $0xc] sm:$0xe]  ;;  %v1192_v6 = vsel %vm739_vm3, %v1187_v56, %v1191_v25  ;;  %v1215_v33 = vrot.slane %v1213_v19, 1  ;;  %v823_v38 = vor.u32 %v821_v0, %v819_v59  ;;  %v1217_v39 = vshrl.u32 %v13300_v34, 16 }
  0x54   :  { %11782 = vmatprep.mubr.msk.bf16.mxu1 %vm251_vm1, %v1168_v14  ;;  %v820_v12 = vsel %vm739_vm3, %v815_v58, %v819_v59  ;;  %v10318_v14 = vcombine.low %v1431_v63, %v13116_v27  ;;  %v1203_v27 = vor.u32 %v1201_v9, %v1199_v30  ;;  %v1701_v51 = vrot.slane %v1137_v13, 1 }
  0x55   :  { %11835 = vmatpush3.bf16.msra.mxu1 %v12597_v43  ;;  %v1195_v43 = vor.u32 %v1193_v50, %v1191_v25  ;;  %v1702_v56 = vrot.slane %v1133_v55, 2  ;;  %v1450_v58 = vrot.slane %v13156_v3, 1  ;;  %v1452_v13 = vrot.slane %v13181_v21, 1 }
  0x56   :  { %11836 = vmatprep.subr.bf16.mxu1 %v12598_v7  ;;  %v1445_v24 = vrot.slane %v10318_v14, 1  ;;  %v1694_v61 = vshrl.u32 %v10318_v14, 16  ;;  %v1208_v48 = vsel %vm739_vm3, %v1203_v27, %v1207_v20  ;;  %v1709_v59 = vrot.slane %v1153_v35, 1  ;;  %v13392_v27 = vld [vmem:[#allocation2 + $0x20] sm:$0xff]  }
  0x57   :  { %v1200_v4 = vsel %vm739_vm3, %v1195_v43, %v1199_v30  ;;  %v1710_v45 = vrot.slane %v1149_v18, 2  ;;  %v13353_v55 = vrot.slane %v1161_v46, 1  ;;  %v13362_v35 = vrot.slane %v1157_v36, 2 }
  0x58   :  { %v1696_v52 = vrot.slane %v1694_v61, 1  ;;  %v1454_v3 = vrot.slane %v13194_v31, 1  ;;  %v1456_v18 = vrot.slane %v13221_v53, 1  ;;  %v13368_v46 = vrot.slane %v1169_v5, 1 }
  0x59   :  { %11837 = vmatpush3.bf16.msra.mxu1 %v12598_v7  ;;  %v1209_v7 = vshrl.u32 %v13295_v54, 16  ;;  %v13375_v19 = vrot.slane %v1165_v47, 2  ;;  %v13379_v21 = vrot.slane %v1177_v15, 1  ;;  %v13383_v36 = vrot.slane %v1173_v2, 2 }
  0x5a   :  { %11755 = vmatmul.mubr.msk.bf16.gmra.mxu0 %vm251_vm1, %v798_v37  ;;  %11894 = vmatprep.subr.bf16.mxu1 %v13277_v29  ;;  %v1697_v37 = vshll.u32 %v10318_v14, 16  ;;  %v13358_v14 = vld [vmem:[#allocation2 + $0x18] sm:$0xff]   ;;  %v1458_v0 = vrot.slane %v13224_v57, 1  ;;  %v13398_v2 = vrot.slane %v1181_v16, 2  ;;  %v13402_v61 = vrot.slane %v1193_v50, 1  ;;  %v13418_v50 = vld [vmem:[#allocation2 + $0x28] sm:$0xff]  }
  0x5b   :  { %11783 = vmatmul.mubr.msk.bf16.gmra.mxu1 %vm251_vm1, %v1176_v41  ;;  %11758 = vmatprep.mubr.msk.bf16.mxu0 %vm251_vm1, %v805_v44  ;;  %v1211_v28 = vor.u32 %v1209_v7, %v1207_v20  ;;  %v1705_v41 = vrot.slane %v1145_v17, 1  ;;  %v1448_v44 = vrot.slane %v13151_v62, 1  ;;  %v1706_v17 = vrot.slane %v1141_v10, 2  ;;  %v1961_v62 = vld [vmem:[#allocation2 + $0x10] sm:$0xe] }
  0x5c   :  { %11786 = vmatprep.mubr.msk.bf16.mxu1 %vm251_vm1, %v1184_v42  ;;  %v1447_v42 = vsel %vm17146_vm4, %v1445_v24, %v1446_v23  ;;  %v1699_v30 = vrot.slane %v1697_v37, 2  ;;  %v1219_v10 = vor.u32 %v1217_v39, %v1215_v33  ;;  %v1460_v20 = vrot.slane %v13251_v11, 1  ;;  %v13420_v37 = vld [vmem:[#allocation2 + $0x30] sm:$0xff]   ;;  %v87_v11 = vld [vmem:[%s17059_s4 + $0x28] sm:$0xff] }
  0x5d   :  { %v1216_v25 = vsel %vm739_vm3, %v1211_v28, %v1215_v33  ;;  %v1449_v43 = vsel %vm17146_vm4, %v1446_v23, %v1448_v44  ;;  %v1707_v5 = vor.u32 %v1706_v17, %v1705_v41  ;;  %v13389_v23 = vrot.slane %v1185_v22, 1  ;;  %v12601_v22 = vld [vmem:[%s17056_s1 + $0xc8] sm:$0xff]  }
  0x5e   :  { %v1700_v63 = vor.u32 %v1699_v30, %v1696_v52  ;;  %v1451_v24 = vsel %vm17146_vm4, %v1448_v44, %v1450_v58  ;;  %v13410_v26 = vrot.slane %v1189_v32, 2  ;;  %v13416_v16 = vrot.slane %v1201_v9, 1 }
  0x5f   :  { %v13426_v32 = vrot.slane %v1197_v40, 2  ;;  %v2060_v44 = vshrl.u32 %v13358_v14, 16  ;;  %v1453_v9 = vsel %vm17146_vm4, %v1450_v58, %v1452_v13  ;;  %v13436_v39 = vrot.slane %v1209_v7, 1  ;;  %v13438_v40 = vld [vmem:[#allocation2 + $0x38] sm:$0xff]  }
  0x60   :  { %v2063_v30 = vshll.u32 %v13358_v14, 16  ;;  %v1455_v7 = vsel %vm17146_vm4, %v1452_v13, %v1454_v3  ;;  %v2069_v17 = vshrl.u32 %v13392_v27, 16  ;;  %v2072_v58 = vshll.u32 %v13392_v27, 16  ;;  %v12604_v13 = vld [vmem:[%s17056_s1 + $0xf0] sm:$0xff]  }
  0x61   :  { %v2392_v33 = vrot.slane %v13438_v40, 2  ;;  %vm110_vm12 = vcmp.gt.f32.partialorder %v87_v11, 0.0 }
  0x62   :  { %11759 = vmatmul.mubr.msk.bf16.gmra.mxu0 %vm251_vm1, %v812_v1  ;;  %v1703_v1 = vor.u32 %v1702_v56, %v1701_v51  ;;  %v13442_v51 = vrot.slane %v1205_v49, 2  ;;  %v12603_v49 = vld [vmem:[%s17056_s1 + $0xc0] sm:$0xff]  }
  0x63   :  { %11787 = vmatmul.mubr.msk.bf16.gmra.mxu1 %vm251_vm1, %v1192_v6  ;;  %11762 = vmatprep.mubr.msk.bf16.mxu0 %vm251_vm1, %v820_v12  ;;  %v12605_v6 = vld [vmem:[#allocation2 + $0x64] ss:$0 sps:$4 sm:$0xff]   ;;  %v13356_v12 = vld [vmem:[#allocation2 + $0x14] sm:$0xf] }
  0x64   :  { %11790 = vmatprep.mubr.msk.bf16.mxu1 %vm251_vm1, %v1200_v4  ;;  %v12600_v4 = vld [vmem:[%s17056_s1 + $0xd0] sm:$0xff]   ;;  %v10368_v47 = vcombine.low %v1961_v62, %v13356_v12  ;;  %v1704_v15 = vsel %vm17094_vm5, %v1700_v63, %v1703_v1  ;;  %v1745_v41 = vshll.u32 %v12605_v6, 16  ;;  %v1708_v56 = vsel %vm17094_vm5, %v1703_v1, %v1707_v5 }
  0x65   :  { %v13459_v62 = vrot.slane %v2060_v44, 1  ;;  %v2078_v63 = vshrl.u32 %v13418_v50, 16  ;;  %v2081_v1 = vshll.u32 %v13418_v50, 16  ;;  %v13484_v44 = vrot.slane %v2069_v17, 1 }
  0x66   :  { %v2055_v52 = vshll.u32 %v10368_v47, 16 }
  0x6a   :  { %11763 = vmatmul.mubr.msk.bf16.gmra.mxu0 %vm251_vm1, %v823_v38  ;;  %v1742_v38 = vshrl.u32 %v12605_v6, 16  ;;  %v2087_v6 = vshrl.u32 %v13420_v37, 16 }
  0x6b   :  { %11791 = vmatmul.mubr.msk.bf16.gmra.mxu1 %vm251_vm1, %v1208_v48  ;;  %11806 = vmatprep.mubr.msk.bf16.mxu0 %vm251_vm1, %v1447_v42  ;;  %v13432_v48 = vor.u32 %v1710_v45, %v1709_v59  ;;  %v2369_v42 = vld [vmem:[#allocation2 + $0x10] sm:$0xc]  ;;  %v13457_v45 = vrot.slane %v1745_v41, 2  ;;  %v13482_v41 = vrot.slane %v2063_v30, 2 }
  0x6c   :  { %11794 = vmatprep.mubr.msk.bf16.mxu1 %vm251_vm1, %v1216_v25  ;;  %v13455_v59 = vrot.slane %v1742_v38, 1  ;;  %v13479_v38 = vld [vmem:[#allocation2 + $0x50] sm:$0xff]   ;;  %v12852_v25 = vmov 0  }
  0x6d   :  { %v2123_v17 = vshrl.u32 %v13479_v38, 16  ;;  %12557 = vset.pattern.permute.xlu0 %v12852_v25  ;;  %12558 = vset.pattern.permute.xlu1 %v12852_v25 }
  0x72   :  { %11807 = vmatmul.mubr.msk.bf16.vlgmr.msra.gmra.mxu0 %vm251_vm1, %v1449_v43 }
  0x73   :  { %11795 = vmatmul.mubr.msk.bf16.gmra.mxu1 %vm251_vm1, %v1219_v10  ;;  %11863 = vmatpush3.bf16.msra.mxu0 %v13234_v60  ;;  %v2052_v60 = vshrl.u32 %v10368_v47, 16  ;;  %v10404_v10 = vcombine.low %v2369_v42, %v13356_v12  ;;  %v1712_v47 = vsel %vm17094_vm5, %v1707_v5, %v13432_v48  ;;  %v2090_v12 = vshll.u32 %v13420_v37, 16 }
  0x74   :  { %11838 = vmatprep.mubr.msk.bf16.mxu1 %vm251_vm1, %v1704_v15  ;;  %11810 = vmatprep.mubr.msk.bf16.mxu0 %vm251_vm1, %v1451_v24  ;;  %v13474_v15 = vrot.slane %v2055_v52, 2  ;;  %v13477_v24 = vld [vmem:[#allocation2 + $0x48] sm:$0xff]   ;;  %v2096_v42 = vshrl.u32 %v13438_v40, 16  ;;  %v1715_v5 = vor.u32 %v13362_v35, %v13353_v55  ;;  %v13495_v52 = vor.u32 %v13375_v19, %v13368_v46 }
  0x75   :  { %11864 = vmatprep.subr.bf16.mxu0 %v12600_v4  ;;  %v13465_v43 = vrot.slane %v2052_v60, 1  ;;  %v13486_v60 = vrot.slane %v2072_v58, 2  ;;  %v13502_v30 = vrot.slane %v10404_v10, 2  ;;  %v12606_v55 = vld [vmem:[%s17056_s1 + $0xe8] sm:$0xff]   ;;  %v13510_v46 = vrot.slane %v2078_v63, 1 }
  0x76   :  { %v13512_v19 = vrot.slane %v2081_v1, 2  ;;  %v2099_v58 = vshll.u32 %v13438_v40, 16  ;;  %v1457_v63 = vsel %vm17146_vm4, %v1454_v3, %v1456_v18  ;;  %v2117_v35 = vshll.u32 %v13477_v24, 16 }
  0x77   :  { %11865 = vmatpush3.bf16.msra.mxu0 %v12600_v4  ;;  %v13470_v4 = vld [vmem:[#allocation2 + $0x40] sm:$0xff]   ;;  %v1716_v31 = vsel %vm17094_vm5, %v13432_v48, %v1715_v5  ;;  %v1720_v3 = vsel %vm17094_vm5, %v1715_v5, %v13495_v52  ;;  %v2126_v1 = vshll.u32 %v13479_v38, 16  ;;  %v83_v48 = vld [vmem:[%s17059_s4 + $0x8] sm:$0xff]  ;;  %v1723_v5 = vor.u32 %v13383_v36, %v13379_v21 }
  0x78   :  { %11866 = vmatprep.subr.bf16.mxu0 %v12601_v22  ;;  %v2108_v10 = vshll.u32 %v13470_v4, 16  ;;  %v13555_v53 = vrot.slane %v2099_v58, 2  ;;  %v86_v58 = vld [vmem:[%s17059_s4 + $0x20] sm:$0xff]  ;;  %vm106_vm7 = vcmp.gt.f32.partialorder %v83_v48, 0.0  ;;  %v13578_v36 = vrot.slane %v2117_v35, 2 }
  0x79   :  { %vm109_vm9 = vcmp.gt.f32.partialorder %v86_v58, 0.0  ;;  %v2398_v35 = vrot.slane %v13479_v38, 2 }
  0x7a   :  { %11811 = vmatmul.mubr.msk.bf16.gmra.mxu0 %vm251_vm1, %v1453_v9  ;;  %v13500_v9 = vld [vmem:[%s17056_s1 + $0x118] sm:$0xff]  }
  0x7b   :  { %11839 = vmatmul.mubr.msk.bf16.vlgmr.msra.gmra.mxu1 %vm251_vm1, %v1708_v56  ;;  %11814 = vmatprep.mubr.msk.bf16.mxu0 %vm251_vm1, %v1455_v7  ;;  %v13514_v56 = vrot.slane %v2087_v6, 1  ;;  %v13517_v7 = vrot.slane %v2090_v12, 2  ;;  %v13529_v6 = vrot.slane %v2096_v42, 1  ;;  %v2114_v12 = vshrl.u32 %v13477_v24, 16 }
  0x7c   :  { %11842 = vmatprep.mubr.msk.bf16.mxu1 %vm251_vm1, %v1712_v47  ;;  %11867 = vmatpush3.bf16.msra.mxu0 %v12601_v22  ;;  %v2105_v22 = vshrl.u32 %v13470_v4, 16  ;;  %v82_v47 = vld [vmem:[%s17059_s4] sm:$0xff]  ;;  %v1459_v42 = vsel %vm17146_vm4, %v1456_v18, %v1458_v0 }
  0x7d   :  { %11895 = vmatpush3.bf16.msra.mxu1 %v13277_v29  ;;  %11868 = vmatprep.subr.bf16.mxu0 %v12603_v49  ;;  %v12607_v29 = vld [vmem:[%s17056_s1 + $0xe0] sm:$0xff]   ;;  %vm105_vm6 = vcmp.gt.f32.partialorder %v82_v47, 0.0  ;;  %v13575_v21 = vrot.slane %v2114_v12, 1  ;;  %v13584_v47 = vld [vmem:[#allocation2 + $0x58] sm:$0xff]   ;;  %v3159_v12 = vsel %vm106_vm7, 1, %v12852_v25 }
  0x7e   :  { %11896 = vmatprep.subr.bf16.mxu1 %v12604_v13  ;;  %v13557_v18 = vrot.slane %v2105_v22, 1  ;;  %v3158_v28 = vsel %vm105_vm6, 1, %v12852_v25  ;;  %v2394_v22 = vrot.slane %v13470_v4, 2 }
  0x7f   :  { %3182 = vperm.xlu0 %12557, %v3158_v28   ;;  %v85_v28 = vld [vmem:[%s17059_s4 + $0x18] sm:$0xff] }
  0x80   :  { %11869 = vmatpush3.bf16.msra.mxu0 %v12603_v49  ;;  %v13559_v49 = vrot.slane %v2108_v10, 2  ;;  %v13580_v10 = vrot.slane %v2123_v17, 1  ;;  %v2396_v17 = vrot.slane %v13477_v24, 2  ;;  %vm108_vm10 = vcmp.gt.f32.partialorder %v85_v28, 0.0 }
  0x81   :  { %11897 = vmatpush3.bf16.msra.mxu1 %v12604_v13  ;;  %11926 = vmatprep.subr.bf16.mxu0 %v13500_v9  ;;  %v84_v13 = vld [vmem:[%s17059_s4 + $0x10] sm:$0xff]  ;;  %v3161_v58 = vsel %vm108_vm10, 1, %v12852_v25 }
  0x82   :  { %11815 = vmatmul.mubr.msk.bf16.gmra.mxu0 %vm251_vm1, %v1457_v63  ;;  %11898 = vmatprep.subr.bf16.mxu1 %v12606_v55  ;;  %vm107_vm8 = vcmp.gt.f32.partialorder %v84_v13, 0.0  ;;  %v13582_v63 = vrot.slane %v2126_v1, 2  ;;  %v1724_v1 = vsel %vm17094_vm5, %v13495_v52, %v1723_v5  ;;  %v13612_v13 = vld [vmem:[#allocation2 + $0x60] sm:$0xff]   ;;  %v2135_v52 = vshll.u32 %v13584_v47, 16 }
  0x83   :  { %11843 = vmatmul.mubr.msk.bf16.gmra.mxu1 %vm251_vm1, %v1716_v31  ;;  %11818 = vmatprep.mubr.msk.bf16.mxu0 %vm251_vm1, %v1459_v42  ;;  %v3160_v31 = vsel %vm107_vm8, 1, %v12852_v25  ;;  %v1727_v42 = vor.u32 %v13398_v2, %v13389_v23  ;;  %v88_v23 = vld [vmem:[%s17059_s4 + $0x30] sm:$0xff]  ;;  %v1461_v2 = vsel %vm17146_vm4, %v1458_v0, %v1460_v20  ;;  %v2132_v0 = vshrl.u32 %v13584_v47, 16 }
  0x84   :  { %11846 = vmatprep.mubr.msk.bf16.mxu1 %vm251_vm1, %v1720_v3  ;;  %3188 = vperm.xlu1 %12558, %v3160_v31   ;;  %v17162_v3 = vrot.slane %v13262_v8, 1  ;;  %vm111_vm11 = vcmp.gt.f32.partialorder %v88_v23, 0.0  ;;  %v3163_v31 = vsel %vm110_vm12, 1, %v12852_v25  ;;  %v2141_v28 = vshrl.u32 %v13612_v13, 16 }
  0x85   :  { %11899 = vmatpush3.bf16.msra.mxu1 %v12606_v55  ;;  %v3162_v55 = vsel %vm109_vm9, 1, %v12852_v25  ;;  %3185 = vperm.xlu0 %12557, %v3159_v12   ;;  %v1728_v57 = vsel %vm17094_vm5, %v1723_v5, %v1727_v42  ;;  %v1731_v5 = vor.u32 %v13410_v26, %v13402_v61  ;;  %v1735_v12 = vor.u32 %v13426_v32, %v13416_v16  ;;  %v92_v61 = vld [vmem:[%s17059_s4 + $0x50] sm:$0xff] }
  0x86   :  { %11900 = vmatprep.subr.bf16.mxu1 %v12607_v29  ;;  %v1463_v48 = vsel %vm17146_vm4, %v1460_v20, %v17162_v3  ;;  %v90_v20 = vld [vmem:[%s17059_s4 + $0x40] sm:$0xff]  ;;  %v2144_v23 = vshll.u32 %v13612_v13, 16  ;;  %v17163_v26 = vrot.slane %v13295_v54, 1  ;;  %vm115_vm15 = vcmp.gt.f32.partialorder %v92_v61, 0.0 }
  0x87   :  { %vm113_vm13 = vcmp.gt.f32.partialorder %v90_v20, 0.0  ;;  %v1732_v32 = vsel %vm17094_vm5, %v1727_v42, %v1731_v5  ;;  %v1736_v11 = vsel %vm17094_vm5, %v1731_v5, %v1735_v12  ;;  %v13657_v8 = vrot.slane %v2132_v0, 1  ;;  %v91_v42 = vld [vmem:[%s17059_s4 + $0x48] sm:$0xff]  ;;  %v94_v54 = vld [vmem:[%s17059_s4 + $0x60] sm:$0xff] }
  0x88   :  { %3191 = vperm.xlu1 %12558, %v3161_v58   ;;  %v3166_v16 = vsel %vm113_vm13, 1, %v12852_v25  ;;  %v13659_v20 = vrot.slane %v2135_v52, 2  ;;  %v3168_v0 = vsel %vm115_vm15, 1, %v12852_v25  ;;  %vm114_vm6 = vcmp.gt.f32.partialorder %v91_v42, 0.0  ;;  %v97_v42 = vld [vmem:[%s17059_s4 + $0x78] sm:$0xff] }
  0x89   :  { %11901 = vmatpush3.bf16.msra.mxu1 %v12607_v29  ;;  %v3164_v29 = vsel %vm111_vm11, 1, %v12852_v25  ;;  %3194 = vperm.xlu0 %12557, %v3162_v55   ;;  %v17164_v55 = vmov %v17162_v3  ;;  %v17165_v3 = vrot.slane %v13300_v34, 1  ;;  %v2058_v52 = vor.u32 %v13474_v15, %v13465_v43  ;;  %v93_v43 = vld [vmem:[%s17059_s4 + $0x58] sm:$0xff] }
  0x8a   :  { %11819 = vmatmul.mubr.msk.bf16.gmra.mxu0 %vm251_vm1, %v1461_v2  ;;  %v89_v2 = vld [vmem:[%s17059_s4 + $0x38] sm:$0xff]  ;;  %v2066_v5 = vor.u32 %v13482_v41, %v13459_v62  ;;  %vm117_vm7 = vcmp.gt.f32.partialorder %v94_v54, 0.0  ;;  %vm17066_vm8 = vcmask 1045504   ;;  %v13684_v61 = vrot.slane %v2144_v23, 2  ;;  %v96_v62 = vld [vmem:[%s17059_s4 + $0x70] sm:$0xff] }
  0x8b   :  { %11847 = vmatmul.mubr.msk.bf16.gmra.mxu1 %vm251_vm1, %v1724_v1  ;;  %11822 = vmatprep.mubr.msk.bf16.mxu0 %vm251_vm1, %v1463_v48  ;;  %v1465_v1 = vsel %vm17146_vm4, %v17164_v55, %v17163_v26  ;;  %vm112_vm14 = vcmp.gt.f32.partialorder %v89_v2, 0.0  ;;  %v17166_v48 = vmov %v17163_v26  ;;  %v3167_v2 = vsel %vm114_vm6, 1, %v12852_v25 }
  0x8c   :  { %11850 = vmatprep.mubr.msk.bf16.mxu1 %vm251_vm1, %v1728_v57  ;;  %3197 = vperm.xlu1 %12558, %v3163_v31   ;;  %v1467_v58 = vsel %vm17146_vm4, %v17166_v48, %v17165_v3  ;;  %v3165_v57 = vsel %vm112_vm14, 1, %v12852_v25  ;;  %v13677_v31 = vld [vmem:[#allocation2 + $0x68] ss:$0 sps:$4 sm:$0xff]   ;;  %v3170_v15 = vsel %vm117_vm7, 1, %v12852_v25  ;;  %vm116_vm9 = vcmp.gt.f32.partialorder %v93_v43, 0.0 }
  0x8d   :  { %3200 = vperm.xlu0 %12557, %v3164_v29   ;;  %v1739_v29 = vor.u32 %v13442_v51, %v13436_v39  ;;  %v1748_v39 = vor.u32 %v13457_v45, %v13455_v59  ;;  %v13682_v51 = vrot.slane %v2141_v28, 1  ;;  %v2067_v59 = vsel %vm17094_vm5, %v2058_v52, %v2066_v5  ;;  %v13695_v45 = vld [vmem:[#allocation2 + $0x10] sm:$0xfc]  }
  0x8e   :  { %v3169_v28 = vsel %vm116_vm9, 1, %v12852_v25  ;;  %vm119_vm10 = vcmp.gt.f32.partialorder %v96_v62, 0.0  ;;  %v17167_v26 = vmov %v17165_v3  ;;  %v2400_v55 = vrot.slane %v13584_v47, 2  ;;  %v13714_v3 = vld [vmem:[#allocation2 + $0x18] sm:$0xff]  }
  0x8f   :  { %v1740_v41 = vsel %vm17094_vm5, %v1735_v12, %v1739_v29  ;;  %v1749_v23 = vsel %vm17094_vm5, %v1739_v29, %v1748_v39  ;;  %v2153_v12 = vshll.u32 %v13677_v31, 16  ;;  %v2075_v34 = vor.u32 %v13486_v60, %v13484_v44  ;;  %v12615_v29 = vld [vmem:[%s17056_s1 + $0x110] sm:$0xff]  }
  0x90   :  { %3203 = vperm.xlu1 %12558, %v3165_v57   ;;  %v2084_v57 = vor.u32 %v13512_v19, %v13510_v46  ;;  %v2712_v60 = vshrl.u32 %v13695_v45, 16  ;;  %vm120_vm13 = vcmp.gt.f32.partialorder %v97_v42, 0.0  ;;  %v100_v19 = vld [vmem:[%s17059_s4 + $0x90] sm:$0xff]  ;;  %v2715_v43 = vshll.u32 %v13695_v45, 16 }
  0x91   :  { %3206 = vperm.xlu0 %12557, %v3166_v16   ;;  %v95_v16 = vld [vmem:[%s17059_s4 + $0x68] sm:$0xff]  ;;  %v13724_v44 = vrot.slane %v2153_v12, 2  ;;  %v2076_v54 = vsel %vm17094_vm5, %v2066_v5, %v2075_v34  ;;  %v3173_v46 = vsel %vm120_vm13, 1, %v12852_v25  ;;  %v2720_v62 = vshrl.u32 %v13714_v3, 16 }
  0x92   :  { %11823 = vmatmul.mubr.msk.bf16.gmra.mxu0 %vm251_vm1, %v1465_v1  ;;  %v2150_v1 = vshrl.u32 %v13677_v31, 16  ;;  %vm118_vm11 = vcmp.gt.f32.partialorder %v95_v16, 0.0  ;;  %v2085_v5 = vsel %vm17094_vm5, %v2075_v34, %v2084_v57  ;;  %vm123_vm14 = vcmp.gt.f32.partialorder %v100_v19, 0.0 }
  0x93   :  { %11851 = vmatmul.mubr.msk.bf16.gmra.mxu1 %vm251_vm1, %v1732_v32  ;;  %11826 = vmatprep.mubr.msk.bf16.mxu0 %vm251_vm1, %v1467_v58  ;;  %v3172_v32 = vsel %vm119_vm10, 1, %v12852_v25  ;;  %v3171_v48 = vsel %vm118_vm11, 1, %v12852_v25  ;;  %v98_v58 = vld [vmem:[%s17059_s4 + $0x80] sm:$0xff]  ;;  %v17171_v34 = vrot.slane %v13418_v50, 2  ;;  %v2120_v42 = vor.u32 %v13578_v36, %v13575_v21 }
  0x94   :  { %11854 = vmatprep.mubr.msk.bf16.mxu1 %vm251_vm1, %v1736_v11  ;;  %3209 = vperm.xlu1 %12558, %v3167_v2   ;;  %v13722_v11 = vrot.slane %v2150_v1, 1  ;;  %vm121_vm12 = vcmp.gt.f32.partialorder %v98_v58, 0.0  ;;  %v12620_v2 = vld [vmem:[%s17056_s1 + $0x108] sm:$0xff]   ;;  %v2129_v50 = vor.u32 %v13582_v63, %v13580_v10  ;;  %v2138_v36 = vor.u32 %v13659_v20, %v13657_v8  ;;  %v12627_v8 = vld [vmem:[#allocation2 + $0x20] sm:$0xff]  }
  0x95   :  { %3212 = vperm.xlu0 %12557, %v3168_v0   ;;  %v17168_v0 = vrot.slane %v13358_v14, 2  ;;  %v103_v14 = vld [vmem:[%s17059_s4 + $0xa8] sm:$0xff]  ;;  %v2397_v10 = vsel %vm17066_vm8, %v2394_v22, %v2396_v17  ;;  %v2147_v63 = vor.u32 %v13684_v61, %v13682_v51  ;;  %v2399_v40 = vsel %vm17066_vm8, %v2396_v17, %v2398_v35 }
  0x96   :  { %vm126_vm10 = vcmp.gt.f32.partialorder %v103_v14, 0.0 }
  0x97   :  { %v2385_v52 = vsel %vm17066_vm8, %v13502_v30, %v17168_v0  ;;  %v2093_v30 = vor.u32 %v13517_v7, %v13514_v56  ;;  %v101_v56 = vld [vmem:[%s17059_s4 + $0x98] sm:$0xff]  ;;  %v104_v7 = vld [vmem:[%s17059_s4 + $0xb0] sm:$0xf]  ;;  %v2148_v4 = vsel %vm17094_vm5, %v2138_v36, %v2147_v63 }
  0x98   :  { %3215 = vperm.xlu1 %12558, %v3169_v28   ;;  %vm124_vm7 = vcmp.gt.f32.partialorder %v101_v56, 0.0  ;;  %vm127_vm9 = vcmp.gt.f32.partialorder %v104_v7, 0.0 }
  0x99   :  { %3218 = vperm.xlu0 %12557, %v3170_v15   ;;  %v3174_v15 = vsel %vm121_vm12, 1, %v12852_v25  ;;  %v3177_v16 = vsel %vm124_vm7, 1, %v12852_v25 }
  0x9a   :  { %11827 = vmatmul.mubr.msk.bf16.gmra.mxu0 %vm251_vm1, %v17167_v26  ;;  %v17170_v26 = vmov %v17168_v0 }
  0x9b   :  { %11855 = vmatmul.mubr.msk.bf16.gmra.mxu1 %vm251_vm1, %v1740_v41  ;;  %11870 = vmatprep.mubr.msk.bf16.mxu0 %vm251_vm1, %v2067_v59  ;;  %v99_v41 = vld [vmem:[%s17059_s4 + $0x88] sm:$0xff]  ;;  %v2102_v59 = vor.u32 %v13555_v53, %v13529_v6  ;;  %v2094_v6 = vsel %vm17094_vm5, %v2084_v57, %v2093_v30  ;;  %v12623_v53 = vld [vmem:[%s17056_s1 + $0x100] sm:$0xff]   ;;  %v2111_v57 = vor.u32 %v13559_v49, %v13557_v18  ;;  %v17173_v18 = vrot.slane %v13420_v37, 2 }
  0x9c   :  { %11858 = vmatprep.mubr.msk.bf16.mxu1 %vm251_vm1, %v1749_v23  ;;  %3221 = vperm.xlu1 %12558, %v3171_v48   ;;  %vm122_vm15 = vcmp.gt.f32.partialorder %v99_v41, 0.0  ;;  %v17169_v23 = vrot.slane %v13392_v27, 2  ;;  %v2723_v27 = vshll.u32 %v13714_v3, 16  ;;  %v17174_v49 = vmov %v17171_v34 }
  0x9d   :  { %3224 = vperm.xlu0 %12557, %v3172_v32   ;;  %v3175_v28 = vsel %vm122_vm15, 1, %v12852_v25  ;;  %v2103_v12 = vsel %vm17094_vm5, %v2093_v30, %v2102_v59  ;;  %v2391_v19 = vsel %vm17066_vm8, %v17174_v49, %v17173_v18  ;;  %v2121_v0 = vsel %vm17094_vm5, %v2111_v57, %v2120_v42 }
  0x9e   :  { %v2387_v1 = vsel %vm17066_vm8, %v17170_v26, %v17169_v23  ;;  %v17172_v32 = vmov %v17169_v23  ;;  %v17175_v21 = vmov %v17173_v18  ;;  %v2395_v37 = vsel %vm17066_vm8, %v2392_v33, %v2394_v22 }
  0x9f   :  { %v2389_v48 = vsel %vm17066_vm8, %v17172_v32, %v17171_v34  ;;  %v2714_v22 = vrot.slane %v2712_v60, 2 }
  0xa0   :  { %3227 = vperm.xlu1 %12558, %v3173_v46   ;;  %v2112_v46 = vsel %vm17094_vm5, %v2102_v59, %v2111_v57 }
  0xa1   :  { %3230 = vperm.xlu0 %12557, %v3174_v15  }
  0xa2   :  { %11871 = vmatmul.mubr.msk.bf16.vlgmr.msra.gmra.mxu0 %vm251_vm1, %v2076_v54  ;;  %v3180_v54 = vsel %vm127_vm9, 1, %v12852_v25 }
  0xa3   :  { %11859 = vmatmul.mubr.msk.bf16.gmra.mxu1 %vm251_vm1, %v1748_v39  ;;  %11927 = vmatpush3.bf16.msra.mxu0 %v13500_v9  ;;  %v102_v39 = vld [vmem:[%s17059_s4 + $0xa0] sm:$0xff]  ;;  %v3176_v9 = vsel %vm123_vm14, 1, %v12852_v25 }
  0xa4   :  { %11902 = vmatprep.mubr.msk.bf16.mxu1 %vm251_vm1, %v2385_v52  ;;  %11874 = vmatprep.mubr.msk.bf16.mxu0 %vm251_vm1, %v2085_v5  ;;  %vm125_vm6 = vcmp.gt.f32.partialorder %v102_v39, 0.0  ;;  %v2130_v52 = vsel %vm17094_vm5, %v2120_v42, %v2129_v50  ;;  %v2139_v5 = vsel %vm17094_vm5, %v2129_v50, %v2138_v36 }
  0xa5   :  { %11928 = vmatprep.subr.bf16.mxu0 %v12615_v29  ;;  %3233 = vperm.xlu1 %12558, %v3175_v28   ;;  %v3178_v58 = vsel %vm125_vm6, 1, %v12852_v25 }
  0xa6   :  { %3236 = vperm.xlu0 %12557, %v3176_v9  }
  0xa7   :  { %11929 = vmatpush3.bf16.msra.mxu0 %v12615_v29  ;;  %v3179_v29 = vsel %vm126_vm10, 1, %v12852_v25  ;;  %v2393_v25 = vsel %vm17066_vm8, %v17175_v21, %v2392_v33  ;;  %v2156_v33 = vor.u32 %v13724_v44, %v13722_v11 }
  0xa8   :  { %11930 = vmatprep.subr.bf16.mxu0 %v12620_v2 }
  0xa9   :  { %3239 = vperm.xlu1 %12558, %v3177_v16  }
  0xaa   :  { %11875 = vmatmul.mubr.msk.bf16.gmra.mxu0 %vm251_vm1, %v2094_v6  ;;  %3242 = vperm.xlu0 %12557, %v3178_v58  }
  0xab   :  { %11903 = vmatmul.mubr.msk.bf16.vlgmr.msra.gmra.mxu1 %vm251_vm1, %v2387_v1  ;;  %11878 = vmatprep.mubr.msk.bf16.mxu0 %vm251_vm1, %v2103_v12 }
  0xac   :  { %11906 = vmatprep.mubr.msk.bf16.mxu1 %vm251_vm1, %v2389_v48  ;;  %11931 = vmatpush3.bf16.msra.mxu0 %v12620_v2 }
  0xad   :  { %11932 = vmatprep.subr.bf16.mxu0 %v12623_v53  ;;  %3245 = vperm.xlu1 %12558, %v3179_v29  }
  0xae   :  { %3248 = vperm.xlu0 %12557, %v3180_v54  }
  0xb0   :  { %11933 = vmatpush3.bf16.msra.mxu0 %v12623_v53 }
  0xb2   :  { %11879 = vmatmul.mubr.msk.bf16.gmra.mxu0 %vm251_vm1, %v2112_v46 }
  0xb3   :  { %11907 = vmatmul.mubr.msk.bf16.gmra.mxu1 %vm251_vm1, %v2391_v19  ;;  %11882 = vmatprep.mubr.msk.bf16.mxu0 %vm251_vm1, %v2121_v0 }
  0xb4   :  { %11910 = vmatprep.mubr.msk.bf16.mxu1 %vm251_vm1, %v2393_v25 }
  0xba   :  { %11883 = vmatmul.mubr.msk.bf16.gmra.mxu0 %vm251_vm1, %v2130_v52 }
  0xbb   :  { %11911 = vmatmul.mubr.msk.bf16.gmra.mxu1 %vm251_vm1, %v2395_v37  ;;  %11886 = vmatprep.mubr.msk.bf16.mxu0 %vm251_vm1, %v2139_v5 }
  0xbc   :  { %11914 = vmatprep.mubr.msk.bf16.mxu1 %vm251_vm1, %v2397_v10 }
  0xbd   :  { %13 = vsyncpa [#allocation4], 0  ;;  %v2157_v20 = vsel %vm17094_vm5, %v2147_v63, %v2156_v33  ;;  %v2717_v51 = vrot.slane %v2715_v43, 3  ;;  %v2722_v61 = vrot.slane %v2720_v62, 2  ;;  %v2725_v11 = vrot.slane %v2723_v27, 3  ;;  %v12628_v44 = vld [vmem:[#allocation2 + $0x28] sm:$0xff]  }
  0xbe   :  { %v2401_v24 = vsel %vm17066_vm8, %v2398_v35, %v2400_v55  ;;  %v2402_v17 = vrot.slane %v13612_v13, 2  ;;  %v2729_v45 = vshrl.u32 %v12627_v8, 16  ;;  %v2732_v60 = vshll.u32 %v12627_v8, 16  ;;  %v12629_v41 = vld [vmem:[#allocation2 + $0x30] sm:$0xff]   ;;  %v12630_v39 = vld [vmem:[#allocation2 + $0x38] sm:$0xff]   ;;  %v12631_v1 = vld [vmem:[#allocation2 + $0x40] sm:$0xff]  }
  0xbf   :  { %v2718_v3 = vor.u32 %v2717_v51, %v2714_v22  ;;  %v2726_v2 = vor.u32 %v2725_v11, %v2722_v61  ;;  %v2738_v43 = vshrl.u32 %v12628_v44, 16  ;;  %v2741_v62 = vshll.u32 %v12628_v44, 16  ;;  %v12632_v32 = vld [vmem:[#allocation2 + $0x48] sm:$0xff]   ;;  %v12633_v0 = vld [vmem:[#allocation2 + $0x50] sm:$0xff]   ;;  %v12634_v52 = vld [vmem:[#allocation2 + $0x58] sm:$0xff]   ;;  %s12855_s20 = smov [#allocation3]  }
  0xc0   :  { %v2404_v38 = vrot.slane %v13677_v31, 2  ;;  %vm17065_vm11 = vsmask.f32 5376  ;;  %v2731_v35 = vrot.slane %v2729_v45, 2  ;;  %v2734_v15 = vrot.slane %v2732_v60, 3  ;;  %v12635_v60 = vld [vmem:[#allocation2 + $0x60] sm:$0xff]  }
  0xc1   :  { %v2403_v13 = vsel %vm17066_vm8, %v2400_v55, %v2402_v17  ;;  %v2727_v30 = vsel %vm17065_vm11, %v2718_v3, %v2726_v2  ;;  %v2740_v59 = vrot.slane %v2738_v43, 2  ;;  %v2743_v28 = vrot.slane %v2741_v62, 3  ;;  %s10177_s21 = sshll.u32 %s12855_s20, 4  ;;  %s10178_s21 = int_to_ptr.vmem [resolvable:$true] %s10177_s21 }
  0xc2   :  { %11887 = vmatmul.mubr.msk.bf16.gmra.mxu0 %vm251_vm1, %v2148_v4  ;;  %v2405_v9 = vsel %vm17066_vm8, %v2402_v17, %v2404_v38  ;;  %v2735_v31 = vor.u32 %v2734_v15, %v2731_v35  ;;  %v2747_v56 = vshrl.u32 %v12629_v41, 16  ;;  %v2750_v7 = vshll.u32 %v12629_v41, 16  ;;  %v12636_v35 = vld [vmem:[#allocation2 + $0x68] sm:$0x1f]   ;;  %p12835_p1 = scmp.lt.s32.totalorder %s10178_s21, %s10178_s21 }
  0xc3   :  { %11915 = vmatmul.mubr.msk.bf16.gmra.mxu1 %vm251_vm1, %v2399_v40  ;;  %11890 = vmatprep.mubr.msk.bf16.mxu0 %vm251_vm1, %v2157_v20  ;;  %v2744_v47 = vor.u32 %v2743_v28, %v2740_v59  ;;  %v2756_v55 = vshrl.u32 %v12630_v39, 16  ;;  %v2759_v6 = vshll.u32 %v12630_v39, 16  ;;  %v2765_v14 = vshrl.u32 %v12631_v1, 16 }
  0xc4   :  { %11918 = vmatprep.mubr.msk.bf16.mxu1 %vm251_vm1, %v2401_v24  ;;  %v2736_v53 = vsel %vm17065_vm11, %v2726_v2, %v2735_v31  ;;  %v2749_v23 = vrot.slane %v2747_v56, 2  ;;  %v2752_v26 = vrot.slane %v2750_v7, 3  ;;  %v2768_v57 = vshll.u32 %v12631_v1, 16 }
  0xc5   :  { %v2745_v12 = vsel %vm17065_vm11, %v2735_v31, %v2744_v47  ;;  %v2758_v16 = vrot.slane %v2756_v55, 2  ;;  %v2761_v34 = vrot.slane %v2759_v6, 3  ;;  %v2774_v54 = vshrl.u32 %v12632_v32, 16 }
  0xc6   :  { %v2753_v58 = vor.u32 %v2752_v26, %v2749_v23  ;;  %v2777_v29 = vshll.u32 %v12632_v32, 16  ;;  %v2767_v49 = vrot.slane %v2765_v14, 2  ;;  %v2770_v19 = vrot.slane %v2768_v57, 3 }
  0xc7   :  { %v2762_v42 = vor.u32 %v2761_v34, %v2758_v16  ;;  %v2776_v50 = vrot.slane %v2774_v54, 2  ;;  %v2783_v63 = vshrl.u32 %v12633_v0, 16  ;;  %v2792_v8 = vshrl.u32 %v12634_v52, 16 }
  0xc8   :  { %v2754_v18 = vsel %vm17065_vm11, %v2744_v47, %v2753_v58  ;;  %v2779_v36 = vrot.slane %v2777_v29, 3  ;;  %v2771_v10 = vor.u32 %v2770_v19, %v2767_v49  ;;  %v2795_v20 = vshll.u32 %v12634_v52, 16 }
  0xc9   :  { %v2763_v25 = vsel %vm17065_vm11, %v2753_v58, %v2762_v42  ;;  %v2785_v17 = vrot.slane %v2783_v63, 2  ;;  %v2794_v62 = vrot.slane %v2792_v8, 2  ;;  %v2801_v59 = vshrl.u32 %v12635_v60, 16 }
  0xca   :  { %11891 = vmatmul.mubr.msk.bf16.gmra.mxu0 %vm251_vm1, %v2156_v33  ;;  %v2786_v33 = vshll.u32 %v12633_v0, 16  ;;  %v2780_v22 = vor.u32 %v2779_v36, %v2776_v50  ;;  %v2772_v24 = vsel %vm17065_vm11, %v2762_v42, %v2771_v10  ;;  %v2804_v28 = vshll.u32 %v12635_v60, 16 }
  0xcb   :  { %11919 = vmatmul.mubr.msk.bf16.gmra.mxu1 %vm251_vm1, %v2403_v13  ;;  %11934 = vmatprep.mubr.msk.bf16.mxu0 %vm251_vm1, %v2727_v30  ;;  %v2810_v56 = vshrl.u32 %v12636_v35, 16  ;;  %v2813_v7 = vshll.u32 %v12636_v35, 16  ;;  %v2803_v26 = vrot.slane %v2801_v59, 2  ;;  %vm3366_vm15 = vcmask 1040384  }
  0xcc   :  { %11922 = vmatprep.mubr.msk.bf16.mxu1 %vm251_vm1, %v2405_v9  ;;  %v2788_v45 = vrot.slane %v2786_v33, 3  ;;  %v2781_v43 = vsel %vm17065_vm11, %v2771_v10, %v2780_v22  ;;  %v2806_v1 = vrot.slane %v2804_v28, 3  ;;  %vm3367_vm6 = vcmask 1044484  }
  0xcd   :  { %v2812_v32 = vrot.slane %v2810_v56, 2  ;;  %vm17148_vm7 = vcmask 519169  }
  0xce   :  { %v2789_v30 = vor.u32 %v2788_v45, %v2785_v17 }
  0xd0   :  { %v2790_v23 = vsel %vm17065_vm11, %v2780_v22, %v2789_v30 }
  0xd2   :  { %v11680_v48 = vpop.f32.mrf.mxu0  ;;  %11935 = vmatmul.mubr.msk.bf16.vlgmr.msra.gmra.mxu0 %vm251_vm1, %v2736_v53 }
  0xd3   :  { %11923 = vmatmul.mubr.msk.bf16.gmra.mxu1 %vm251_vm1, %v2404_v38  ;;  %11938 = vmatprep.mubr.msk.bf16.mxu0 %vm251_vm1, %v2745_v12  ;;  %v2797_v38 = vrot.slane %v2795_v20, 3 }
  0xd4   :  { %v322_v27 = vpop.f32.mrf.mxu0 }
  0xd5   :  { %v2798_v31 = vor.u32 %v2797_v38, %v2794_v62 }
  0xd6   :  { %v11681_v46 = vpop.f32.mrf.mxu0 }
  0xd7   :  { %v2799_v34 = vsel %vm17065_vm11, %v2789_v30, %v2798_v31 }
  0xd8   :  { %v13882_v21 = vpop.f32.mrf.mxu0 }
  0xda   :  { %v11684_v37 = vpop.f32.mrf.mxu0  ;;  %11939 = vmatmul.mubr.msk.bf16.gmra.mxu0 %vm251_vm1, %v2754_v18 }
  0xdb   :  { %v11712_v5 = vpop.f32.mrf.mxu1  ;;  %11942 = vmatprep.mubr.msk.bf16.mxu0 %vm251_vm1, %v2763_v25 }
  0xdc   :  { %v13887_v40 = vadd.f32 %v11712_v5, %v11680_v48  ;;  %v338_v4 = vpop.f32.mrf.mxu0  ;;  %v2815_v48 = vrot.slane %v2813_v7, 3 }
  0xdd   :  { %v632_v51 = vpop.f32.mrf.mxu1 }
  0xde   :  { %v13889_v61 = vadd.f32 %v632_v51, %v322_v27  ;;  %v11685_v11 = vpop.f32.mrf.mxu0  ;;  %v2807_v27 = vor.u32 %v2806_v1, %v2803_v26  ;;  %v2816_v29 = vor.u32 %v2815_v48, %v2812_v32 }
  0xdf   :  { %v11713_v44 = vpop.f32.mrf.mxu1 }
  0xe0   :  { %v13892_v3 = vadd.f32 %v11713_v44, %v11681_v46  ;;  %v13894_v2 = vpop.f32.mrf.mxu0  ;;  %v2808_v0 = vsel %vm17065_vm11, %v2798_v31, %v2807_v27  ;;  %v2817_v36 = vsel %vm17065_vm11, %v2807_v27, %v2816_v29 }
  0xe1   :  { %v13897_v15 = vpop.f32.mrf.mxu1 }
  0xe2   :  { %v11688_v41 = vpop.f32.mrf.mxu0  ;;  %11943 = vmatmul.mubr.msk.bf16.gmra.mxu0 %vm251_vm1, %v2772_v24 }
  0xe3   :  { %v11716_v13 = vpop.f32.mrf.mxu1  ;;  %11946 = vmatprep.mubr.msk.bf16.mxu0 %vm251_vm1, %v2781_v43 }
  0xe4   :  { %v13901_v39 = vadd.f32 %v11716_v13, %v11684_v37  ;;  %v354_v9 = vpop.f32.mrf.mxu0 }
  0xe5   :  { %v648_v47 = vpop.f32.mrf.mxu1 }
  0xe6   :  { %v13903_v55 = vadd.f32 %v648_v47, %v338_v4  ;;  %v11689_v6 = vpop.f32.mrf.mxu0 }
  0xe7   :  { %v11717_v53 = vpop.f32.mrf.mxu1 }
  0xe8   :  { %v13906_v12 = vadd.f32 %v11717_v53, %v11685_v11  ;;  %v13908_v16 = vpop.f32.mrf.mxu0 }
  0xe9   :  { %v13911_v58 = vpop.f32.mrf.mxu1 }
  0xea   :  { %v11692_v14 = vpop.f32.mrf.mxu0  ;;  %11947 = vmatmul.mubr.msk.bf16.gmra.mxu0 %vm251_vm1, %v2790_v23 }
  0xeb   :  { %v11720_v57 = vpop.f32.mrf.mxu1  ;;  %11950 = vmatprep.mubr.msk.bf16.mxu0 %vm251_vm1, %v2799_v34 }
  0xec   :  { %v13915_v42 = vadd.f32 %v11720_v57, %v11688_v41  ;;  %v370_v54 = vpop.f32.mrf.mxu0 }
  0xed   :  { %v664_v46 = vpop.f32.mrf.mxu1 }
  0xee   :  { %v13917_v18 = vadd.f32 %v664_v46, %v354_v9  ;;  %v11693_v49 = vpop.f32.mrf.mxu0 }
  0xef   :  { %v11721_v19 = vpop.f32.mrf.mxu1 }
  0xf0   :  { %v13920_v25 = vadd.f32 %v11721_v19, %v11689_v6  ;;  %v13922_v50 = vpop.f32.mrf.mxu0 }
  0xf1   :  { %v13925_v52 = vpop.f32.mrf.mxu1 }
  0xf2   :  { %v11696_v37 = vpop.f32.mrf.mxu0  ;;  %11951 = vmatmul.mubr.msk.bf16.gmra.mxu0 %vm251_vm1, %v2808_v0 }
  0xf3   :  { %v11724_v5 = vpop.f32.mrf.mxu1  ;;  %11954 = vmatprep.mubr.msk.bf16.mxu0 %vm251_vm1, %v2817_v36 }
  0xf4   :  { %v13929_v10 = vadd.f32 %v11724_v5, %v11692_v14  ;;  %v386_v63 = vpop.f32.mrf.mxu0 }
  0xf5   :  { %v680_v33 = vpop.f32.mrf.mxu1 }
  0xf6   :  { %v13931_v4 = vadd.f32 %v680_v33, %v370_v54  ;;  %v11697_v22 = vpop.f32.mrf.mxu0 }
  0xf7   :  { %v11725_v8 = vpop.f32.mrf.mxu1 }
  0xf8   :  { %v13933_v20 = vadd.f32 %v11725_v8, %v11693_v49  ;;  %v13935_v51 = vpop.f32.mrf.mxu0 }
  0xf9   :  { %v13937_v11 = vpop.f32.mrf.mxu1 }
  0xfa   :  { %v11700_v44 = vpop.f32.mrf.mxu0  ;;  %11955 = vmatmul.mubr.msk.bf16.gmra.mxu0 %vm251_vm1, %v2816_v29 }
  0xfb   :  { %v11728_v24 = vpop.f32.mrf.mxu1 }
  0xfc   :  { %v13940_v17 = vadd.f32 %v11728_v24, %v11696_v37  ;;  %v402_v45 = vpop.f32.mrf.mxu0  ;;  %v12638_v24 = vld [vmem:[%s17056_s1 + $0x150] sm:$0xff]  }
  0xfd   :  { %v696_v60 = vpop.f32.mrf.mxu1 }
  0xfe   :  { %v13942_v43 = vadd.f32 %v696_v60, %v386_v63  ;;  %v11701_v62 = vpop.f32.mrf.mxu0 }
  0xff   :  { %v11729_v38 = vpop.f32.mrf.mxu1 }
 0x100   :  { %v13944_v35 = vadd.f32 %v11729_v38, %v11697_v22  ;;  %v13946_v41 = vpop.f32.mrf.mxu0 }
 0x101   :  { %v13948_v13 = vpop.f32.mrf.mxu1 }
 0x102   :  { %v11744_v30 = vpop.f32.mrf.mxu0 }
 0x103   :  { %v11732_v59 = vpop.f32.mrf.mxu1  ;;  %v1014_v28 = vadd.f32 %v11744_v30, %v13887_v40 }
 0x104   :  { %v13951_v9 = vadd.f32 %v11732_v59, %v11700_v44  ;;  %v918_v31 = vpop.f32.mrf.mxu0 }
 0x105   :  { %v712_v56 = vpop.f32.mrf.mxu1  ;;  %v1012_v7 = vadd.f32 %v918_v31, %v13889_v61  ;;  %v12637_v61 = vld [vmem:[%s17056_s1 + $0x158] sm:$0xff]  }
 0x106   :  { %v13954_v47 = vadd.f32 %v712_v56, %v402_v45  ;;  %v11745_v6 = vpop.f32.mrf.mxu0  ;;  %11958 = vmatprep.subr.bf16.mxu1 %v12637_v61 }
 0x107   :  { %v11733_v53 = vpop.f32.mrf.mxu1  ;;  %v1015_v23 = vadd.f32 %v11745_v6, %v13892_v3  ;;  %11959 = vmatpush3.bf16.msra.mxu1 %v12637_v61 }
 0x108   :  { %v13957_v26 = vpop.f32.mrf.mxu0  ;;  %11960 = vmatprep.subr.bf16.mxu1 %v12638_v24 }
 0x109   :  { %v13959_v1 = vpop.f32.mrf.mxu1 }
 0x10a   :  { %v11748_v34 = vpop.f32.mrf.mxu0 }
 0x10b   :  { %v11776_v32 = vpop.f32.mrf.mxu1  ;;  %v1018_v40 = vadd.f32 %v11748_v34, %v13901_v39  ;;  %11961 = vmatpush3.bf16.msra.mxu1 %v12638_v24  ;;  %v12639_v24 = vld [vmem:[%s17056_s1 + $0x148] sm:$0xff]  }
 0x10c   :  { %v13962_v48 = vadd.f32 %v11776_v32, %v1014_v28  ;;  %v934_v14 = vpop.f32.mrf.mxu0  ;;  %11962 = vmatprep.subr.bf16.mxu1 %v12639_v24 }
 0x10d   :  { %v1314_v57 = vpop.f32.mrf.mxu1  ;;  %v1016_v27 = vadd.f32 %v934_v14, %v13903_v55 }
 0x10e   :  { %v13968_v54 = vadd.f32 %v1314_v57, %v1012_v7  ;;  %v11749_v3 = vpop.f32.mrf.mxu0 }
 0x10f   :  { %v11777_v29 = vpop.f32.mrf.mxu1  ;;  %v1019_v46 = vadd.f32 %v11749_v3, %v13906_v12  ;;  %11963 = vmatpush3.bf16.msra.mxu1 %v12639_v24 }
 0x110   :  { %v13971_v49 = vadd.f32 %v11777_v29, %v1015_v23  ;;  %v13973_v39 = vpop.f32.mrf.mxu0 }
 0x111   :  { %v13975_v19 = vpop.f32.mrf.mxu1 }
 0x112   :  { %v11752_v0 = vpop.f32.mrf.mxu0 }
 0x113   :  { %v11780_v36 = vpop.f32.mrf.mxu1  ;;  %v1022_v37 = vadd.f32 %v11752_v0, %v13915_v42 }
 0x114   :  { %v13978_v5 = vadd.f32 %v11780_v36, %v1018_v40  ;;  %v950_v55 = vpop.f32.mrf.mxu0 }
 0x115   :  { %v1330_v63 = vpop.f32.mrf.mxu1  ;;  %v1020_v33 = vadd.f32 %v950_v55, %v13917_v18 }
 0x116   :  { %v13981_v22 = vadd.f32 %v1330_v63, %v1016_v27  ;;  %v11753_v12 = vpop.f32.mrf.mxu0 }
 0x117   :  { %v11781_v8 = vpop.f32.mrf.mxu1  ;;  %v1023_v44 = vadd.f32 %v11753_v12, %v13920_v25 }
 0x118   :  { %v13987_v45 = vadd.f32 %v11781_v8, %v1019_v46  ;;  %v13989_v60 = vpop.f32.mrf.mxu0 }
 0x119   :  { %v13991_v42 = vpop.f32.mrf.mxu1 }
 0x11a   :  { %v11756_v62 = vpop.f32.mrf.mxu0 }
 0x11b   :  { %v11784_v18 = vpop.f32.mrf.mxu1  ;;  %v1026_v38 = vadd.f32 %v11756_v62, %v13929_v10 }
 0x11c   :  { %v13994_v30 = vadd.f32 %v11784_v18, %v1022_v37  ;;  %v966_v59 = vpop.f32.mrf.mxu0 }
 0x11d   :  { %v1346_v25 = vpop.f32.mrf.mxu1  ;;  %v1024_v28 = vadd.f32 %v966_v59, %v13931_v4 }
 0x11e   :  { %v13997_v31 = vadd.f32 %v1346_v25, %v1020_v33  ;;  %v11757_v56 = vpop.f32.mrf.mxu0 }
 0x11f   :  { %v11785_v7 = vpop.f32.mrf.mxu1  ;;  %v1027_v6 = vadd.f32 %v11757_v56, %v13933_v20 }
 0x120   :  { %v14000_v53 = vadd.f32 %v11785_v7, %v1023_v44  ;;  %v14002_v23 = vpop.f32.mrf.mxu0 }
 0x121   :  { %v14004_v34 = vpop.f32.mrf.mxu1 }
 0x122   :  { %v11760_v32 = vpop.f32.mrf.mxu0 }
 0x123   :  { %v11788_v10 = vpop.f32.mrf.mxu1  ;;  %v1030_v40 = vadd.f32 %v11760_v32, %v13940_v17 }
 0x124   :  { %v14007_v14 = vadd.f32 %v11788_v10, %v1026_v38  ;;  %v982_v61 = vpop.f32.mrf.mxu0 }
 0x125   :  { %v1362_v4 = vpop.f32.mrf.mxu1  ;;  %v1028_v57 = vadd.f32 %v982_v61, %v13942_v43 }
 0x126   :  { %v14010_v27 = vadd.f32 %v1362_v4, %v1024_v28  ;;  %v11761_v3 = vpop.f32.mrf.mxu0 }
 0x127   :  { %v11789_v20 = vpop.f32.mrf.mxu1  ;;  %v1031_v29 = vadd.f32 %v11761_v3, %v13944_v35 }
 0x128   :  { %v14013_v46 = vadd.f32 %v11789_v20, %v1027_v6  ;;  %v14015_v0 = vpop.f32.mrf.mxu0 }
 0x129   :  { %v14017_v36 = vpop.f32.mrf.mxu1 }
 0x12a   :  { %v11764_v37 = vpop.f32.mrf.mxu0 }
 0x12b   :  { %v11792_v17 = vpop.f32.mrf.mxu1  ;;  %v1034_v55 = vadd.f32 %v11764_v37, %v13951_v9  ;;  %v12641_v9 = vld [vmem:[%s17056_s1 + $0x138] sm:$0xff]  }
 0x12c   :  { %v14020_v63 = vadd.f32 %v11792_v17, %v1030_v40  ;;  %v998_v33 = vpop.f32.mrf.mxu0  ;;  %11990 = vmatprep.subr.bf16.mxu0 %v12641_v9  ;;  %v12640_v40 = vld [vmem:[%s17056_s1 + $0x140] sm:$0xff]  }
 0x12d   :  { %v1378_v43 = vpop.f32.mrf.mxu1  ;;  %v1032_v12 = vadd.f32 %v998_v33, %v13954_v47  ;;  %11991 = vmatpush3.bf16.msra.mxu0 %v12641_v9  ;;  %11964 = vmatprep.subr.bf16.mxu1 %v12640_v40 }
 0x12e   :  { %v14023_v8 = vadd.f32 %v1378_v43, %v1028_v57  ;;  %v11765_v44 = vpop.f32.mrf.mxu0  ;;  %11965 = vmatpush3.bf16.msra.mxu1 %v12640_v40 }
 0x12f   :  { %v11793_v35 = vpop.f32.mrf.mxu1 }
 0x130   :  { %v14028_v62 = vadd.f32 %v11793_v35, %v1031_v29  ;;  %v14030_v18 = vpop.f32.mrf.mxu0 }
 0x131   :  { %v14032_v38 = vpop.f32.mrf.mxu1 }
 0x132   :  { %v11808_v47 = vpop.f32.mrf.mxu0 }
 0x133   :  { %v11796_v59 = vpop.f32.mrf.mxu1  ;;  %v1658_v25 = vadd.f32 %v11808_v47, %v13962_v48  ;;  %v12644_v48 = vld [vmem:[%s17056_s1 + $0x130] sm:$0xff]  }
 0x134   :  { %v14038_v28 = vadd.f32 %v11796_v59, %v1034_v55  ;;  %v1562_v56 = vpop.f32.mrf.mxu0  ;;  %11992 = vmatprep.subr.bf16.mxu0 %v12644_v48 }
 0x135   :  { %v1394_v7 = vpop.f32.mrf.mxu1  ;;  %v1656_v6 = vadd.f32 %v1562_v56, %v13968_v54  ;;  %11993 = vmatpush3.bf16.msra.mxu0 %v12644_v48 }
 0x136   :  { %v14041_v32 = vadd.f32 %v1394_v7, %v1032_v12  ;;  %v11809_v10 = vpop.f32.mrf.mxu0 }
 0x137   :  { %v11797_v61 = vpop.f32.mrf.mxu1  ;;  %v1659_v4 = vadd.f32 %v11809_v10, %v13971_v49  ;;  %v12645_v49 = vld [vmem:[%s17056_s1 + $0x128] sm:$0xff]  }
 0x138   :  { %v14050_v57 = vpop.f32.mrf.mxu0  ;;  %11994 = vmatprep.subr.bf16.mxu0 %v12645_v49 }
 0x139   :  { %v14052_v3 = vpop.f32.mrf.mxu1  ;;  %11995 = vmatpush3.bf16.msra.mxu0 %v12645_v49 }
 0x13a   :  { %v11812_v54 = vpop.f32.mrf.mxu0 }
 0x13b   :  { %v11840_v20 = vpop.f32.mrf.mxu1  ;;  %v1662_v29 = vadd.f32 %v11812_v54, %v13978_v5 }
 0x13c   :  { %v14055_v37 = vadd.f32 %v11840_v20, %v1658_v25  ;;  %v1578_v17 = vpop.f32.mrf.mxu0 }
 0x13d   :  { %v1844_v55 = vpop.f32.mrf.mxu1  ;;  %v1660_v33 = vadd.f32 %v1578_v17, %v13981_v22 }
 0x13e   :  { %v14061_v43 = vadd.f32 %v1844_v55, %v1656_v6  ;;  %v11813_v12 = vpop.f32.mrf.mxu0 }
 0x13f   :  { %v11841_v44 = vpop.f32.mrf.mxu1  ;;  %v1663_v35 = vadd.f32 %v11813_v12, %v13987_v45 }
 0x140   :  { %v14064_v24 = vadd.f32 %v11841_v44, %v1659_v4  ;;  %v14066_v5 = vpop.f32.mrf.mxu0 }
 0x141   :  { %v14068_v9 = vpop.f32.mrf.mxu1 }
 0x142   :  { %v11816_v47 = vpop.f32.mrf.mxu0 }
 0x143   :  { %v11844_v59 = vpop.f32.mrf.mxu1  ;;  %v1666_v25 = vadd.f32 %v11816_v47, %v13994_v30  ;;  %v12649_v30 = vld [vmem:[%s17056_s1 + $0x120] sm:$0xff]   ;;  %v14096_v47 = vld [vmem:[%s17056_s1 + $0x178] sm:$0xff]  }
 0x144   :  { %v14071_v56 = vadd.f32 %v11844_v59, %v1662_v29  ;;  %v1594_v22 = vpop.f32.mrf.mxu0  ;;  %11996 = vmatprep.subr.bf16.mxu0 %v12649_v30  ;;  %17177 = vst [vmem:[#allocation7_spill] sm:$0xff] %v14096_v47  ;;  %12022 = vmatprep.subr.bf16.mxu1 %v14096_v47 }
 0x145   :  { %v1860_v7 = vpop.f32.mrf.mxu1  ;;  %v1664_v6 = vadd.f32 %v1594_v22, %v13997_v31  ;;  %11997 = vmatpush3.bf16.msra.mxu0 %v12649_v30 }
 0x146   :  { %v14074_v10 = vadd.f32 %v1860_v7, %v1660_v33  ;;  %v11817_v45 = vpop.f32.mrf.mxu0 }
 0x147   :  { %v11845_v40 = vpop.f32.mrf.mxu1  ;;  %v1667_v61 = vadd.f32 %v11817_v45, %v14000_v53 }
 0x148   :  { %v14077_v4 = vadd.f32 %v11845_v40, %v1663_v35  ;;  %v14079_v48 = vpop.f32.mrf.mxu0 }
 0x149   :  { %v14081_v54 = vpop.f32.mrf.mxu1 }
 0x14a   :  { %v11820_v20 = vpop.f32.mrf.mxu0 }
 0x14b   :  { %v11848_v29 = vpop.f32.mrf.mxu1  ;;  %v1670_v31 = vadd.f32 %v11820_v20, %v14007_v14 }
 0x14c   :  { %v14087_v17 = vadd.f32 %v11848_v29, %v1666_v25  ;;  %v1610_v49 = vpop.f32.mrf.mxu0 }
 0x14d   :  { %v1876_v55 = vpop.f32.mrf.mxu1  ;;  %v1668_v53 = vadd.f32 %v1610_v49, %v14010_v27 }
 0x14e   :  { %v14090_v33 = vadd.f32 %v1876_v55, %v1664_v6  ;;  %v11821_v12 = vpop.f32.mrf.mxu0 }
 0x14f   :  { %v11849_v44 = vpop.f32.mrf.mxu1  ;;  %v1671_v35 = vadd.f32 %v11821_v12, %v14013_v46 }
 0x150   :  { %17176 = vst [vmem:[#allocation6_spill] sm:$0xff] %v14090_v33  ;;  %v14098_v14 = vadd.f32 %v11849_v44, %v1667_v61  ;;  %v14100_v59 = vpop.f32.mrf.mxu0  ;;  %v12666_v33 = vld [vmem:[%s17056_s1 + $0x198] sm:$0xff]  }
 0x151   :  { %v14102_v25 = vpop.f32.mrf.mxu1  ;;  %12054 = vmatprep.subr.bf16.mxu0 %v12666_v33  ;;  %v668_v33 = vadd.f32 %v13925_v52, %v13908_v16 }
 0x152   :  { %17178 = vst [vmem:[#allocation8_spill] sm:$0xff] %v14098_v14  ;;  %v11824_v27 = vpop.f32.mrf.mxu0 }
 0x153   :  { %v11852_v22 = vpop.f32.mrf.mxu1  ;;  %v1674_v7 = vadd.f32 %v11824_v27, %v14020_v63 }
 0x154   :  { %v14106_v6 = vadd.f32 %v11852_v22, %v1670_v31  ;;  %v1626_v46 = vpop.f32.mrf.mxu0 }
 0x155   :  { %v1892_v45 = vpop.f32.mrf.mxu1  ;;  %v1672_v40 = vadd.f32 %v1626_v46, %v14023_v8 }
 0x156   :  { %17179 = vst [vmem:[#allocation9_spill] sm:$0xff] %v14106_v6  ;;  %v14109_v20 = vadd.f32 %v1892_v45, %v1668_v53  ;;  %v11825_v61 = vpop.f32.mrf.mxu0 }
 0x157   :  { %v11853_v30 = vpop.f32.mrf.mxu1  ;;  %v1675_v29 = vadd.f32 %v11825_v61, %v14028_v62 }
 0x158   :  { %17180 = vst [vmem:[#allocation10_spill] sm:$0xff] %v14109_v20  ;;  %v14112_v49 = vadd.f32 %v11853_v30, %v1671_v35  ;;  %v14114_v55 = vpop.f32.mrf.mxu0 }
 0x159   :  { %v14116_v12 = vpop.f32.mrf.mxu1 }
 0x15a   :  { %17181 = vst [vmem:[#allocation11_spill] sm:$0xff] %v14112_v49  ;;  %v11828_v44 = vpop.f32.mrf.mxu0 }
 0x15b   :  { %v11856_v63 = vpop.f32.mrf.mxu1  ;;  %v1678_v31 = vadd.f32 %v11828_v44, %v14038_v28 }
 0x15c   :  { %v14119_v27 = vadd.f32 %v11856_v63, %v1674_v7  ;;  %v1642_v22 = vpop.f32.mrf.mxu0 }
 0x15d   :  { %v1908_v8 = vpop.f32.mrf.mxu1  ;;  %v1676_v53 = vadd.f32 %v1642_v22, %v14041_v32 }
 0x15e   :  { %17182 = vst [vmem:[#allocation12_spill] sm:$0xff] %v14119_v27  ;;  %v14122_v46 = vadd.f32 %v1908_v8, %v1672_v40  ;;  %v11829_v45 = vpop.f32.mrf.mxu0 }
 0x15f   :  { %v11857_v62 = vpop.f32.mrf.mxu1 }
 0x160   :  { %17183 = vst [vmem:[#allocation13_spill] sm:$0xff] %v14122_v46  ;;  %v14124_v35 = vadd.f32 %v11857_v62, %v1675_v29  ;;  %v14126_v61 = vpop.f32.mrf.mxu0 }
 0x161   :  { %v14128_v30 = vpop.f32.mrf.mxu1 }
 0x162   :  { %17184 = vst [vmem:[#allocation14_spill] sm:$0xff] %v14124_v35  ;;  %v14130_v47 = vpop.f32.mrf.mxu0 }
 0x163   :  { %v11860_v49 = vpop.f32.mrf.mxu1 }
 0x164   :  { %v14132_v28 = vadd.f32 %v11860_v49, %v1678_v31  ;;  %v14134_v7 = vpop.f32.mrf.mxu0 }
 0x165   :  { %v1924_v44 = vpop.f32.mrf.mxu1 }
 0x166   :  { %v14136_v63 = vadd.f32 %v1924_v44, %v1676_v53  ;;  %v14138_v32 = vpop.f32.mrf.mxu0 }
 0x167   :  { %v11861_v40 = vpop.f32.mrf.mxu1 }
 0x168   :  { %17185 = vst [vmem:[#allocation15_spill] sm:$0xff] %v14136_v63  ;;  %v14140_v22 = vpop.f32.mrf.mxu0 }
 0x169   :  { %v14142_v29 = vpop.f32.mrf.mxu1 }
 0x16a   :  { %v14144_v8 = vpop.f32.mrf.mxu0 }
 0x16b   :  { %v14146_v45 = vpop.f32.mrf.mxu1 }
 0x16c   :  { %17186 = vst [vmem:[#allocation16_spill] sm:$0xff] %v14146_v45  ;;  %v14148_v62 = vpop.f32.mrf.mxu0 }
 0x16d   :  { %v14150_v49 = vpop.f32.mrf.mxu1 }
 0x16e   :  { %17187 = vst [vmem:[#allocation17_spill] sm:$0xff] %v14150_v49  ;;  %v14152_v31 = vpop.f32.mrf.mxu0  ;;  %v3484_v49 = vld [vmem:[#allocation2 + $0x4] sm:$0x8] }
 0x16f   :  { %v14154_v35 = vpop.f32.mrf.mxu1 }
 0x170   :  { %17188 = vst [vmem:[#allocation18_spill] sm:$0xff] %v14154_v35  ;;  %v14156_v53 = vpop.f32.mrf.mxu0 }
 0x171   :  { %v14158_v44 = vpop.f32.mrf.mxu1 }
 0x172   :  { %17189 = vst [vmem:[#allocation19_spill] sm:$0xff] %v14158_v44  ;;  %v14160_v40 = vpop.f32.mrf.mxu0 }
 0x173   :  { %v14162_v63 = vpop.f32.mrf.mxu1 }
 0x174   :  { %17190 = vst [vmem:[#allocation20_spill] sm:$0xff] %v14162_v63  ;;  %v14164_v46 = vpop.f32.mrf.mxu0 }
 0x175   :  { %17191 = vst [vmem:[#allocation21_spill] sm:$0xff] %v14164_v46  ;;  %v14166_v27 = vpop.f32.mrf.mxu1 }
 0x176   :  { %17192 = vst [vmem:[#allocation22_spill] sm:$0xff] %v14166_v27  ;;  %v14168_v20 = vpop.f32.mrf.mxu0 }
 0x177   :  { %17193 = vst [vmem:[#allocation23_spill] sm:$0xff] %v14168_v20  ;;  %v14170_v6 = vpop.f32.mrf.mxu1 }
 0x178   :  { %17194 = vst [vmem:[#allocation24_spill] sm:$0xff] %v14170_v6  ;;  %v14172_v14 = vpop.f32.mrf.mxu0  ;;  %v636_v6 = vadd.f32 %v13897_v15, %v13882_v21  ;;  %v684_v21 = vadd.f32 %v13937_v11, %v13922_v50 }
 0x179   :  { %17195 = vst [vmem:[#allocation25_spill] sm:$0xff] %v14172_v14  ;;  %v14177_v35 = vpop.f32.mrf.mxu1 }
 0x17a   :  { %17196 = vst [vmem:[#allocation26_spill] sm:$0xff] %v14177_v35  ;;  %v14179_v44 = vpop.f32.mrf.mxu0  ;;  %v652_v35 = vadd.f32 %v13911_v58, %v13894_v2  ;;  %v716_v2 = vadd.f32 %v13959_v1, %v13946_v41  ;;  %v1021_v58 = vadd.f32 %v13989_v60, %v668_v33 }
 0x17b   :  { %v14181_v63 = vpop.f32.mrf.mxu1 }
 0x17c   :  { %17197 = vst [vmem:[#allocation27_spill] sm:$0xff] %v14181_v63  ;;  %v14183_v46 = vpop.f32.mrf.mxu0  ;;  %v1013_v63 = vadd.f32 %v13957_v26, %v636_v6  ;;  %v1017_v16 = vadd.f32 %v13973_v39, %v652_v35  ;;  %v1025_v26 = vadd.f32 %v14002_v23, %v684_v21  ;;  %v1417_v23 = vadd.f32 %v14004_v34, %v1021_v58 }
 0x17d   :  { %17198 = vst [vmem:[#allocation28_spill] sm:$0xff] %v14183_v46  ;;  %v14185_v27 = vpop.f32.mrf.mxu1  ;;  %v2349_v58 = vadd.f32 %v14138_v32, %v14064_v24  ;;  %v2350_v24 = vadd.f32 %v14148_v62, %v14074_v10  ;;  %v17206_v62 = vld [vmem:[#allocation17_spill] sm:$0xff] }
 0x17e   :  { %17199 = vst [vmem:[#allocation29_spill] sm:$0xff] %v14185_v27  ;;  %v14187_v20 = vpop.f32.mrf.mxu0  ;;  %v14202_v27 = vld [vmem:[#allocation2 + $0x8] sm:$0xf]  ;;  %v1409_v50 = vadd.f32 %v13975_v19, %v1013_v63  ;;  %v1413_v60 = vadd.f32 %v13991_v42, %v1017_v16  ;;  %v1421_v19 = vadd.f32 %v14017_v36, %v1025_v26 }
 0x17f   :  { %v14191_v14 = vpop.f32.mrf.mxu1 }
 0x180   :  { %17200 = vst [vmem:[#allocation30_spill] sm:$0xff] %v14191_v14  ;;  %v14193_v45 = vpop.f32.mrf.mxu0  ;;  %v10526_v14 = vcombine.low %v3484_v49, %v14202_v27  ;;  %v1033_v49 = vadd.f32 %v14030_v18, %v716_v2  ;;  %v1657_v35 = vadd.f32 %v14050_v57, %v1409_v50  ;;  %v1669_v42 = vadd.f32 %v14100_v59, %v1421_v19 }
 0x181   :  { %17201 = vst [vmem:[#allocation31_spill] sm:$0xff] %v14193_v45  ;;  %v14200_v46 = vpop.f32.mrf.mxu1  ;;  %v700_v45 = vadd.f32 %v13948_v13, %v13935_v51  ;;  %v14225_v13 = vpop.permute.xlu0 %3182  ;;  %v2346_v59 = vadd.f32 %v14134_v7, %v14061_v43  ;;  %v2352_v50 = vadd.f32 %v14144_v8, %v14071_v56  ;;  %v17205_v8 = vld [vmem:[#allocation16_spill] sm:$0xff] }
 0x182   :  { %v14206_v15 = vpop.f32.mrf.mxu0  ;;  %17202 = vst [vmem:[#allocation32_spill] sm:$0xff] %v14225_v13  ;;  %v3787_v1 = vshrl.u32 %v10526_v14, 16  ;;  %v3790_v39 = vshll.u32 %v10526_v14, 16  ;;  %v1429_v63 = vadd.f32 %v14052_v3, %v1033_v49  ;;  %v1665_v14 = vadd.f32 %v14079_v48, %v1417_v23  ;;  %v14278_v7 = vpop.permute.xlu1 %3188  ;;  %v17210_v23 = vld [vmem:[#allocation19_spill] sm:$0xff] }
 0x183   :  { %v14215_v52 = vpop.f32.mrf.mxu1  ;;  %v1029_v11 = vadd.f32 %v14015_v0, %v700_v45  ;;  %v1661_v45 = vadd.f32 %v14066_v5, %v1413_v60  ;;  %v1939_v36 = vadd.f32 %v14068_v9, %v1657_v35  ;;  %v2348_v48 = vadd.f32 %v14130_v47, %v14055_v37  ;;  %17204 = vst [vmem:[#allocation34_spill] sm:$0xff] %v14278_v7  ;;  %v17211_v35 = vld [vmem:[#allocation20_spill] sm:$0xff] }
 0x184   :  { %v14218_v6 = vpop.f32.mrf.mxu0  ;;  %v14244_v57 = vrot.slane %v3787_v1, 3  ;;  %v14246_v2 = vrot.slane %v3790_v39, 4  ;;  %v1951_v43 = vadd.f32 %v14116_v12, %v1669_v42  ;;  %v2353_v47 = vadd.f32 %v14152_v31, %v14077_v4  ;;  %v17208_v1 = vld [vmem:[#allocation6_spill] sm:$0xff]  ;;  %v17209_v39 = vld [vmem:[#allocation21_spill] sm:$0xff] }
 0x185   :  { %v14223_v51 = vpop.f32.mrf.mxu1  ;;  %v1425_v18 = vadd.f32 %v14032_v38, %v1029_v11  ;;  %v1677_v38 = vadd.f32 %v14126_v61, %v1429_v63  ;;  %v14262_v26 = vpop.permute.xlu0 %3185  ;;  %v1947_v61 = vadd.f32 %v14102_v25, %v1665_v14  ;;  %v2356_v12 = vadd.f32 %v14160_v40, %v14087_v17  ;;  %v17207_v11 = vld [vmem:[#allocation18_spill] sm:$0xff]  ;;  %v17214_v40 = vld [vmem:[#allocation25_spill] sm:$0xff] }
 0x186   :  { %v14227_v41 = vpop.f32.mrf.mxu0  ;;  %17203 = vst [vmem:[#allocation33_spill] sm:$0xff] %v14262_v26  ;;  %v3793_v25 = vor.u32 %v14246_v2, %v14244_v57  ;;  %v2596_v4 = vadd.f32 %v17205_v8, %v2348_v48  ;;  %v2594_v31 = vadd.f32 %v17206_v62, %v2346_v59  ;;  %v2597_v49 = vadd.f32 %v17207_v11, %v2349_v58  ;;  %v17215_v14 = vld [vmem:[#allocation22_spill] sm:$0xff]  ;;  %v17220_v58 = vld [vmem:[#allocation28_spill] sm:$0xff]  ;;  %v17223_v8 = vld [vmem:[#allocation11_spill] sm:$0xff] }
 0x187   :  { %v14232_v33 = vpop.f32.mrf.mxu1  ;;  %v1673_v16 = vadd.f32 %v14114_v55, %v1425_v18  ;;  %v1943_v55 = vadd.f32 %v14081_v54, %v1661_v45  ;;  %v14284_v56 = vadd.f32 %v14142_v29, %v1677_v38  ;;  %v2354_v60 = vadd.f32 %v17209_v39, %v17208_v1  ;;  %v17213_v18 = vld [vmem:[#allocation23_spill] sm:$0xff]  ;;  %v17218_v38 = vld [vmem:[#allocation9_spill] sm:$0xff]  ;;  %v17219_v59 = vld [vmem:[#allocation10_spill] sm:$0xff] }
 0x188   :  { %v14235_v0 = vpop.f32.mrf.mxu0  ;;  %v14298_v19 = vadd.f32 %v17211_v35, %v2352_v50  ;;  %v2355_v63 = vadd.f32 %v17214_v40, %v1947_v61  ;;  %vm17068_vm12 = vcmp.eq.s32.totalorder %v14278_v7, 1  ;;  %v14305_v42 = vadd.f32 %v17215_v14, %v2350_v24  ;;  %v14319_v61 = vld [vmem:[%s17057_s2] ss:$0 sm:$0xff]  ;;  %v17221_v50 = vld [vmem:[#allocation26_spill] sm:$0xff]  ;;  %v17224_v1 = vld [vmem:[#allocation29_spill] sm:$0xff] }
 0x189   :  { %v14241_v21 = vpop.f32.mrf.mxu1  ;;  %v1955_v32 = vadd.f32 %v14128_v30, %v1673_v16  ;;  %v14310_v16 = vpop.permute.xlu0 %3194  ;;  %v2360_v48 = vadd.f32 %v14179_v44, %v17218_v38  ;;  %vm17067_vm13 = vcmp.eq.s32.totalorder %v14225_v13, 1  ;;  %v2361_v44 = vadd.f32 %v14187_v20, %v17223_v8  ;;  %v17226_v35 = vld [vmem:[#allocation31_spill] sm:$0xff] }
 0x18a   :  { %v11892_v34 = vpop.f32.mrf.mxu0  ;;  %17217 = vst [vmem:[#allocation16_spill] sm:$0xff] %v14310_v16  ;;  %v14331_v39 = vadd.f32 %v17224_v1, %v2354_v60  ;;  %v14349_v60 = vadd.f32 %v14200_v46, %v2355_v63  ;;  %vm17147_vm10 = vcmp.eq.s32.totalorder %v14262_v26, 1 }
 0x18b   :  { %v14251_v3 = vpop.f32.mrf.mxu1  ;;  %v14254_v5 = vadd.f32 %v11892_v34, %v14132_v28  ;;  %v2347_v28 = vadd.f32 %v14140_v22, %v1939_v36  ;;  %v2351_v22 = vadd.f32 %v14156_v53, %v1943_v55  ;;  %v17212_v53 = vld [vmem:[#allocation8_spill] sm:$0xff]  ;;  %v2358_v55 = vadd.f32 %v17220_v58, %v17219_v59  ;;  %v17230_v58 = vld [vmem:[#allocation14_spill] sm:$0xff] }
 0x18c   :  { %v14264_v9 = vpop.f32.mrf.mxu0  ;;  %v2357_v17 = vadd.f32 %v17213_v18, %v17212_v53  ;;  %v17216_v34 = vld [vmem:[#allocation24_spill] sm:$0xff]  ;;  %v2359_v53 = vadd.f32 %v17226_v35, %v1951_v43  ;;  %v14365_v63 = vadd.f32 %v14232_v33, %v2361_v44  ;;  %v17232_v33 = vld [vmem:[#allocation15_spill] sm:$0xff] }
 0x18d   :  { %v14271_v37 = vpop.f32.mrf.mxu1  ;;  %v2595_v29 = vadd.f32 %v17210_v23, %v2347_v28  ;;  %v14308_v36 = vadd.f32 %v17216_v34, %v2353_v47  ;;  %v14323_v24 = vadd.f32 %v17221_v50, %v2351_v22  ;;  %v17222_v47 = vld [vmem:[#allocation27_spill] sm:$0xff]  ;;  %v14333_v23 = vpop.permute.xlu1 %3191  ;;  %v17227_v18 = vld [vmem:[#allocation12_spill] sm:$0xff]  ;;  %v17228_v22 = vld [vmem:[#allocation13_spill] sm:$0xff]  ;;  %v14359_v59 = vadd.f32 %v14223_v51, %v2358_v55 }
 0x18e   :  { %v11893_v54 = vpop.f32.mrf.mxu0  ;;  %17225 = vst [vmem:[#allocation17_spill] sm:$0xff] %v14333_v23  ;;  %v2364_v40 = vadd.f32 %v14206_v15, %v17227_v18  ;;  %v2362_v14 = vadd.f32 %v14218_v6, %v17228_v22  ;;  %vm17069_vm14 = vcmp.eq.s32.totalorder %v14333_v23, 1  ;;  %v14356_v6 = vadd.f32 %v14215_v52, %v2360_v48  ;;  %v14369_v52 = vpop.permute.xlu0 %3200 }
 0x18f   :  { %v14289_v10 = vpop.f32.mrf.mxu1  ;;  %v14326_v54 = vadd.f32 %v17222_v47, %v2356_v12  ;;  %v14343_v12 = vld [vmem:[%s17058_s3] ss:$0 sm:$0xff]  ;;  %17231 = vst [vmem:[#allocation18_spill] sm:$0xff] %v14369_v52  ;;  %v14372_v51 = vadd.f32 %v14241_v21, %v2359_v53  ;;  %vm17070_vm8 = vcmp.eq.s32.totalorder %v14369_v52, 1 }
 0x190   :  { %v2335_v30 = vpop.f32.mrf.mxu0 }
 0x191   :  { %v2567_v45 = vpop.f32.mrf.mxu1  ;;  %v14387_v21 = vpop.permute.xlu1 %3197 }
 0x192   :  { %v11936_v28 = vpop.f32.mrf.mxu0  ;;  %17233 = vst [vmem:[#allocation6_spill] sm:$0xff] %v14387_v21 }
 0x193   :  { %v11924_v62 = vpop.f32.mrf.mxu1  ;;  %v3008_v11 = vadd.f32 %v11936_v28, %v2596_v4  ;;  %v17229_v4 = vld [vmem:[#allocation30_spill] sm:$0xff]  ;;  %v2363_v28 = vadd.f32 %v14235_v0, %v1955_v32  ;;  %v14378_v0 = vadd.f32 %v14271_v37, %v2362_v14  ;;  %v14382_v32 = vadd.f32 %v14264_v9, %v17232_v33 }
 0x194   :  { %v2912_v20 = vpop.f32.mrf.mxu0  ;;  %v14346_v34 = vadd.f32 %v17229_v4, %v2357_v17  ;;  %v2365_v17 = vadd.f32 %v14227_v41, %v17230_v58  ;;  %v14375_v41 = vadd.f32 %v14251_v3, %v2364_v40  ;;  %v14395_v9 = vadd.f32 %v2335_v30, %v14284_v56 }
 0x195   :  { %v14352_v43 = vpop.f32.mrf.mxu1  ;;  %v3038_v15 = vmul.f32 %v14319_v61, %v3008_v11  ;;  %v3006_v38 = vadd.f32 %v2912_v20, %v2594_v31  ;;  %v14392_v37 = vadd.f32 %v2567_v45, %v2363_v28  ;;  %v14400_v40 = vadd.f32 %v11924_v62, %v14254_v5  ;;  %v14406_v20 = vpop.permute.xlu0 %3206 }
 0x196   :  { %v11937_v46 = vpop.f32.mrf.mxu0  ;;  %v14390_v3 = vadd.f32 %v14289_v10, %v2365_v17  ;;  %17234 = vst [vmem:[#allocation21_spill] sm:$0xff] %v14406_v20 }
 0x197   :  { %v11925_v50 = vpop.f32.mrf.mxu1  ;;  %v3068_v47 = vadd.f32 %v14343_v12, %v3038_v15  ;;  %v3036_v31 = vmul.f32 %v14319_v61, %v3006_v38  ;;  %v3009_v8 = vadd.f32 %v11937_v46, %v2597_v49  ;;  %v14417_v46 = vpop.permute.xlu1 %3203 }
 0x198   :  { %v2915_v48 = vpop.f32.mrf.mxu0  ;;  %17235 = vst [vmem:[#allocation19_spill] sm:$0xff] %v14417_v46 }
 0x199   :  { %vm3091_vm9 = vcmp.gt.f32.partialorder %v3068_v47, 0.0  ;;  %v3114_v49 = vmul.f32 0.1, %v3068_v47  ;;  %v3066_v55 = vadd.f32 %v14343_v12, %v3036_v31  ;;  %v3039_v44 = vmul.f32 %v14319_v61, %v3009_v8 }
 0x19a   :  { %v3007_v11 = vadd.f32 %v2915_v48, %v2595_v29  ;;  %v11940_v1 = vpop.f32.mrf.mxu0 }
 0x19b   :  { %v3137_v35 = vsel %vm3091_vm9, %v3068_v47, %v3114_v49  ;;  %vm3089_vm11 = vcmp.gt.f32.partialorder %v3066_v55, 0.0  ;;  %v3112_v53 = vmul.f32 0.1, %v3066_v55  ;;  %v3069_v18 = vadd.f32 %v14343_v12, %v3039_v44 }
 0x19c   :  { %v3275_v10 = vsel %vm17068_vm12, %v3137_v35, 0.0  ;;  %v3037_v45 = vmul.f32 %v14319_v61, %v3007_v11  ;;  %v3012_v56 = vadd.f32 %v11940_v1, %v14298_v19  ;;  %v2928_v30 = vpop.f32.mrf.mxu0  ;;  %vm17071_vm12 = vcmp.eq.s32.totalorder %v14417_v46, 1 }
 0x19d   :  { %v11102_v29 = vpack.c.bf16 %v3275_v10, %v3275_v10  ;;  %v3135_v22 = vsel %vm3089_vm11, %v3066_v55, %v3112_v53  ;;  %vm3092_vm9 = vcmp.gt.f32.partialorder %v3069_v18, 0.0  ;;  %v3115_v14 = vmul.f32 0.1, %v3069_v18 }
 0x19e   :  { %v3273_v4 = vsel %vm17067_vm13, %v3135_v22, 0.0  ;;  %v3067_v5 = vadd.f32 %v14343_v12, %v3037_v45  ;;  %v3042_v62 = vmul.f32 %v14319_v61, %v3012_v56  ;;  %v3010_v15 = vadd.f32 %v2928_v30, %v14305_v42  ;;  %v11941_v38 = vpop.f32.mrf.mxu0  ;;  %v14436_v45 = vpop.permute.xlu0 %3212 }
 0x19f   :  { %v14413_v58 = vrot.slane %v11102_v29, 7  ;;  %v11100_v19 = vpack.c.bf16 %v3273_v4, %v3273_v4  ;;  %v3138_v17 = vsel %vm3092_vm9, %v3069_v18, %v3115_v14  ;;  %v3013_v28 = vadd.f32 %v11941_v38, %v14308_v36  ;;  %vm14427_vm9 = vmor %vm3366_vm15, %vm3367_vm6  ;;  %17239 = vst [vmem:[#allocation8_spill] sm:$0xff] %v14436_v45 }
 0x1a0   :  { %vm17076_vm11 = vcmp.eq.s32.totalorder %v14310_v16, 1  ;;  %v3276_v50 = vsel %vm17069_vm14, %v3138_v17, 0.0  ;;  %vm3090_vm13 = vcmp.gt.f32.partialorder %v3067_v5, 0.0  ;;  %v3113_v47 = vmul.f32 0.1, %v3067_v5  ;;  %v2931_v8 = vpop.f32.mrf.mxu0 }
 0x1a1   :  { %v3072_v31 = vadd.f32 %v14343_v12, %v3042_v62  ;;  %v3376_v42 = vrot.slane %v14413_v58, 4  ;;  %v3369_v33 = vrot.slane %v11100_v19, 7  ;;  %v11103_v48 = vpack.c.bf16 %v3276_v50, %v3276_v50 }
 0x1a2   :  { %v3040_v36 = vmul.f32 %v14319_v61, %v3010_v15  ;;  %v17236_v49 = vmov 0  ;;  %v3136_v55 = vsel %vm3090_vm13, %v3067_v5, %v3113_v47  ;;  %v3043_v11 = vmul.f32 %v14319_v61, %v3013_v28  ;;  %v11944_v1 = vpop.f32.mrf.mxu0  ;;  %v14445_v15 = vpop.permute.xlu1 %3209 }
 0x1a3   :  { %v17237_v49 = vsel %vm14427_vm9, 4294967295, %v17236_v49  ;;  %vm3095_vm14 = vcmp.gt.f32.partialorder %v3072_v31, 0.0  ;;  %v3118_v44 = vmul.f32 0.1, %v3072_v31  ;;  %v3370_v35 = vrot.slane %v3369_v33, 4  ;;  %17240 = vst [vmem:[#allocation23_spill] sm:$0xff] %v14445_v15 }
 0x1a4   :  { %17238 = vst [vmem:[#allocation20_spill] sm:$0xff] %v17237_v49  ;;  %3460 = vst.msk [vmem:[#allocation2 + $0xc] sm:$0xe] %vm17148_vm7, %v3369_v33  ;;  %v3377_v53 = vrot.slane %v11103_v48, 7  ;;  %v3274_v18 = vsel %vm17147_vm10, %v3136_v55, 0.0  ;;  %v3070_v10 = vadd.f32 %v14343_v12, %v3040_v36  ;;  %v3073_v29 = vadd.f32 %v14343_v12, %v3043_v11  ;;  %v2944_v14 = vpop.f32.mrf.mxu0 }
 0x1a5   :  { %v11101_v56 = vpack.c.bf16 %v3274_v18, %v3274_v18  ;;  %v3141_v30 = vsel %vm3095_vm14, %v3072_v31, %v3118_v44  ;;  %v3011_v22 = vadd.f32 %v2931_v8, %v14323_v24  ;;  %vm17072_vm13 = vcmp.eq.s32.totalorder %v14387_v21, 1 }
 0x1a6   :  { %v3378_v4 = vsel %vm14427_vm9, %v3376_v42, %v3377_v53  ;;  %v3379_v5 = vrot.slane %v3377_v53, 4  ;;  %v3279_v62 = vsel %vm17070_vm8, %v3141_v30, 0.0  ;;  %vm3093_vm15 = vcmp.gt.f32.partialorder %v3070_v10, 0.0  ;;  %v11945_v24 = vpop.f32.mrf.mxu0 }
 0x1a7   :  { %3463 = vst.msk [vmem:[#allocation2 + $0x18] sm:$0xf] %vm56_vm0, %v3378_v4  ;;  %v3371_v38 = vrot.slane %v11101_v56, 7  ;;  %v11106_v19 = vpack.c.bf16 %v3279_v62, %v3279_v62  ;;  %v3116_v17 = vmul.f32 0.1, %v3070_v10  ;;  %vm3096_vm14 = vcmp.gt.f32.partialorder %v3073_v29, 0.0 }
 0x1a8   :  { %vm17073_vm6 = vcmp.eq.s32.totalorder %v14436_v45, 1  ;;  %v3119_v28 = vmul.f32 0.1, %v3073_v29  ;;  %v3041_v50 = vmul.f32 %v14319_v61, %v3011_v22  ;;  %v3016_v47 = vadd.f32 %v11944_v1, %v14326_v54  ;;  %v2947_v36 = vpop.f32.mrf.mxu0  ;;  %v14473_v22 = vpop.permute.xlu1 %3215 }
 0x1a9   :  { %v3014_v31 = vadd.f32 %v2944_v14, %v14331_v39  ;;  %v3372_v8 = vsel %vm14427_vm9, %v3370_v35, %v3371_v38  ;;  %v3373_v42 = vrot.slane %v3371_v38, 4  ;;  %v14454_v33 = vrot.slane %v11106_v19, 7  ;;  %v14463_v39 = vpop.permute.xlu0 %3218  ;;  %17242 = vst [vmem:[#allocation22_spill] sm:$0xff] %v14473_v22 }
 0x1aa   :  { %v3139_v48 = vsel %vm3093_vm15, %v3070_v10, %v3116_v17  ;;  %3461 = vst.msk [vmem:[#allocation2 + $0x10] sm:$0xf] %vm56_vm0, %v3372_v8  ;;  %v3142_v44 = vsel %vm3096_vm14, %v3073_v29, %v3119_v28  ;;  %v3071_v11 = vadd.f32 %v14343_v12, %v3041_v50  ;;  %v3046_v54 = vmul.f32 %v14319_v61, %v3016_v47  ;;  %v11948_v10 = vpop.f32.mrf.mxu0 }
 0x1ab   :  { %v3277_v55 = vsel %vm17076_vm11, %v3139_v48, 0.0  ;;  %vm17074_vm8 = vcmp.eq.s32.totalorder %v14406_v20, 1  ;;  %17241 = vst [vmem:[#allocation25_spill] sm:$0xff] %v14463_v39  ;;  %v3375_v1 = vsel %vm14427_vm9, %v3373_v42, %v14413_v58  ;;  %v3388_v35 = vrot.slane %v14454_v33, 4 }
 0x1ac   :  { %v11104_v53 = vpack.c.bf16 %v3277_v55, %v3277_v55  ;;  %v3280_v18 = vsel %vm17071_vm12, %v3142_v44, 0.0  ;;  %3462 = vst.msk [vmem:[#allocation2 + $0x14] sm:$0xf] %vm56_vm0, %v3375_v1  ;;  %vm3094_vm15 = vcmp.gt.f32.partialorder %v3071_v11, 0.0  ;;  %v3117_v30 = vmul.f32 0.1, %v3071_v11  ;;  %v2960_v38 = vpop.f32.mrf.mxu0 }
 0x1ad   :  { %v11107_v56 = vpack.c.bf16 %v3280_v18, %v3280_v18  ;;  %v3076_v29 = vadd.f32 %v14343_v12, %v3046_v54  ;;  %v3044_v4 = vmul.f32 %v14319_v61, %v3014_v31  ;;  %v3017_v58 = vadd.f32 %v11945_v24, %v14346_v34 }
 0x1ae   :  { %v3380_v14 = vrot.slane %v11104_v53, 7  ;;  %v3015_v62 = vadd.f32 %v2947_v36, %v14349_v60  ;;  %v3140_v17 = vsel %vm3094_vm15, %v3071_v11, %v3117_v30  ;;  %vm17075_vm12 = vcmp.eq.s32.totalorder %v14473_v22, 1  ;;  %v11949_v24 = vpop.f32.mrf.mxu0  ;;  %v14505_v53 = vpop.permute.xlu1 %3221 }
 0x1af   :  { %v14478_v19 = vrot.slane %v11107_v56, 7  ;;  %vm3099_vm14 = vcmp.gt.f32.partialorder %v3076_v29, 0.0  ;;  %v3122_v28 = vmul.f32 0.1, %v3076_v29  ;;  %v14483_v50 = vadd.f32 %v14352_v43, %v14382_v32  ;;  %v14494_v43 = vld [vmem:[#allocation2 + $0xc] sm:$0xf]  ;;  %v14497_v32 = vpop.permute.xlu0 %3224 }
 0x1b0   :  { %v3381_v47 = vsel %vm14427_vm9, %v3379_v5, %v3380_v14  ;;  %v3278_v34 = vsel %vm17072_vm13, %v3140_v17, 0.0  ;;  %v3074_v60 = vadd.f32 %v14343_v12, %v3044_v4  ;;  %v3382_v31 = vrot.slane %v3380_v14, 4  ;;  %17243 = vst [vmem:[#allocation24_spill] sm:$0xff] %v14497_v32  ;;  %v2963_v44 = vpop.f32.mrf.mxu0  ;;  %17244 = vst [vmem:[#allocation9_spill] sm:$0xff] %v14505_v53 }
 0x1b1   :  { %3464 = vst.msk [vmem:[#allocation2 + $0x1c] sm:$0xf] %vm56_vm0, %v3381_v47  ;;  %v3390_v8 = vsel %vm14427_vm9, %v3388_v35, %v14478_v19  ;;  %v11105_v42 = vpack.c.bf16 %v3278_v34, %v3278_v34  ;;  %v3145_v48 = vsel %vm3099_vm14, %v3076_v29, %v3122_v28  ;;  %vm17079_vm15 = vcmp.eq.s32.totalorder %v14445_v15, 1 }
 0x1b2   :  { %3467 = vst.msk [vmem:[#allocation2 + $0x28] sm:$0xf] %vm56_vm0, %v3390_v8  ;;  %v3283_v5 = vsel %vm17073_vm6, %v3145_v48, 0.0  ;;  %vm3097_vm13 = vcmp.gt.f32.partialorder %v3074_v60, 0.0  ;;  %v3120_v36 = vmul.f32 0.1, %v3074_v60  ;;  %v3047_v55 = vmul.f32 %v14319_v61, %v3017_v58  ;;  %v11952_v14 = vpop.f32.mrf.mxu0 }
 0x1b3   :  { %v3383_v11 = vrot.slane %v11105_v42, 7  ;;  %v11110_v54 = vpack.c.bf16 %v3283_v5, %v3283_v5  ;;  %v3045_v1 = vmul.f32 %v14319_v61, %v3015_v62  ;;  %v3020_v35 = vadd.f32 %v11948_v10, %v14356_v6 }
 0x1b4   :  { %v3143_v18 = vsel %vm3097_vm13, %v3074_v60, %v3120_v36  ;;  %v3077_v56 = vadd.f32 %v14343_v12, %v3047_v55  ;;  %v3018_v30 = vadd.f32 %v2960_v38, %v14359_v59  ;;  %v14511_v29 = vcombine.low %v14202_v27, %v14494_v43  ;;  %v2976_v38 = vpop.f32.mrf.mxu0  ;;  %v14531_v60 = vpop.permute.xlu0 %3230 }
 0x1b5   :  { %vm17077_vm14 = vcmp.eq.s32.totalorder %v14497_v32, 1  ;;  %v3384_v4 = vsel %vm14427_vm9, %v3382_v31, %v3383_v11  ;;  %v3385_v58 = vrot.slane %v3383_v11, 4  ;;  %v14516_v62 = vrot.slane %v11110_v54, 7  ;;  %17245 = vst [vmem:[#allocation10_spill] sm:$0xff] %v14531_v60  ;;  %v14541_v55 = vpop.permute.xlu1 %3227 }
 0x1b6   :  { %v3281_v6 = vsel %vm17074_vm8, %v3143_v18, 0.0  ;;  %3465 = vst.msk [vmem:[#allocation2 + $0x20] sm:$0xf] %vm56_vm0, %v3384_v4  ;;  %vm3100_vm13 = vcmp.gt.f32.partialorder %v3077_v56, 0.0  ;;  %v3123_v59 = vmul.f32 0.1, %v3077_v56  ;;  %v3075_v27 = vadd.f32 %v14343_v12, %v3045_v1  ;;  %11966 = vmatprep.mubr.msk.bf16.mxu1 %vm251_vm1, %v14511_v29  ;;  %v14534_v48 = vpop.f32.mrf.mxu0 }
 0x1b7   :  { %v11108_v10 = vpack.c.bf16 %v3281_v6, %v3281_v6  ;;  %vm17078_vm6 = vcmp.eq.s32.totalorder %v14463_v39, 1  ;;  %v3391_v17 = vrot.slane %v14478_v19, 4  ;;  %v3387_v28 = vsel %vm14427_vm9, %v3385_v58, %v14454_v33  ;;  %17246 = vst [vmem:[#allocation28_spill] sm:$0xff] %v14541_v55 }
 0x1b8   :  { %v3050_v47 = vmul.f32 %v14319_v61, %v3020_v35  ;;  %v3048_v34 = vmul.f32 %v14319_v61, %v3018_v30  ;;  %3466 = vst.msk [vmem:[#allocation2 + $0x24] sm:$0xf] %vm56_vm0, %v3387_v28  ;;  %v3146_v8 = vsel %vm3100_vm13, %v3077_v56, %v3123_v59  ;;  %vm3098_vm8 = vcmp.gt.f32.partialorder %v3075_v27, 0.0  ;;  %v14546_v18 = vpop.f32.mrf.mxu0  ;;  %v14558_v28 = vpop.permute.xlu0 %3236 }
 0x1b9   :  { %v3392_v31 = vrot.slane %v11108_v10, 7  ;;  %v3121_v42 = vmul.f32 0.1, %v3075_v27  ;;  %v3284_v19 = vsel %vm17075_vm12, %v3146_v8, 0.0  ;;  %v3021_v36 = vadd.f32 %v11949_v24, %v14365_v63  ;;  %17247 = vst [vmem:[#allocation26_spill] sm:$0xff] %v14558_v28 }
 0x1ba   :  { %v3080_v5 = vadd.f32 %v14343_v12, %v3050_v47  ;;  %v3078_v33 = vadd.f32 %v14343_v12, %v3048_v34  ;;  %v3400_v11 = vrot.slane %v14516_v62, 4  ;;  %v11111_v1 = vpack.c.bf16 %v3284_v19, %v3284_v19  ;;  %v14553_v6 = vpop.f32.mrf.mxu0 }
 0x1bb   :  { %v3393_v54 = vsel %vm14427_vm9, %v3391_v17, %v3392_v31  ;;  %v3144_v35 = vsel %vm3098_vm8, %v3075_v27, %v3121_v42  ;;  %vm3265_vm13 = vcmp.eq.s32.totalorder %v14541_v55, 1  ;;  %v3051_v58 = vmul.f32 %v14319_v61, %v3021_v36 }
 0x1bc   :  { %3468 = vst.msk [vmem:[#allocation2 + $0x2c] sm:$0xf] %vm56_vm0, %v3393_v54  ;;  %v3282_v56 = vsel %vm17079_vm15, %v3144_v35, 0.0  ;;  %vm3103_vm12 = vcmp.gt.f32.partialorder %v3080_v5, 0.0  ;;  %v3126_v63 = vmul.f32 0.1, %v3080_v5  ;;  %v3019_v27 = vadd.f32 %v2963_v44, %v14372_v51  ;;  %v14565_v19 = vpop.f32.mrf.mxu0 }
 0x1bd   :  { %vm3101_vm11 = vcmp.gt.f32.partialorder %v3078_v33, 0.0  ;;  %v3401_v24 = vrot.slane %v11111_v1, 7  ;;  %v11109_v30 = vpack.c.bf16 %v3282_v56, %v3282_v56  ;;  %v3124_v4 = vmul.f32 0.1, %v3078_v33  ;;  %v12652_v56 = vld [vmem:[%s17056_s1 + $0x170] sm:$0xff]  }
 0x1be   :  { %v3394_v10 = vrot.slane %v3392_v31, 4  ;;  %v3149_v59 = vsel %vm3103_vm12, %v3080_v5, %v3126_v63  ;;  %v3024_v17 = vadd.f32 %v11952_v14, %v14375_v41  ;;  %vm17083_vm8 = vcmp.eq.s32.totalorder %v14505_v53, 1  ;;  %v14572_v31 = vpop.permute.xlu1 %3233  ;;  %v11957_v54 = vpop.f32.mrf.mxu0 }
 0x1bf   :  { %v3402_v47 = vsel %vm14427_vm9, %v3400_v11, %v3401_v24  ;;  %v3395_v34 = vrot.slane %v11109_v30, 7  ;;  %v3287_v8 = vsel %vm17077_vm14, %v3149_v59, 0.0  ;;  %v3022_v42 = vadd.f32 %v2976_v38, %v14378_v0  ;;  %17248 = vst [vmem:[#allocation27_spill] sm:$0xff] %v14572_v31  ;;  %v3488_v11 = vld [vmem:[#allocation2 + $0x14] sm:$0xf] }
 0x1c0   :  { %vm17082_vm12 = vcmp.eq.s32.totalorder %v14558_v28, 1  ;;  %3471 = vst.msk [vmem:[#allocation2 + $0x38] sm:$0xf] %vm56_vm0, %v3402_v47  ;;  %v11114_v51 = vpack.c.bf16 %v3287_v8, %v3287_v8  ;;  %v3147_v41 = vsel %vm3101_vm11, %v3078_v33, %v3124_v4  ;;  %v3081_v44 = vadd.f32 %v14343_v12, %v3051_v58 }
 0x1c1   :  { %v3049_v14 = vmul.f32 %v14319_v61, %v3019_v27  ;;  %v3396_v5 = vsel %vm14427_vm9, %v3394_v10, %v3395_v34  ;;  %v3397_v36 = vrot.slane %v3395_v34, 4  ;;  %v3285_v0 = vsel %vm17078_vm6, %v3147_v41, 0.0  ;;  %v14592_v10 = vld [vmem:[#allocation2 + $0x10] sm:$0xf]  ;;  %v14598_v34 = vld [vmem:[#allocation2 + $0x1c] sm:$0xf] }
 0x1c2   :  { %v3054_v38 = vmul.f32 %v14319_v61, %v3024_v17  ;;  %3469 = vst.msk [vmem:[#allocation2 + $0x30] sm:$0xf] %vm56_vm0, %v3396_v5  ;;  %v14580_v33 = vrot.slane %v11114_v51, 7  ;;  %v11112_v1 = vpack.c.bf16 %v3285_v0, %v3285_v0  ;;  %vm3104_vm11 = vcmp.gt.f32.partialorder %v3081_v44, 0.0  ;;  %v17250_v0 = vld [vmem:[#allocation7_spill] sm:$0xff] }
 0x1c3   :  { %v3127_v35 = vmul.f32 0.1, %v3081_v44  ;;  %vm17080_vm14 = vcmp.eq.s32.totalorder %v14531_v60, 1  ;;  %v3399_v63 = vsel %vm14427_vm9, %v3397_v36, %v14516_v62  ;;  %v3079_v30 = vadd.f32 %v14343_v12, %v3049_v14  ;;  %v14607_v14 = vpop.permute.xlu1 %3239 }
 0x1c4   :  { %v3084_v4 = vadd.f32 %v14343_v12, %v3054_v38  ;;  %v3052_v58 = vmul.f32 %v14319_v61, %v3022_v42  ;;  %v3403_v59 = vrot.slane %v3401_v24, 4  ;;  %3470 = vst.msk [vmem:[#allocation2 + $0x34] sm:$0xf] %vm56_vm0, %v3399_v63  ;;  %v3404_v27 = vrot.slane %v11112_v1, 7  ;;  %17249 = vst [vmem:[#allocation11_spill] sm:$0xff] %v14607_v14  ;;  %v12657_v1 = vld [vmem:[%s17056_s1 + $0x168] sm:$0xff]  }
 0x1c5   :  { %v3150_v17 = vsel %vm3104_vm11, %v3081_v44, %v3127_v35  ;;  %v14596_v47 = vcombine.low %v14592_v10, %v3488_v11  ;;  %vm3102_vm6 = vcmp.gt.f32.partialorder %v3079_v30, 0.0  ;;  %v3125_v8 = vmul.f32 0.1, %v3079_v30  ;;  %v3489_v44 = vld [vmem:[#allocation2 + $0x18] sm:$0xf]  ;;  %v14620_v35 = vpop.permute.xlu0 %3242 }
 0x1c6   :  { %v3288_v62 = vsel %vm3265_vm13, %v3150_v17, 0.0  ;;  %vm3107_vm15 = vcmp.gt.f32.partialorder %v3084_v4, 0.0  ;;  %v3412_v42 = vrot.slane %v14580_v33, 4  ;;  %v3405_v24 = vsel %vm14427_vm9, %v3403_v59, %v3404_v27  ;;  %17251 = vst [vmem:[#allocation29_spill] sm:$0xff] %v14620_v35 }
 0x1c7   :  { %v11115_v51 = vpack.c.bf16 %v3288_v62, %v3288_v62  ;;  %v3130_v41 = vmul.f32 0.1, %v3084_v4  ;;  %11967 = vmatmul.mubr.msk.bf16.vlgmr.msra.gmra.mxu1 %vm251_vm1, %v14596_v47  ;;  %3472 = vst.msk [vmem:[#allocation2 + $0x3c] sm:$0xf] %vm56_vm0, %v3405_v24  ;;  %v3148_v5 = vsel %vm3102_vm6, %v3079_v30, %v3125_v8  ;;  %v3082_v36 = vadd.f32 %v14343_v12, %v3052_v58 }
 0x1c8   :  { %12023 = vmatpush3.bf16.msra.mxu1 %v17250_v0  ;;  %v3025_v38 = vadd.f32 %v14534_v48, %v14390_v3  ;;  %v14615_v54 = vcombine.low %v3489_v44, %v14598_v34  ;;  %vm17081_vm11 = vcmp.eq.s32.totalorder %v14607_v14, 1  ;;  %v3286_v30 = vsel %vm17083_vm8, %v3148_v5, 0.0  ;;  %v2583_v3 = vpop.f32.mrf.mxu1 }
 0x1c9   :  { %v3413_v63 = vrot.slane %v11115_v51, 7  ;;  %v3153_v58 = vsel %vm3107_vm15, %v3084_v4, %v3130_v41  ;;  %v10528_v59 = vcombine.low %v3488_v11, %v3489_v44  ;;  %12024 = vmatprep.subr.bf16.mxu1 %v12652_v56  ;;  %v11113_v48 = vpack.c.bf16 %v3286_v30, %v3286_v30 }
 0x1ca   :  { %v3291_v17 = vsel %vm17082_vm12, %v3153_v58, 0.0  ;;  %vm3105_vm6 = vcmp.gt.f32.partialorder %v3082_v36, 0.0  ;;  %v3128_v62 = vmul.f32 0.1, %v3082_v36  ;;  %11970 = vmatprep.mubr.msk.bf16.mxu1 %vm251_vm1, %v14615_v54  ;;  %v3406_v8 = vrot.slane %v3404_v27, 4 }
 0x1cb   :  { %v3414_v24 = vsel %vm14427_vm9, %v3412_v42, %v3413_v63  ;;  %v11118_v51 = vpack.c.bf16 %v3291_v17, %v3291_v17  ;;  %v3055_v5 = vmul.f32 %v14319_v61, %v3025_v38  ;;  %v3407_v11 = vrot.slane %v11113_v48, 7  ;;  %v12663_v42 = vld [vmem:[%s17056_s1 + $0x160] sm:$0xff]   ;;  %v14645_v48 = vpop.permute.xlu0 %3248 }
 0x1cc   :  { %3475 = vst.msk [vmem:[#allocation2 + $0x48] sm:$0xf] %vm56_vm0, %v3414_v24  ;;  %v3151_v4 = vsel %vm3105_vm6, %v3082_v36, %v3128_v62  ;;  %v3804_v41 = vshrl.u32 %v10528_v59, 16  ;;  %v3807_v44 = vshll.u32 %v10528_v59, 16  ;;  %12025 = vmatpush3.bf16.msra.mxu1 %v12652_v56  ;;  %v2615_v0 = vadd.f32 %v2583_v3, %v14395_v9  ;;  %17252 = vst [vmem:[#allocation31_spill] sm:$0xff] %v14645_v48  ;;  %v14651_v62 = vld [vmem:[%s17056_s1 + $0x1b8] sm:$0xff]  }
 0x1cd   :  { %v14635_v30 = vrot.slane %v11118_v51, 7  ;;  %v3289_v27 = vsel %vm17080_vm14, %v3151_v4, 0.0  ;;  %v3085_v58 = vadd.f32 %v14343_v12, %v3055_v5  ;;  %12026 = vmatprep.subr.bf16.mxu1 %v12657_v1  ;;  %v3408_v36 = vsel %vm14427_vm9, %v3406_v8, %v3407_v11  ;;  %v14662_v5 = vld [vmem:[#allocation2 + $0x24] sm:$0xf] }
 0x1ce   :  { %v3409_v38 = vrot.slane %v3407_v11, 4  ;;  %v11116_v59 = vpack.c.bf16 %v3289_v27, %v3289_v27  ;;  %v3806_v56 = vrot.slane %v3804_v41, 3  ;;  %v3415_v9 = vrot.slane %v3413_v63, 4  ;;  %3473 = vst.msk [vmem:[#allocation2 + $0x40] sm:$0xf] %vm56_vm0, %v3408_v36 }
 0x1cf   :  { %vm3108_vm15 = vcmp.gt.f32.partialorder %v3085_v58, 0.0  ;;  %v3131_v3 = vmul.f32 0.1, %v3085_v58  ;;  %v3809_v17 = vrot.slane %v3807_v44, 4  ;;  %vm3267_vm6 = vcmp.eq.s32.totalorder %v14572_v31, 1 }
 0x1d0   :  { %v3411_v8 = vsel %vm14427_vm9, %v3409_v38, %v14580_v33  ;;  %v3424_v24 = vrot.slane %v14635_v30, 4  ;;  %v14658_v51 = vrot.slane %v11116_v59, 7  ;;  %v3023_v63 = vadd.f32 %v14546_v18, %v14392_v37  ;;  %12027 = vmatpush3.bf16.msra.mxu1 %v12657_v1  ;;  %v14671_v44 = vld [vmem:[#allocation2 + $0x28] sm:$0xf]  ;;  %v14673_v27 = vld [vmem:[#allocation2 + $0x2c] sm:$0xf]  ;;  %v2995_v38 = vpop.f32.mrf.mxu0  ;;  %v14686_v59 = vpop.permute.xlu1 %3245 }
 0x1d1   :  { %3474 = vst.msk [vmem:[#allocation2 + $0x44] sm:$0xf] %vm56_vm0, %v3411_v8  ;;  %v3154_v11 = vsel %vm3108_vm15, %v3085_v58, %v3131_v3  ;;  %v10527_v4 = vcombine.low %v14494_v43, %v14592_v10  ;;  %v3028_v41 = vadd.f32 %v14553_v6, %v14400_v40  ;;  %v14669_v33 = vor.u32 %v3809_v17, %v3806_v56  ;;  %v3491_v36 = vld [vmem:[#allocation2 + $0x20] sm:$0xf] }
 0x1d2   :  { %12028 = vmatprep.subr.bf16.mxu1 %v12663_v42  ;;  %vm17084_vm14 = vcmp.eq.s32.totalorder %v14645_v48, 1  ;;  %v3417_v37 = vsel %vm14427_vm9, %v3415_v9, %v14658_v51  ;;  %v3418_v18 = vrot.slane %v14658_v51, 4  ;;  %v3292_v43 = vsel %vm17081_vm11, %v3154_v11, 0.0  ;;  %17253 = vst [vmem:[#allocation12_spill] sm:$0xff] %v14686_v59 }
 0x1d3   :  { %v3053_v40 = vmul.f32 %v14319_v61, %v3023_v63  ;;  %3476 = vst.msk [vmem:[#allocation2 + $0x4c] sm:$0xf] %vm56_vm0, %v3417_v37  ;;  %v11119_v6 = vpack.c.bf16 %v3292_v43, %v3292_v43  ;;  %v3795_v10 = vshrl.u32 %v10527_v4, 16  ;;  %v3798_v1 = vshll.u32 %v10527_v4, 16 }
 0x1d4   :  { %v3058_v58 = vmul.f32 %v14319_v61, %v3028_v41  ;;  %vm3270_vm15 = vcmp.eq.s32.totalorder %v14620_v35, 1  ;;  %v3026_v9 = vadd.f32 %v14565_v19, %v14483_v50  ;;  %v14692_v3 = vcombine.low %v3491_v36, %v14662_v5  ;;  %12029 = vmatpush3.bf16.msra.mxu1 %v12663_v42 }
 0x1d5   :  { %v3083_v56 = vadd.f32 %v14343_v12, %v3053_v40  ;;  %v14696_v17 = vcombine.low %v14671_v44, %v14673_v27  ;;  %v14698_v8 = vrot.slane %v11119_v6, 7  ;;  %v3797_v63 = vrot.slane %v3795_v10, 3  ;;  %12086 = vmatprep.subr.bf16.mxu1 %v14651_v62 }
 0x1d6   :  { %v3800_v11 = vrot.slane %v3798_v1, 4  ;;  %v3088_v4 = vadd.f32 %v14343_v12, %v3058_v58  ;;  %v3056_v50 = vmul.f32 %v14319_v61, %v3026_v9  ;;  %11971 = vmatmul.mubr.msk.bf16.gmra.mxu1 %vm251_vm1, %v14692_v3  ;;  %v3027_v19 = vadd.f32 %v2995_v38, %v2615_v0 }
 0x1d7   :  { %vm3106_vm11 = vcmp.gt.f32.partialorder %v3083_v56, 0.0  ;;  %v3129_v41 = vmul.f32 0.1, %v3083_v56  ;;  %vm3271_vm12 = vcmp.eq.s32.totalorder %v14686_v59, 1  ;;  %v3426_v42 = vsel %vm14427_vm9, %v3424_v24, %v14698_v8  ;;  %11974 = vmatprep.mubr.msk.bf16.mxu1 %vm251_vm1, %v14696_v17 }
 0x1d8   :  { %v3427_v37 = vrot.slane %v14698_v8, 4  ;;  %v3801_v43 = vor.u32 %v3800_v11, %v3797_v63  ;;  %vm3111_vm8 = vcmp.gt.f32.partialorder %v3088_v4, 0.0  ;;  %3479 = vst.msk [vmem:[#allocation2 + $0x58] sm:$0xf] %vm56_vm0, %v3426_v42  ;;  %v3134_v6 = vmul.f32 0.1, %v3088_v4 }
 0x1d9   :  { %v3152_v40 = vsel %vm3106_vm11, %v3083_v56, %v3129_v41  ;;  %v3086_v10 = vadd.f32 %v14343_v12, %v3056_v50  ;;  %v3057_v0 = vmul.f32 %v14319_v61, %v3027_v19  ;;  %v10529_v38 = vcombine.low %v14598_v34, %v3491_v36  ;;  %v12668_v56 = vld [vmem:[%s17056_s1 + $0x190] sm:$0xff]  }
 0x1da   :  { %v3290_v1 = vsel %vm3267_vm6, %v3152_v40, 0.0  ;;  %v3802_v24 = vsel %vm430_vm2, %v3793_v25, %v3801_v43  ;;  %v3811_v58 = vsel %vm430_vm2, %v3801_v43, %v14669_v33  ;;  %v3157_v61 = vsel %vm3111_vm8, %v3088_v4, %v3134_v6  ;;  %v3496_v34 = vld [vmem:[#allocation2 + $0x34] sm:$0xf]  ;;  %v12829_v4 = vld [vmem:[%s17056_s1 + $0x198] sm:$0xff]   ;;  %v3495_v40 = vld [vmem:[#allocation2 + $0x30] sm:$0xf] }
 0x1db   :  { %v11117_v9 = vpack.c.bf16 %v3290_v1, %v3290_v1  ;;  %11998 = vmatprep.mubr.msk.bf16.mxu0 %vm251_vm1, %v3802_v24  ;;  %vm3109_vm11 = vcmp.gt.f32.partialorder %v3086_v10, 0.0  ;;  %v3132_v63 = vmul.f32 0.1, %v3086_v10  ;;  %v3295_v57 = vsel %vm17084_vm14, %v3157_v61, 0.0  ;;  %v12670_v6 = vld [vmem:[%s17056_s1 + $0x188] sm:$0xff]  }
 0x1dc   :  { %11999 = vmatmul.mubr.msk.bf16.vlgmr.msra.gmra.mxu0 %vm251_vm1, %v3811_v58  ;;  %v3087_v2 = vadd.f32 %v14343_v12, %v3057_v0  ;;  %v3813_v25 = vshrl.u32 %v10529_v38, 16  ;;  %v3816_v11 = vshll.u32 %v10529_v38, 16  ;;  %v11122_v41 = vpack.c.bf16 %v3295_v57, %v3295_v57  ;;  %v3498_v1 = vld [vmem:[#allocation2 + $0x3c] sm:$0xf]  ;;  %v3497_v61 = vld [vmem:[#allocation2 + $0x38] sm:$0xf] }
 0x1dd   :  { %v3419_v36 = vrot.slane %v11117_v9, 7  ;;  %v3155_v50 = vsel %vm3109_vm11, %v3086_v10, %v3132_v63  ;;  %v10530_v19 = vcombine.low %v14662_v5, %v14671_v44  ;;  %12055 = vmatpush3.bf16.msra.mxu0 %v12829_v4  ;;  %vm3482_vm14 = vcmask 518144   ;;  %v3500_v63 = vld [vmem:[#allocation2 + $0x44] sm:$0xf]  ;;  %v3502_v57 = vld [vmem:[#allocation2 + $0x4c] sm:$0xf] }
 0x1de   :  { %v3293_v42 = vsel %vm3270_vm15, %v3155_v50, 0.0  ;;  %vm3110_vm8 = vcmp.gt.f32.partialorder %v3087_v2, 0.0  ;;  %v3133_v43 = vmul.f32 0.1, %v3087_v2  ;;  %v3815_v12 = vrot.slane %v3813_v25, 3  ;;  %12056 = vmatprep.subr.bf16.mxu0 %v12668_v56 }
 0x1df   :  { %v3420_v5 = vsel %vm14427_vm9, %v3418_v18, %v3419_v36  ;;  %v3421_v44 = vrot.slane %v3419_v36, 4  ;;  %v3434_v10 = vrot.slane %v11122_v41, 7  ;;  %v11120_v0 = vpack.c.bf16 %v3293_v42, %v3293_v42  ;;  %v12674_v42 = vld [vmem:[%s17056_s1 + $0x180] sm:$0xff]  }
 0x1e0   :  { %3477 = vst.msk [vmem:[#allocation2 + $0x50] sm:$0xf] %vm56_vm0, %v3420_v5  ;;  %v3156_v24 = vsel %vm3110_vm8, %v3087_v2, %v3133_v43  ;;  %v3818_v58 = vrot.slane %v3816_v11, 4  ;;  %v3822_v38 = vshrl.u32 %v10530_v19, 16  ;;  %v3825_v9 = vshll.u32 %v10530_v19, 16 }
 0x1e1   :  { %v3423_v51 = vsel %vm14427_vm9, %v3421_v44, %v14635_v30  ;;  %v3428_v25 = vrot.slane %v11120_v0, 7  ;;  %v3294_v18 = vsel %vm3271_vm12, %v3156_v24, 0.0  ;;  %v14752_v36 = vcombine.low %v3495_v40, %v3496_v34  ;;  %12057 = vmatpush3.bf16.msra.mxu0 %v12668_v56  ;;  %v3499_v5 = vld [vmem:[#allocation2 + $0x40] sm:$0xf]  ;;  %v3501_v44 = vld [vmem:[#allocation2 + $0x48] sm:$0xf] }
 0x1e2   :  { %3478 = vst.msk [vmem:[#allocation2 + $0x54] sm:$0xf] %vm56_vm0, %v3423_v51  ;;  %v11121_v2 = vpack.c.bf16 %v3294_v18, %v3294_v18  ;;  %v3819_v11 = vor.u32 %v3818_v58, %v3815_v12  ;;  %v3824_v41 = vrot.slane %v3822_v38, 3  ;;  %v3827_v50 = vrot.slane %v3825_v9, 4  ;;  %12058 = vmatprep.subr.bf16.mxu0 %v12670_v6 }
 0x1e3   :  { %v3429_v19 = vsel %vm14427_vm9, %v3427_v37, %v3428_v25  ;;  %v3430_v30 = vrot.slane %v3428_v25, 4  ;;  %11975 = vmatmul.mubr.msk.bf16.gmra.mxu1 %vm251_vm1, %v14752_v36  ;;  %v14761_v4 = vcombine.low %v3497_v61, %v3498_v1  ;;  %v10531_v56 = vcombine.low %v14673_v27, %v3495_v40 }
 0x1e4   :  { %3480 = vst.msk [vmem:[#allocation2 + $0x5c] sm:$0xf] %vm56_vm0, %v3429_v19  ;;  %v3431_v43 = vrot.slane %v11121_v2, 7  ;;  %v3820_v8 = vsel %vm430_vm2, %v14669_v33, %v3819_v11  ;;  %v3828_v12 = vor.u32 %v3827_v50, %v3824_v41  ;;  %v10532_v37 = vcombine.low %v3496_v34, %v3497_v61  ;;  %v14785_v2 = vld [vmem:[%s17056_s1 + $0x1d8] sm:$0xff]  }
 0x1e5   :  { %12002 = vmatprep.mubr.msk.bf16.mxu0 %vm251_vm1, %v3820_v8  ;;  %11978 = vmatprep.mubr.msk.bf16.mxu1 %vm251_vm1, %v14761_v4  ;;  %v3831_v27 = vshrl.u32 %v10531_v56, 16  ;;  %v3834_v40 = vshll.u32 %v10531_v56, 16  ;;  %v14773_v0 = vcombine.low %v3499_v5, %v3500_v63  ;;  %v14775_v24 = vcombine.low %v3501_v44, %v3502_v57 }
 0x1e6   :  { %v3432_v58 = vsel %vm14427_vm9, %v3430_v30, %v3431_v43  ;;  %v3433_v38 = vrot.slane %v3431_v43, 4  ;;  %v3829_v33 = vsel %vm430_vm2, %v3819_v11, %v3828_v12  ;;  %v3840_v34 = vshrl.u32 %v10532_v37, 16  ;;  %12059 = vmatpush3.bf16.msra.mxu0 %v12670_v6 }
 0x1e7   :  { %3481 = vst.msk [vmem:[#allocation2 + $0x60] sm:$0xf] %vm56_vm0, %v3432_v58  ;;  %12003 = vmatmul.mubr.msk.bf16.gmra.mxu0 %vm251_vm1, %v3829_v33  ;;  %v3833_v9 = vrot.slane %v3831_v27, 3  ;;  %v3836_v61 = vrot.slane %v3834_v40, 4  ;;  %v3843_v51 = vshll.u32 %v10532_v37, 16  ;;  %v10533_v25 = vcombine.low %v3498_v1, %v3499_v5  ;;  %12060 = vmatprep.subr.bf16.mxu0 %v12674_v42 }
 0x1e8   :  { %v3503_v18 = vld [vmem:[#allocation2 + $0x50] sm:$0xf]  ;;  %v3435_v11 = vsel %vm14427_vm9, %v3433_v38, %v3434_v10  ;;  %v3842_v41 = vrot.slane %v3840_v34, 3  ;;  %v10534_v6 = vcombine.low %v3500_v63, %v3501_v44  ;;  %v3505_v5 = vld [vmem:[#allocation2 + $0x58] sm:$0xf]  ;;  %vm17263_vm11 = vcmask 1045504  }
 0x1e9   :  { %v10535_v50 = vcombine.low %v3502_v57, %v3503_v18  ;;  %3483 = vst.msk [vmem:[#allocation2 + $0x64] sm:$0x7] %vm3482_vm14, %v3435_v11  ;;  %v3837_v19 = vor.u32 %v3836_v61, %v3833_v9  ;;  %v3845_v30 = vrot.slane %v3843_v51, 4  ;;  %v3849_v56 = vshrl.u32 %v10533_v25, 16  ;;  %v3504_v1 = vld [vmem:[#allocation2 + $0x54] sm:$0xf]  ;;  %vm17264_vm8 = vmmov %vm17263_vm11 }
 0x1ea   :  { %v3852_v43 = vshll.u32 %v10533_v25, 16  ;;  %v3858_v8 = vshrl.u32 %v10534_v6, 16  ;;  %v3861_v37 = vshll.u32 %v10534_v6, 16  ;;  %12061 = vmatpush3.bf16.msra.mxu0 %v12674_v42  ;;  %v10536_v9 = vcombine.low %v3504_v1, %v3505_v5 }
 0x1eb   :  { %v3867_v27 = vshrl.u32 %v10535_v50, 16  ;;  %v3838_v40 = vsel %vm430_vm2, %v3828_v12, %v3837_v19  ;;  %v3846_v58 = vor.u32 %v3845_v30, %v3842_v41  ;;  %11979 = vmatmul.mubr.msk.bf16.gmra.mxu1 %vm251_vm1, %v14773_v0  ;;  %v3851_v10 = vrot.slane %v3849_v56, 3  ;;  %v3506_v57 = vld [vmem:[#allocation2 + $0x5c] sm:$0xf]  ;;  %12118 = vmatprep.subr.bf16.mxu0 %v14785_v2 }
 0x1ec   :  { %v3854_v63 = vrot.slane %v3852_v43, 4  ;;  %12006 = vmatprep.mubr.msk.bf16.mxu0 %vm251_vm1, %v3838_v40  ;;  %11982 = vmatprep.mubr.msk.bf16.mxu1 %vm251_vm1, %v14775_v24  ;;  %v3860_v44 = vrot.slane %v3858_v8, 3  ;;  %v3863_v38 = vrot.slane %v3861_v37, 4  ;;  %v3870_v34 = vshll.u32 %v10535_v50, 16 }
 0x1ed   :  { %v3869_v33 = vrot.slane %v3867_v27, 3  ;;  %v3847_v42 = vsel %vm430_vm2, %v3837_v19, %v3846_v58  ;;  %v14800_v25 = vcombine.low %v3503_v18, %v3504_v1  ;;  %v14803_v6 = vcombine.low %v3505_v5, %v3506_v57  ;;  %v14810_v1 = vld [vmem:[#allocation2 + $0x10] sm:$0xf] }
 0x1ee   :  { %v3855_v12 = vor.u32 %v3854_v63, %v3851_v10  ;;  %v3864_v51 = vor.u32 %v3863_v38, %v3860_v44  ;;  %v3872_v11 = vrot.slane %v3870_v34, 4  ;;  %v3507_v41 = vld [vmem:[#allocation2 + $0x60] sm:$0x3]  ;;  %v3876_v30 = vshrl.u32 %v10536_v9, 16  ;;  %v4389_v44 = vld [vmem:[#allocation2 + $0xc] sm:$0xf] }
 0x1ef   :  { %12007 = vmatmul.mubr.msk.bf16.gmra.mxu0 %vm251_vm1, %v3847_v42  ;;  %v3879_v56 = vshll.u32 %v10536_v9, 16  ;;  %v4096_v19 = vshll.u32 %v14511_v29, 16  ;;  %v10537_v50 = vcombine.low %v3506_v57, %v3507_v41  ;;  %v4100_v18 = vshll.u32 %v14596_v47, 16 }
 0x1f0   :  { %v3856_v61 = vsel %vm430_vm2, %v3846_v58, %v3855_v12  ;;  %v3873_v43 = vor.u32 %v3872_v11, %v3869_v33  ;;  %v3865_v8 = vsel %vm430_vm2, %v3855_v12, %v3864_v51  ;;  %v3878_v37 = vrot.slane %v3876_v30, 3  ;;  %v14822_v30 = vld [vmem:[#allocation2 + $0x14] sm:$0xff]  }
 0x1f1   :  { %12010 = vmatprep.mubr.msk.bf16.mxu0 %vm251_vm1, %v3856_v61  ;;  %v3881_v5 = vrot.slane %v3879_v56, 4  ;;  %v3885_v27 = vshrl.u32 %v10537_v50, 16  ;;  %v3888_v40 = vshll.u32 %v10537_v50, 16  ;;  %v4098_v10 = vrot.slane %v4096_v19, 1 }
 0x1f2   :  { %v3874_v58 = vsel %vm430_vm2, %v3864_v51, %v3873_v43  ;;  %v4094_v38 = vshrl.u32 %v14511_v29, 16  ;;  %v4102_v33 = vrot.slane %v4100_v18, 1  ;;  %v10587_v42 = vcombine.low %v4389_v44, %v14810_v1 }
 0x1f3   :  { %11983 = vmatmul.mubr.msk.bf16.gmra.mxu1 %vm251_vm1, %v14800_v25  ;;  %v3887_v63 = vrot.slane %v3885_v27, 3  ;;  %v3890_v57 = vrot.slane %v3888_v40, 4  ;;  %v3882_v12 = vor.u32 %v3881_v5, %v3878_v37  ;;  %v4107_v34 = vshll.u32 %v14615_v54, 16  ;;  %v14829_v37 = vld [vmem:[#allocation2 + $0x1c] sm:$0xff]  }
 0x1f4   :  { %11986 = vmatprep.mubr.msk.bf16.mxu1 %vm251_vm1, %v14803_v6  ;;  %v10509_v9 = vcombine.low %v3507_v41, %v3507_v41  ;;  %v4099_v61 = vor.u32 %v4098_v10, %v4094_v38  ;;  %v4482_v56 = vshll.u32 %v10587_v42, 16  ;;  %v4114_v29 = vshll.u32 %v14692_v3, 16  ;;  %v14841_v38 = vld [vmem:[#allocation2 + $0x24] sm:$0xff]  }
 0x1f5   :  { %v3891_v11 = vor.u32 %v3890_v57, %v3887_v63  ;;  %v3883_v19 = vsel %vm430_vm2, %v3873_v43, %v3882_v12  ;;  %v4104_v50 = vshrl.u32 %v14596_v47, 16  ;;  %v4487_v27 = vshll.u32 %v14822_v30, 16  ;;  %v12677_v63 = vld [vmem:[%s17056_s1 + $0x1b0] sm:$0xff]  }
 0x1f6   :  { %v4103_v51 = vsel %vm739_vm3, %v4099_v61, %v4102_v33  ;;  %v4484_v5 = vrot.slane %v4482_v56, 1  ;;  %v4111_v40 = vshrl.u32 %v14615_v54, 16  ;;  %v4480_v43 = vshrl.u32 %v10587_v42, 16  ;;  %v12682_v61 = vld [vmem:[%s17056_s1 + $0x1a8] sm:$0xff]  }
 0x1f7   :  { %12011 = vmatmul.mubr.msk.bf16.gmra.mxu0 %vm251_vm1, %v3865_v8  ;;  %v4109_v8 = vrot.slane %v4107_v34, 1  ;;  %v3892_v41 = vsel %vm430_vm2, %v3882_v12, %v3891_v11  ;;  %v4106_v18 = vor.u32 %v4104_v50, %v4102_v33  ;;  %v4121_v10 = vshll.u32 %v14696_v17, 16 }
 0x1f8   :  { %12014 = vmatprep.mubr.msk.bf16.mxu0 %vm251_vm1, %v3874_v58  ;;  %v4116_v58 = vrot.slane %v4114_v29, 1  ;;  %v4495_v44 = vshll.u32 %v14829_v37, 16  ;;  %v4485_v54 = vor.u32 %v4484_v5, %v4480_v43  ;;  %v4489_v33 = vrot.slane %v4487_v27, 1 }
 0x1f9   :  { %v4113_v47 = vor.u32 %v4111_v40, %v4109_v8  ;;  %v4110_v57 = vsel %vm739_vm3, %v4106_v18, %v4109_v8  ;;  %v4128_v12 = vshll.u32 %v14752_v36, 16  ;;  %v4118_v34 = vshrl.u32 %v14692_v3, 16 }
 0x1fa   :  { %v4497_v56 = vrot.slane %v4495_v44, 1  ;;  %v4503_v29 = vshll.u32 %v14841_v38, 16  ;;  %v4490_v3 = vsel %vm739_vm3, %v4485_v54, %v4489_v33  ;;  %v4499_v8 = vshrl.u32 %v14829_v37, 16 }
 0x1fb   :  { %11987 = vmatmul.mubr.msk.bf16.gmra.mxu1 %vm251_vm1, %v10509_v9  ;;  %v4117_v42 = vsel %vm739_vm3, %v4113_v47, %v4116_v58  ;;  %v4123_v9 = vrot.slane %v4121_v10, 1  ;;  %v4130_v50 = vrot.slane %v4128_v12, 1  ;;  %v4135_v18 = vshll.u32 %v14761_v4, 16  ;;  %v14877_v10 = vld [vmem:[#allocation2 + $0x34] sm:$0xff]  }
 0x1fc   :  { %12030 = vmatprep.mubr.msk.bf16.mxu1 %vm251_vm1, %v4103_v51  ;;  %v4120_v51 = vor.u32 %v4118_v34, %v4116_v58  ;;  %v4491_v5 = vshrl.u32 %v14822_v30, 16  ;;  %v4501_v40 = vor.u32 %v4499_v8, %v4497_v56  ;;  %v4505_v58 = vrot.slane %v4503_v29, 1  ;;  %v14887_v12 = vld [vmem:[%s17056_s1 + $0x1f8] sm:$0xff]  }
 0x1fd   :  { %v4132_v54 = vshrl.u32 %v14752_v36, 16  ;;  %v12691_v36 = vld [vmem:[%s17056_s1 + $0x1d0] sm:$0xff]  }
 0x1ff   :  { %12015 = vmatmul.mubr.msk.bf16.gmra.mxu0 %vm251_vm1, %v3883_v19  ;;  %v4125_v19 = vshrl.u32 %v14696_v17, 16  ;;  %v4124_v17 = vsel %vm739_vm3, %v4120_v51, %v4123_v9  ;;  %v4134_v51 = vor.u32 %v4132_v54, %v4130_v50  ;;  %v4156_v54 = vshll.u32 %v14800_v25, 16 }
 0x200   :  { %12018 = vmatprep.mubr.msk.bf16.mxu0 %vm251_vm1, %v3892_v41 }
 0x201   :  { %v4127_v41 = vor.u32 %v4125_v19, %v4123_v9  ;;  %v4506_v9 = vsel %vm739_vm3, %v4501_v40, %v4505_v58  ;;  %v4139_v19 = vshrl.u32 %v14761_v4, 16  ;;  %v14909_v4 = vld [vmem:[#allocation2 + $0x44] sm:$0xff]  }
 0x203   :  { %12031 = vmatmul.mubr.msk.bf16.vlgmr.msra.gmra.mxu1 %vm251_vm1, %v4110_v57  ;;  %v4131_v43 = vsel %vm739_vm3, %v4127_v41, %v4130_v50  ;;  %v4493_v57 = vor.u32 %v4491_v5, %v4489_v33 }
 0x204   :  { %12034 = vmatprep.mubr.msk.bf16.mxu1 %vm251_vm1, %v4117_v42  ;;  %12087 = vmatpush3.bf16.msra.mxu1 %v14651_v62  ;;  %v14860_v62 = vld [vmem:[#allocation2 + $0x2c] sm:$0xff]   ;;  %v4137_v42 = vrot.slane %v4135_v18, 1  ;;  %v4149_v18 = vshll.u32 %v14775_v24, 16 }
 0x205   :  { %12088 = vmatprep.subr.bf16.mxu1 %v12677_v63  ;;  %v17089_v47 = vshll.u32 %v14860_v62, 16  ;;  %v4498_v34 = vsel %vm739_vm3, %v4493_v57, %v4497_v56  ;;  %v17090_v56 = vshrl.u32 %v14860_v62, 16 }
 0x206   :  { %v4141_v50 = vor.u32 %v4139_v19, %v4137_v42  ;;  %v4138_v40 = vsel %vm739_vm3, %v4134_v51, %v4137_v42 }
 0x207   :  { %12019 = vmatmul.mubr.msk.bf16.gmra.mxu0 %vm251_vm1, %v3891_v11  ;;  %v12686_v11 = vld [vmem:[%s17056_s1 + $0x1a0] sm:$0xff]   ;;  %v4513_v33 = vrot.slane %v17089_v47, 1 }
 0x208   :  { %12062 = vmatprep.mubr.msk.bf16.mxu0 %vm251_vm1, %v4490_v3  ;;  %12089 = vmatpush3.bf16.msra.mxu1 %v12677_v63  ;;  %v4142_v63 = vshll.u32 %v14773_v0, 16  ;;  %v14891_v3 = vld [vmem:[#allocation2 + $0x3c] sm:$0xff]  }
 0x209   :  { %12090 = vmatprep.subr.bf16.mxu1 %v12682_v61 }
 0x20a   :  { %v4144_v41 = vrot.slane %v4142_v63, 1 }
 0x20b   :  { %12035 = vmatmul.mubr.msk.bf16.gmra.mxu1 %vm251_vm1, %v4124_v17  ;;  %v4507_v17 = vshrl.u32 %v14841_v38, 16 }
 0x20c   :  { %12038 = vmatprep.mubr.msk.bf16.mxu1 %vm251_vm1, %v4131_v43  ;;  %12091 = vmatpush3.bf16.msra.mxu1 %v12682_v61  ;;  %v17085_v61 = vshll.u32 %v14877_v10, 16  ;;  %v17086_v43 = vshll.u32 %v14891_v3, 16  ;;  %v4145_v57 = vsel %vm739_vm3, %v4141_v50, %v4144_v41  ;;  %v14929_v50 = vld [vmem:[#allocation2 + $0x4c] sm:$0xff]  }
 0x20d   :  { %12092 = vmatprep.subr.bf16.mxu1 %v12686_v11  ;;  %v4509_v42 = vor.u32 %v4507_v17, %v4505_v58  ;;  %v12694_v58 = vld [vmem:[%s17056_s1 + $0x1c0] sm:$0xff]  }
 0x20e   :  { %v4521_v63 = vrot.slane %v17085_v61, 1  ;;  %v17087_v61 = vshll.u32 %v14909_v4, 16 }
 0x20f   :  { %12063 = vmatmul.mubr.msk.bf16.vlgmr.msra.gmra.mxu0 %vm251_vm1, %v4498_v34  ;;  %v4146_v34 = vshrl.u32 %v14773_v0, 16  ;;  %v4514_v51 = vsel %vm739_vm3, %v4509_v42, %v4513_v33 }
 0x210   :  { %12066 = vmatprep.mubr.msk.bf16.mxu0 %vm251_vm1, %v4506_v9  ;;  %12093 = vmatpush3.bf16.msra.mxu1 %v12686_v11  ;;  %v12692_v11 = vld [vmem:[%s17056_s1 + $0x1c8] sm:$0xff]   ;;  %v4151_v9 = vrot.slane %v4149_v18, 1  ;;  %v12685_v18 = vld [vmem:[#allocation2 + $0x60] ss:$0 sps:$4 sm:$0x77]  }
 0x211   :  { %12119 = vmatpush3.bf16.msra.mxu0 %v14785_v2  ;;  %12150 = vmatprep.subr.bf16.mxu1 %v14887_v12  ;;  %v4517_v2 = vor.u32 %v17090_v56, %v4513_v33  ;;  %v4148_v19 = vor.u32 %v4146_v34, %v4144_v41  ;;  %v4158_v33 = vrot.slane %v4156_v54, 1  ;;  %v4163_v41 = vshll.u32 %v14803_v6, 16  ;;  %v14963_v56 = vld [vmem:[#allocation2 + $0x5c] sm:$0xff]  }
 0x212   :  { %12120 = vmatprep.subr.bf16.mxu0 %v12691_v36  ;;  %v4523_v34 = vshrl.u32 %v14877_v10, 16  ;;  %v17092_v54 = vshll.u32 %v14929_v50, 16 }
 0x213   :  { %12039 = vmatmul.mubr.msk.bf16.gmra.mxu1 %vm251_vm1, %v4138_v40  ;;  %v4529_v40 = vrot.slane %v17086_v43, 1  ;;  %v4522_v0 = vsel %vm739_vm3, %v4517_v2, %v4521_v63  ;;  %v4152_v43 = vsel %vm739_vm3, %v4148_v19, %v4151_v9  ;;  %v14949_v2 = vld [vmem:[%s17056_s1 + $0x218] sm:$0xff]   ;;  %v4171_v19 = vshll.u32 %v12685_v18, 16 }
 0x214   :  { %12042 = vmatprep.mubr.msk.bf16.mxu1 %vm251_vm1, %v4145_v57  ;;  %v17088_v57 = vshrl.u32 %v14891_v3, 16 }
 0x215   :  { %12121 = vmatpush3.bf16.msra.mxu0 %v12691_v36  ;;  %v4153_v36 = vshrl.u32 %v14775_v24, 16  ;;  %v4537_v24 = vrot.slane %v17087_v61, 1  ;;  %v4160_v61 = vshrl.u32 %v14800_v25, 16 }
 0x216   :  { %12122 = vmatprep.subr.bf16.mxu0 %v12692_v11 }
 0x217   :  { %12067 = vmatmul.mubr.msk.bf16.gmra.mxu0 %vm251_vm1, %v4514_v51  ;;  %v4155_v42 = vor.u32 %v4153_v36, %v4151_v9  ;;  %v4533_v51 = vor.u32 %v17088_v57, %v4529_v40  ;;  %v14954_v9 = vld [vmem:[#allocation2 + $0x54] sm:$0xff]   ;;  %v4525_v36 = vor.u32 %v4523_v34, %v4521_v63  ;;  %v4167_v57 = vshrl.u32 %v14803_v6, 16 }
 0x218   :  { %12070 = vmatprep.mubr.msk.bf16.mxu0 %vm251_vm1, %v4522_v0  ;;  %v4165_v0 = vrot.slane %v4163_v41, 1  ;;  %v4162_v47 = vor.u32 %v4160_v61, %v4158_v33  ;;  %v4545_v63 = vrot.slane %v17092_v54, 1  ;;  %v17091_v25 = vshll.u32 %v14954_v9, 16 }
 0x219   :  { %12123 = vmatpush3.bf16.msra.mxu0 %v12692_v11  ;;  %v4159_v11 = vsel %vm739_vm3, %v4155_v42, %v4158_v33  ;;  %v4538_v42 = vsel %vm739_vm3, %v4533_v51, %v4537_v24  ;;  %v4547_v6 = vshrl.u32 %v14929_v50, 16  ;;  %v4539_v61 = vshrl.u32 %v14909_v4, 16  ;;  %v14975_v51 = vld [vmem:[#allocation2 + $0x64] ss:$0 sps:$4 sm:$0x77]  }
 0x21a   :  { %12124 = vmatprep.subr.bf16.mxu0 %v12694_v58  ;;  %v4169_v41 = vor.u32 %v4167_v57, %v4165_v0  ;;  %v17093_v33 = vshll.u32 %v14963_v56, 16  ;;  %v4553_v57 = vrot.slane %v17091_v25, 1  ;;  %v4175_v54 = vshrl.u32 %v12685_v18, 16 }
 0x21b   :  { %12043 = vmatmul.mubr.msk.bf16.gmra.mxu1 %vm251_vm1, %v4152_v43  ;;  %v4530_v43 = vsel %vm739_vm3, %v4525_v36, %v4529_v40  ;;  %v4785_v40 = vld [vmem:[#allocation2 + $0xc] sm:$0xe]  ;;  %v4549_v36 = vor.u32 %v4547_v6, %v4545_v63 }
 0x21c   :  { %12046 = vmatprep.mubr.msk.bf16.mxu1 %vm251_vm1, %v4159_v11  ;;  %v4173_v11 = vrot.slane %v4171_v19, 1 }
 0x21d   :  { %12125 = vmatpush3.bf16.msra.mxu0 %v12694_v58  ;;  %v4166_v58 = vsel %vm739_vm3, %v4162_v47, %v4165_v0  ;;  %v4561_v0 = vrot.slane %v17093_v33, 1  ;;  %v4554_v25 = vsel %vm739_vm3, %v4549_v36, %v4553_v57 }
 0x21e   :  { %12182 = vmatprep.subr.bf16.mxu0 %v14949_v2  ;;  %v4174_v19 = vsel %vm739_vm3, %v4169_v41, %v4173_v11 }
 0x21f   :  { %12071 = vmatmul.mubr.msk.bf16.gmra.mxu0 %vm251_vm1, %v4530_v43  ;;  %v10623_v43 = vcombine.low %v4785_v40, %v14810_v1  ;;  %v4799_v1 = vrot.slane %v14822_v30, 1  ;;  %v4177_v40 = vor.u32 %v4175_v54, %v4173_v11  ;;  %v4801_v11 = vrot.slane %v14829_v37, 1  ;;  %v12697_v37 = vld [vmem:[%s17056_s1 + $0x1e0] sm:$0xff]  }
 0x220   :  { %12074 = vmatprep.mubr.msk.bf16.mxu0 %vm251_vm1, %v4538_v42  ;;  %v4541_v42 = vor.u32 %v4539_v61, %v4537_v24  ;;  %v4563_v24 = vshrl.u32 %v14963_v56, 16 }
 0x221   :  { %v4798_v41 = vrot.slane %v10623_v43, 1  ;;  %v5046_v36 = vshrl.u32 %v10623_v43, 16  ;;  %v5049_v18 = vshll.u32 %v10623_v43, 16  ;;  %v5054_v43 = vrot.slane %v4487_v27, 2  ;;  %v12696_v27 = vld [vmem:[%s17056_s1 + $0x1e8] sm:$0xff]  }
 0x222   :  { %v4546_v47 = vsel %vm739_vm3, %v4541_v42, %v4545_v63  ;;  %v4555_v63 = vshrl.u32 %v14954_v9, 16 }
 0x223   :  { %12047 = vmatmul.mubr.msk.bf16.gmra.mxu1 %vm251_vm1, %v4166_v58  ;;  %v4567_v58 = vshll.u32 %v14975_v51, 16 }
 0x224   :  { %12050 = vmatprep.mubr.msk.bf16.mxu1 %vm251_vm1, %v4174_v19  ;;  %v4565_v19 = vor.u32 %v4563_v24, %v4561_v0  ;;  %v4557_v33 = vor.u32 %v4555_v63, %v4553_v57  ;;  %v4803_v57 = vrot.slane %v14841_v38, 1  ;;  %v17254_v38 = vshrl.u32 %v14860_v62, 16 }
 0x225   :  { %v4569_v42 = vrot.slane %v4567_v58, 1  ;;  %v5053_v58 = vrot.slane %v4491_v5, 1 }
 0x227   :  { %12075 = vmatmul.mubr.msk.bf16.gmra.mxu0 %vm251_vm1, %v4546_v47  ;;  %v4800_v47 = vsel %vm17146_vm4, %v4798_v41, %v4799_v1  ;;  %v4570_v54 = vsel %vm739_vm3, %v4565_v19, %v4569_v42  ;;  %v5051_v41 = vrot.slane %v5049_v18, 2  ;;  %v4571_v19 = vshrl.u32 %v14975_v51, 16 }
 0x228   :  { %12078 = vmatprep.mubr.msk.bf16.mxu0 %vm251_vm1, %v4554_v25  ;;  %v4562_v25 = vsel %vm739_vm3, %v4557_v33, %v4561_v0  ;;  %v12695_v33 = vld [vmem:[%s17056_s1 + $0x1f0] sm:$0xff]   ;;  %v4802_v0 = vsel %vm17146_vm4, %v4799_v1, %v4801_v11  ;;  %v5057_v1 = vrot.slane %v4499_v8, 1  ;;  %v5058_v18 = vrot.slane %v4495_v44, 2 }
 0x229   :  { %v4573_v30 = vor.u32 %v4571_v19, %v4569_v42  ;;  %v5062_v42 = vrot.slane %v4503_v29, 2  ;;  %v5065_v29 = vrot.slane %v17254_v38, 1 }
 0x22a   :  { %v5059_v44 = vor.u32 %v5058_v18, %v5057_v1  ;;  %v17257_v18 = vshrl.u32 %v14891_v3, 16 }
 0x22b   :  { %12051 = vmatmul.mubr.msk.bf16.gmra.mxu1 %vm251_vm1, %v4177_v40  ;;  %v5048_v40 = vrot.slane %v5046_v36, 1  ;;  %v4804_v36 = vsel %vm17146_vm4, %v4801_v11, %v4803_v57  ;;  %v4807_v11 = vrot.slane %v14877_v10, 1 }
 0x22c   :  { %12094 = vmatprep.mubr.msk.bf16.mxu1 %vm251_vm1, %v4800_v47  ;;  %v5055_v47 = vor.u32 %v5054_v43, %v5053_v58  ;;  %v15053_v43 = vld [vmem:[%s17056_s1 + $0x238] sm:$0xff]  }
 0x22d   :  { %v5052_v5 = vor.u32 %v5051_v41, %v5048_v40  ;;  %v17255_v40 = vshll.u32 %v14860_v62, 16 }
 0x22f   :  { %12079 = vmatmul.mubr.msk.bf16.gmra.mxu0 %vm251_vm1, %v4562_v25  ;;  %v4805_v25 = vrot.slane %v14860_v62, 1  ;;  %v5066_v41 = vrot.slane %v17255_v40, 2  ;;  %v5069_v62 = vrot.slane %v4523_v34, 1  ;;  %v12703_v34 = vld [vmem:[%s17056_s1 + $0x208] sm:$0xff]  }
 0x230   :  { %12082 = vmatprep.mubr.msk.bf16.mxu0 %vm251_vm1, %v4570_v54  ;;  %v5056_v54 = vsel %vm17094_vm5, %v5052_v5, %v5055_v47  ;;  %v17256_v5 = vshll.u32 %v14877_v10, 16 }
 0x231   :  { %v4806_v8 = vsel %vm17146_vm4, %v4803_v57, %v4805_v25  ;;  %v5060_v57 = vsel %vm17094_vm5, %v5055_v47, %v5059_v44  ;;  %v5067_v47 = vor.u32 %v5066_v41, %v5065_v29  ;;  %v5313_v29 = vld [vmem:[#allocation2 + $0x10] sm:$0xe] }
 0x233   :  { %12095 = vmatmul.mubr.msk.bf16.vlgmr.msra.gmra.mxu1 %vm251_vm1, %v4802_v0  ;;  %v12702_v0 = vld [vmem:[%s17056_s1 + $0x210] sm:$0xff]  }
 0x234   :  { %12098 = vmatprep.mubr.msk.bf16.mxu1 %vm251_vm1, %v4804_v36  ;;  %12151 = vmatpush3.bf16.msra.mxu1 %v14887_v12  ;;  %v5061_v12 = vrot.slane %v4507_v17, 1  ;;  %v4808_v17 = vsel %vm17146_vm4, %v4805_v25, %v4807_v11  ;;  %v5070_v36 = vrot.slane %v17256_v5, 2  ;;  %v5073_v25 = vrot.slane %v17257_v18, 1 }
 0x235   :  { %12152 = vmatprep.subr.bf16.mxu1 %v12695_v33  ;;  %v17261_v5 = vshll.u32 %v14954_v9, 16 }
 0x236   :  { %v5063_v58 = vor.u32 %v5062_v42, %v5061_v12  ;;  %v5071_v10 = vor.u32 %v5070_v36, %v5069_v62  ;;  %v4813_v42 = vrot.slane %v14929_v50, 1  ;;  %v5085_v62 = vrot.slane %v4555_v63, 1 }
 0x237   :  { %12083 = vmatmul.mubr.msk.bf16.gmra.mxu0 %vm251_vm1, %v4573_v30  ;;  %v4811_v30 = vrot.slane %v14909_v4, 1  ;;  %v5086_v36 = vrot.slane %v17261_v5, 2 }
 0x238   :  { %12126 = vmatprep.mubr.msk.bf16.mxu0 %vm251_vm1, %v5056_v54  ;;  %12153 = vmatpush3.bf16.msra.mxu1 %v12695_v33  ;;  %v4809_v33 = vrot.slane %v14891_v3, 1  ;;  %v5064_v19 = vsel %vm17094_vm5, %v5059_v44, %v5063_v58  ;;  %v17258_v54 = vshll.u32 %v14891_v3, 16  ;;  %v4815_v3 = vrot.slane %v14954_v9, 1 }
 0x239   :  { %12154 = vmatprep.subr.bf16.mxu1 %v12696_v27 }
 0x23a   :  { %v4812_v1 = vsel %vm17146_vm4, %v4809_v33, %v4811_v30  ;;  %v5074_v12 = vrot.slane %v17258_v54, 2  ;;  %v4816_v40 = vsel %vm17146_vm4, %v4813_v42, %v4815_v3 }
 0x23b   :  { %12099 = vmatmul.mubr.msk.bf16.gmra.mxu1 %vm251_vm1, %v4806_v8  ;;  %v12708_v8 = vld [vmem:[%s17056_s1 + $0x200] sm:$0xff]  }
 0x23c   :  { %12102 = vmatprep.mubr.msk.bf16.mxu1 %vm251_vm1, %v4808_v17  ;;  %12155 = vmatpush3.bf16.msra.mxu1 %v12696_v27  ;;  %v4810_v27 = vsel %vm17146_vm4, %v4807_v11, %v4809_v33  ;;  %v5077_v11 = vrot.slane %v4539_v61, 1  ;;  %v15094_v17 = vld [vmem:[#allocation2 + $0x14] sm:$0xf]  ;;  %v5075_v61 = vor.u32 %v5074_v12, %v5073_v25  ;;  %v5081_v33 = vrot.slane %v4547_v6, 1 }
 0x23d   :  { %12156 = vmatprep.subr.bf16.mxu1 %v12697_v37  ;;  %v10673_v41 = vcombine.low %v5313_v29, %v15094_v17  ;;  %v5087_v25 = vor.u32 %v5086_v36, %v5085_v62 }
 0x23f   :  { %12127 = vmatmul.mubr.msk.bf16.vlgmr.msra.gmra.mxu0 %vm251_vm1, %v5060_v57  ;;  %v15100_v57 = vld [vmem:[#allocation2 + $0x18] sm:$0xff]   ;;  %v5407_v6 = vshll.u32 %v10673_v41, 16 }
 0x240   :  { %12130 = vmatprep.mubr.msk.bf16.mxu0 %vm251_vm1, %v5064_v19  ;;  %12157 = vmatpush3.bf16.msra.mxu1 %v12697_v37  ;;  %v17259_v37 = vshll.u32 %v14909_v4, 16  ;;  %v4814_v4 = vsel %vm17146_vm4, %v4811_v30, %v4813_v42  ;;  %v5076_v30 = vsel %vm17094_vm5, %v5071_v10, %v5075_v61  ;;  %v5412_v18 = vshrl.u32 %v15100_v57, 16 }
 0x241   :  { %12183 = vmatpush3.bf16.msra.mxu0 %v14949_v2  ;;  %12214 = vmatprep.subr.bf16.mxu1 %v15053_v43  ;;  %v5068_v2 = vsel %vm17094_vm5, %v5063_v58, %v5067_v47  ;;  %v5072_v58 = vsel %vm17094_vm5, %v5067_v47, %v5071_v10  ;;  %v5415_v63 = vshll.u32 %v15100_v57, 16 }
 0x242   :  { %12184 = vmatprep.subr.bf16.mxu0 %v12702_v0  ;;  %v5078_v44 = vrot.slane %v17259_v37, 2  ;;  %v5414_v37 = vrot.slane %v5412_v18, 1 }
 0x243   :  { %12103 = vmatmul.mubr.msk.bf16.gmra.mxu1 %vm251_vm1, %v4810_v27  ;;  %v4817_v27 = vrot.slane %v14963_v56, 1 }
 0x244   :  { %12106 = vmatprep.mubr.msk.bf16.mxu1 %vm251_vm1, %v4812_v1  ;;  %v5079_v38 = vor.u32 %v5078_v44, %v5077_v11  ;;  %v12699_v1 = vld [vmem:[#allocation2 + $0x64] ss:$0 sps:$4 sm:$0xff]   ;;  %v5409_v11 = vrot.slane %v5407_v6, 2  ;;  %v5417_v44 = vrot.slane %v5415_v63, 2  ;;  %v15143_v6 = vld [vmem:[#allocation2 + $0x38] sm:$0xff]  }
 0x245   :  { %12185 = vmatpush3.bf16.msra.mxu0 %v12702_v0  ;;  %v17260_v0 = vshll.u32 %v14929_v50, 16  ;;  %v5404_v50 = vshrl.u32 %v10673_v41, 16  ;;  %v4818_v10 = vsel %vm17146_vm4, %v4815_v3, %v4817_v27  ;;  %v5094_v54 = vshrl.u32 %v12699_v1, 16  ;;  %v5721_v63 = vld [vmem:[#allocation2 + $0x10] sm:$0xc] }
 0x246   :  { %12186 = vmatprep.subr.bf16.mxu0 %v12703_v34  ;;  %v5080_v47 = vsel %vm17094_vm5, %v5075_v61, %v5079_v38  ;;  %v5097_v12 = vshll.u32 %v12699_v1, 16  ;;  %v5418_v62 = vor.u32 %v5417_v44, %v5414_v37  ;;  %v5735_v37 = vrot.slane %v15100_v57, 2  ;;  %v12715_v57 = vld [vmem:[%s17056_s1 + $0x228] sm:$0xff]  }
 0x247   :  { %12131 = vmatmul.mubr.msk.bf16.gmra.mxu0 %vm251_vm1, %v5068_v2  ;;  %v5082_v19 = vrot.slane %v17260_v0, 2  ;;  %v5406_v42 = vrot.slane %v5404_v50, 1 }
 0x248   :  { %12134 = vmatprep.mubr.msk.bf16.mxu0 %vm251_vm1, %v5072_v58  ;;  %v5089_v58 = vrot.slane %v4563_v24, 1  ;;  %v5099_v41 = vrot.slane %v5097_v12, 2 }
 0x249   :  { %12187 = vmatpush3.bf16.msra.mxu0 %v12703_v34  ;;  %v4819_v34 = vrot.slane %v14975_v51, 1  ;;  %v5083_v9 = vor.u32 %v5082_v19, %v5081_v33  ;;  %v15121_v51 = vld [vmem:[#allocation2 + $0x20] sm:$0xff]   ;;  %v5410_v19 = vor.u32 %v5409_v11, %v5406_v42  ;;  %v5448_v42 = vshrl.u32 %v15143_v6, 16 }
 0x24a   :  { %12188 = vmatprep.subr.bf16.mxu0 %v12708_v8  ;;  %v5421_v33 = vshrl.u32 %v15121_v51, 16  ;;  %v5424_v0 = vshll.u32 %v15121_v51, 16  ;;  %v5451_v11 = vshll.u32 %v15143_v6, 16 }
 0x24b   :  { %12107 = vmatmul.mubr.msk.bf16.gmra.mxu1 %vm251_vm1, %v4814_v4  ;;  %v4820_v2 = vsel %vm17146_vm4, %v4817_v27, %v4819_v34  ;;  %v5084_v3 = vsel %vm17094_vm5, %v5079_v38, %v5083_v9  ;;  %v5088_v61 = vsel %vm17094_vm5, %v5083_v9, %v5087_v25  ;;  %v17262_v4 = vshll.u32 %v14963_v56, 16 }
 0x24c   :  { %12110 = vmatprep.mubr.msk.bf16.mxu1 %vm251_vm1, %v4816_v40  ;;  %v5096_v40 = vrot.slane %v5094_v54, 1  ;;  %v5423_v36 = vrot.slane %v5421_v33, 1  ;;  %v5426_v56 = vrot.slane %v5424_v0, 2  ;;  %v5419_v27 = vsel %vm17094_vm5, %v5410_v19, %v5418_v62 }
 0x24d   :  { %12189 = vmatpush3.bf16.msra.mxu0 %v12708_v8  ;;  %v15124_v8 = vld [vmem:[#allocation2 + $0x28] sm:$0xff]   ;;  %v5090_v29 = vrot.slane %v17262_v4, 2 }
 0x24e   :  { %v5430_v5 = vshrl.u32 %v15124_v8, 16  ;;  %v5433_v24 = vshll.u32 %v15124_v8, 16  ;;  %v5427_v9 = vor.u32 %v5426_v56, %v5423_v36  ;;  %v5737_v36 = vrot.slane %v15121_v51, 2 }
 0x24f   :  { %12135 = vmatmul.mubr.msk.bf16.gmra.mxu0 %vm251_vm1, %v5076_v30  ;;  %v5091_v38 = vor.u32 %v5090_v29, %v5089_v58  ;;  %v15139_v30 = vld [vmem:[#allocation2 + $0x30] sm:$0xff]   ;;  %v5450_v29 = vrot.slane %v5448_v42, 1 }
 0x250   :  { %12138 = vmatprep.mubr.msk.bf16.mxu0 %vm251_vm1, %v5080_v47  ;;  %v5100_v47 = vor.u32 %v5099_v41, %v5096_v40  ;;  %v5432_v1 = vrot.slane %v5430_v5, 1  ;;  %v5435_v50 = vrot.slane %v5433_v24, 2  ;;  %v5442_v54 = vshll.u32 %v15139_v30, 16  ;;  %v15164_v41 = vld [vmem:[#allocation2 + $0x48] sm:$0xff]  }
 0x251   :  { %v5092_v18 = vsel %vm17094_vm5, %v5087_v25, %v5091_v38  ;;  %v12711_v25 = vld [vmem:[%s17056_s1 + $0x230] sm:$0xff]   ;;  %v5453_v40 = vrot.slane %v5451_v11, 2  ;;  %v5466_v24 = vshrl.u32 %v15164_v41, 16  ;;  %v5738_v51 = vsel %vm17264_vm8, %v5735_v37, %v5737_v36 }
 0x252   :  { %v5436_v12 = vor.u32 %v5435_v50, %v5432_v1  ;;  %v5444_v58 = vrot.slane %v5442_v54, 2  ;;  %v15183_v1 = vld [vmem:[#allocation2 + $0x50] sm:$0xff]   ;;  %v5739_v50 = vrot.slane %v15124_v8, 2 }
 0x253   :  { %12111 = vmatmul.mubr.msk.bf16.gmra.mxu1 %vm251_vm1, %v4818_v10  ;;  %v10709_v10 = vcombine.low %v5721_v63, %v15094_v17  ;;  %v5428_v17 = vsel %vm17094_vm5, %v5418_v62, %v5427_v9  ;;  %v5454_v5 = vor.u32 %v5453_v40, %v5450_v29  ;;  %v5468_v63 = vrot.slane %v5466_v24, 1 }
 0x254   :  { %12114 = vmatprep.mubr.msk.bf16.mxu1 %vm251_vm1, %v4820_v2  ;;  %v5439_v2 = vshrl.u32 %v15139_v30, 16  ;;  %v5437_v4 = vsel %vm17094_vm5, %v5427_v9, %v5436_v12  ;;  %v5475_v54 = vshrl.u32 %v15183_v1, 16 }
 0x256   :  { %v5441_v44 = vrot.slane %v5439_v2, 1 }
 0x257   :  { %12139 = vmatmul.mubr.msk.bf16.gmra.mxu0 %vm251_vm1, %v5084_v3  ;;  %v15160_v3 = vld [vmem:[#allocation2 + $0x40] sm:$0xff]  }
 0x258   :  { %12142 = vmatprep.mubr.msk.bf16.mxu0 %vm251_vm1, %v5088_v61  ;;  %v5734_v61 = vrot.slane %v10709_v10, 2  ;;  %v5445_v33 = vor.u32 %v5444_v58, %v5441_v44  ;;  %v5457_v0 = vshrl.u32 %v15160_v3, 16  ;;  %v5460_v19 = vshll.u32 %v15160_v3, 16  ;;  %v15188_v10 = vld [vmem:[#allocation2 + $0x58] sm:$0xff]   ;;  %v15201_v58 = vld [vmem:[#allocation2 + $0x60] sm:$0xff]  }
 0x259   :  { %v5484_v42 = vshrl.u32 %v15188_v10, 16  ;;  %v5487_v11 = vshll.u32 %v15188_v10, 16 }
 0x25a   :  { %v5736_v62 = vsel %vm17263_vm11, %v5734_v61, %v5735_v37  ;;  %v5446_v56 = vsel %vm17094_vm5, %v5436_v12, %v5445_v33  ;;  %vm17265_vm11 = vmmov %vm17264_vm8  ;;  %v5477_v37 = vrot.slane %v5475_v54, 1  ;;  %v5743_v61 = vrot.slane %v15143_v6, 2 }
 0x25b   :  { %12115 = vmatmul.mubr.msk.bf16.gmra.mxu1 %vm251_vm1, %v4819_v34  ;;  %v5101_v34 = vsel %vm17094_vm5, %v5091_v38, %v5100_v47  ;;  %v5469_v38 = vshll.u32 %v15164_v41, 16  ;;  %v5740_v8 = vsel %vm17265_vm11, %v5737_v36, %v5739_v50  ;;  %v5486_v29 = vrot.slane %v5484_v42, 1  ;;  %vm17266_vm11 = vmmov %vm17264_vm8 }
 0x25c   :  { %12158 = vmatprep.mubr.msk.bf16.mxu1 %vm251_vm1, %v5419_v27  ;;  %v5462_v27 = vrot.slane %v5460_v19, 2  ;;  %v5489_v40 = vrot.slane %v5487_v11, 2  ;;  %v5496_v19 = vshll.u32 %v15201_v58, 16  ;;  %v5749_v42 = vrot.slane %v15183_v1, 2 }
 0x25d   :  { %v5471_v9 = vrot.slane %v5469_v38, 2  ;;  %v5745_v38 = vrot.slane %v15160_v3, 2 }
 0x25e   :  { %v5490_v6 = vor.u32 %v5489_v40, %v5486_v29 }
 0x25f   :  { %12143 = vmatmul.mubr.msk.bf16.gmra.mxu0 %vm251_vm1, %v5092_v18  ;;  %v5455_v18 = vsel %vm17094_vm5, %v5445_v33, %v5454_v5  ;;  %v5472_v12 = vor.u32 %v5471_v9, %v5468_v63  ;;  %v12721_v63 = vld [vmem:[#allocation2 + $0x18] sm:$0xff]   ;;  %v12720_v9 = vld [vmem:[#allocation2 + $0x10] sm:$0xfc]  }
 0x260   :  { %12146 = vmatprep.mubr.msk.bf16.mxu0 %vm251_vm1, %v5101_v34  ;;  %v5478_v34 = vshll.u32 %v15183_v1, 16 }
 0x262   :  { %v5480_v44 = vrot.slane %v5478_v34, 2  ;;  %v6070_v34 = vshrl.u32 %v12721_v63, 16 }
 0x263   :  { %12159 = vmatmul.mubr.msk.bf16.vlgmr.msra.gmra.mxu1 %vm251_vm1, %v5428_v17 }
 0x264   :  { %12162 = vmatprep.mubr.msk.bf16.mxu1 %vm251_vm1, %v5437_v4  ;;  %12215 = vmatpush3.bf16.msra.mxu1 %v15053_v43  ;;  %v12719_v43 = vld [vmem:[%s17056_s1 + $0x220] sm:$0xff]   ;;  %v5481_v33 = vor.u32 %v5480_v44, %v5477_v37  ;;  %v6072_v44 = vrot.slane %v6070_v34, 2 }
 0x265   :  { %12216 = vmatprep.subr.bf16.mxu1 %v12711_v25 }
 0x267   :  { %12147 = vmatmul.mubr.msk.bf16.gmra.mxu0 %vm251_vm1, %v5100_v47  ;;  %v5459_v47 = vrot.slane %v5457_v0, 1  ;;  %v5493_v0 = vshrl.u32 %v15201_v58, 16 }
 0x268   :  { %12190 = vmatprep.mubr.msk.bf16.mxu0 %vm251_vm1, %v5736_v62  ;;  %12217 = vmatpush3.bf16.msra.mxu1 %v12711_v25  ;;  %v5741_v25 = vrot.slane %v15139_v30, 2 }
 0x269   :  { %12218 = vmatprep.subr.bf16.mxu1 %v12715_v57  ;;  %v5463_v2 = vor.u32 %v5462_v27, %v5459_v47  ;;  %v5495_v36 = vrot.slane %v5493_v0, 1  ;;  %v5747_v47 = vrot.slane %v15164_v41, 2  ;;  %v5491_v27 = vsel %vm17094_vm5, %v5481_v33, %v5490_v6 }
 0x26a   :  { %v5742_v30 = vsel %vm17264_vm8, %v5739_v50, %v5741_v25  ;;  %v5744_v62 = vsel %vm17266_vm11, %v5741_v25, %v5743_v61  ;;  %vm17267_vm11 = vmmov %vm17264_vm8  ;;  %v6062_v41 = vshrl.u32 %v12720_v9, 16  ;;  %v12722_v25 = vld [vmem:[#allocation2 + $0x20] sm:$0xff]  }
 0x26b   :  { %12163 = vmatmul.mubr.msk.bf16.gmra.mxu1 %vm251_vm1, %v5446_v56  ;;  %v5464_v17 = vsel %vm17094_vm5, %v5454_v5, %v5463_v2  ;;  %v5473_v4 = vsel %vm17094_vm5, %v5463_v2, %v5472_v12  ;;  %v5498_v56 = vrot.slane %v5496_v19, 2  ;;  %v5748_v3 = vsel %vm17267_vm11, %v5745_v38, %v5747_v47  ;;  %vm17268_vm11 = vmmov %vm17264_vm8 }
 0x26c   :  { %12166 = vmatprep.mubr.msk.bf16.mxu1 %vm251_vm1, %v5455_v18  ;;  %12219 = vmatpush3.bf16.msra.mxu1 %v12715_v57  ;;  %v15206_v57 = vld [vmem:[#allocation2 + $0x68] ss:$0 sps:$4 sm:$0xff]   ;;  %v6064_v29 = vrot.slane %v6062_v41, 2  ;;  %v6082_v1 = vshll.u32 %v12722_v25, 16 }
 0x26d   :  { %12220 = vmatprep.subr.bf16.mxu1 %v12719_v43  ;;  %v5502_v5 = vshrl.u32 %v15206_v57, 16  ;;  %v5505_v24 = vshll.u32 %v15206_v57, 16  ;;  %v5499_v2 = vor.u32 %v5498_v56, %v5495_v36  ;;  %v12724_v36 = vld [vmem:[#allocation2 + $0x30] sm:$0xff]   ;;  %v5755_v56 = vrot.slane %v15206_v57, 2 }
 0x26f   :  { %12191 = vmatmul.mubr.msk.bf16.vlgmr.msra.gmra.mxu0 %vm251_vm1, %v5738_v51  ;;  %v5504_v50 = vrot.slane %v5502_v5, 1  ;;  %v5507_v18 = vrot.slane %v5505_v24, 2  ;;  %v5746_v51 = vsel %vm17264_vm8, %v5743_v61, %v5745_v38  ;;  %v5500_v11 = vsel %vm17094_vm5, %v5490_v6, %v5499_v2 }
 0x270   :  { %12194 = vmatprep.mubr.msk.bf16.mxu0 %vm251_vm1, %v5740_v8  ;;  %12221 = vmatpush3.bf16.msra.mxu1 %v12719_v43  ;;  %v5482_v43 = vsel %vm17094_vm5, %v5472_v12, %v5481_v33  ;;  %v6073_v8 = vshll.u32 %v12721_v63, 16  ;;  %v6065_v12 = vshll.u32 %v12720_v9, 16  ;;  %v6079_v33 = vshrl.u32 %v12722_v25, 16  ;;  %v12725_v63 = vld [vmem:[#allocation2 + $0x38] sm:$0xff]  }
 0x271   :  { %v5508_v54 = vor.u32 %v5507_v18, %v5504_v50  ;;  %v5753_v24 = vrot.slane %v15201_v58, 2  ;;  %v6100_v58 = vshll.u32 %v12724_v36, 16  ;;  %v6106_v57 = vshrl.u32 %v12725_v63, 16 }
 0x272   :  { %v6075_v61 = vrot.slane %v6073_v8, 3  ;;  %v6067_v40 = vrot.slane %v6065_v12, 3  ;;  %v6081_v38 = vrot.slane %v6079_v33, 2  ;;  %v6109_v8 = vshll.u32 %v12725_v63, 16 }
 0x273   :  { %12167 = vmatmul.mubr.msk.bf16.gmra.mxu1 %vm251_vm1, %v5464_v17  ;;  %v5751_v17 = vrot.slane %v15188_v10, 2  ;;  %v5509_v37 = vsel %vm17094_vm5, %v5499_v2, %v5508_v54  ;;  %v6097_v2 = vshrl.u32 %v12724_v36, 16  ;;  %vm17270_vm5 = vmmov %vm17268_vm11 }
 0x274   :  { %12170 = vmatprep.mubr.msk.bf16.mxu1 %vm251_vm1, %v5473_v4  ;;  %v12723_v4 = vld [vmem:[#allocation2 + $0x28] sm:$0xff]   ;;  %v6076_v19 = vor.u32 %v6075_v61, %v6072_v44  ;;  %v6068_v5 = vor.u32 %v6067_v40, %v6064_v29  ;;  %v6111_v44 = vrot.slane %v6109_v8, 3 }
 0x275   :  { %v5752_v0 = vsel %vm17268_vm11, %v5749_v42, %v5751_v17  ;;  %v6091_v10 = vshll.u32 %v12723_v4, 16  ;;  %v5754_v9 = vsel %vm17268_vm11, %v5751_v17, %v5753_v24  ;;  %v6099_v12 = vrot.slane %v6097_v2, 2  ;;  %v12727_v61 = vld [vmem:[#allocation2 + $0x48] sm:$0xff]  }
 0x277   :  { %12195 = vmatmul.mubr.msk.bf16.gmra.mxu0 %vm251_vm1, %v5742_v30  ;;  %v5750_v30 = vsel %vm17264_vm8, %v5747_v47, %v5749_v42  ;;  %vm17269_vm8 = vsmask.f32 5376  ;;  %v6093_v50 = vrot.slane %v6091_v10, 3  ;;  %v6102_v42 = vrot.slane %v6100_v58, 3 }
 0x278   :  { %12198 = vmatprep.mubr.msk.bf16.mxu0 %vm251_vm1, %v5744_v62  ;;  %v6088_v62 = vshrl.u32 %v12723_v4, 16  ;;  %v6077_v47 = vsel %vm17269_vm8, %v6068_v5, %v6076_v19  ;;  %vm17271_vm11 = vmmov %vm17269_vm8 }
 0x279   :  { %v6103_v4 = vor.u32 %v6102_v42, %v6099_v12 }
 0x27b   :  { %12171 = vmatmul.mubr.msk.bf16.gmra.mxu1 %vm251_vm1, %v5482_v43  ;;  %v6084_v43 = vrot.slane %v6082_v1, 3  ;;  %v6124_v1 = vshrl.u32 %v12727_v61, 16 }
 0x27c   :  { %12174 = vmatprep.mubr.msk.bf16.mxu1 %vm251_vm1, %v5491_v27  ;;  %v6090_v27 = vrot.slane %v6088_v62, 2 }
 0x27d   :  { %v6126_v36 = vrot.slane %v6124_v1, 2 }
 0x27f   :  { %12199 = vmatmul.mubr.msk.bf16.gmra.mxu0 %vm251_vm1, %v5746_v51  ;;  %v6085_v51 = vor.u32 %v6084_v43, %v6081_v38 }
 0x280   :  { %12202 = vmatprep.mubr.msk.bf16.mxu0 %vm251_vm1, %v5748_v3  ;;  %v5756_v3 = vsel %vm17270_vm5, %v5753_v24, %v5755_v56  ;;  %vm17272_vm5 = vmmov %vm17269_vm8  ;;  %v12728_v24 = vld [vmem:[#allocation2 + $0x50] sm:$0xff]  }
 0x281   :  { %v6086_v41 = vsel %vm17269_vm8, %v6076_v19, %v6085_v51  ;;  %vm17273_vm8 = vmmov %vm17272_vm5  ;;  %v6136_v2 = vshll.u32 %v12728_v24, 16 }
 0x283   :  { %12175 = vmatmul.mubr.msk.bf16.gmra.mxu1 %vm251_vm1, %v5500_v11  ;;  %v12726_v11 = vld [vmem:[#allocation2 + $0x40] sm:$0xff]  }
 0x284   :  { %12178 = vmatprep.mubr.msk.bf16.mxu1 %vm251_vm1, %v5509_v37  ;;  %v6108_v37 = vrot.slane %v6106_v57, 2  ;;  %v6115_v29 = vshrl.u32 %v12726_v11, 16  ;;  %v6118_v40 = vshll.u32 %v12726_v11, 16 }
 0x286   :  { %v6112_v33 = vor.u32 %v6111_v44, %v6108_v37  ;;  %v6117_v10 = vrot.slane %v6115_v29, 2  ;;  %v6120_v5 = vrot.slane %v6118_v40, 3  ;;  %v12731_v29 = vld [vmem:[#allocation2 + $0x68] sm:$0x1f]  }
 0x287   :  { %12203 = vmatmul.mubr.msk.bf16.gmra.mxu0 %vm251_vm1, %v5750_v30  ;;  %v11968_v6 = vpop.f32.mrf.mxu1 }
 0x288   :  { %12206 = vmatprep.mubr.msk.bf16.mxu0 %vm251_vm1, %v5752_v0  ;;  %v6127_v0 = vshll.u32 %v12727_v61, 16  ;;  %v6113_v38 = vsel %vm17273_vm8, %v6103_v4, %v6112_v33  ;;  %vm17275_vm8 = vmmov %vm17272_vm5 }
 0x289   :  { %v3678_v18 = vpop.f32.mrf.mxu1 }
 0x28b   :  { %12179 = vmatmul.mubr.msk.bf16.gmra.mxu1 %vm251_vm1, %v5508_v54  ;;  %v6094_v54 = vor.u32 %v6093_v50, %v6090_v27  ;;  %v11969_v34 = vpop.f32.mrf.mxu1  ;;  %v12729_v27 = vld [vmem:[#allocation2 + $0x58] sm:$0xff]  }
 0x28c   :  { %12222 = vmatprep.mubr.msk.bf16.mxu1 %vm251_vm1, %v6077_v47  ;;  %v6129_v47 = vrot.slane %v6127_v0, 3  ;;  %v6142_v57 = vshrl.u32 %v12729_v27, 16  ;;  %v6145_v8 = vshll.u32 %v12729_v27, 16 }
 0x28d   :  { %v6095_v25 = vsel %vm17271_vm11, %v6085_v51, %v6094_v54  ;;  %v15249_v17 = vpop.f32.mrf.mxu1  ;;  %v6104_v62 = vsel %vm17272_vm5, %v6094_v54, %v6103_v4  ;;  %v6133_v51 = vshrl.u32 %v12728_v24, 16  ;;  %vm17274_vm11 = vmmov %vm17272_vm5  ;;  %v6163_v24 = vshll.u32 %v12731_v29, 16 }
 0x28e   :  { %v6130_v54 = vor.u32 %v6129_v47, %v6126_v36  ;;  %v6144_v61 = vrot.slane %v6142_v57, 2  ;;  %v6147_v4 = vrot.slane %v6145_v8, 3 }
 0x28f   :  { %12207 = vmatmul.mubr.msk.bf16.gmra.mxu0 %vm251_vm1, %v5754_v9  ;;  %v6121_v9 = vor.u32 %v6120_v5, %v6117_v10  ;;  %v6135_v11 = vrot.slane %v6133_v51, 2  ;;  %v6160_v5 = vshrl.u32 %v12731_v29, 16 }
 0x290   :  { %12210 = vmatprep.mubr.msk.bf16.mxu0 %vm251_vm1, %v5756_v3  ;;  %v6148_v10 = vor.u32 %v6147_v4, %v6144_v61 }
 0x291   :  { %v6122_v42 = vsel %vm17274_vm11, %v6112_v33, %v6121_v9  ;;  %vm17276_vm11 = vmmov %vm17272_vm5  ;;  %v6162_v8 = vrot.slane %v6160_v5, 2 }
 0x293   :  { %12223 = vmatmul.mubr.msk.bf16.vlgmr.msra.gmra.mxu1 %vm251_vm1, %v6086_v41 }
 0x294   :  { %12226 = vmatprep.mubr.msk.bf16.mxu1 %vm251_vm1, %v6095_v25  ;;  %v6138_v25 = vrot.slane %v6136_v2, 3 }
 0x296   :  { %v11972_v30 = vpop.f32.mrf.mxu1 }
 0x297   :  { %12211 = vmatmul.mubr.msk.bf16.gmra.mxu0 %vm251_vm1, %v5755_v56 }
 0x298   :  { %v3694_v19 = vpop.f32.mrf.mxu1 }
 0x29a   :  { %v11973_v43 = vpop.f32.mrf.mxu1 }
 0x29b   :  { %12227 = vmatmul.mubr.msk.bf16.gmra.mxu1 %vm251_vm1, %v6104_v62 }
 0x29c   :  { %v12000_v50 = vpop.f32.mrf.mxu0  ;;  %12230 = vmatprep.mubr.msk.bf16.mxu1 %vm251_vm1, %v6113_v38  ;;  %v15261_v3 = vpop.f32.mrf.mxu1 }
 0x29d   :  { %v15257_v56 = vadd.f32 %v12000_v50, %v11968_v6  ;;  %v12730_v6 = vld [vmem:[#allocation2 + $0x60] sm:$0xff]  }
 0x29e   :  { %v3987_v63 = vpop.f32.mrf.mxu0  ;;  %v6151_v1 = vshrl.u32 %v12730_v6, 16  ;;  %v6154_v0 = vshll.u32 %v12730_v6, 16 }
 0x29f   :  { %v15259_v58 = vadd.f32 %v3987_v63, %v3678_v18  ;;  %v6131_v18 = vsel %vm17272_vm5, %v6121_v9, %v6130_v54 }
 0x2a0   :  { %v12001_v41 = vpop.f32.mrf.mxu0  ;;  %v6153_v63 = vrot.slane %v6151_v1, 2  ;;  %v6156_v9 = vrot.slane %v6154_v0, 3 }
 0x2a1   :  { %v15263_v12 = vadd.f32 %v12001_v41, %v11969_v34  ;;  %v6139_v34 = vor.u32 %v6138_v25, %v6135_v11  ;;  %v6165_v41 = vrot.slane %v6163_v24, 3 }
 0x2a2   :  { %v15266_v37 = vpop.f32.mrf.mxu0  ;;  %v6157_v11 = vor.u32 %v6156_v9, %v6153_v63 }
 0x2a3   :  { %v11976_v44 = vpop.f32.mrf.mxu1  ;;  %12231 = vmatmul.mubr.msk.bf16.gmra.mxu1 %vm251_vm1, %v6122_v42  ;;  %v6140_v50 = vsel %vm17275_vm8, %v6130_v54, %v6139_v34  ;;  %v6149_v57 = vsel %vm17276_vm11, %v6139_v34, %v6148_v10  ;;  %v6166_v6 = vor.u32 %v6165_v41, %v6162_v8  ;;  %vm17277_vm8 = vmmov %vm17272_vm5 }
 0x2a4   :  { %12234 = vmatprep.mubr.msk.bf16.mxu1 %vm251_vm1, %v6131_v18  ;;  %v6158_v34 = vsel %vm17272_vm5, %v6148_v10, %v6157_v11 }
 0x2a5   :  { %v3710_v40 = vpop.f32.mrf.mxu1  ;;  %v6167_v0 = vsel %vm17277_vm8, %v6157_v11, %v6166_v6 }
 0x2a7   :  { %v12004_v33 = vpop.f32.mrf.mxu0  ;;  %v11977_v62 = vpop.f32.mrf.mxu1 }
 0x2a8   :  { %v15271_v38 = vadd.f32 %v12004_v33, %v11972_v30 }
 0x2a9   :  { %v4003_v36 = vpop.f32.mrf.mxu0  ;;  %v15273_v47 = vpop.f32.mrf.mxu1 }
 0x2aa   :  { %v15275_v27 = vadd.f32 %v4003_v36, %v3694_v19 }
 0x2ab   :  { %v12005_v51 = vpop.f32.mrf.mxu0  ;;  %v11980_v2 = vpop.f32.mrf.mxu1  ;;  %12235 = vmatmul.mubr.msk.bf16.gmra.mxu1 %vm251_vm1, %v6140_v50 }
 0x2ac   :  { %v15280_v42 = vadd.f32 %v12005_v51, %v11973_v43  ;;  %12238 = vmatprep.mubr.msk.bf16.mxu1 %vm251_vm1, %v6149_v57 }
 0x2ad   :  { %v15283_v30 = vpop.f32.mrf.mxu0  ;;  %v3726_v19 = vpop.f32.mrf.mxu1 }
 0x2af   :  { %v12008_v25 = vpop.f32.mrf.mxu0  ;;  %v11981_v54 = vpop.f32.mrf.mxu1 }
 0x2b0   :  { %v15285_v18 = vadd.f32 %v12008_v25, %v11976_v44 }
 0x2b1   :  { %v4019_v61 = vpop.f32.mrf.mxu0  ;;  %v15287_v4 = vpop.f32.mrf.mxu1 }
 0x2b2   :  { %v15289_v29 = vadd.f32 %v4019_v61, %v3710_v40 }
 0x2b3   :  { %v12009_v43 = vpop.f32.mrf.mxu0  ;;  %v11984_v1 = vpop.f32.mrf.mxu1  ;;  %12239 = vmatmul.mubr.msk.bf16.gmra.mxu1 %vm251_vm1, %v6158_v34 }
 0x2b4   :  { %v15294_v33 = vadd.f32 %v12009_v43, %v11977_v62  ;;  %12242 = vmatprep.mubr.msk.bf16.mxu1 %vm251_vm1, %v6167_v0 }
 0x2b5   :  { %v15297_v5 = vpop.f32.mrf.mxu0  ;;  %v3742_v44 = vpop.f32.mrf.mxu1 }
 0x2b7   :  { %v12012_v24 = vpop.f32.mrf.mxu0  ;;  %v11985_v36 = vpop.f32.mrf.mxu1 }
 0x2b8   :  { %v15299_v50 = vadd.f32 %v12012_v24, %v11980_v2 }
 0x2b9   :  { %v4035_v40 = vpop.f32.mrf.mxu0  ;;  %v15301_v63 = vpop.f32.mrf.mxu1 }
 0x2ba   :  { %v15303_v10 = vadd.f32 %v4035_v40, %v3726_v19 }
 0x2bb   :  { %v12013_v9 = vpop.f32.mrf.mxu0  ;;  %v11988_v51 = vpop.f32.mrf.mxu1  ;;  %12243 = vmatmul.mubr.msk.bf16.gmra.mxu1 %vm251_vm1, %v6166_v6 }
 0x2bc   :  { %v15306_v62 = vadd.f32 %v12013_v9, %v11981_v54 }
 0x2bd   :  { %v15308_v57 = vpop.f32.mrf.mxu0  ;;  %v3758_v8 = vpop.f32.mrf.mxu1 }
 0x2bf   :  { %v12016_v41 = vpop.f32.mrf.mxu0  ;;  %v11989_v11 = vpop.f32.mrf.mxu1 }
 0x2c0   :  { %v15310_v25 = vadd.f32 %v12016_v41, %v11984_v1 }
 0x2c1   :  { %v4051_v2 = vpop.f32.mrf.mxu0  ;;  %v15312_v61 = vpop.f32.mrf.mxu1 }
 0x2c2   :  { %v15314_v34 = vadd.f32 %v4051_v2, %v3742_v44 }
 0x2c3   :  { %v12017_v19 = vpop.f32.mrf.mxu0  ;;  %v12032_v43 = vpop.f32.mrf.mxu1 }
 0x2c4   :  { %v15316_v0 = vadd.f32 %v12017_v19, %v11985_v36  ;;  %v4368_v6 = vadd.f32 %v12032_v43, %v15257_v56  ;;  %v12732_v56 = vld [vmem:[%s17056_s1 + $0x278] sm:$0xff]  }
 0x2c5   :  { %v15319_v54 = vpop.f32.mrf.mxu0  ;;  %v4272_v24 = vpop.f32.mrf.mxu1  ;;  %12246 = vmatprep.subr.bf16.mxu0 %v12732_v56 }
 0x2c6   :  { %v4366_v40 = vadd.f32 %v4272_v24, %v15259_v58  ;;  %12247 = vmatpush3.bf16.msra.mxu0 %v12732_v56 }
 0x2c7   :  { %v12020_v9 = vpop.f32.mrf.mxu0  ;;  %v12033_v11 = vpop.f32.mrf.mxu1 }
 0x2c8   :  { %v15322_v1 = vadd.f32 %v12020_v9, %v11988_v51  ;;  %v4369_v41 = vadd.f32 %v12033_v11, %v15263_v12 }
 0x2c9   :  { %v4067_v59 = vpop.f32.mrf.mxu0  ;;  %v15325_v44 = vpop.f32.mrf.mxu1 }
 0x2ca   :  { %v15327_v2 = vadd.f32 %v4067_v59, %v3758_v8 }
 0x2cb   :  { %v12021_v36 = vpop.f32.mrf.mxu0  ;;  %v12036_v19 = vpop.f32.mrf.mxu1 }
 0x2cc   :  { %v4372_v43 = vadd.f32 %v12036_v19, %v15271_v38 }
 0x2cd   :  { %v15333_v58 = vpop.f32.mrf.mxu0  ;;  %v4288_v51 = vpop.f32.mrf.mxu1 }
 0x2ce   :  { %v4370_v12 = vadd.f32 %v4288_v51, %v15275_v27 }
 0x2cf   :  { %v12064_v24 = vpop.f32.mrf.mxu0  ;;  %v12037_v9 = vpop.f32.mrf.mxu1 }
 0x2d0   :  { %v15336_v11 = vadd.f32 %v12064_v24, %v4368_v6  ;;  %v4373_v59 = vadd.f32 %v12037_v9, %v15280_v42  ;;  %v12733_v42 = vld [vmem:[%s17056_s1 + $0x270] sm:$0xff]  }
 0x2d1   :  { %v4668_v8 = vpop.f32.mrf.mxu0  ;;  %v15339_v35 = vpop.f32.mrf.mxu1  ;;  %12248 = vmatprep.subr.bf16.mxu0 %v12733_v42 }
 0x2d2   :  { %v15341_v36 = vadd.f32 %v4668_v8, %v4366_v40  ;;  %12249 = vmatpush3.bf16.msra.mxu0 %v12733_v42 }
 0x2d3   :  { %v12065_v48 = vpop.f32.mrf.mxu0  ;;  %v12040_v38 = vpop.f32.mrf.mxu1 }
 0x2d4   :  { %v15343_v19 = vadd.f32 %v12065_v48, %v4369_v41  ;;  %v4376_v31 = vadd.f32 %v12040_v38, %v15285_v18 }
 0x2d5   :  { %v15346_v56 = vpop.f32.mrf.mxu0  ;;  %v4304_v27 = vpop.f32.mrf.mxu1 }
 0x2d6   :  { %v4374_v51 = vadd.f32 %v4304_v27, %v15289_v29 }
 0x2d7   :  { %v12068_v6 = vpop.f32.mrf.mxu0  ;;  %v12041_v24 = vpop.f32.mrf.mxu1 }
 0x2d8   :  { %v15352_v9 = vadd.f32 %v12068_v6, %v4372_v43  ;;  %v4377_v40 = vadd.f32 %v12041_v24, %v15294_v33 }
 0x2d9   :  { %v4684_v48 = vpop.f32.mrf.mxu0  ;;  %v15355_v41 = vpop.f32.mrf.mxu1 }
 0x2da   :  { %v15357_v18 = vadd.f32 %v4684_v48, %v4370_v12 }
 0x2db   :  { %v12069_v8 = vpop.f32.mrf.mxu0  ;;  %v12044_v38 = vpop.f32.mrf.mxu1 }
 0x2dc   :  { %v15359_v29 = vadd.f32 %v12069_v8, %v4373_v59  ;;  %v4380_v27 = vadd.f32 %v12044_v38, %v15299_v50 }
 0x2dd   :  { %v15362_v14 = vpop.f32.mrf.mxu0  ;;  %v4320_v60 = vpop.f32.mrf.mxu1 }
 0x2de   :  { %v4378_v43 = vadd.f32 %v4320_v60, %v15303_v10 }
 0x2df   :  { %v12072_v6 = vpop.f32.mrf.mxu0  ;;  %v12045_v33 = vpop.f32.mrf.mxu1 }
 0x2e0   :  { %v15365_v24 = vadd.f32 %v12072_v6, %v4376_v31  ;;  %v4381_v28 = vadd.f32 %v12045_v33, %v15306_v62 }
 0x2e1   :  { %v4700_v42 = vpop.f32.mrf.mxu0  ;;  %v15368_v12 = vpop.f32.mrf.mxu1 }
 0x2e2   :  { %v15370_v48 = vadd.f32 %v4700_v42, %v4374_v51 }
 0x2e3   :  { %v12073_v59 = vpop.f32.mrf.mxu0  ;;  %v12048_v8 = vpop.f32.mrf.mxu1 }
 0x2e4   :  { %v15372_v53 = vadd.f32 %v12073_v59, %v4377_v40  ;;  %v4384_v50 = vadd.f32 %v12048_v8, %v15310_v25 }
 0x2e5   :  { %v15375_v38 = vpop.f32.mrf.mxu0  ;;  %v4336_v60 = vpop.f32.mrf.mxu1 }
 0x2e6   :  { %v4382_v10 = vadd.f32 %v4336_v60, %v15314_v34 }
 0x2e7   :  { %v12076_v31 = vpop.f32.mrf.mxu0  ;;  %v12049_v6 = vpop.f32.mrf.mxu1 }
 0x2e8   :  { %v15378_v55 = vadd.f32 %v12076_v31, %v4380_v27  ;;  %v4385_v62 = vadd.f32 %v12049_v6, %v15316_v0 }
 0x2e9   :  { %v4716_v33 = vpop.f32.mrf.mxu0  ;;  %v15381_v51 = vpop.f32.mrf.mxu1 }
 0x2ea   :  { %v15383_v42 = vadd.f32 %v4716_v33, %v4378_v43  ;;  %v12734_v43 = vld [vmem:[%s17056_s1 + $0x268] sm:$0xff]  }
 0x2eb   :  { %v12077_v40 = vpop.f32.mrf.mxu0  ;;  %v12052_v59 = vpop.f32.mrf.mxu1  ;;  %12250 = vmatprep.subr.bf16.mxu0 %v12734_v43 }
 0x2ec   :  { %v15385_v39 = vadd.f32 %v12077_v40, %v4381_v28  ;;  %v4388_v25 = vadd.f32 %v12052_v59, %v15322_v1  ;;  %12251 = vmatpush3.bf16.msra.mxu0 %v12734_v43 }
 0x2ed   :  { %v15388_v8 = vpop.f32.mrf.mxu0  ;;  %v4352_v34 = vpop.f32.mrf.mxu1 }
 0x2ee   :  { %v4386_v60 = vadd.f32 %v4352_v34, %v15327_v2 }
 0x2ef   :  { %v12080_v27 = vpop.f32.mrf.mxu0  ;;  %v12053_v31 = vpop.f32.mrf.mxu1 }
 0x2f0   :  { %v15391_v32 = vadd.f32 %v12080_v27, %v4384_v50 }
 0x2f1   :  { %v4732_v0 = vpop.f32.mrf.mxu0  ;;  %v15393_v6 = vpop.f32.mrf.mxu1 }
 0x2f2   :  { %v15398_v28 = vadd.f32 %v4732_v0, %v4382_v10 }
 0x2f3   :  { %v12081_v33 = vpop.f32.mrf.mxu0  ;;  %v12096_v1 = vpop.f32.mrf.mxu1 }
 0x2f4   :  { %v15400_v40 = vadd.f32 %v12081_v33, %v4385_v62  ;;  %v5011_v2 = vadd.f32 %v12096_v1, %v15336_v11 }
 0x2f5   :  { %v15403_v59 = vpop.f32.mrf.mxu0  ;;  %v4915_v50 = vpop.f32.mrf.mxu1 }
 0x2f6   :  { %v5009_v34 = vadd.f32 %v4915_v50, %v15341_v36 }
 0x2f7   :  { %v12084_v27 = vpop.f32.mrf.mxu0  ;;  %v12097_v31 = vpop.f32.mrf.mxu1 }
 0x2f8   :  { %v15406_v15 = vadd.f32 %v12084_v27, %v4388_v25  ;;  %v5012_v10 = vadd.f32 %v12097_v31, %v15343_v19 }
 0x2f9   :  { %v4748_v0 = vpop.f32.mrf.mxu0  ;;  %v15409_v22 = vpop.f32.mrf.mxu1 }
 0x2fa   :  { %v15411_v20 = vadd.f32 %v4748_v0, %v4386_v60  ;;  %v12735_v60 = vld [vmem:[%s17056_s1 + $0x260] sm:$0xff]  }
 0x2fb   :  { %v12085_v62 = vpop.f32.mrf.mxu0  ;;  %v12100_v33 = vpop.f32.mrf.mxu1  ;;  %12252 = vmatprep.subr.bf16.mxu0 %v12735_v60 }
 0x2fc   :  { %v5015_v11 = vadd.f32 %v12100_v33, %v15352_v9  ;;  %v12736_v9 = vld [vmem:[%s17056_s1 + $0x258] sm:$0xff]   ;;  %12253 = vmatpush3.bf16.msra.mxu0 %v12735_v60 }
 0x2fd   :  { %v15414_v43 = vpop.f32.mrf.mxu0  ;;  %v4931_v1 = vpop.f32.mrf.mxu1  ;;  %12278 = vmatprep.subr.bf16.mxu1 %v12736_v9 }
 0x2fe   :  { %v5013_v36 = vadd.f32 %v4931_v1, %v15357_v18  ;;  %12279 = vmatpush3.bf16.msra.mxu1 %v12736_v9 }
 0x2ff   :  { %v12128_v50 = vpop.f32.mrf.mxu0  ;;  %v12101_v45 = vpop.f32.mrf.mxu1 }
 0x300   :  { %v15417_v25 = vadd.f32 %v12128_v50, %v5011_v2  ;;  %v5016_v19 = vadd.f32 %v12101_v45, %v15359_v29 }
 0x301   :  { %v5196_v27 = vpop.f32.mrf.mxu0  ;;  %v15420_v31 = vpop.f32.mrf.mxu1 }
 0x302   :  { %v15428_v0 = vadd.f32 %v5196_v27, %v5009_v34 }
 0x303   :  { %v12129_v18 = vpop.f32.mrf.mxu0  ;;  %v12104_v62 = vpop.f32.mrf.mxu1 }
 0x304   :  { %v15430_v2 = vadd.f32 %v12129_v18, %v5012_v10  ;;  %v5019_v45 = vadd.f32 %v12104_v62, %v15365_v24 }
 0x305   :  { %v15433_v29 = vpop.f32.mrf.mxu0  ;;  %v4947_v33 = vpop.f32.mrf.mxu1 }
 0x306   :  { %v5017_v1 = vadd.f32 %v4947_v33, %v15370_v48  ;;  %v12741_v48 = vld [vmem:[%s17056_s1 + $0x250] sm:$0xff]  }
 0x307   :  { %v12132_v50 = vpop.f32.mrf.mxu0  ;;  %v12105_v21 = vpop.f32.mrf.mxu1  ;;  %12280 = vmatprep.subr.bf16.mxu1 %v12741_v48 }
 0x308   :  { %v15436_v46 = vadd.f32 %v12132_v50, %v5015_v11  ;;  %v5020_v34 = vadd.f32 %v12105_v21, %v15372_v53  ;;  %12281 = vmatpush3.bf16.msra.mxu1 %v12741_v48  ;;  %v15461_v50 = vld [vmem:[%s17056_s1 + $0x298] sm:$0xff]  }
 0x309   :  { %v5212_v27 = vpop.f32.mrf.mxu0  ;;  %v15439_v16 = vpop.f32.mrf.mxu1  ;;  %17279 = vst [vmem:[#allocation30_spill] sm:$0xff] %v15461_v50  ;;  %12310 = vmatprep.subr.bf16.mxu0 %v15461_v50 }
 0x30a   :  { %v15441_v10 = vadd.f32 %v5212_v27, %v5013_v36  ;;  %v12742_v36 = vld [vmem:[%s17056_s1 + $0x248] sm:$0xff]  }
 0x30b   :  { %v12133_v18 = vpop.f32.mrf.mxu0  ;;  %v12108_v24 = vpop.f32.mrf.mxu1  ;;  %12282 = vmatprep.subr.bf16.mxu1 %v12742_v36 }
 0x30c   :  { %v15443_v60 = vadd.f32 %v12133_v18, %v5016_v19  ;;  %v5023_v9 = vadd.f32 %v12108_v24, %v15378_v55  ;;  %12283 = vmatpush3.bf16.msra.mxu1 %v12742_v36 }
 0x30d   :  { %v15449_v62 = vpop.f32.mrf.mxu0  ;;  %v4963_v11 = vpop.f32.mrf.mxu1 }
 0x30e   :  { %v5021_v21 = vadd.f32 %v4963_v11, %v15383_v42  ;;  %v12746_v11 = vld [vmem:[%s17056_s1 + $0x240] sm:$0xff]  }
 0x30f   :  { %v12136_v53 = vpop.f32.mrf.mxu0  ;;  %v12109_v33 = vpop.f32.mrf.mxu1  ;;  %12284 = vmatprep.subr.bf16.mxu1 %v12746_v11 }
 0x310   :  { %v15455_v19 = vadd.f32 %v12136_v53, %v5019_v45  ;;  %v5024_v55 = vadd.f32 %v12109_v33, %v15385_v39  ;;  %12285 = vmatpush3.bf16.msra.mxu1 %v12746_v11 }
 0x311   :  { %v5228_v27 = vpop.f32.mrf.mxu0  ;;  %v15463_v18 = vpop.f32.mrf.mxu1 }
 0x312   :  { %17278 = vst [vmem:[#allocation13_spill] sm:$0xff] %v15455_v19  ;;  %v15465_v42 = vadd.f32 %v5228_v27, %v5017_v1 }
 0x313   :  { %v12137_v24 = vpop.f32.mrf.mxu0  ;;  %v12112_v48 = vpop.f32.mrf.mxu1 }
 0x314   :  { %17280 = vst [vmem:[#allocation14_spill] sm:$0xff] %v15465_v42  ;;  %v15468_v45 = vadd.f32 %v12137_v24, %v5020_v34  ;;  %v5027_v39 = vadd.f32 %v12112_v48, %v15391_v32 }
 0x315   :  { %v15474_v53 = vpop.f32.mrf.mxu0  ;;  %v4979_v33 = vpop.f32.mrf.mxu1 }
 0x316   :  { %17281 = vst [vmem:[#allocation15_spill] sm:$0xff] %v15468_v45  ;;  %v5025_v49 = vadd.f32 %v4979_v33, %v15398_v28 }
 0x317   :  { %v12140_v1 = vpop.f32.mrf.mxu0  ;;  %v12113_v27 = vpop.f32.mrf.mxu1 }
 0x318   :  { %v15477_v50 = vadd.f32 %v12140_v1, %v5023_v9  ;;  %v5028_v34 = vadd.f32 %v12113_v27, %v15400_v40 }
 0x319   :  { %v5244_v36 = vpop.f32.mrf.mxu0  ;;  %v15480_v24 = vpop.f32.mrf.mxu1 }
 0x31a   :  { %17282 = vst [vmem:[#allocation7_spill] sm:$0xff] %v15477_v50  ;;  %v15482_v32 = vadd.f32 %v5244_v36, %v5021_v21 }
 0x31b   :  { %v12141_v48 = vpop.f32.mrf.mxu0  ;;  %v12116_v52 = vpop.f32.mrf.mxu1 }
 0x31c   :  { %17283 = vst [vmem:[#allocation35_spill] sm:$0xff] %v15482_v32  ;;  %v15484_v26 = vadd.f32 %v12141_v48, %v5024_v55  ;;  %v5031_v23 = vadd.f32 %v12116_v52, %v15406_v15 }
 0x31d   :  { %v15487_v28 = vpop.f32.mrf.mxu0  ;;  %v4995_v33 = vpop.f32.mrf.mxu1 }
 0x31e   :  { %17284 = vst [vmem:[#allocation36_spill] sm:$0xff] %v15484_v26  ;;  %v5029_v11 = vadd.f32 %v4995_v33, %v15411_v20 }
 0x31f   :  { %v12144_v9 = vpop.f32.mrf.mxu0  ;;  %v12117_v1 = vpop.f32.mrf.mxu1 }
 0x320   :  { %v15490_v13 = vadd.f32 %v12144_v9, %v5027_v39 }
 0x321   :  { %v5260_v40 = vpop.f32.mrf.mxu0  ;;  %v15492_v27 = vpop.f32.mrf.mxu1 }
 0x322   :  { %17285 = vst [vmem:[#allocation37_spill] sm:$0xff] %v15490_v13  ;;  %v15494_v21 = vadd.f32 %v5260_v40, %v5025_v49 }
 0x323   :  { %v12145_v36 = vpop.f32.mrf.mxu0  ;;  %v15496_v7 = vpop.f32.mrf.mxu1 }
 0x324   :  { %17286 = vst [vmem:[#allocation38_spill] sm:$0xff] %v15494_v21  ;;  %v15498_v55 = vadd.f32 %v12145_v36, %v5028_v34 }
 0x325   :  { %v15500_v52 = vpop.f32.mrf.mxu0  ;;  %v15502_v15 = vpop.f32.mrf.mxu1 }
 0x326   :  { %17287 = vst [vmem:[#allocation39_spill] sm:$0xff] %v15498_v55 }
 0x327   :  { %v12148_v48 = vpop.f32.mrf.mxu0  ;;  %v15504_v20 = vpop.f32.mrf.mxu1 }
 0x328   :  { %v15506_v33 = vadd.f32 %v12148_v48, %v5031_v23 }
 0x329   :  { %v5276_v39 = vpop.f32.mrf.mxu0  ;;  %v15508_v9 = vpop.f32.mrf.mxu1 }
 0x32a   :  { %v15510_v1 = vadd.f32 %v5276_v39, %v5029_v11 }
 0x32b   :  { %v12149_v49 = vpop.f32.mrf.mxu0  ;;  %v15512_v40 = vpop.f32.mrf.mxu1 }
 0x32c   :  { %17288 = vst [vmem:[#allocation40_spill] sm:$0xff] %v15510_v1 }
 0x32d   :  { %v15514_v21 = vpop.f32.mrf.mxu0  ;;  %v15516_v34 = vpop.f32.mrf.mxu1 }
 0x32f   :  { %v15518_v36 = vpop.f32.mrf.mxu0  ;;  %v15520_v55 = vpop.f32.mrf.mxu1 }
 0x331   :  { %v15522_v13 = vpop.f32.mrf.mxu0  ;;  %v15524_v23 = vpop.f32.mrf.mxu1 }
 0x332   :  { %17289 = vst [vmem:[#allocation41_spill] sm:$0xff] %v15524_v23 }
 0x333   :  { %v15526_v48 = vpop.f32.mrf.mxu0  ;;  %v15528_v26 = vpop.f32.mrf.mxu1 }
 0x334   :  { %17290 = vst [vmem:[#allocation42_spill] sm:$0xff] %v15528_v26 }
 0x335   :  { %v15530_v11 = vpop.f32.mrf.mxu0  ;;  %v15532_v39 = vpop.f32.mrf.mxu1 }
 0x336   :  { %17291 = vst [vmem:[#allocation43_spill] sm:$0xff] %v15530_v11  ;;  %17292 = vst [vmem:[#allocation44_spill] sm:$0xff] %v15532_v39  ;;  %v15553_v39 = vld [vmem:[%s17056_s1 + $0x2b8] sm:$0xff]  }
 0x337   :  { %v15534_v49 = vpop.f32.mrf.mxu0  ;;  %v15536_v1 = vpop.f32.mrf.mxu1  ;;  %17301 = vst [vmem:[#allocation53_spill] sm:$0xff] %v15553_v39  ;;  %12342 = vmatprep.subr.bf16.mxu1 %v15553_v39  ;;  %v4023_v39 = vadd.f32 %v15297_v5, %v15273_v47  ;;  %v4071_v5 = vadd.f32 %v15333_v58, %v15312_v61 }
 0x338   :  { %17293 = vst [vmem:[#allocation45_spill] sm:$0xff] %v15534_v49  ;;  %17294 = vst [vmem:[#allocation46_spill] sm:$0xff] %v15536_v1 }
 0x339   :  { %v15538_v32 = vpop.f32.mrf.mxu0  ;;  %v15540_v50 = vpop.f32.mrf.mxu1 }
 0x33a   :  { %17295 = vst [vmem:[#allocation47_spill] sm:$0xff] %v15538_v32  ;;  %17296 = vst [vmem:[#allocation48_spill] sm:$0xff] %v15540_v50  ;;  %v6716_v32 = vld [vmem:[#allocation2 + $0x4] sm:$0x8] }
 0x33b   :  { %v15542_v45 = vpop.f32.mrf.mxu0  ;;  %v15544_v42 = vpop.f32.mrf.mxu1 }
 0x33c   :  { %17297 = vst [vmem:[#allocation49_spill] sm:$0xff] %v15542_v45  ;;  %17298 = vst [vmem:[#allocation50_spill] sm:$0xff] %v15544_v42  ;;  %v15564_v42 = vld [vmem:[#allocation2 + $0x8] sm:$0xf] }
 0x33d   :  { %v15546_v19 = vpop.f32.mrf.mxu0  ;;  %v15548_v23 = vpop.f32.mrf.mxu1  ;;  %17306 = vst [vmem:[#allocation58_spill] sm:$0xff] %v15564_v42 }
 0x33e   :  { %17299 = vst [vmem:[#allocation51_spill] sm:$0xff] %v15546_v19  ;;  %17300 = vst [vmem:[#allocation52_spill] sm:$0xff] %v15548_v23  ;;  %v10833_v23 = vcombine.low %v6716_v32, %v15564_v42  ;;  %v4055_v32 = vadd.f32 %v15319_v54, %v15301_v63 }
 0x33f   :  { %v15555_v49 = vpop.f32.mrf.mxu0  ;;  %v15557_v1 = vpop.f32.mrf.mxu1 }
 0x340   :  { %17302 = vst [vmem:[#allocation54_spill] sm:$0xff] %v15555_v49  ;;  %17303 = vst [vmem:[#allocation55_spill] sm:$0xff] %v15557_v1  ;;  %v3991_v49 = vadd.f32 %v15266_v37, %v15249_v17  ;;  %v4007_v1 = vadd.f32 %v15283_v30, %v15261_v3  ;;  %v7019_v42 = vshrl.u32 %v10833_v23, 16  ;;  %v4375_v3 = vadd.f32 %v15355_v41, %v4023_v39 }
 0x341   :  { %v15560_v50 = vpop.f32.mrf.mxu0  ;;  %v15562_v45 = vpop.f32.mrf.mxu1 }
 0x342   :  { %17304 = vst [vmem:[#allocation56_spill] sm:$0xff] %v15560_v50  ;;  %17305 = vst [vmem:[#allocation57_spill] sm:$0xff] %v15562_v45  ;;  %v4039_v45 = vadd.f32 %v15308_v57, %v15287_v4  ;;  %v4367_v17 = vadd.f32 %v15325_v44, %v3991_v49  ;;  %v4371_v37 = vadd.f32 %v15339_v35, %v4007_v1 }
 0x343   :  { %v15567_v19 = vpop.f32.mrf.mxu0  ;;  %v15569_v11 = vpop.f32.mrf.mxu1  ;;  %v4383_v57 = vadd.f32 %v15381_v51, %v4055_v32  ;;  %v4771_v44 = vadd.f32 %v15375_v38, %v4375_v3  ;;  %v4387_v1 = vadd.f32 %v15393_v6, %v4071_v5 }
 0x344   :  { %17307 = vst [vmem:[#allocation59_spill] sm:$0xff] %v15569_v11  ;;  %v7022_v11 = vshll.u32 %v10833_v23, 16  ;;  %v4379_v47 = vadd.f32 %v15368_v12, %v4039_v45  ;;  %v4763_v63 = vadd.f32 %v15346_v56, %v4367_v17  ;;  %v4767_v54 = vadd.f32 %v15362_v14, %v4371_v37  ;;  %v17309_v17 = vld [vmem:[#allocation13_spill] sm:$0xff] }
 0x345   :  { %v15579_v50 = vpop.f32.mrf.mxu0  ;;  %v15581_v26 = vpop.f32.mrf.mxu1  ;;  %v4779_v45 = vadd.f32 %v15403_v59, %v4383_v57  ;;  %v15606_v23 = vrot.slane %v7019_v42, 3  ;;  %v5018_v56 = vadd.f32 %v15439_v16, %v4771_v44  ;;  %v4783_v39 = vadd.f32 %v15414_v43, %v4387_v1  ;;  %v17313_v57 = vld [vmem:[#allocation14_spill] sm:$0xff]  ;;  %v17320_v1 = vld [vmem:[#allocation7_spill] sm:$0xff] }
 0x346   :  { %v4775_v35 = vadd.f32 %v15388_v8, %v4379_v47  ;;  %v15608_v61 = vrot.slane %v7022_v11, 4  ;;  %v5010_v58 = vadd.f32 %v15409_v22, %v4763_v63  ;;  %v5014_v14 = vadd.f32 %v15420_v31, %v4767_v54  ;;  %v17315_v63 = vld [vmem:[#allocation15_spill] sm:$0xff] }
 0x347   :  { %v15589_v30 = vpop.f32.mrf.mxu0  ;;  %v15591_v4 = vpop.f32.mrf.mxu1  ;;  %v5026_v59 = vadd.f32 %v15480_v24, %v4779_v45  ;;  %v5299_v31 = vadd.f32 %v15474_v53, %v5018_v56  ;;  %v5030_v32 = vadd.f32 %v15492_v27, %v4783_v39  ;;  %v5700_v43 = vadd.f32 %v15496_v7, %v15417_v25  ;;  %v17322_v39 = vld [vmem:[#allocation51_spill] sm:$0xff] }
 0x348   :  { %v5022_v38 = vadd.f32 %v15463_v18, %v4775_v35  ;;  %v5291_v42 = vadd.f32 %v15433_v29, %v5010_v58  ;;  %v5295_v22 = vadd.f32 %v15449_v62, %v5014_v14  ;;  %v7025_v24 = vor.u32 %v15608_v61, %v15606_v23  ;;  %v17319_v35 = vld [vmem:[#allocation48_spill] sm:$0xff]  ;;  %v17321_v58 = vld [vmem:[#allocation50_spill] sm:$0xff] }
 0x349   :  { %v15600_v41 = vpop.f32.mrf.mxu0  ;;  %v15602_v12 = vpop.f32.mrf.mxu1  ;;  %v5307_v49 = vadd.f32 %v15500_v52, %v5026_v59  ;;  %v5698_v29 = vadd.f32 %v15502_v15, %v15428_v0  ;;  %v5701_v62 = vadd.f32 %v15504_v20, %v15430_v2  ;;  %v5311_v27 = vadd.f32 %v15514_v21, %v5030_v32  ;;  %v17308_v20 = vld [vmem:[#allocation41_spill] sm:$0xff]  ;;  %v17311_v21 = vld [vmem:[#allocation43_spill] sm:$0xff] }
 0x34a   :  { %v5303_v16 = vadd.f32 %v15487_v28, %v5022_v38  ;;  %v5699_v53 = vadd.f32 %v15508_v9, %v5291_v42  ;;  %v5704_v28 = vadd.f32 %v15512_v40, %v15436_v46  ;;  %v5947_v7 = vadd.f32 %v15518_v36, %v5700_v43  ;;  %v17310_v46 = vld [vmem:[#allocation42_spill] sm:$0xff]  ;;  %v17312_v36 = vld [vmem:[#allocation45_spill] sm:$0xff]  ;;  %v17324_v32 = vld [vmem:[#allocation35_spill] sm:$0xff] }
 0x34b   :  { %v15614_v51 = vpop.f32.mrf.mxu0  ;;  %v12180_v8 = vpop.f32.mrf.mxu1  ;;  %v5702_v25 = vadd.f32 %v15516_v34, %v15441_v10  ;;  %v5705_v0 = vadd.f32 %v15520_v55, %v15443_v60  ;;  %v5945_v15 = vadd.f32 %v15522_v13, %v5698_v29  ;;  %v5948_v2 = vadd.f32 %v15526_v48, %v5701_v62  ;;  %v17314_v10 = vld [vmem:[#allocation44_spill] sm:$0xff]  ;;  %v17316_v60 = vld [vmem:[#allocation46_spill] sm:$0xff]  ;;  %v17317_v13 = vld [vmem:[#allocation47_spill] sm:$0xff] }
 0x34c   :  { %v15619_v6 = vadd.f32 %v12180_v8, %v15506_v33  ;;  %v5703_v9 = vadd.f32 %v17308_v20, %v5295_v22  ;;  %v5708_v40 = vadd.f32 %v17310_v46, %v17309_v17  ;;  %v5946_v47 = vadd.f32 %v17311_v21, %v5699_v53  ;;  %v17318_v48 = vld [vmem:[#allocation49_spill] sm:$0xff]  ;;  %v15667_v8 = vld [vmem:[%s17057_s2 + $0x1] ss:$0 sm:$0xff]  ;;  %v17323_v42 = vld [vmem:[#allocation54_spill] sm:$0xff] }
 0x34d   :  { %v5902_v11 = vpop.f32.mrf.mxu0  ;;  %v5684_v18 = vpop.f32.mrf.mxu1  ;;  %v5951_v5 = vadd.f32 %v17312_v36, %v5704_v28  ;;  %v5706_v34 = vadd.f32 %v17314_v10, %v17313_v57  ;;  %v5709_v55 = vadd.f32 %v17316_v60, %v17315_v63  ;;  %v15656_v54 = vadd.f32 %v17317_v13, %v5702_v25  ;;  %v17325_v43 = vld [vmem:[#allocation52_spill] sm:$0xff]  ;;  %v17328_v25 = vld [vmem:[#allocation55_spill] sm:$0xff]  ;;  %v17329_v20 = vld [vmem:[#allocation57_spill] sm:$0xff] }
 0x34e   :  { %v15659_v44 = vadd.f32 %v17318_v48, %v5705_v0  ;;  %v5707_v45 = vadd.f32 %v17319_v35, %v5299_v31  ;;  %v5712_v14 = vadd.f32 %v17321_v58, %v17320_v1  ;;  %v15670_v59 = vadd.f32 %v17322_v39, %v5703_v9  ;;  %v17326_v62 = vld [vmem:[#allocation56_spill] sm:$0xff]  ;;  %v15689_v46 = vld [vmem:[%s17058_s3 + $0x1] ss:$0 sm:$0xff]  ;;  %v17330_v21 = vld [vmem:[#allocation37_spill] sm:$0xff] }
 0x34f   :  { %v12208_v52 = vpop.f32.mrf.mxu0  ;;  %v12181_v33 = vpop.f32.mrf.mxu1  ;;  %v15673_v22 = vadd.f32 %v17323_v42, %v5708_v40  ;;  %v5710_v29 = vadd.f32 %v17325_v43, %v17324_v32  ;;  %v15678_v53 = vadd.f32 %v17326_v62, %v5706_v34  ;;  %v15681_v28 = vadd.f32 %v15567_v19, %v5709_v55  ;;  %v17331_v36 = vld [vmem:[#allocation59_spill] sm:$0xff]  ;;  %v17332_v63 = vld [vmem:[#allocation38_spill] sm:$0xff] }
 0x350   :  { %v17327_v33 = vld [vmem:[#allocation36_spill] sm:$0xff]  ;;  %v5711_v17 = vadd.f32 %v17329_v20, %v5303_v16  ;;  %v5716_v57 = vadd.f32 %v17331_v36, %v17330_v21  ;;  %v15698_v34 = vadd.f32 %v15589_v30, %v5712_v14  ;;  %v5714_v60 = vadd.f32 %v15581_v26, %v17332_v63  ;;  %v17333_v55 = vld [vmem:[#allocation39_spill] sm:$0xff] }
 0x351   :  { %v5915_v37 = vpop.f32.mrf.mxu0  ;;  %v5687_v3 = vpop.f32.mrf.mxu1  ;;  %v5713_v0 = vadd.f32 %v17328_v25, %v17327_v33  ;;  %v15701_v16 = vadd.f32 %v15600_v41, %v5710_v29  ;;  %v5717_v13 = vadd.f32 %v15591_v4, %v17333_v55  ;;  %v5715_v35 = vadd.f32 %v15602_v12, %v5307_v49  ;;  %v17334_v26 = vld [vmem:[#allocation40_spill] sm:$0xff] }
 0x352   :  { %v15713_v41 = vadd.f32 %v5902_v11, %v5711_v17  ;;  %v15715_v58 = vadd.f32 %v12208_v52, %v5716_v57  ;;  %v15718_v14 = vadd.f32 %v5684_v18, %v17334_v26  ;;  %v15722_v39 = vadd.f32 %v5915_v37, %v5714_v60  ;;  %v17335_v37 = vld [vmem:[#allocation34_spill] sm:$0xff]  ;;  %v17337_v20 = vld [vmem:[#allocation32_spill] sm:$0xff] }
 0x353   :  { %v12209_v56 = vpop.f32.mrf.mxu0  ;;  %v12224_v38 = vpop.f32.mrf.mxu1  ;;  %v15711_v30 = vadd.f32 %v15614_v51, %v5713_v0  ;;  %v15727_v51 = vadd.f32 %v5687_v3, %v5311_v27  ;;  %vm17336_vm8 = vcmp.eq.s32.totalorder %v17335_v37, 1 }
 0x354   :  { %v6358_v31 = vadd.f32 %v12224_v38, %v5947_v7  ;;  %v15692_v7 = vadd.f32 %v15579_v50, %v5707_v45 }
 0x355   :  { %v5918_v9 = vpop.f32.mrf.mxu0  ;;  %v6262_v40 = vpop.f32.mrf.mxu1 }
 0x356   :  { %v6389_v19 = vmul.f32 %v15667_v8, %v6358_v31  ;;  %v6356_v10 = vadd.f32 %v6262_v40, %v5945_v15  ;;  %v15730_v31 = vadd.f32 %v5918_v9, %v5715_v35 }
 0x357   :  { %v12212_v50 = vpop.f32.mrf.mxu0  ;;  %v12225_v48 = vpop.f32.mrf.mxu1 }
 0x358   :  { %v6420_v45 = vadd.f32 %v15689_v46, %v6389_v19  ;;  %v6387_v15 = vmul.f32 %v15667_v8, %v6356_v10  ;;  %v6359_v1 = vadd.f32 %v12225_v48, %v5948_v2  ;;  %v15725_v2 = vadd.f32 %v12209_v56, %v5717_v13 }
 0x359   :  { %v15720_v4 = vpop.f32.mrf.mxu0  ;;  %v6265_v38 = vpop.f32.mrf.mxu1  ;;  %v15737_v3 = vadd.f32 %v12212_v50, %v15619_v6  ;;  %v17339_v50 = vld [vmem:[#allocation17_spill] sm:$0xff] }
 0x35a   :  { %vm6443_vm11 = vcmp.gt.f32.partialorder %v6420_v45, 0.0  ;;  %v6466_v12 = vmul.f32 0.1, %v6420_v45  ;;  %v6418_v49 = vadd.f32 %v15689_v46, %v6387_v15  ;;  %v6390_v52 = vmul.f32 %v15667_v8, %v6359_v1 }
 0x35b   :  { %v12213_v11 = vpop.f32.mrf.mxu0  ;;  %v6357_v42 = vadd.f32 %v6265_v38, %v5946_v47  ;;  %v12228_v32 = vpop.f32.mrf.mxu1 }
 0x35c   :  { %v6489_v18 = vsel %vm6443_vm11, %v6420_v45, %v6466_v12  ;;  %vm6441_vm5 = vcmp.gt.f32.partialorder %v6418_v49, 0.0  ;;  %v6464_v43 = vmul.f32 0.1, %v6418_v49  ;;  %v6362_v29 = vadd.f32 %v12228_v32, %v5951_v5 }
 0x35d   :  { %v6512_v62 = vsel %vm17336_vm8, %v6489_v18, 0.0  ;;  %v6421_v33 = vadd.f32 %v15689_v46, %v6390_v52  ;;  %v6388_v56 = vmul.f32 %v15667_v8, %v6357_v42  ;;  %v6278_v27 = vpop.f32.mrf.mxu1  ;;  %vm17338_vm11 = vcmp.eq.s32.totalorder %v17337_v20, 1 }
 0x35e   :  { %v11125_v25 = vpack.c.bf16 %v6512_v62, %v6512_v62  ;;  %v6487_v47 = vsel %vm6441_vm5, %v6418_v49, %v6464_v43  ;;  %v6393_v0 = vmul.f32 %v15667_v8, %v6362_v29  ;;  %v6360_v19 = vadd.f32 %v6278_v27, %v15656_v54  ;;  %v17342_v43 = vld [vmem:[#allocation18_spill] sm:$0xff] }
 0x35f   :  { %v6510_v5 = vsel %vm17338_vm11, %v6487_v47, 0.0  ;;  %vm6444_vm4 = vcmp.gt.f32.partialorder %v6421_v33, 0.0  ;;  %v6467_v17 = vmul.f32 0.1, %v6421_v33  ;;  %v6419_v9 = vadd.f32 %v15689_v46, %v6388_v56  ;;  %v12229_v40 = vpop.f32.mrf.mxu1 }
 0x360   :  { %v6608_v21 = vrot.slane %v11125_v25, 7  ;;  %v11123_v36 = vpack.c.bf16 %v6510_v5, %v6510_v5  ;;  %v6424_v57 = vadd.f32 %v15689_v46, %v6393_v0  ;;  %v6363_v63 = vadd.f32 %v12229_v40, %v15659_v44 }
 0x361   :  { %v6490_v6 = vsel %vm6444_vm4, %v6421_v33, %v6467_v17  ;;  %vm6442_vm8 = vcmp.gt.f32.partialorder %v6419_v9, 0.0  ;;  %v6465_v10 = vmul.f32 0.1, %v6419_v9  ;;  %v6281_v60 = vpop.f32.mrf.mxu1  ;;  %vm17340_vm5 = vcmp.eq.s32.totalorder %v17339_v50, 1 }
 0x362   :  { %v6610_v55 = vrot.slane %v6608_v21, 4  ;;  %v6603_v13 = vrot.slane %v11123_v36, 7  ;;  %v6513_v48 = vsel %vm17340_vm5, %v6490_v6, 0.0  ;;  %vm6447_vm11 = vcmp.gt.f32.partialorder %v6424_v57, 0.0 }
 0x363   :  { %v11126_v35 = vpack.c.bf16 %v6513_v48, %v6513_v48  ;;  %v6488_v45 = vsel %vm6442_vm8, %v6419_v9, %v6465_v10  ;;  %v6470_v15 = vmul.f32 0.1, %v6424_v57  ;;  %v6391_v1 = vmul.f32 %v15667_v8, %v6360_v19  ;;  %v12232_v26 = vpop.f32.mrf.mxu1  ;;  %v17345_v48 = vld [vmem:[#allocation16_spill] sm:$0xff] }
 0x364   :  { %v6604_v38 = vrot.slane %v6603_v13, 4  ;;  %6693 = vst.msk [vmem:[#allocation2 + $0xc] sm:$0xe] %vm17148_vm7, %v6603_v13  ;;  %v6511_v12 = vsel %vm17147_vm10, %v6488_v45, 0.0  ;;  %v6394_v44 = vmul.f32 %v15667_v8, %v6363_v63  ;;  %v6361_v49 = vadd.f32 %v6281_v60, %v15670_v59  ;;  %v17347_v45 = vld [vmem:[#allocation19_spill] sm:$0xff] }
 0x365   :  { %v6611_v11 = vrot.slane %v11126_v35, 7  ;;  %v11124_v52 = vpack.c.bf16 %v6511_v12, %v6511_v12  ;;  %v6493_v42 = vsel %vm6447_vm11, %v6424_v57, %v6470_v15  ;;  %v6422_v32 = vadd.f32 %v15689_v46, %v6391_v1  ;;  %v6294_v18 = vpop.f32.mrf.mxu1 }
 0x366   :  { %vm17343_vm4 = vcmp.eq.s32.totalorder %v17342_v43, 1  ;;  %v6425_v62 = vadd.f32 %v15689_v46, %v6394_v44  ;;  %v6392_v33 = vmul.f32 %v15667_v8, %v6361_v49  ;;  %v6366_v56 = vadd.f32 %v12232_v26, %v15673_v22 }
 0x367   :  { %v6516_v29 = vsel %vm17343_vm4, %v6493_v42, 0.0  ;;  %v6612_v25 = vsel %vm14427_vm9, %v6610_v55, %v6611_v11  ;;  %v6613_v47 = vrot.slane %v6611_v11, 4  ;;  %v6605_v59 = vrot.slane %v11124_v52, 7  ;;  %v12233_v5 = vpop.f32.mrf.mxu1 }
 0x368   :  { %v11129_v0 = vpack.c.bf16 %v6516_v29, %v6516_v29  ;;  %6696 = vst.msk [vmem:[#allocation2 + $0x18] sm:$0xf] %vm56_vm0, %v6612_v25  ;;  %vm6445_vm8 = vcmp.gt.f32.partialorder %v6422_v32, 0.0  ;;  %v6468_v17 = vmul.f32 0.1, %v6422_v32  ;;  %vm6448_vm5 = vcmp.gt.f32.partialorder %v6425_v62, 0.0 }
 0x369   :  { %v6471_v9 = vmul.f32 0.1, %v6425_v62  ;;  %v6606_v40 = vsel %vm14427_vm9, %v6604_v38, %v6605_v59  ;;  %v6607_v36 = vrot.slane %v6605_v59, 4  ;;  %v6423_v22 = vadd.f32 %v15689_v46, %v6392_v33  ;;  %v6297_v19 = vpop.f32.mrf.mxu1  ;;  %v17349_v29 = vld [vmem:[#allocation6_spill] sm:$0xff] }
 0x36a   :  { %v15765_v57 = vrot.slane %v11129_v0, 7  ;;  %6694 = vst.msk [vmem:[#allocation2 + $0x10] sm:$0xf] %vm56_vm0, %v6606_v40  ;;  %v6491_v6 = vsel %vm6445_vm8, %v6422_v32, %v6468_v17  ;;  %v6397_v63 = vmul.f32 %v15667_v8, %v6366_v56  ;;  %v6364_v60 = vadd.f32 %v6294_v18, %v15678_v53  ;;  %v17351_v40 = vld [vmem:[#allocation8_spill] sm:$0xff] }
 0x36b   :  { %v6494_v10 = vsel %vm6448_vm5, %v6425_v62, %v6471_v9  ;;  %v6609_v55 = vsel %vm14427_vm9, %v6607_v36, %v6608_v21  ;;  %vm17346_vm11 = vcmp.eq.s32.totalorder %v17345_v48, 1  ;;  %vm17348_vm4 = vcmp.eq.s32.totalorder %v17347_v45, 1  ;;  %v12236_v1 = vpop.f32.mrf.mxu1 }
 0x36c   :  { %v6622_v13 = vrot.slane %v15765_v57, 4  ;;  %v6514_v35 = vsel %vm17346_vm11, %v6491_v6, 0.0  ;;  %v6517_v15 = vsel %vm17348_vm4, %v6494_v10, 0.0  ;;  %6695 = vst.msk [vmem:[#allocation2 + $0x14] sm:$0xf] %vm56_vm0, %v6609_v55  ;;  %vm6446_vm8 = vcmp.gt.f32.partialorder %v6423_v22, 0.0 }
 0x36d   :  { %v11127_v26 = vpack.c.bf16 %v6514_v35, %v6514_v35  ;;  %v11130_v38 = vpack.c.bf16 %v6517_v15, %v6517_v15  ;;  %v6469_v12 = vmul.f32 0.1, %v6423_v22  ;;  %v6428_v53 = vadd.f32 %v15689_v46, %v6397_v63  ;;  %v6310_v11 = vpop.f32.mrf.mxu1 }
 0x36e   :  { %v6395_v44 = vmul.f32 %v15667_v8, %v6364_v60  ;;  %v6367_v21 = vadd.f32 %v12233_v5, %v15681_v28  ;;  %v6365_v49 = vadd.f32 %v6297_v19, %v15692_v7  ;;  %v6370_v18 = vadd.f32 %v12236_v1, %v15698_v34  ;;  %v17353_v60 = vld [vmem:[#allocation21_spill] sm:$0xff] }
 0x36f   :  { %v6614_v52 = vrot.slane %v11127_v26, 7  ;;  %v6623_v42 = vrot.slane %v11130_v38, 7  ;;  %v6492_v32 = vsel %vm6446_vm8, %v6423_v22, %v6469_v12  ;;  %vm17350_vm5 = vcmp.eq.s32.totalorder %v17349_v29, 1  ;;  %v15787_v25 = vpop.f32.mrf.mxu1 }
 0x370   :  { %v6515_v62 = vsel %vm17350_vm5, %v6492_v32, 0.0  ;;  %vm6451_vm11 = vcmp.gt.f32.partialorder %v6428_v53, 0.0  ;;  %v6474_v33 = vmul.f32 0.1, %v6428_v53  ;;  %v6426_v56 = vadd.f32 %v15689_v46, %v6395_v44  ;;  %v5934_v44 = vpop.f32.mrf.mxu0 }
 0x371   :  { %v15791_v28 = vadd.f32 %v15720_v4, %v15718_v14  ;;  %v6615_v7 = vsel %vm14427_vm9, %v6613_v47, %v6614_v52  ;;  %v6616_v59 = vrot.slane %v6614_v52, 4  ;;  %v6624_v34 = vsel %vm14427_vm9, %v6622_v13, %v6623_v42  ;;  %v6313_v9 = vpop.f32.mrf.mxu1  ;;  %v16725_v29 = vld.sshfl [vmem:[%s17060_s5] sm:$0x33 pattern:$0x76325410] }
 0x372   :  { %6697 = vst.msk [vmem:[#allocation2 + $0x1c] sm:$0xf] %vm56_vm0, %v6615_v7  ;;  %6700 = vst.msk [vmem:[#allocation2 + $0x28] sm:$0xf] %vm56_vm0, %v6624_v34  ;;  %v11128_v0 = vpack.c.bf16 %v6515_v62, %v6515_v62  ;;  %v6497_v5 = vsel %vm6451_vm11, %v6428_v53, %v6474_v33  ;;  %vm6449_vm4 = vcmp.gt.f32.partialorder %v6426_v56, 0.0  ;;  %vm17352_vm8 = vcmp.eq.s32.totalorder %v17351_v40, 1 }
 0x373   :  { %v6472_v17 = vmul.f32 0.1, %v6426_v56  ;;  %v6520_v14 = vsel %vm17352_vm8, %v6497_v5, 0.0  ;;  %v6398_v4 = vmul.f32 %v15667_v8, %v6367_v21  ;;  %v6396_v47 = vmul.f32 %v15667_v8, %v6365_v49  ;;  %v12240_v63 = vpop.f32.mrf.mxu1  ;;  %v15822_v7 = vld [vmem:[#allocation2 + $0x14] sm:$0xf]  ;;  %v17357_v5 = vld [vmem:[#allocation23_spill] sm:$0xff] }
 0x374   :  { %v6401_v36 = vmul.f32 %v15667_v8, %v6370_v18  ;;  %v6617_v22 = vrot.slane %v11128_v0, 7  ;;  %v11133_v19 = vpack.c.bf16 %v6520_v14, %v6520_v14  ;;  %v6368_v10 = vadd.f32 %v6310_v11, %v15701_v16  ;;  %v17355_v34 = vld [vmem:[#allocation22_spill] sm:$0xff]  ;;  %v6719_v14 = vld [vmem:[#allocation2 + $0x10] sm:$0xf]  ;;  %17445 = vst [vmem:[#allocation15_spill] sm:$0xff] %v16725_v29 }
 0x375   :  { %v6495_v6 = vsel %vm6449_vm4, %v6426_v56, %v6472_v17  ;;  %vm17354_vm5 = vcmp.eq.s32.totalorder %v17353_v60, 1  ;;  %v6429_v13 = vadd.f32 %v15689_v46, %v6398_v4  ;;  %v6427_v35 = vadd.f32 %v15689_v46, %v6396_v47  ;;  %v15812_v53 = vpop.f32.mrf.mxu1  ;;  %v6718_v56 = vld [vmem:[#allocation2 + $0xc] sm:$0xf] }
 0x376   :  { %v6518_v55 = vsel %vm17354_vm5, %v6495_v6, 0.0  ;;  %v6432_v15 = vadd.f32 %v15689_v46, %v6401_v36  ;;  %v6625_v1 = vrot.slane %v6623_v42, 4  ;;  %v6618_v26 = vsel %vm14427_vm9, %v6616_v59, %v6617_v22 }
 0x377   :  { %v6619_v38 = vrot.slane %v6617_v22, 4  ;;  %v11131_v12 = vpack.c.bf16 %v6518_v55, %v6518_v55  ;;  %6698 = vst.msk [vmem:[#allocation2 + $0x20] sm:$0xf] %vm56_vm0, %v6618_v26  ;;  %vm6452_vm11 = vcmp.gt.f32.partialorder %v6429_v13, 0.0  ;;  %v6475_v16 = vmul.f32 0.1, %v6429_v13  ;;  %v15818_v42 = vpop.f32.mrf.mxu1 }
 0x378   :  { %vm6450_vm4 = vcmp.gt.f32.partialorder %v6427_v35, 0.0  ;;  %v6473_v21 = vmul.f32 0.1, %v6427_v35  ;;  %v6632_v11 = vrot.slane %v11133_v19, 7  ;;  %vm6455_vm8 = vcmp.gt.f32.partialorder %v6432_v15, 0.0  ;;  %v12750_v19 = vld [vmem:[%s17056_s1 + $0x290] sm:$0xff]  }
 0x379   :  { %v6621_v49 = vsel %vm14427_vm9, %v6619_v38, %v15765_v57  ;;  %v6626_v52 = vrot.slane %v11131_v12, 7  ;;  %v6498_v32 = vsel %vm6452_vm11, %v6429_v13, %v6475_v16  ;;  %v6478_v62 = vmul.f32 0.1, %v6432_v15  ;;  %v15833_v4 = vpop.f32.mrf.mxu1  ;;  %v17359_v55 = vld [vmem:[#allocation58_spill] sm:$0xff]  ;;  %v17360_v12 = vld [vmem:[#allocation24_spill] sm:$0xff] }
 0x37a   :  { %6699 = vst.msk [vmem:[#allocation2 + $0x24] sm:$0xf] %vm56_vm0, %v6621_v49  ;;  %v6496_v18 = vsel %vm6450_vm4, %v6427_v35, %v6473_v21  ;;  %v6399_v33 = vmul.f32 %v15667_v8, %v6368_v10  ;;  %v15825_v59 = vadd.f32 %v5934_v44, %v15727_v51  ;;  %vm17356_vm5 = vcmp.eq.s32.totalorder %v17355_v34, 1 }
 0x37b   :  { %v6627_v57 = vsel %vm14427_vm9, %v6625_v1, %v6626_v52  ;;  %v6521_v0 = vsel %vm17356_vm5, %v6498_v32, 0.0  ;;  %vm17358_vm10 = vcmp.eq.s32.totalorder %v17357_v5, 1  ;;  %v6501_v22 = vsel %vm6455_vm8, %v6432_v15, %v6478_v62  ;;  %v15847_v1 = vpop.f32.mrf.mxu1 }
 0x37c   :  { %v6519_v17 = vsel %vm17358_vm10, %v6496_v18, 0.0  ;;  %6701 = vst.msk [vmem:[#allocation2 + $0x2c] sm:$0xf] %vm56_vm0, %v6627_v57  ;;  %v11134_v47 = vpack.c.bf16 %v6521_v0, %v6521_v0  ;;  %v6430_v51 = vadd.f32 %v15689_v46, %v6399_v33  ;;  %v6634_v6 = vrot.slane %v6632_v11, 4  ;;  %v17363_v0 = vld [vmem:[#allocation25_spill] sm:$0xff] }
 0x37d   :  { %v11132_v36 = vpack.c.bf16 %v6519_v17, %v6519_v17  ;;  %v6628_v10 = vrot.slane %v6626_v52, 4  ;;  %v15842_v13 = vcombine.low %v17359_v55, %v6718_v56  ;;  %v15845_v35 = vcombine.low %v6719_v14, %v15822_v7  ;;  %v15857_v52 = vpop.f32.mrf.mxu1 }
 0x37e   :  { %v6635_v26 = vrot.slane %v11134_v47, 7  ;;  %vm17361_vm10 = vcmp.eq.s32.totalorder %v17360_v12, 1  ;;  %vm6453_vm11 = vcmp.gt.f32.partialorder %v6430_v51, 0.0  ;;  %v6476_v44 = vmul.f32 0.1, %v6430_v51 }
 0x37f   :  { %v6629_v38 = vrot.slane %v11132_v36, 7  ;;  %v6524_v15 = vsel %vm17361_vm10, %v6501_v22, 0.0  ;;  %12254 = vmatprep.mubr.msk.bf16.mxu0 %vm251_vm1, %v15842_v13  ;;  %v6371_v16 = vadd.f32 %v15787_v25, %v15711_v30  ;;  %v6369_v21 = vadd.f32 %v6313_v9, %v15713_v41  ;;  %v17362_v9 = vld [vmem:[#allocation30_spill] sm:$0xff]  ;;  %v12245_v57 = vpop.f32.mrf.mxu1  ;;  %v12755_v36 = vld [vmem:[%s17056_s1 + $0x288] sm:$0xff]  }
 0x380   :  { %v6374_v49 = vadd.f32 %v12240_v63, %v15715_v58  ;;  %v6636_v32 = vsel %vm14427_vm9, %v6634_v6, %v6635_v26  ;;  %v15863_v33 = vcombine.low %v6718_v56, %v6719_v14  ;;  %12255 = vmatmul.mubr.msk.bf16.vlgmr.msra.gmra.mxu0 %vm251_vm1, %v15845_v35  ;;  %v11137_v30 = vpack.c.bf16 %v6524_v15, %v6524_v15  ;;  %v6722_v63 = vld [vmem:[#allocation2 + $0x1c] sm:$0xf] }
 0x381   :  { %v6630_v18 = vsel %vm14427_vm9, %v6628_v10, %v6629_v38  ;;  %v6631_v62 = vrot.slane %v6629_v38, 4  ;;  %6704 = vst.msk [vmem:[#allocation2 + $0x38] sm:$0xf] %vm56_vm0, %v6636_v32  ;;  %v6499_v41 = vsel %vm6453_vm11, %v6430_v51, %v6476_v44  ;;  %v6402_v58 = vmul.f32 %v15667_v8, %v6371_v16  ;;  %12311 = vmatpush3.bf16.msra.mxu0 %v17362_v9  ;;  %v6721_v10 = vld [vmem:[#allocation2 + $0x18] sm:$0xf]  ;;  %v17366_v9 = vld [vmem:[#allocation9_spill] sm:$0xff] }
 0x382   :  { %6702 = vst.msk [vmem:[#allocation2 + $0x30] sm:$0xf] %vm56_vm0, %v6630_v18  ;;  %v6400_v25 = vmul.f32 %v15667_v8, %v6369_v21  ;;  %vm17364_vm4 = vcmp.eq.s32.totalorder %v17363_v0, 1  ;;  %v6405_v14 = vmul.f32 %v15667_v8, %v6374_v49  ;;  %v6372_v47 = vadd.f32 %v15812_v53, %v15722_v39  ;;  %12312 = vmatprep.subr.bf16.mxu0 %v12750_v19 }
 0x383   :  { %v6633_v56 = vsel %vm14427_vm9, %v6631_v62, %v6632_v11  ;;  %v6522_v17 = vsel %vm17364_vm4, %v6499_v41, 0.0  ;;  %v6637_v22 = vrot.slane %v6635_v26, 4  ;;  %v6433_v6 = vadd.f32 %v15689_v46, %v6402_v58 }
 0x384   :  { %6703 = vst.msk [vmem:[#allocation2 + $0x34] sm:$0xf] %vm56_vm0, %v6633_v56  ;;  %v11135_v51 = vpack.c.bf16 %v6522_v17, %v6522_v17  ;;  %v6431_v11 = vadd.f32 %v15689_v46, %v6400_v25  ;;  %v6436_v55 = vadd.f32 %v15689_v46, %v6405_v14  ;;  %v6403_v38 = vmul.f32 %v15667_v8, %v6372_v47  ;;  %v17368_v56 = vld [vmem:[#allocation26_spill] sm:$0xff] }
 0x385   :  { %v6375_v39 = vadd.f32 %v15818_v42, %v15725_v2  ;;  %v15889_v53 = vcombine.low %v6721_v10, %v6722_v63  ;;  %vm6456_vm8 = vcmp.gt.f32.partialorder %v6433_v6, 0.0  ;;  %v6479_v26 = vmul.f32 0.1, %v6433_v6  ;;  %12313 = vmatpush3.bf16.msra.mxu0 %v12750_v19  ;;  %v12763_v2 = vld [vmem:[%s17056_s1 + $0x280] sm:$0xff]  }
 0x386   :  { %v6638_v15 = vrot.slane %v11135_v51, 7  ;;  %vm6454_vm5 = vcmp.gt.f32.partialorder %v6431_v11, 0.0  ;;  %v6477_v44 = vmul.f32 0.1, %v6431_v11  ;;  %vm6459_vm10 = vcmp.gt.f32.partialorder %v6436_v55, 0.0  ;;  %12314 = vmatprep.subr.bf16.mxu0 %v12755_v36 }
 0x387   :  { %v6482_v16 = vmul.f32 0.1, %v6436_v55  ;;  %v6434_v21 = vadd.f32 %v15689_v46, %v6403_v38  ;;  %12258 = vmatprep.mubr.msk.bf16.mxu0 %vm251_vm1, %v15889_v53  ;;  %v6644_v42 = vrot.slane %v11137_v30, 7  ;;  %v6502_v32 = vsel %vm6456_vm8, %v6433_v6, %v6479_v26  ;;  %v6723_v51 = vld [vmem:[#allocation2 + $0x20] sm:$0xf] }
 0x388   :  { %v6639_v49 = vsel %vm14427_vm9, %v6637_v22, %v6638_v15  ;;  %v6406_v19 = vmul.f32 %v15667_v8, %v6375_v39  ;;  %v6525_v62 = vsel %vm3265_vm13, %v6502_v32, 0.0  ;;  %v6500_v41 = vsel %vm6454_vm5, %v6431_v11, %v6477_v44  ;;  %v15912_v11 = vld [vmem:[%s17056_s1 + $0x2d8] sm:$0xff]  }
 0x389   :  { %6705 = vst.msk [vmem:[#allocation2 + $0x3c] sm:$0xf] %vm56_vm0, %v6639_v49  ;;  %v6505_v58 = vsel %vm6459_vm10, %v6436_v55, %v6482_v16  ;;  %vm6457_vm11 = vcmp.gt.f32.partialorder %v6434_v21, 0.0  ;;  %v11138_v25 = vpack.c.bf16 %v6525_v62, %v6525_v62  ;;  %vm17367_vm4 = vcmp.eq.s32.totalorder %v17366_v9, 1  ;;  %12315 = vmatpush3.bf16.msra.mxu0 %v12755_v36  ;;  %v17370_v16 = vld [vmem:[#allocation10_spill] sm:$0xff] }
 0x38a   :  { %v6523_v57 = vsel %vm17367_vm4, %v6500_v41, 0.0  ;;  %vm17369_vm7 = vcmp.eq.s32.totalorder %v17368_v56, 1  ;;  %v6480_v17 = vmul.f32 0.1, %v6434_v21  ;;  %v6437_v22 = vadd.f32 %v15689_v46, %v6406_v19  ;;  %12316 = vmatprep.subr.bf16.mxu0 %v12763_v2 }
 0x38b   :  { %v6528_v30 = vsel %vm17369_vm7, %v6505_v58, 0.0  ;;  %v11136_v14 = vpack.c.bf16 %v6523_v57, %v6523_v57  ;;  %v10835_v6 = vcombine.low %v15822_v7, %v6721_v10  ;;  %v6646_v55 = vrot.slane %v6644_v42, 4 }
 0x38c   :  { %v11141_v47 = vpack.c.bf16 %v6528_v30, %v6528_v30  ;;  %v6640_v38 = vrot.slane %v6638_v15, 4  ;;  %v6647_v39 = vrot.slane %v11138_v25, 7  ;;  %v6503_v26 = vsel %vm6457_vm11, %v6434_v21, %v6480_v17  ;;  %v17372_v30 = vld [vmem:[#allocation11_spill] sm:$0xff] }
 0x38d   :  { %v6641_v44 = vrot.slane %v11136_v14, 7  ;;  %vm17371_vm7 = vcmp.eq.s32.totalorder %v17370_v16, 1  ;;  %vm6460_vm8 = vcmp.gt.f32.partialorder %v6437_v22, 0.0  ;;  %v6483_v32 = vmul.f32 0.1, %v6437_v22  ;;  %12317 = vmatpush3.bf16.msra.mxu0 %v12763_v2 }
 0x38e   :  { %v15915_v36 = vrot.slane %v11141_v47, 7  ;;  %v6526_v49 = vsel %vm17371_vm7, %v6503_v26, 0.0  ;;  %v6648_v7 = vsel %vm14427_vm9, %v6646_v55, %v6647_v39  ;;  %v15921_v19 = vcombine.low %v6722_v63, %v6723_v51  ;;  %12374 = vmatprep.subr.bf16.mxu0 %v15912_v11  ;;  %v6724_v55 = vld [vmem:[#allocation2 + $0x24] sm:$0xf]  ;;  %v6726_v26 = vld [vmem:[#allocation2 + $0x2c] sm:$0xf] }
 0x38f   :  { %v11139_v10 = vpack.c.bf16 %v6526_v49, %v6526_v49  ;;  %v6649_v62 = vrot.slane %v6647_v39, 4  ;;  %6708 = vst.msk [vmem:[#allocation2 + $0x48] sm:$0xf] %vm56_vm0, %v6648_v7  ;;  %v6642_v15 = vsel %vm14427_vm9, %v6640_v38, %v6641_v44  ;;  %v6643_v21 = vrot.slane %v6641_v44, 4 }
 0x390   :  { %v7036_v41 = vshrl.u32 %v10835_v6, 16  ;;  %6706 = vst.msk [vmem:[#allocation2 + $0x40] sm:$0xf] %vm56_vm0, %v6642_v15  ;;  %v6658_v58 = vrot.slane %v15915_v36, 4  ;;  %v6506_v57 = vsel %vm6460_vm8, %v6437_v22, %v6483_v32  ;;  %v7039_v63 = vshll.u32 %v10835_v6, 16 }
 0x391   :  { %v15929_v25 = vrot.slane %v11139_v10, 7  ;;  %v6645_v2 = vsel %vm14427_vm9, %v6643_v21, %v6644_v42  ;;  %vm17373_vm5 = vcmp.eq.s32.totalorder %v17372_v30, 1  ;;  %v6373_v47 = vadd.f32 %v15833_v4, %v15730_v31 }
 0x392   :  { %v6529_v17 = vsel %vm17373_vm5, %v6506_v57, 0.0  ;;  %v7038_v14 = vrot.slane %v7036_v41, 3  ;;  %6707 = vst.msk [vmem:[#allocation2 + $0x44] sm:$0xf] %vm56_vm0, %v6645_v2  ;;  %v7041_v39 = vrot.slane %v7039_v63, 4  ;;  %v7027_v44 = vshrl.u32 %v15863_v33, 16  ;;  %v6345_v63 = vpop.f32.mrf.mxu1 }
 0x393   :  { %v6651_v38 = vsel %vm14427_vm9, %v6649_v62, %v15929_v25  ;;  %v6652_v22 = vrot.slane %v15929_v25, 4  ;;  %v11142_v6 = vpack.c.bf16 %v6529_v17, %v6529_v17  ;;  %v6404_v42 = vmul.f32 %v15667_v8, %v6373_v47  ;;  %v6725_v57 = vld [vmem:[#allocation2 + $0x28] sm:$0xf] }
 0x394   :  { %6709 = vst.msk [vmem:[#allocation2 + $0x4c] sm:$0xf] %vm56_vm0, %v6651_v38  ;;  %v7030_v31 = vshll.u32 %v15863_v33, 16  ;;  %v6378_v4 = vadd.f32 %v15847_v1, %v15737_v3  ;;  %v15950_v7 = vor.u32 %v7041_v39, %v7038_v14  ;;  %v6376_v10 = vadd.f32 %v15857_v52, %v15791_v28  ;;  %v15958_v33 = vld [vmem:[#allocation2 + $0x30] sm:$0xf] }
 0x395   :  { %v15948_v49 = vrot.slane %v11142_v6, 7  ;;  %v15954_v32 = vcombine.low %v6723_v51, %v6724_v55  ;;  %v6435_v62 = vadd.f32 %v15689_v46, %v6404_v42  ;;  %v7029_v15 = vrot.slane %v7027_v44, 3  ;;  %v12766_v44 = vld [vmem:[%s17056_s1 + $0x2b0] sm:$0xff]  }
 0x396   :  { %v7032_v21 = vrot.slane %v7030_v31, 4  ;;  %v6409_v41 = vmul.f32 %v15667_v8, %v6378_v4  ;;  %v6407_v28 = vmul.f32 %v15667_v8, %v6376_v10  ;;  %v15967_v52 = vcombine.low %v6725_v57, %v6726_v26  ;;  %v17375_v10 = vld [vmem:[#allocation31_spill] sm:$0xff] }
 0x397   :  { %v6660_v3 = vsel %vm14427_vm9, %v6658_v58, %v15948_v49  ;;  %v6661_v1 = vrot.slane %v15948_v49, 4  ;;  %12259 = vmatmul.mubr.msk.bf16.gmra.mxu0 %vm251_vm1, %v15954_v32  ;;  %vm6458_vm10 = vcmp.gt.f32.partialorder %v6435_v62, 0.0  ;;  %v6481_v51 = vmul.f32 0.1, %v6435_v62 }
 0x398   :  { %6712 = vst.msk [vmem:[#allocation2 + $0x58] sm:$0xf] %vm56_vm0, %v6660_v3  ;;  %v7033_v2 = vor.u32 %v7032_v21, %v7029_v15  ;;  %v6440_v17 = vadd.f32 %v15689_v46, %v6409_v41  ;;  %v6438_v14 = vadd.f32 %v15689_v46, %v6407_v28  ;;  %12262 = vmatprep.mubr.msk.bf16.mxu0 %vm251_vm1, %v15967_v52  ;;  %vm17376_vm7 = vcmp.eq.s32.totalorder %v17375_v10, 1  ;;  %v12767_v3 = vld [vmem:[%s17056_s1 + $0x2a8] sm:$0xff]  }
 0x399   :  { %v15974_v58 = vcombine.low %v6724_v55, %v6725_v57  ;;  %v15977_v47 = vcombine.low %v6726_v26, %v15958_v33  ;;  %v6377_v38 = vadd.f32 %v6345_v63, %v15825_v59  ;;  %v6504_v6 = vsel %vm6458_vm10, %v6435_v62, %v6481_v51  ;;  %v6728_v57 = vld [vmem:[#allocation2 + $0x34] sm:$0xf] }
 0x39a   :  { %v7034_v39 = vsel %vm430_vm2, %v7025_v24, %v7033_v2  ;;  %vm6463_vm11 = vcmp.gt.f32.partialorder %v6440_v17, 0.0  ;;  %v6486_v42 = vmul.f32 0.1, %v6440_v17  ;;  %v6527_v55 = vsel %vm3267_vm6, %v6504_v6, 0.0  ;;  %v17377_v63 = vld [vmem:[#allocation53_spill] sm:$0xff] }
 0x39b   :  { %12286 = vmatprep.mubr.msk.bf16.mxu1 %vm251_vm1, %v7034_v39  ;;  %v7043_v59 = vsel %vm430_vm2, %v7033_v2, %v15950_v7  ;;  %vm6461_vm4 = vcmp.gt.f32.partialorder %v6438_v14, 0.0  ;;  %v6484_v26 = vmul.f32 0.1, %v6438_v14  ;;  %v11140_v4 = vpack.c.bf16 %v6527_v55, %v6527_v55  ;;  %v6731_v55 = vld [vmem:[#allocation2 + $0x40] sm:$0xf] }
 0x39c   :  { %v6509_v23 = vsel %vm6463_vm11, %v6440_v17, %v6486_v42  ;;  %12287 = vmatmul.mubr.msk.bf16.vlgmr.msra.gmra.mxu1 %vm251_vm1, %v7043_v59  ;;  %v6408_v61 = vmul.f32 %v15667_v8, %v6377_v38  ;;  %v7045_v24 = vshrl.u32 %v15921_v19, 16  ;;  %v7048_v21 = vshll.u32 %v15921_v19, 16  ;;  %v6730_v38 = vld [vmem:[#allocation2 + $0x3c] sm:$0xf]  ;;  %v6729_v42 = vld [vmem:[#allocation2 + $0x38] sm:$0xf] }
 0x39d   :  { %v6532_v62 = vsel %vm17376_vm7, %v6509_v23, 0.0  ;;  %v6507_v15 = vsel %vm6461_vm4, %v6438_v14, %v6484_v26  ;;  %v7054_v41 = vshrl.u32 %v15974_v58, 16  ;;  %12343 = vmatpush3.bf16.msra.mxu1 %v17377_v63  ;;  %v6653_v28 = vrot.slane %v11140_v4, 7  ;;  %v6734_v63 = vld [vmem:[#allocation2 + $0x4c] sm:$0xf] }
 0x39e   :  { %v11145_v51 = vpack.c.bf16 %v6532_v62, %v6532_v62  ;;  %v6530_v2 = vsel %vm3270_vm15, %v6507_v15, 0.0  ;;  %v6439_v17 = vadd.f32 %v15689_v46, %v6408_v61  ;;  %12344 = vmatprep.subr.bf16.mxu1 %v12766_v44  ;;  %v7047_v19 = vrot.slane %v7045_v24, 3  ;;  %v12771_v46 = vld [vmem:[%s17056_s1 + $0x2a0] sm:$0xff]  }
 0x39f   :  { %v11143_v14 = vpack.c.bf16 %v6530_v2, %v6530_v2  ;;  %v7050_v6 = vrot.slane %v7048_v21, 4  ;;  %v7056_v39 = vrot.slane %v7054_v41, 3  ;;  %v6654_v59 = vsel %vm14427_vm9, %v6652_v22, %v6653_v28  ;;  %v6732_v15 = vld [vmem:[#allocation2 + $0x44] sm:$0xf] }
 0x3a0   :  { %v6655_v26 = vrot.slane %v6653_v28, 4  ;;  %v6668_v4 = vrot.slane %v11145_v51, 7  ;;  %vm6462_vm8 = vcmp.gt.f32.partialorder %v6439_v17, 0.0  ;;  %6710 = vst.msk [vmem:[#allocation2 + $0x50] sm:$0xf] %vm56_vm0, %v6654_v59  ;;  %v7057_v62 = vshll.u32 %v15974_v58, 16 }
 0x3a1   :  { %v6662_v23 = vrot.slane %v11143_v14, 7  ;;  %v6485_v61 = vmul.f32 0.1, %v6439_v17  ;;  %v7051_v24 = vor.u32 %v7050_v6, %v7047_v19  ;;  %12345 = vmatpush3.bf16.msra.mxu1 %v12766_v44  ;;  %v16019_v22 = vcombine.low %v15958_v33, %v6728_v57  ;;  %v6733_v33 = vld [vmem:[#allocation2 + $0x48] sm:$0xf] }
 0x3a2   :  { %v6657_v25 = vsel %vm14427_vm9, %v6655_v26, %v15915_v36  ;;  %v16021_v21 = vcombine.low %v6729_v42, %v6730_v38  ;;  %v10839_v41 = vcombine.low %v6728_v57, %v6729_v42  ;;  %12346 = vmatprep.subr.bf16.mxu1 %v12767_v3  ;;  %v7059_v2 = vrot.slane %v7057_v62, 4 }
 0x3a3   :  { %6711 = vst.msk [vmem:[#allocation2 + $0x54] sm:$0xf] %vm56_vm0, %v6657_v25  ;;  %v6663_v58 = vsel %vm14427_vm9, %v6661_v1, %v6662_v23  ;;  %v6664_v44 = vrot.slane %v6662_v23, 4  ;;  %v6508_v28 = vsel %vm6462_vm8, %v6439_v17, %v6485_v61  ;;  %v7052_v36 = vsel %vm430_vm2, %v15950_v7, %v7051_v24  ;;  %12263 = vmatmul.mubr.msk.bf16.gmra.mxu0 %vm251_vm1, %v16019_v22  ;;  %v16048_v25 = vld [vmem:[%s17056_s1 + $0x2f8] sm:$0xff]  }
 0x3a4   :  { %6713 = vst.msk [vmem:[#allocation2 + $0x5c] sm:$0xf] %vm56_vm0, %v6663_v58  ;;  %v6531_v57 = vsel %vm3271_vm12, %v6508_v28, 0.0  ;;  %12290 = vmatprep.mubr.msk.bf16.mxu1 %vm251_vm1, %v7052_v36  ;;  %v10840_v49 = vcombine.low %v6730_v38, %v6731_v55  ;;  %v7063_v1 = vshrl.u32 %v15977_v47, 16  ;;  %12266 = vmatprep.mubr.msk.bf16.mxu0 %vm251_vm1, %v16021_v21  ;;  %v7066_v7 = vshll.u32 %v15977_v47, 16 }
 0x3a5   :  { %v11144_v14 = vpack.c.bf16 %v6531_v57, %v6531_v57  ;;  %v7072_v17 = vshrl.u32 %v10839_v41, 16  ;;  %v7075_v19 = vshll.u32 %v10839_v41, 16  ;;  %12347 = vmatpush3.bf16.msra.mxu1 %v12767_v3  ;;  %v7060_v6 = vor.u32 %v7059_v2, %v7056_v39 }
 0x3a6   :  { %v7065_v42 = vrot.slane %v7063_v1, 3  ;;  %v16041_v59 = vcombine.low %v6731_v55, %v6732_v15  ;;  %v16043_v26 = vcombine.low %v6733_v33, %v6734_v63  ;;  %12348 = vmatprep.subr.bf16.mxu1 %v12771_v46  ;;  %v7068_v38 = vrot.slane %v7066_v7, 4 }
 0x3a7   :  { %v6665_v23 = vrot.slane %v11144_v14, 7  ;;  %v7074_v61 = vrot.slane %v7072_v17, 3  ;;  %v7077_v62 = vrot.slane %v7075_v19, 4  ;;  %v7061_v47 = vsel %vm430_vm2, %v7051_v24, %v7060_v6  ;;  %v6735_v41 = vld [vmem:[#allocation2 + $0x50] sm:$0xf] }
 0x3a8   :  { %v10841_v3 = vcombine.low %v6732_v15, %v6733_v33  ;;  %v7081_v39 = vshrl.u32 %v10840_v49, 16  ;;  %v7084_v58 = vshll.u32 %v10840_v49, 16  ;;  %12291 = vmatmul.mubr.msk.bf16.gmra.mxu1 %vm251_vm1, %v7061_v47  ;;  %v7069_v36 = vor.u32 %v7068_v38, %v7065_v42 }
 0x3a9   :  { %v6666_v55 = vsel %vm14427_vm9, %v6664_v44, %v6665_v23  ;;  %v6667_v28 = vrot.slane %v6665_v23, 4  ;;  %v7078_v57 = vor.u32 %v7077_v62, %v7074_v61  ;;  %v10842_v2 = vcombine.low %v6734_v63, %v6735_v41  ;;  %12349 = vmatpush3.bf16.msra.mxu1 %v12771_v46  ;;  %v6737_v46 = vld [vmem:[#allocation2 + $0x58] sm:$0xf] }
 0x3aa   :  { %6714 = vst.msk [vmem:[#allocation2 + $0x60] sm:$0xf] %vm56_vm0, %v6666_v55  ;;  %v7083_v1 = vrot.slane %v7081_v39, 3  ;;  %v7086_v14 = vrot.slane %v7084_v58, 4  ;;  %v7090_v7 = vshrl.u32 %v10841_v3, 16  ;;  %v7070_v15 = vsel %vm430_vm2, %v7060_v6, %v7069_v36  ;;  %12406 = vmatprep.subr.bf16.mxu1 %v16048_v25 }
 0x3ab   :  { %v6669_v24 = vsel %vm14427_vm9, %v6667_v28, %v6668_v4  ;;  %v7093_v33 = vshll.u32 %v10841_v3, 16  ;;  %v6736_v49 = vld [vmem:[#allocation2 + $0x54] sm:$0xf]  ;;  %12294 = vmatprep.mubr.msk.bf16.mxu1 %vm251_vm1, %v7070_v15  ;;  %12267 = vmatmul.mubr.msk.bf16.gmra.mxu0 %vm251_vm1, %v16041_v59  ;;  %v7099_v44 = vshrl.u32 %v10842_v2, 16  ;;  %v7102_v4 = vshll.u32 %v10842_v2, 16 }
 0x3ac   :  { %6715 = vst.msk [vmem:[#allocation2 + $0x64] sm:$0x7] %vm3482_vm14, %v6669_v24  ;;  %v7087_v63 = vor.u32 %v7086_v14, %v7083_v1  ;;  %12270 = vmatprep.mubr.msk.bf16.mxu0 %vm251_vm1, %v16043_v26  ;;  %v7079_v17 = vsel %vm430_vm2, %v7069_v36, %v7078_v57  ;;  %v7092_v19 = vrot.slane %v7090_v7, 3  ;;  %v6738_v42 = vld [vmem:[#allocation2 + $0x5c] sm:$0xf]  ;;  %v10843_v23 = vcombine.low %v6736_v49, %v6737_v46 }
 0x3ad   :  { %v7095_v6 = vrot.slane %v7093_v33, 4  ;;  %v7101_v61 = vrot.slane %v7099_v44, 3  ;;  %v7104_v62 = vrot.slane %v7102_v4, 4  ;;  %v16067_v47 = vcombine.low %v6735_v41, %v6736_v49  ;;  %v16079_v7 = vld [vmem:[#allocation2 + $0x10] sm:$0xf] }
 0x3ae   :  { %v7088_v38 = vsel %vm430_vm2, %v7078_v57, %v7087_v63  ;;  %v16070_v39 = vcombine.low %v6737_v46, %v6738_v42  ;;  %v7328_v58 = vshll.u32 %v15842_v13, 16  ;;  %v7108_v36 = vshrl.u32 %v10843_v23, 16 }
 0x3af   :  { %v7096_v55 = vor.u32 %v7095_v6, %v7092_v19  ;;  %v7111_v2 = vshll.u32 %v10843_v23, 16  ;;  %v7105_v1 = vor.u32 %v7104_v62, %v7101_v61  ;;  %v7332_v41 = vshll.u32 %v15845_v35, 16 }
 0x3b0   :  { %12295 = vmatmul.mubr.msk.bf16.gmra.mxu1 %vm251_vm1, %v7079_v17  ;;  %v7110_v15 = vrot.slane %v7108_v36, 3  ;;  %v7330_v49 = vrot.slane %v7328_v58, 1  ;;  %v7621_v17 = vld [vmem:[#allocation2 + $0xc] sm:$0xf]  ;;  %v7326_v19 = vshrl.u32 %v15842_v13, 16  ;;  %v7339_v23 = vshll.u32 %v15889_v53, 16 }
 0x3b1   :  { %v6739_v3 = vld [vmem:[#allocation2 + $0x60] sm:$0x3]  ;;  %12298 = vmatprep.mubr.msk.bf16.mxu1 %vm251_vm1, %v7088_v38  ;;  %v7097_v24 = vsel %vm430_vm2, %v7087_v63, %v7096_v55  ;;  %v7113_v33 = vrot.slane %v7111_v2, 4  ;;  %v7106_v46 = vsel %vm430_vm2, %v7096_v55, %v7105_v1  ;;  %v7334_v6 = vrot.slane %v7332_v41, 1 }
 0x3b2   :  { %v10844_v28 = vcombine.low %v6738_v42, %v6739_v3  ;;  %v10894_v42 = vcombine.low %v7621_v17, %v16079_v7  ;;  %v10816_v38 = vcombine.low %v6739_v3, %v6739_v3  ;;  %v7331_v61 = vor.u32 %v7330_v49, %v7326_v19 }
 0x3b3   :  { %12271 = vmatmul.mubr.msk.bf16.gmra.mxu0 %vm251_vm1, %v16067_v47  ;;  %v7114_v63 = vor.u32 %v7113_v33, %v7110_v15  ;;  %v7346_v55 = vshll.u32 %v15954_v32, 16  ;;  %v7336_v13 = vshrl.u32 %v15845_v35, 16  ;;  %v7341_v2 = vrot.slane %v7339_v23, 1  ;;  %v16100_v35 = vld [vmem:[#allocation2 + $0x1c] sm:$0xff]  }
 0x3b4   :  { %v7117_v57 = vshrl.u32 %v10844_v28, 16  ;;  %v7120_v14 = vshll.u32 %v10844_v28, 16  ;;  %12274 = vmatprep.mubr.msk.bf16.mxu0 %vm251_vm1, %v16070_v39  ;;  %v7335_v58 = vsel %vm739_vm3, %v7331_v61, %v7334_v6  ;;  %v16093_v28 = vld [vmem:[#allocation2 + $0x14] sm:$0xff]   ;;  %v7714_v36 = vshll.u32 %v10894_v42, 16  ;;  %v12779_v61 = vld [vmem:[%s17056_s1 + $0x2c8] sm:$0xff]  }
 0x3b5   :  { %v7115_v41 = vsel %vm430_vm2, %v7105_v1, %v7114_v63  ;;  %v7719_v33 = vshll.u32 %v16093_v28, 16  ;;  %v12774_v1 = vld [vmem:[%s17056_s1 + $0x2d0] sm:$0xff]   ;;  %v7360_v17 = vshll.u32 %v16019_v22, 16  ;;  %v7350_v23 = vshrl.u32 %v15954_v32, 16 }
 0x3b6   :  { %v7119_v44 = vrot.slane %v7117_v57, 3  ;;  %v7122_v4 = vrot.slane %v7120_v14, 4  ;;  %v7338_v57 = vor.u32 %v7336_v13, %v7334_v6  ;;  %v7343_v14 = vshrl.u32 %v15889_v53, 16 }
 0x3b7   :  { %v7716_v15 = vrot.slane %v7714_v36, 1  ;;  %v7712_v53 = vshrl.u32 %v10894_v42, 16  ;;  %v7721_v6 = vrot.slane %v7719_v33, 1  ;;  %v7362_v13 = vrot.slane %v7360_v17, 1 }
 0x3b8   :  { %12299 = vmatmul.mubr.msk.bf16.gmra.mxu1 %vm251_vm1, %v7097_v24  ;;  %v7123_v62 = vor.u32 %v7122_v4, %v7119_v44  ;;  %v7348_v24 = vrot.slane %v7346_v55, 1  ;;  %v7345_v49 = vor.u32 %v7343_v14, %v7341_v2  ;;  %v7342_v44 = vsel %vm739_vm3, %v7338_v57, %v7341_v2  ;;  %v16128_v2 = vld [vmem:[#allocation2 + $0x2c] sm:$0xff]  }
 0x3b9   :  { %12302 = vmatprep.mubr.msk.bf16.mxu1 %vm251_vm1, %v7106_v46  ;;  %v7353_v46 = vshll.u32 %v15967_v52, 16  ;;  %v7717_v19 = vor.u32 %v7716_v15, %v7712_v53  ;;  %v7357_v55 = vshrl.u32 %v15967_v52, 16  ;;  %v7367_v57 = vshll.u32 %v16021_v21, 16  ;;  %v12783_v52 = vld [vmem:[%s17056_s1 + $0x2c0] sm:$0xff]   ;;  %v16148_v53 = vld [vmem:[#allocation2 + $0x34] sm:$0xff]  }
 0x3ba   :  { %v7124_v3 = vsel %vm430_vm2, %v7114_v63, %v7123_v62  ;;  %v7349_v4 = vsel %vm739_vm3, %v7345_v49, %v7348_v24  ;;  %v7727_v63 = vshll.u32 %v16100_v35, 16  ;;  %v7723_v14 = vshrl.u32 %v16093_v28, 16 }
 0x3bb   :  { %12275 = vmatmul.mubr.msk.bf16.gmra.mxu0 %vm251_vm1, %v10816_v38  ;;  %v16117_v38 = vld [vmem:[#allocation2 + $0x24] sm:$0xff]   ;;  %v7355_v42 = vrot.slane %v7353_v46, 1  ;;  %v7722_v32 = vsel %vm739_vm3, %v7717_v19, %v7721_v6  ;;  %v7374_v15 = vshll.u32 %v16041_v59, 16  ;;  %v7369_v17 = vrot.slane %v7367_v57, 1 }
 0x3bc   :  { %12318 = vmatprep.mubr.msk.bf16.mxu0 %vm251_vm1, %v7335_v58  ;;  %v7352_v58 = vor.u32 %v7350_v23, %v7348_v24  ;;  %v7735_v36 = vshll.u32 %v16117_v38, 16  ;;  %v12788_v23 = vld [vmem:[%s17056_s1 + $0x2f0] sm:$0xff]   ;;  %v17154_v57 = vshrl.u32 %v16128_v2, 16  ;;  %vm17380_vm2 = vcmask 1046528  }
 0x3bd   :  { %vm17381_vm5 = vmmov %vm17380_vm2  ;;  %v10007_v48 = vcombine.high %v16725_v29, %v16725_v29 }
 0x3be   :  { %v7737_v46 = vrot.slane %v7735_v36, 1  ;;  %vm17382_vm10 = vmmov %vm17380_vm2 }
 0x3bf   :  { %vm17384_vm11 = vmmov %vm17380_vm2 }
 0x3c0   :  { %12303 = vmatmul.mubr.msk.bf16.gmra.mxu1 %vm251_vm1, %v7115_v41  ;;  %v7359_v41 = vor.u32 %v7357_v55, %v7355_v42  ;;  %vm17385_vm4 = vmmov %vm17380_vm2 }
 0x3c1   :  { %12306 = vmatprep.mubr.msk.bf16.mxu1 %vm251_vm1, %v7124_v3  ;;  %v7731_v3 = vshrl.u32 %v16100_v35, 16 }
 0x3c2   :  { %v7363_v24 = vsel %vm739_vm3, %v7359_v41, %v7362_v13 }
 0x3c3   :  { %12319 = vmatmul.mubr.msk.bf16.vlgmr.msra.gmra.mxu0 %vm251_vm1, %v7342_v44  ;;  %v17153_v44 = vshll.u32 %v16128_v2, 16 }
 0x3c4   :  { %12322 = vmatprep.mubr.msk.bf16.mxu0 %vm251_vm1, %v7349_v4  ;;  %12375 = vmatpush3.bf16.msra.mxu0 %v15912_v11  ;;  %v7729_v11 = vrot.slane %v7727_v63, 1  ;;  %v7725_v4 = vor.u32 %v7723_v14, %v7721_v6 }
 0x3c5   :  { %12376 = vmatprep.subr.bf16.mxu0 %v12774_v1  ;;  %v7745_v55 = vrot.slane %v17153_v44, 1 }
 0x3c6   :  { %v7733_v49 = vor.u32 %v7731_v3, %v7729_v11 }
 0x3c8   :  { %12307 = vmatmul.mubr.msk.bf16.gmra.mxu1 %vm251_vm1, %v7123_v62  ;;  %12377 = vmatpush3.bf16.msra.mxu0 %v12774_v1  ;;  %v7356_v62 = vsel %vm739_vm3, %v7352_v58, %v7355_v42  ;;  %v7364_v1 = vshrl.u32 %v16019_v22, 16  ;;  %v16158_v22 = vld [vmem:[%s17056_s1 + $0x318] sm:$0xff]   ;;  %v7730_v42 = vsel %vm739_vm3, %v7725_v4, %v7729_v11  ;;  %v7371_v58 = vshrl.u32 %v16021_v21, 16 }
 0x3c9   :  { %12350 = vmatprep.mubr.msk.bf16.mxu1 %vm251_vm1, %v7722_v32  ;;  %12378 = vmatprep.subr.bf16.mxu0 %v12779_v61  ;;  %v7738_v6 = vsel %vm739_vm3, %v7733_v49, %v7737_v46  ;;  %v16167_v32 = vld [vmem:[#allocation2 + $0x3c] sm:$0xff]   ;;  %v7381_v11 = vshll.u32 %v16043_v26, 16 }
 0x3ca   :  { %v7366_v19 = vor.u32 %v7364_v1, %v7362_v13  ;;  %v17149_v13 = vshll.u32 %v16148_v53, 16  ;;  %v7373_v41 = vor.u32 %v7371_v58, %v7369_v17  ;;  %v7378_v1 = vshrl.u32 %v16041_v59, 16 }
 0x3cb   :  { %12323 = vmatmul.mubr.msk.bf16.gmra.mxu0 %vm251_vm1, %v7356_v62  ;;  %v12789_v62 = vld [vmem:[%s17056_s1 + $0x2e8] sm:$0xff]   ;;  %v17150_v4 = vshll.u32 %v16167_v32, 16  ;;  %v7385_v59 = vshrl.u32 %v16043_v26, 16 }
 0x3cc   :  { %12326 = vmatprep.mubr.msk.bf16.mxu0 %vm251_vm1, %v7363_v24  ;;  %12379 = vmatpush3.bf16.msra.mxu0 %v12779_v61  ;;  %v7376_v61 = vrot.slane %v7374_v15, 1  ;;  %v7370_v21 = vsel %vm739_vm3, %v7366_v19, %v7369_v17  ;;  %v7388_v15 = vshll.u32 %v16067_v47, 16  ;;  %v7753_v49 = vrot.slane %v17149_v13, 1  ;;  %v16189_v17 = vld [vmem:[#allocation2 + $0x44] sm:$0xff]  }
 0x3cd   :  { %12380 = vmatprep.subr.bf16.mxu0 %v12783_v52  ;;  %v12782_v13 = vld [vmem:[#allocation2 + $0x60] ss:$0 sps:$4 sm:$0x77]  }
 0x3ce   :  { %v7377_v24 = vsel %vm739_vm3, %v7373_v41, %v7376_v61  ;;  %v7380_v58 = vor.u32 %v7378_v1, %v7376_v61  ;;  %v17152_v61 = vshll.u32 %v16189_v17, 16  ;;  %v7755_v1 = vshrl.u32 %v16148_v53, 16 }
 0x3d0   :  { %12351 = vmatmul.mubr.msk.bf16.vlgmr.msra.gmra.mxu1 %vm251_vm1, %v7730_v42  ;;  %12381 = vmatpush3.bf16.msra.mxu0 %v12783_v52  ;;  %v7739_v52 = vshrl.u32 %v16117_v38, 16  ;;  %v7383_v42 = vrot.slane %v7381_v11, 1  ;;  %v16204_v11 = vld [vmem:[#allocation2 + $0x4c] sm:$0xff]  }
 0x3d1   :  { %12354 = vmatprep.mubr.msk.bf16.mxu1 %vm251_vm1, %v7738_v6  ;;  %12407 = vmatpush3.bf16.msra.mxu1 %v16048_v25  ;;  %v7749_v25 = vor.u32 %v17154_v57, %v7745_v55  ;;  %v12791_v6 = vld [vmem:[%s17056_s1 + $0x2e0] sm:$0xff]  }
 0x3d2   :  { %12408 = vmatprep.subr.bf16.mxu1 %v12788_v23  ;;  %12438 = vmatprep.subr.bf16.mxu0 %v16158_v22  ;;  %v7741_v19 = vor.u32 %v7739_v52, %v7737_v46  ;;  %v7384_v26 = vsel %vm739_vm3, %v7380_v58, %v7383_v42  ;;  %v7392_v58 = vshrl.u32 %v16067_v47, 16 }
 0x3d3   :  { %12327 = vmatmul.mubr.msk.bf16.gmra.mxu0 %vm251_vm1, %v7370_v21  ;;  %v7390_v21 = vrot.slane %v7388_v15, 1  ;;  %v7754_v46 = vsel %vm739_vm3, %v7749_v25, %v7753_v49  ;;  %v17151_v15 = vshrl.u32 %v16167_v32, 16  ;;  %v16212_v25 = vld [vmem:[%s17056_s1 + $0x338] sm:$0xff]  }
 0x3d4   :  { %12330 = vmatprep.mubr.msk.bf16.mxu0 %vm251_vm1, %v7377_v24  ;;  %v7746_v41 = vsel %vm739_vm3, %v7741_v19, %v7745_v55  ;;  %v7395_v24 = vshll.u32 %v16070_v39, 16  ;;  %v7387_v55 = vor.u32 %v7385_v59, %v7383_v42  ;;  %v7769_v42 = vrot.slane %v17152_v61, 1 }
 0x3d5   :  { %12409 = vmatpush3.bf16.msra.mxu1 %v12788_v23  ;;  %v7761_v23 = vrot.slane %v17150_v4, 1  ;;  %v7775_v59 = vshll.u32 %v16204_v11, 16  ;;  %v16224_v4 = vld [vmem:[#allocation2 + $0x54] sm:$0xff]  }
 0x3d6   :  { %12410 = vmatprep.subr.bf16.mxu1 %v12789_v62  ;;  %v7391_v19 = vsel %vm739_vm3, %v7387_v55, %v7390_v21  ;;  %v7394_v55 = vor.u32 %v7392_v58, %v7390_v21  ;;  %v17155_v57 = vshll.u32 %v16224_v4, 16  ;;  %v8017_v21 = vld [vmem:[#allocation2 + $0xc] sm:$0xe] }
 0x3d8   :  { %12355 = vmatmul.mubr.msk.bf16.gmra.mxu1 %vm251_vm1, %v7746_v41  ;;  %v7397_v41 = vrot.slane %v7395_v24, 1  ;;  %v7399_v24 = vshrl.u32 %v16070_v39, 16  ;;  %v7785_v58 = vrot.slane %v17155_v57, 1 }
 0x3d9   :  { %12358 = vmatprep.mubr.msk.bf16.mxu1 %vm251_vm1, %v7754_v46  ;;  %12411 = vmatpush3.bf16.msra.mxu1 %v12789_v62  ;;  %v7403_v46 = vshll.u32 %v12782_v13, 16  ;;  %v7765_v62 = vor.u32 %v17151_v15, %v7761_v23 }
 0x3da   :  { %12412 = vmatprep.subr.bf16.mxu1 %v12791_v6  ;;  %v7401_v61 = vor.u32 %v7399_v24, %v7397_v41  ;;  %v7398_v39 = vsel %vm739_vm3, %v7394_v55, %v7397_v41 }
 0x3db   :  { %12331 = vmatmul.mubr.msk.bf16.gmra.mxu0 %vm251_vm1, %v7384_v26  ;;  %v7757_v26 = vor.u32 %v7755_v1, %v7753_v49  ;;  %v7405_v44 = vrot.slane %v7403_v46, 1  ;;  %v7770_v47 = vsel %vm739_vm3, %v7765_v62, %v7769_v42  ;;  %v16236_v49 = vld [vmem:[#allocation2 + $0x5c] sm:$0xff]   ;;  %v10930_v46 = vcombine.low %v8017_v21, %v16079_v7 }
 0x3dc   :  { %12334 = vmatprep.mubr.msk.bf16.mxu0 %vm251_vm1, %v7391_v19  ;;  %v7777_v19 = vrot.slane %v7775_v59, 1  ;;  %v17156_v41 = vshll.u32 %v16236_v49, 16  ;;  %v8031_v7 = vrot.slane %v16093_v28, 1  ;;  %v12793_v28 = vld [vmem:[%s17056_s1 + $0x308] sm:$0xff]  }
 0x3dd   :  { %12413 = vmatpush3.bf16.msra.mxu1 %v12791_v6  ;;  %v7762_v15 = vsel %vm739_vm3, %v7757_v26, %v7761_v23  ;;  %v7779_v6 = vshrl.u32 %v16204_v11, 16  ;;  %v7771_v23 = vshrl.u32 %v16189_v17, 16  ;;  %v16251_v26 = vld [vmem:[#allocation2 + $0x64] ss:$0 sps:$4 sm:$0x77]  }
 0x3de   :  { %12470 = vmatprep.subr.bf16.mxu1 %v16212_v25  ;;  %v7793_v21 = vrot.slane %v17156_v41, 1  ;;  %v8281_v41 = vshll.u32 %v10930_v46, 16 }
 0x3df   :  { %v7781_v62 = vor.u32 %v7779_v6, %v7777_v19  ;;  %v7773_v24 = vor.u32 %v7771_v23, %v7769_v42  ;;  %v17157_v42 = vshrl.u32 %v16236_v49, 16 }
 0x3e0   :  { %12359 = vmatmul.mubr.msk.bf16.gmra.mxu1 %vm251_vm1, %v7762_v15  ;;  %v7406_v15 = vsel %vm739_vm3, %v7401_v61, %v7405_v44  ;;  %v7407_v61 = vshrl.u32 %v12782_v13, 16 }
 0x3e1   :  { %12362 = vmatprep.mubr.msk.bf16.mxu1 %vm251_vm1, %v7770_v47  ;;  %v7778_v55 = vsel %vm739_vm3, %v7773_v24, %v7777_v19  ;;  %v8030_v47 = vrot.slane %v10930_v46, 1  ;;  %v7787_v19 = vshrl.u32 %v16224_v4, 16  ;;  %v7797_v24 = vor.u32 %v17157_v42, %v7793_v21 }
 0x3e2   :  { %v7409_v57 = vor.u32 %v7407_v61, %v7405_v44  ;;  %v8033_v44 = vrot.slane %v16100_v35, 1  ;;  %v12794_v35 = vld [vmem:[%s17056_s1 + $0x300] sm:$0xff]  }
 0x3e3   :  { %12335 = vmatmul.mubr.msk.bf16.gmra.mxu0 %vm251_vm1, %v7398_v39  ;;  %v7786_v39 = vsel %vm739_vm3, %v7781_v62, %v7785_v58  ;;  %v8032_v13 = vsel %vm17380_vm2, %v8030_v47, %v8031_v7  ;;  %v8035_v47 = vrot.slane %v16117_v38, 1  ;;  %v8041_v38 = vrot.slane %v16167_v32, 1 }
 0x3e4   :  { %12338 = vmatprep.mubr.msk.bf16.mxu0 %vm251_vm1, %v7406_v15  ;;  %v7799_v15 = vshll.u32 %v16251_v26, 16 }
 0x3e6   :  { %v7801_v62 = vrot.slane %v7799_v15, 1 }
 0x3e8   :  { %12363 = vmatmul.mubr.msk.bf16.gmra.mxu1 %vm251_vm1, %v7778_v55  ;;  %v8278_v55 = vshrl.u32 %v10930_v46, 16  ;;  %v7802_v15 = vsel %vm739_vm3, %v7797_v24, %v7801_v62  ;;  %v8286_v46 = vrot.slane %v7719_v33, 2 }
 0x3e9   :  { %12366 = vmatprep.mubr.msk.bf16.mxu1 %vm251_vm1, %v7786_v39  ;;  %v7789_v39 = vor.u32 %v7787_v19, %v7785_v58  ;;  %v12792_v58 = vld [vmem:[%s17056_s1 + $0x310] sm:$0xff]  }
 0x3ea   :  { %v8280_v42 = vrot.slane %v8278_v55, 1 }
 0x3eb   :  { %12339 = vmatmul.mubr.msk.bf16.gmra.mxu0 %vm251_vm1, %v7409_v57  ;;  %v7794_v61 = vsel %vm739_vm3, %v7789_v39, %v7793_v21  ;;  %v8285_v57 = vrot.slane %v7723_v14, 1  ;;  %v8034_v21 = vsel %vm17381_vm5, %v8031_v7, %v8033_v44  ;;  %v8036_v14 = vsel %vm17382_vm10, %v8033_v44, %v8035_v47  ;;  %vm17391_vm5 = vmmov %vm17380_vm2 }
 0x3ec   :  { %12382 = vmatprep.mubr.msk.bf16.mxu0 %vm251_vm1, %v8032_v13  ;;  %v8283_v13 = vrot.slane %v8281_v41, 2  ;;  %v7803_v39 = vshrl.u32 %v16251_v26, 16  ;;  %v8037_v41 = vrot.slane %v16128_v2, 1  ;;  %v8289_v7 = vrot.slane %v7731_v3, 1 }
 0x3ed   :  { %v8287_v55 = vor.u32 %v8286_v46, %v8285_v57  ;;  %v8290_v44 = vrot.slane %v7727_v63, 2  ;;  %vm17383_vm3 = vsmask.f32 6400 }
 0x3ee   :  { %v8284_v24 = vor.u32 %v8283_v13, %v8280_v42  ;;  %v7805_v33 = vor.u32 %v7803_v39, %v7801_v62  ;;  %v8039_v42 = vrot.slane %v16148_v53, 1  ;;  %v8294_v62 = vrot.slane %v7735_v36, 2  ;;  %v12799_v36 = vld [vmem:[%s17056_s1 + $0x330] sm:$0xff]   ;;  %vm17387_vm7 = vmmov %vm17383_vm3 }
 0x3ef   :  { %v8038_v63 = vsel %vm17384_vm11, %v8035_v47, %v8037_v41  ;;  %v8291_v3 = vor.u32 %v8290_v44, %v8289_v7  ;;  %v17386_v47 = vshrl.u32 %v16128_v2, 16  ;;  %vm17389_vm8 = vmmov %vm17383_vm3  ;;  %v17393_v44 = vshll.u32 %v16167_v32, 16 }
 0x3f0   :  { %12367 = vmatmul.mubr.msk.bf16.gmra.mxu1 %vm251_vm1, %v7794_v61  ;;  %v8293_v61 = vrot.slane %v7739_v52, 1  ;;  %v8040_v57 = vsel %vm17385_vm4, %v8037_v41, %v8039_v42  ;;  %v16321_v52 = vld [vmem:[%s17056_s1 + $0x358] sm:$0xff]   ;;  %vm17394_vm10 = vmmov %vm17383_vm3 }
 0x3f1   :  { %12370 = vmatprep.mubr.msk.bf16.mxu1 %vm251_vm1, %v7802_v15  ;;  %v8297_v13 = vrot.slane %v17386_v47, 1  ;;  %v8292_v46 = vsel %vm17387_vm7, %v8287_v55, %v8291_v3  ;;  %vm17396_vm11 = vmmov %vm17380_vm2  ;;  %v8545_v47 = vld [vmem:[#allocation2 + $0x10] sm:$0xe] }
 0x3f2   :  { %v8295_v15 = vor.u32 %v8294_v62, %v8293_v61  ;;  %v12805_v61 = vld [vmem:[%s17056_s1 + $0x320] sm:$0xff]   ;;  %vm17397_vm4 = vmmov %vm17380_vm2 }
 0x3f3   :  { %12383 = vmatmul.mubr.msk.bf16.vlgmr.msra.gmra.mxu0 %vm251_vm1, %v8034_v21  ;;  %vm17398_vm7 = vmmov %vm17383_vm3 }
 0x3f4   :  { %12386 = vmatprep.mubr.msk.bf16.mxu0 %vm251_vm1, %v8036_v14  ;;  %12439 = vmatpush3.bf16.msra.mxu0 %v16158_v22  ;;  %v8288_v22 = vsel %vm17383_vm3, %v8284_v24, %v8287_v55  ;;  %v8043_v14 = vrot.slane %v16189_v17, 1  ;;  %v8296_v39 = vsel %vm17389_vm8, %v8291_v3, %v8295_v15  ;;  %v8301_v24 = vrot.slane %v7755_v1, 1  ;;  %v12800_v55 = vld [vmem:[%s17056_s1 + $0x328] sm:$0xff]   ;;  %vm17399_vm8 = vmmov %vm17383_vm3 }
 0x3f5   :  { %12440 = vmatprep.subr.bf16.mxu0 %v12792_v58  ;;  %v8309_v3 = vrot.slane %v7771_v23, 1  ;;  %v16368_v23 = vld [vmem:[#allocation2 + $0x18] sm:$0xff]  }
 0x3f8   :  { %12371 = vmatmul.mubr.msk.bf16.gmra.mxu1 %vm251_vm1, %v7805_v33  ;;  %12441 = vmatpush3.bf16.msra.mxu0 %v12792_v58  ;;  %v17388_v58 = vshll.u32 %v16128_v2, 16  ;;  %v8042_v2 = vsel %vm17380_vm2, %v8039_v42, %v8041_v38  ;;  %v8306_v42 = vrot.slane %v17393_v44, 2 }
 0x3f9   :  { %12414 = vmatprep.mubr.msk.bf16.mxu1 %vm251_vm1, %v8288_v22  ;;  %12442 = vmatprep.subr.bf16.mxu0 %v12793_v28  ;;  %v8045_v22 = vrot.slane %v16204_v11, 1  ;;  %v17400_v11 = vshll.u32 %v16224_v4, 16 }
 0x3fa   :  { %v8298_v21 = vrot.slane %v17388_v58, 2  ;;  %v8313_v58 = vrot.slane %v7779_v6, 1 }
 0x3fb   :  { %12387 = vmatmul.mubr.msk.bf16.gmra.mxu0 %vm251_vm1, %v8038_v63 }
 0x3fc   :  { %12390 = vmatprep.mubr.msk.bf16.mxu0 %vm251_vm1, %v8040_v57  ;;  %12443 = vmatpush3.bf16.msra.mxu0 %v12793_v28  ;;  %v17390_v28 = vshll.u32 %v16148_v53, 16  ;;  %v8299_v41 = vor.u32 %v8298_v21, %v8297_v13  ;;  %v8044_v53 = vsel %vm17391_vm5, %v8041_v38, %v8043_v14  ;;  %v16361_v38 = vld [vmem:[#allocation2 + $0x14] sm:$0xf]  ;;  %vm17401_vm5 = vmmov %vm17380_vm2 }
 0x3fd   :  { %12444 = vmatprep.subr.bf16.mxu0 %v12794_v35 }
 0x3fe   :  { %v8302_v33 = vrot.slane %v17390_v28, 2  ;;  %v8300_v62 = vsel %vm17394_vm10, %v8295_v15, %v8299_v41  ;;  %v8046_v15 = vsel %vm17396_vm11, %v8043_v14, %v8045_v22  ;;  %v8314_v14 = vrot.slane %v7775_v59, 2  ;;  %vm17403_vm10 = vmmov %vm17383_vm3 }
 0x3ff   :  { %v8318_v59 = vrot.slane %v17400_v11, 2  ;;  %vm17405_vm11 = vmmov %vm17383_vm3  ;;  %v16411_v11 = vld [vmem:[#allocation2 + $0x38] sm:$0xff]  }
 0x400   :  { %12415 = vmatmul.mubr.msk.bf16.vlgmr.msra.gmra.mxu1 %vm251_vm1, %v8292_v46  ;;  %12445 = vmatpush3.bf16.msra.mxu0 %v12794_v35  ;;  %v8303_v1 = vor.u32 %v8302_v33, %v8301_v24  ;;  %v8047_v35 = vrot.slane %v16224_v4, 1  ;;  %v10980_v46 = vcombine.low %v8545_v47, %v16361_v38  ;;  %v8051_v24 = vrot.slane %v16251_v26, 1 }
 0x401   :  { %12418 = vmatprep.mubr.msk.bf16.mxu1 %vm251_vm1, %v8296_v39  ;;  %12471 = vmatpush3.bf16.msra.mxu1 %v16212_v25  ;;  %v17392_v25 = vshrl.u32 %v16167_v32, 16  ;;  %v17395_v32 = vshll.u32 %v16189_v17, 16  ;;  %v8049_v39 = vrot.slane %v16236_v49, 1  ;;  %v8315_v26 = vor.u32 %v8314_v14, %v8313_v58 }
 0x402   :  { %12472 = vmatprep.subr.bf16.mxu1 %v12799_v36  ;;  %12502 = vmatprep.subr.bf16.mxu0 %v16321_v52  ;;  %v8304_v63 = vsel %vm17383_vm3, %v8299_v41, %v8303_v1  ;;  %v8048_v13 = vsel %vm17397_vm4, %v8045_v22, %v8047_v35  ;;  %v8636_v28 = vshrl.u32 %v10980_v46, 16  ;;  %v8639_v33 = vshll.u32 %v10980_v46, 16  ;;  %vm17406_vm4 = vmmov %vm17383_vm3 }
 0x403   :  { %12391 = vmatmul.mubr.msk.bf16.gmra.mxu0 %vm251_vm1, %v8042_v2  ;;  %v8305_v7 = vrot.slane %v17392_v25, 1  ;;  %v8310_v57 = vrot.slane %v17395_v32, 2  ;;  %v8644_v2 = vshrl.u32 %v16368_v23, 16  ;;  %v8317_v41 = vrot.slane %v7787_v19, 1  ;;  %v16392_v19 = vld [vmem:[#allocation2 + $0x28] sm:$0xff]  }
 0x404   :  { %12394 = vmatprep.mubr.msk.bf16.mxu0 %vm251_vm1, %v8044_v53  ;;  %v12796_v53 = vld [vmem:[#allocation2 + $0x64] ss:$0 sps:$4 sm:$0xff]   ;;  %v8052_v25 = vsel %vm17401_vm5, %v8049_v39, %v8051_v24  ;;  %v8638_v44 = vrot.slane %v8636_v28, 1  ;;  %v8662_v58 = vshrl.u32 %v16392_v19, 16  ;;  %vm17410_vm5 = vcmask 1045504  }
 0x405   :  { %12473 = vmatpush3.bf16.msra.mxu1 %v12799_v36  ;;  %v8307_v36 = vor.u32 %v8306_v42, %v8305_v7  ;;  %v8311_v17 = vor.u32 %v8310_v57, %v8309_v3  ;;  %v16389_v7 = vld [vmem:[#allocation2 + $0x20] sm:$0xff]   ;;  %v8641_v42 = vrot.slane %v8639_v33, 2  ;;  %v8646_v22 = vrot.slane %v8644_v2, 1  ;;  %v16407_v33 = vld [vmem:[#allocation2 + $0x30] sm:$0xff]  }
 0x406   :  { %12474 = vmatprep.subr.bf16.mxu1 %v12800_v55  ;;  %v8319_v4 = vor.u32 %v8318_v59, %v8317_v41  ;;  %v17402_v3 = vshrl.u32 %v16236_v49, 16  ;;  %v17404_v57 = vshll.u32 %v16236_v49, 16  ;;  %v8656_v47 = vshll.u32 %v16389_v7, 16 }
 0x407   :  { %v8308_v21 = vsel %vm17398_vm7, %v8303_v1, %v8307_v36  ;;  %v8312_v6 = vsel %vm17399_vm8, %v8307_v36, %v8311_v17  ;;  %v8050_v1 = vsel %vm17380_vm2, %v8047_v35, %v8049_v39  ;;  %v8316_v32 = vsel %vm17403_vm10, %v8311_v17, %v8315_v26  ;;  %vm17407_vm7 = vmmov %vm17383_vm3 }
 0x408   :  { %12419 = vmatmul.mubr.msk.bf16.gmra.mxu1 %vm251_vm1, %v8300_v62  ;;  %v8326_v62 = vshrl.u32 %v12796_v53, 16  ;;  %v8321_v35 = vrot.slane %v17402_v3, 1  ;;  %v8322_v36 = vrot.slane %v17404_v57, 2  ;;  %v8320_v14 = vsel %vm17383_vm3, %v8315_v26, %v8319_v4  ;;  %vm17408_vm8 = vmmov %vm17383_vm3 }
 0x409   :  { %12422 = vmatprep.mubr.msk.bf16.mxu1 %vm251_vm1, %v8304_v63  ;;  %12475 = vmatpush3.bf16.msra.mxu1 %v12800_v55  ;;  %v8647_v55 = vshll.u32 %v16368_v23, 16  ;;  %v8329_v63 = vshll.u32 %v12796_v53, 16  ;;  %v8658_v17 = vrot.slane %v8656_v47, 2  ;;  %v8671_v26 = vshrl.u32 %v16407_v33, 16  ;;  %vm17409_vm2 = vmmov %vm17383_vm3  ;;  %v16431_v47 = vld [vmem:[#allocation2 + $0x48] sm:$0xff]  }
 0x40a   :  { %12476 = vmatprep.subr.bf16.mxu1 %v12805_v61  ;;  %v8328_v39 = vrot.slane %v8326_v62, 1  ;;  %v8323_v2 = vor.u32 %v8322_v36, %v8321_v35  ;;  %vm17411_vm10 = vmmov %vm17409_vm2 }
 0x40b   :  { %12395 = vmatmul.mubr.msk.bf16.gmra.mxu0 %vm251_vm1, %v8046_v15  ;;  %v8653_v15 = vshrl.u32 %v16389_v7, 16  ;;  %v8331_v28 = vrot.slane %v8329_v63, 2  ;;  %v12808_v63 = vld [vmem:[%s17056_s1 + $0x350] sm:$0xff]   ;;  %v8673_v3 = vrot.slane %v8671_v26, 1  ;;  %vm17412_vm3 = vmmov %vm17409_vm2 }
 0x40c   :  { %12398 = vmatprep.mubr.msk.bf16.mxu0 %vm251_vm1, %v8048_v13  ;;  %v8642_v13 = vor.u32 %v8641_v42, %v8638_v44  ;;  %v8953_v44 = vld [vmem:[#allocation2 + $0x10] sm:$0xc] }
 0x40d   :  { %12477 = vmatpush3.bf16.msra.mxu1 %v12805_v61  ;;  %v8649_v61 = vrot.slane %v8647_v55, 2  ;;  %v8655_v49 = vrot.slane %v8653_v15, 1  ;;  %v8332_v59 = vor.u32 %v8331_v28, %v8328_v39  ;;  %v11016_v62 = vcombine.low %v8953_v44, %v16361_v38 }
 0x40e   :  { %v8698_v28 = vshrl.u32 %v16431_v47, 16 }
 0x40f   :  { %v8650_v46 = vor.u32 %v8649_v61, %v8646_v22  ;;  %v8659_v53 = vor.u32 %v8658_v17, %v8655_v49  ;;  %v8683_v22 = vshll.u32 %v16411_v11, 16  ;;  %v8333_v61 = vsel %vm17407_vm7, %v8323_v2, %v8332_v59  ;;  %vm17415_vm7 = vmmov %vm17409_vm2 }
 0x410   :  { %12423 = vmatmul.mubr.msk.bf16.gmra.mxu1 %vm251_vm1, %v8308_v21  ;;  %v8665_v21 = vshll.u32 %v16392_v19, 16  ;;  %v8966_v38 = vrot.slane %v11016_v62, 2  ;;  %v8701_v49 = vshll.u32 %v16431_v47, 16 }
 0x411   :  { %12426 = vmatprep.mubr.msk.bf16.mxu1 %vm251_vm1, %v8312_v6  ;;  %v8651_v55 = vsel %vm17405_vm11, %v8642_v13, %v8650_v46  ;;  %v8664_v6 = vrot.slane %v8662_v58, 1  ;;  %v8685_v15 = vrot.slane %v8683_v22, 2  ;;  %v8967_v13 = vrot.slane %v16368_v23, 2  ;;  %vm17413_vm11 = vmmov %vm17410_vm5 }
 0x412   :  { %v8667_v41 = vrot.slane %v8665_v21, 2  ;;  %v8703_v26 = vrot.slane %v8701_v49, 2 }
 0x413   :  { %12399 = vmatmul.mubr.msk.bf16.gmra.mxu0 %vm251_vm1, %v8050_v1  ;;  %v8674_v1 = vshll.u32 %v16407_v33, 16  ;;  %v8968_v23 = vsel %vm17410_vm5, %v8966_v38, %v8967_v13 }
 0x414   :  { %12402 = vmatprep.mubr.msk.bf16.mxu0 %vm251_vm1, %v8052_v25  ;;  %v8324_v25 = vsel %vm17406_vm4, %v8319_v4, %v8323_v2  ;;  %v8668_v42 = vor.u32 %v8667_v41, %v8664_v6  ;;  %v8660_v4 = vsel %vm17408_vm8, %v8650_v46, %v8659_v53  ;;  %v12812_v46 = vld [vmem:[%s17056_s1 + $0x348] sm:$0xff]   ;;  %v16450_v6 = vld [vmem:[#allocation2 + $0x50] sm:$0xff]   ;;  %v8969_v41 = vrot.slane %v16389_v7, 2  ;;  %vm17414_vm4 = vmmov %vm17410_vm5 }
 0x415   :  { %v8676_v35 = vrot.slane %v8674_v1, 2  ;;  %v16455_v1 = vld [vmem:[#allocation2 + $0x58] sm:$0xff]   ;;  %vm17416_vm8 = vmmov %vm17409_vm2 }
 0x416   :  { %v8669_v57 = vsel %vm17409_vm2, %v8659_v53, %v8668_v42  ;;  %v8700_v53 = vrot.slane %v8698_v28, 1  ;;  %v8970_v7 = vsel %vm17413_vm11, %v8967_v13, %v8969_v41  ;;  %v8719_v62 = vshll.u32 %v16455_v1, 16  ;;  %v16473_v13 = vld [vmem:[#allocation2 + $0x68] ss:$0 sps:$4 sm:$0xff]   ;;  %vm17417_vm2 = vmmov %vm17414_vm4 }
 0x417   :  { %v8677_v58 = vor.u32 %v8676_v35, %v8673_v3  ;;  %v16468_v35 = vld [vmem:[#allocation2 + $0x60] sm:$0xff]   ;;  %v8734_v28 = vshrl.u32 %v16473_v13, 16  ;;  %v8737_v49 = vshll.u32 %v16473_v13, 16  ;;  %vm17418_vm5 = vmmov %vm17417_vm2 }
 0x418   :  { %12427 = vmatmul.mubr.msk.bf16.gmra.mxu1 %vm251_vm1, %v8316_v32  ;;  %v16427_v32 = vld [vmem:[#allocation2 + $0x40] sm:$0xff]   ;;  %v8704_v22 = vor.u32 %v8703_v26, %v8700_v53  ;;  %v8721_v38 = vrot.slane %v8719_v62, 2  ;;  %v12818_v53 = vld [vmem:[#allocation2 + $0x18] sm:$0xff]   ;;  %v8979_v26 = vrot.slane %v16431_v47, 2  ;;  %vm17420_vm11 = vmmov %vm17417_vm2 }
 0x419   :  { %12430 = vmatprep.mubr.msk.bf16.mxu1 %vm251_vm1, %v8320_v14  ;;  %v8689_v21 = vshrl.u32 %v16427_v32, 16  ;;  %v8692_v14 = vshll.u32 %v16427_v32, 16  ;;  %v8678_v17 = vsel %vm17411_vm10, %v8668_v42, %v8677_v58  ;;  %v8707_v42 = vshrl.u32 %v16450_v6, 16  ;;  %vm17419_vm10 = vmmov %vm17412_vm3  ;;  %v12819_v47 = vld [vmem:[#allocation2 + $0x20] sm:$0xff]  }
 0x41b   :  { %12403 = vmatmul.mubr.msk.bf16.gmra.mxu0 %vm251_vm1, %v8051_v24  ;;  %v8680_v24 = vshrl.u32 %v16411_v11, 16  ;;  %v8691_v2 = vrot.slane %v8689_v21, 1  ;;  %v8725_v21 = vshrl.u32 %v16468_v35, 16 }
 0x41c   :  { %12446 = vmatprep.mubr.msk.bf16.mxu0 %vm251_vm1, %v8651_v55  ;;  %v8694_v55 = vrot.slane %v8692_v14, 2  ;;  %v8728_v14 = vshll.u32 %v16468_v35, 16 }
 0x41d   :  { %v8682_v36 = vrot.slane %v8680_v24, 1  ;;  %v8710_v24 = vshll.u32 %v16450_v6, 16 }
 0x41e   :  { %v8695_v44 = vor.u32 %v8694_v55, %v8691_v2  ;;  %v8977_v2 = vrot.slane %v16427_v32, 2 }
 0x41f   :  { %v8686_v39 = vor.u32 %v8685_v15, %v8682_v36  ;;  %v8712_v3 = vrot.slane %v8710_v24, 2 }
 0x420   :  { %12431 = vmatmul.mubr.msk.bf16.gmra.mxu1 %vm251_vm1, %v8324_v25  ;;  %v8971_v25 = vrot.slane %v16392_v19, 2  ;;  %v8705_v36 = vsel %vm17416_vm8, %v8695_v44, %v8704_v22  ;;  %vm17423_vm8 = vmmov %vm17412_vm3 }
 0x421   :  { %12434 = vmatprep.mubr.msk.bf16.mxu1 %vm251_vm1, %v8333_v61  ;;  %v8716_v61 = vshrl.u32 %v16455_v1, 16 }
 0x422   :  { %v8972_v19 = vsel %vm17414_vm4, %v8969_v41, %v8971_v25  ;;  %v8736_v41 = vrot.slane %v8734_v28, 1  ;;  %vm17421_vm4 = vmmov %vm17417_vm2 }
 0x423   :  { %12447 = vmatmul.mubr.msk.bf16.vlgmr.msra.gmra.mxu0 %vm251_vm1, %v8660_v4  ;;  %v8709_v4 = vrot.slane %v8707_v42, 1  ;;  %v8718_v15 = vrot.slane %v8716_v61, 1  ;;  %v8980_v32 = vsel %vm17421_vm4, %v8977_v2, %v8979_v26 }
 0x424   :  { %12450 = vmatprep.mubr.msk.bf16.mxu0 %vm251_vm1, %v8669_v57  ;;  %12503 = vmatpush3.bf16.msra.mxu0 %v16321_v52  ;;  %v12816_v52 = vld [vmem:[%s17056_s1 + $0x340] sm:$0xff]   ;;  %v8973_v57 = vrot.slane %v16407_v33, 2 }
 0x425   :  { %12504 = vmatprep.subr.bf16.mxu0 %v12808_v63  ;;  %v8722_v33 = vor.u32 %v8721_v38, %v8718_v15  ;;  %v8983_v15 = vrot.slane %v16455_v1, 2 }
 0x428   :  { %12435 = vmatmul.mubr.msk.bf16.gmra.mxu1 %vm251_vm1, %v8332_v59  ;;  %12505 = vmatpush3.bf16.msra.mxu0 %v12808_v63  ;;  %v8687_v59 = vsel %vm17412_vm3, %v8677_v58, %v8686_v39  ;;  %v8696_v63 = vsel %vm17415_vm7, %v8686_v39, %v8695_v44  ;;  %v8713_v58 = vor.u32 %v8712_v3, %v8709_v4  ;;  %vm17422_vm7 = vmmov %vm17412_vm3 }
 0x429   :  { %12478 = vmatprep.mubr.msk.bf16.mxu1 %vm251_vm1, %v8968_v23  ;;  %12506 = vmatprep.subr.bf16.mxu0 %v12812_v46  ;;  %v8974_v39 = vsel %vm17417_vm2, %v8971_v25, %v8973_v57  ;;  %v12817_v25 = vld [vmem:[#allocation2 + $0x10] sm:$0xfc]  }
 0x42a   :  { %v8723_v55 = vsel %vm17412_vm3, %v8713_v58, %v8722_v33  ;;  %v9294_v61 = vshrl.u32 %v12817_v25, 16  ;;  %v9297_v62 = vshll.u32 %v12817_v25, 16  ;;  %vm17426_vm3 = vmmov %vm17417_vm2 }
 0x42b   :  { %12451 = vmatmul.mubr.msk.bf16.gmra.mxu0 %vm251_vm1, %v8678_v17  ;;  %v8730_v17 = vrot.slane %v8728_v14, 2  ;;  %v9314_v14 = vshll.u32 %v12819_v47, 16 }
 0x42c   :  { %12454 = vmatprep.mubr.msk.bf16.mxu0 %vm251_vm1, %v8687_v59  ;;  %12507 = vmatpush3.bf16.msra.mxu0 %v12812_v46  ;;  %v8975_v46 = vrot.slane %v16411_v11, 2  ;;  %v8714_v11 = vsel %vm17419_vm10, %v8704_v22, %v8713_v58  ;;  %v8739_v59 = vrot.slane %v8737_v49, 2  ;;  %v9305_v22 = vshll.u32 %v12818_v53, 16 }
 0x42d   :  { %12508 = vmatprep.subr.bf16.mxu0 %v12816_v52  ;;  %v9296_v38 = vrot.slane %v9294_v61, 2  ;;  %vm17425_vm10 = vsmask.f32 5376 }
 0x42e   :  { %v8976_v23 = vsel %vm17418_vm5, %v8973_v57, %v8975_v46  ;;  %v8978_v42 = vsel %vm17420_vm11, %v8975_v46, %v8977_v2  ;;  %v8740_v24 = vor.u32 %v8739_v59, %v8736_v41  ;;  %v9307_v57 = vrot.slane %v9305_v22, 3  ;;  %vm17424_vm5 = vmmov %vm17417_vm2 }
 0x42f   :  { %v9299_v46 = vrot.slane %v9297_v62, 3  ;;  %v8985_v2 = vrot.slane %v16468_v35, 2  ;;  %vm17427_vm11 = vmmov %vm17417_vm2 }
 0x430   :  { %12479 = vmatmul.mubr.msk.bf16.vlgmr.msra.gmra.mxu1 %vm251_vm1, %v8970_v7  ;;  %12509 = vmatpush3.bf16.msra.mxu0 %v12816_v52  ;;  %v8727_v52 = vrot.slane %v8725_v21, 1  ;;  %v9302_v7 = vshrl.u32 %v12818_v53, 16  ;;  %v9311_v21 = vshrl.u32 %v12819_v47, 16  ;;  %v12822_v53 = vld [vmem:[#allocation2 + $0x38] sm:$0xff]   ;;  %vm17428_vm4 = vmmov %vm17425_vm10 }
 0x431   :  { %12482 = vmatprep.mubr.msk.bf16.mxu1 %vm251_vm1, %v8972_v19  ;;  %v9300_v1 = vor.u32 %v9299_v46, %v9296_v38  ;;  %v8986_v22 = vsel %vm17426_vm3, %v8983_v15, %v8985_v2  ;;  %v9338_v61 = vshrl.u32 %v12822_v53, 16  ;;  %v9341_v35 = vshll.u32 %v12822_v53, 16 }
 0x432   :  { %v8731_v44 = vor.u32 %v8730_v17, %v8727_v52  ;;  %v9304_v3 = vrot.slane %v9302_v7, 2  ;;  %v12821_v17 = vld [vmem:[#allocation2 + $0x30] sm:$0xff]  }
 0x433   :  { %12455 = vmatmul.mubr.msk.bf16.gmra.mxu0 %vm251_vm1, %v8696_v63  ;;  %v8981_v63 = vrot.slane %v16450_v6, 2  ;;  %v9332_v7 = vshll.u32 %v12821_v17, 16 }
 0x434   :  { %12458 = vmatprep.mubr.msk.bf16.mxu0 %vm251_vm1, %v8705_v36  ;;  %v8732_v19 = vsel %vm17422_vm7, %v8722_v33, %v8731_v44  ;;  %v8741_v4 = vsel %vm17423_vm8, %v8731_v44, %v8740_v24  ;;  %v12820_v36 = vld [vmem:[#allocation2 + $0x28] sm:$0xff]   ;;  %v9308_v6 = vor.u32 %v9307_v57, %v9304_v3  ;;  %vm17429_vm7 = vmmov %vm17428_vm4  ;;  %v9340_v3 = vrot.slane %v9338_v61, 2 }
 0x435   :  { %v9320_v33 = vshrl.u32 %v12820_v36, 16  ;;  %v9323_v28 = vshll.u32 %v12820_v36, 16  ;;  %v8984_v49 = vsel %vm17424_vm5, %v8981_v63, %v8983_v15  ;;  %v9334_v47 = vrot.slane %v9332_v7, 3  ;;  %v12824_v36 = vld [vmem:[#allocation2 + $0x48] sm:$0xff]   ;;  %vm17430_vm8 = vmmov %vm17428_vm4 }
 0x436   :  { %v9343_v57 = vrot.slane %v9341_v35, 3 }
 0x437   :  { %v9322_v41 = vrot.slane %v9320_v33, 2  ;;  %v9325_v59 = vrot.slane %v9323_v28, 3 }
 0x438   :  { %12483 = vmatmul.mubr.msk.bf16.gmra.mxu1 %vm251_vm1, %v8974_v39  ;;  %v8982_v39 = vsel %vm17417_vm2, %v8979_v26, %v8981_v63  ;;  %v8987_v26 = vrot.slane %v16473_v13, 2  ;;  %v12823_v63 = vld [vmem:[#allocation2 + $0x40] sm:$0xff]   ;;  %vm17431_vm2 = vmmov %vm17428_vm4 }
 0x439   :  { %12486 = vmatprep.mubr.msk.bf16.mxu1 %vm251_vm1, %v8976_v23  ;;  %v9313_v23 = vrot.slane %v9311_v21, 2  ;;  %v9347_v46 = vshrl.u32 %v12823_v63, 16  ;;  %v9350_v21 = vshll.u32 %v12823_v63, 16  ;;  %vm17432_vm5 = vmmov %vm17431_vm2 }
 0x43a   :  { %vm17434_vm3 = vmmov %vm17431_vm2 }
 0x43b   :  { %12459 = vmatmul.mubr.msk.bf16.gmra.mxu0 %vm251_vm1, %v8714_v11  ;;  %v9316_v11 = vrot.slane %v9314_v14, 3  ;;  %v9344_v14 = vor.u32 %v9343_v57, %v9340_v3  ;;  %v12827_v57 = vld [vmem:[#allocation2 + $0x60] sm:$0xff]  }
 0x43c   :  { %12462 = vmatprep.mubr.msk.bf16.mxu0 %vm251_vm1, %v8723_v55  ;;  %v9309_v55 = vsel %vm17425_vm10, %v9300_v1, %v9308_v6  ;;  %v9352_v1 = vrot.slane %v9350_v21, 3  ;;  %vm17433_vm10 = vmmov %vm17431_vm2  ;;  %v12828_v21 = vld [vmem:[#allocation2 + $0x68] sm:$0x1f]  }
 0x43d   :  { %v9317_v25 = vor.u32 %v9316_v11, %v9313_v23  ;;  %v12825_v23 = vld [vmem:[#allocation2 + $0x50] sm:$0xff]  }
 0x43e   :  { %v9365_v7 = vshrl.u32 %v12825_v23, 16 }
 0x43f   :  { %v9318_v62 = vsel %vm17428_vm4, %v9308_v6, %v9317_v25  ;;  %v9359_v6 = vshll.u32 %v12824_v36, 16  ;;  %vm17436_vm4 = vmmov %vm17431_vm2 }
 0x440   :  { %12487 = vmatmul.mubr.msk.bf16.gmra.mxu1 %vm251_vm1, %v8978_v42  ;;  %v16501_v58 = vpop.f32.mrf.mxu0  ;;  %v9329_v42 = vshrl.u32 %v12821_v17, 16 }
 0x441   :  { %12490 = vmatprep.mubr.msk.bf16.mxu1 %vm251_vm1, %v8980_v32  ;;  %v9326_v32 = vor.u32 %v9325_v59, %v9322_v41  ;;  %v9361_v41 = vrot.slane %v9359_v6, 3  ;;  %v12826_v59 = vld [vmem:[#allocation2 + $0x58] sm:$0xff]   ;;  %v9383_v6 = vshrl.u32 %v12827_v57, 16 }
 0x442   :  { %v6910_v52 = vpop.f32.mrf.mxu0 }
 0x443   :  { %12463 = vmatmul.mubr.msk.bf16.gmra.mxu0 %vm251_vm1, %v8732_v19  ;;  %v9331_v19 = vrot.slane %v9329_v42, 2 }
 0x444   :  { %12466 = vmatprep.mubr.msk.bf16.mxu0 %vm251_vm1, %v8741_v4  ;;  %v12257_v44 = vpop.f32.mrf.mxu0  ;;  %v9327_v4 = vsel %vm17429_vm7, %v9317_v25, %v9326_v32  ;;  %vm17437_vm7 = vmmov %vm17431_vm2 }
 0x445   :  { %v9335_v38 = vor.u32 %v9334_v47, %v9331_v19 }
 0x446   :  { %v6913_v13 = vpop.f32.mrf.mxu0 }
 0x447   :  { %v9336_v28 = vsel %vm17430_vm8, %v9326_v32, %v9335_v38  ;;  %v9345_v17 = vsel %vm17431_vm2, %v9335_v38, %v9344_v14  ;;  %vm10009_vm8 = vcmask 588800  }
 0x448   :  { %12491 = vmatmul.mubr.msk.bf16.gmra.mxu1 %vm251_vm1, %v8982_v39  ;;  %v9356_v39 = vshrl.u32 %v12824_v36, 16 }
 0x449   :  { %12494 = vmatprep.mubr.msk.bf16.mxu1 %vm251_vm1, %v8984_v49  ;;  %v9349_v49 = vrot.slane %v9347_v46, 2 }
 0x44b   :  { %12467 = vmatmul.mubr.msk.bf16.gmra.mxu0 %vm251_vm1, %v8740_v24  ;;  %v8988_v24 = vsel %vm17427_vm11, %v8985_v2, %v8987_v26  ;;  %v9353_v42 = vor.u32 %v9352_v1, %v9349_v49  ;;  %v9395_v1 = vshll.u32 %v12828_v21, 16  ;;  %vm17435_vm11 = vmmov %vm17431_vm2 }
 0x44c   :  { %12510 = vmatprep.mubr.msk.bf16.mxu0 %vm251_vm1, %v9309_v55  ;;  %v9358_v55 = vrot.slane %v9356_v39, 2 }
 0x44e   :  { %v9362_v35 = vor.u32 %v9361_v41, %v9358_v55 }
 0x450   :  { %12495 = vmatmul.mubr.msk.bf16.gmra.mxu1 %vm251_vm1, %v8986_v22  ;;  %v9368_v22 = vshll.u32 %v12825_v23, 16  ;;  %v9363_v36 = vsel %vm17433_vm10, %v9353_v42, %v9362_v35 }
 0x451   :  { %12498 = vmatprep.mubr.msk.bf16.mxu1 %vm251_vm1, %v8988_v24  ;;  %v9374_v24 = vshrl.u32 %v12826_v59, 16 }
 0x452   :  { %v9370_v3 = vrot.slane %v9368_v22, 3 }
 0x453   :  { %12511 = vmatmul.mubr.msk.bf16.vlgmr.msra.gmra.mxu0 %vm251_vm1, %v9318_v62  ;;  %v9377_v62 = vshll.u32 %v12826_v59, 16  ;;  %v9376_v38 = vrot.slane %v9374_v24, 2  ;;  %v9385_v59 = vrot.slane %v9383_v6, 2  ;;  %v9397_v24 = vrot.slane %v9395_v1, 3 }
 0x454   :  { %12514 = vmatprep.mubr.msk.bf16.mxu0 %vm251_vm1, %v9327_v4  ;;  %v9367_v4 = vrot.slane %v9365_v7, 2 }
 0x455   :  { %v9379_v46 = vrot.slane %v9377_v62, 3 }
 0x456   :  { %v9371_v39 = vor.u32 %v9370_v3, %v9367_v4 }
 0x457   :  { %v12260_v15 = vpop.f32.mrf.mxu0  ;;  %v9380_v49 = vor.u32 %v9379_v46, %v9376_v38 }
 0x458   :  { %12499 = vmatmul.mubr.msk.bf16.gmra.mxu1 %vm251_vm1, %v8987_v26  ;;  %v9372_v41 = vsel %vm17434_vm3, %v9362_v35, %v9371_v39 }
 0x459   :  { %v6926_v33 = vpop.f32.mrf.mxu0  ;;  %v9381_v22 = vsel %vm17435_vm11, %v9371_v39, %v9380_v49  ;;  %11097 = vmatprep.mubr.msk.f32.mxu1 %vm10009_vm8, %v10007_v48 }
 0x45b   :  { %12515 = vmatmul.mubr.msk.bf16.gmra.mxu0 %vm251_vm1, %v9336_v28  ;;  %v12261_v2 = vpop.f32.mrf.mxu0 }
 0x45c   :  { %v12288_v11 = vpop.f32.mrf.mxu1  ;;  %12518 = vmatprep.mubr.msk.bf16.mxu0 %vm251_vm1, %v9345_v17 }
 0x45d   :  { %v16525_v53 = vadd.f32 %v12288_v11, %v16501_v58  ;;  %v6929_v61 = vpop.f32.mrf.mxu0  ;;  %v9354_v58 = vsel %vm17432_vm5, %v9344_v14, %v9353_v42  ;;  %v9392_v14 = vshrl.u32 %v12828_v21, 16 }
 0x45e   :  { %v7219_v26 = vpop.f32.mrf.mxu1 }
 0x45f   :  { %v16528_v25 = vadd.f32 %v7219_v26, %v6910_v52 }
 0x460   :  { %v12289_v32 = vpop.f32.mrf.mxu1 }
 0x461   :  { %v16530_v19 = vadd.f32 %v12289_v32, %v12257_v44  ;;  %v9394_v32 = vrot.slane %v9392_v14, 2 }
 0x462   :  { %v7222_v47 = vpop.f32.mrf.mxu1 }
 0x463   :  { %v16532_v63 = vadd.f32 %v7222_v47, %v6913_v13  ;;  %v12264_v52 = vpop.f32.mrf.mxu0  ;;  %12519 = vmatmul.mubr.msk.bf16.gmra.mxu0 %vm251_vm1, %v9354_v58  ;;  %v9386_v13 = vshll.u32 %v12827_v57, 16 }
 0x464   :  { %12522 = vmatprep.mubr.msk.bf16.mxu0 %vm251_vm1, %v9363_v36 }
 0x465   :  { %v6942_v44 = vpop.f32.mrf.mxu0  ;;  %v9388_v26 = vrot.slane %v9386_v13, 3 }
 0x467   :  { %v12265_v28 = vpop.f32.mrf.mxu0  ;;  %v9389_v4 = vor.u32 %v9388_v26, %v9385_v59 }
 0x468   :  { %v12292_v23 = vpop.f32.mrf.mxu1 }
 0x469   :  { %v16538_v11 = vadd.f32 %v12292_v23, %v12260_v15  ;;  %v6945_v17 = vpop.f32.mrf.mxu0  ;;  %v9390_v21 = vsel %vm17436_vm4, %v9380_v49, %v9389_v4 }
 0x46a   :  { %v7235_v55 = vpop.f32.mrf.mxu1 }
 0x46b   :  { %v16541_v42 = vadd.f32 %v7235_v55, %v6926_v33  ;;  %v12268_v7 = vpop.f32.mrf.mxu0  ;;  %12523 = vmatmul.mubr.msk.bf16.gmra.mxu0 %vm251_vm1, %v9372_v41  ;;  %v9398_v33 = vor.u32 %v9397_v24, %v9394_v32 }
 0x46c   :  { %v12293_v62 = vpop.f32.mrf.mxu1  ;;  %12526 = vmatprep.mubr.msk.bf16.mxu0 %vm251_vm1, %v9381_v22 }
 0x46d   :  { %v16546_v15 = vadd.f32 %v12293_v62, %v12261_v2  ;;  %v6958_v47 = vpop.f32.mrf.mxu0  ;;  %v9399_v2 = vsel %vm17437_vm7, %v9389_v4, %v9398_v33 }
 0x46e   :  { %v7238_v58 = vpop.f32.mrf.mxu1 }
 0x46f   :  { %v16548_v35 = vadd.f32 %v7238_v58, %v6929_v61  ;;  %v12269_v3 = vpop.f32.mrf.mxu0 }
 0x470   :  { %v12296_v57 = vpop.f32.mrf.mxu1 }
 0x471   :  { %v16550_v36 = vadd.f32 %v12296_v57, %v12264_v52  ;;  %v6961_v38 = vpop.f32.mrf.mxu0 }
 0x472   :  { %v7251_v46 = vpop.f32.mrf.mxu1 }
 0x473   :  { %v16553_v39 = vadd.f32 %v7251_v46, %v6942_v44  ;;  %v12272_v6 = vpop.f32.mrf.mxu0  ;;  %12527 = vmatmul.mubr.msk.bf16.gmra.mxu0 %vm251_vm1, %v9390_v21 }
 0x474   :  { %v12297_v13 = vpop.f32.mrf.mxu1  ;;  %12530 = vmatprep.mubr.msk.bf16.mxu0 %vm251_vm1, %v9399_v2 }
 0x475   :  { %v16558_v61 = vadd.f32 %v12297_v13, %v12265_v28  ;;  %v6974_v14 = vpop.f32.mrf.mxu0 }
 0x476   :  { %v7254_v1 = vpop.f32.mrf.mxu1 }
 0x477   :  { %v16560_v52 = vadd.f32 %v7254_v1, %v6945_v17  ;;  %v12273_v23 = vpop.f32.mrf.mxu0 }
 0x478   :  { %v12300_v55 = vpop.f32.mrf.mxu1 }
 0x479   :  { %v16562_v41 = vadd.f32 %v12300_v55, %v12268_v7  ;;  %v6977_v44 = vpop.f32.mrf.mxu0 }
 0x47a   :  { %v7267_v49 = vpop.f32.mrf.mxu1 }
 0x47b   :  { %v16564_v59 = vadd.f32 %v7267_v49, %v6958_v47  ;;  %v12276_v26 = vpop.f32.mrf.mxu0  ;;  %12531 = vmatmul.mubr.msk.bf16.gmra.mxu0 %vm251_vm1, %v9398_v33 }
 0x47c   :  { %v12301_v22 = vpop.f32.mrf.mxu1 }
 0x47d   :  { %v16567_v32 = vadd.f32 %v12301_v22, %v12269_v3  ;;  %v6990_v28 = vpop.f32.mrf.mxu0 }
 0x47e   :  { %v7270_v24 = vpop.f32.mrf.mxu1 }
 0x47f   :  { %v16569_v62 = vadd.f32 %v7270_v24, %v6961_v38  ;;  %v12277_v17 = vpop.f32.mrf.mxu0 }
 0x480   :  { %v12304_v58 = vpop.f32.mrf.mxu1 }
 0x481   :  { %v16571_v4 = vadd.f32 %v12304_v58, %v12272_v6  ;;  %v6993_v7 = vpop.f32.mrf.mxu0 }
 0x482   :  { %v7283_v57 = vpop.f32.mrf.mxu1 }
 0x483   :  { %v16573_v46 = vadd.f32 %v7283_v57, %v6974_v14  ;;  %v12320_v47 = vpop.f32.mrf.mxu0 }
 0x484   :  { %v12305_v21 = vpop.f32.mrf.mxu1  ;;  %v7600_v2 = vadd.f32 %v12320_v47, %v16525_v53 }
 0x485   :  { %v16576_v33 = vadd.f32 %v12305_v21, %v12273_v23  ;;  %v7504_v3 = vpop.f32.mrf.mxu0 }
 0x486   :  { %v7286_v13 = vpop.f32.mrf.mxu1  ;;  %v7598_v1 = vadd.f32 %v7504_v3, %v16528_v25 }
 0x487   :  { %v16579_v38 = vadd.f32 %v7286_v13, %v6977_v44  ;;  %v12321_v55 = vpop.f32.mrf.mxu0 }
 0x488   :  { %v12308_v49 = vpop.f32.mrf.mxu1  ;;  %v7601_v6 = vadd.f32 %v12321_v55, %v16530_v19 }
 0x489   :  { %v16582_v22 = vadd.f32 %v12308_v49, %v12276_v26  ;;  %v7507_v14 = vpop.f32.mrf.mxu0 }
 0x48a   :  { %v7299_v24 = vpop.f32.mrf.mxu1  ;;  %v7599_v17 = vadd.f32 %v7507_v14, %v16532_v63 }
 0x48b   :  { %v16585_v58 = vadd.f32 %v7299_v24, %v6990_v28  ;;  %v12324_v53 = vpop.f32.mrf.mxu0 }
 0x48c   :  { %v12309_v23 = vpop.f32.mrf.mxu1  ;;  %v7604_v57 = vadd.f32 %v12324_v53, %v16538_v11 }
 0x48d   :  { %v7520_v47 = vpop.f32.mrf.mxu0 }
 0x48e   :  { %v7302_v25 = vpop.f32.mrf.mxu1  ;;  %v7602_v44 = vadd.f32 %v7520_v47, %v16541_v42 }
 0x48f   :  { %v16589_v21 = vadd.f32 %v7302_v25, %v6993_v7  ;;  %v12325_v3 = vpop.f32.mrf.mxu0 }
 0x490   :  { %v12352_v19 = vpop.f32.mrf.mxu1  ;;  %v7605_v26 = vadd.f32 %v12325_v3, %v16546_v15 }
 0x491   :  { %v16592_v13 = vadd.f32 %v12352_v19, %v7600_v2  ;;  %v7523_v55 = vpop.f32.mrf.mxu0 }
 0x492   :  { %v7900_v63 = vpop.f32.mrf.mxu1  ;;  %v7603_v28 = vadd.f32 %v7523_v55, %v16548_v35 }
 0x493   :  { %v16595_v49 = vadd.f32 %v7900_v63, %v7598_v1  ;;  %v12328_v14 = vpop.f32.mrf.mxu0 }
 0x494   :  { %v12353_v11 = vpop.f32.mrf.mxu1  ;;  %v7608_v24 = vadd.f32 %v12328_v14, %v16550_v36 }
 0x495   :  { %v16598_v53 = vadd.f32 %v12353_v11, %v7601_v6  ;;  %v7536_v42 = vpop.f32.mrf.mxu0 }
 0x496   :  { %v7903_v7 = vpop.f32.mrf.mxu1  ;;  %v7606_v23 = vadd.f32 %v7536_v42, %v16553_v39 }
 0x497   :  { %v16601_v47 = vadd.f32 %v7903_v7, %v7599_v17  ;;  %v12329_v15 = vpop.f32.mrf.mxu0 }
 0x498   :  { %v12356_v2 = vpop.f32.mrf.mxu1  ;;  %v7609_v25 = vadd.f32 %v12329_v15, %v16558_v61 }
 0x499   :  { %v16604_v3 = vadd.f32 %v12356_v2, %v7604_v57  ;;  %v7539_v35 = vpop.f32.mrf.mxu0 }
 0x49a   :  { %v7916_v1 = vpop.f32.mrf.mxu1  ;;  %v7607_v19 = vadd.f32 %v7539_v35, %v16560_v52 }
 0x49b   :  { %v16607_v55 = vadd.f32 %v7916_v1, %v7602_v44  ;;  %v12332_v36 = vpop.f32.mrf.mxu0 }
 0x49c   :  { %v12357_v6 = vpop.f32.mrf.mxu1  ;;  %v7612_v63 = vadd.f32 %v12332_v36, %v16562_v41 }
 0x49d   :  { %v16610_v14 = vadd.f32 %v12357_v6, %v7605_v26  ;;  %v7552_v39 = vpop.f32.mrf.mxu0 }
 0x49e   :  { %v7919_v17 = vpop.f32.mrf.mxu1  ;;  %v7610_v11 = vadd.f32 %v7552_v39, %v16564_v59 }
 0x49f   :  { %v16613_v42 = vadd.f32 %v7919_v17, %v7603_v28  ;;  %v12333_v61 = vpop.f32.mrf.mxu0 }
 0x4a0   :  { %v12360_v57 = vpop.f32.mrf.mxu1  ;;  %v7613_v7 = vadd.f32 %v12333_v61, %v16567_v32 }
 0x4a1   :  { %v16616_v15 = vadd.f32 %v12360_v57, %v7608_v24  ;;  %v7555_v52 = vpop.f32.mrf.mxu0 }
 0x4a2   :  { %v7932_v44 = vpop.f32.mrf.mxu1  ;;  %v7611_v2 = vadd.f32 %v7555_v52, %v16569_v62 }
 0x4a3   :  { %v16619_v35 = vadd.f32 %v7932_v44, %v7606_v23  ;;  %v12336_v41 = vpop.f32.mrf.mxu0 }
 0x4a4   :  { %v12361_v26 = vpop.f32.mrf.mxu1  ;;  %v7616_v1 = vadd.f32 %v12336_v41, %v16571_v4 }
 0x4a5   :  { %v16622_v36 = vadd.f32 %v12361_v26, %v7609_v25  ;;  %v7568_v59 = vpop.f32.mrf.mxu0 }
 0x4a6   :  { %v7935_v28 = vpop.f32.mrf.mxu1  ;;  %v7614_v6 = vadd.f32 %v7568_v59, %v16573_v46 }
 0x4a7   :  { %v16625_v39 = vadd.f32 %v7935_v28, %v7607_v19  ;;  %v12337_v32 = vpop.f32.mrf.mxu0 }
 0x4a8   :  { %v12364_v24 = vpop.f32.mrf.mxu1  ;;  %v7617_v17 = vadd.f32 %v12337_v32, %v16576_v33 }
 0x4a9   :  { %v16628_v61 = vadd.f32 %v12364_v24, %v7612_v63  ;;  %v7571_v62 = vpop.f32.mrf.mxu0 }
 0x4aa   :  { %v7948_v23 = vpop.f32.mrf.mxu1  ;;  %v7615_v57 = vadd.f32 %v7571_v62, %v16579_v38 }
 0x4ab   :  { %v16631_v52 = vadd.f32 %v7948_v23, %v7610_v11  ;;  %v12340_v4 = vpop.f32.mrf.mxu0 }
 0x4ac   :  { %v12365_v25 = vpop.f32.mrf.mxu1  ;;  %v7620_v44 = vadd.f32 %v12340_v4, %v16582_v22 }
 0x4ad   :  { %v16634_v41 = vadd.f32 %v12365_v25, %v7613_v7  ;;  %v7584_v46 = vpop.f32.mrf.mxu0 }
 0x4ae   :  { %v7951_v19 = vpop.f32.mrf.mxu1  ;;  %v7618_v26 = vadd.f32 %v7584_v46, %v16585_v58 }
 0x4af   :  { %v16637_v59 = vadd.f32 %v7951_v19, %v7611_v2  ;;  %v12341_v33 = vpop.f32.mrf.mxu0 }
 0x4b0   :  { %v12368_v63 = vpop.f32.mrf.mxu1 }
 0x4b1   :  { %v16639_v28 = vadd.f32 %v12368_v63, %v7616_v1  ;;  %v7587_v32 = vpop.f32.mrf.mxu0 }
 0x4b2   :  { %v7964_v38 = vpop.f32.mrf.mxu1  ;;  %v7619_v11 = vadd.f32 %v7587_v32, %v16589_v21 }
 0x4b3   :  { %v16642_v24 = vadd.f32 %v7964_v38, %v7614_v6  ;;  %v12384_v62 = vpop.f32.mrf.mxu0 }
 0x4b4   :  { %v12369_v22 = vpop.f32.mrf.mxu1  ;;  %v8243_v7 = vadd.f32 %v12384_v62, %v16592_v13 }
 0x4b5   :  { %v16645_v23 = vadd.f32 %v12369_v22, %v7617_v17  ;;  %v8147_v4 = vpop.f32.mrf.mxu0 }
 0x4b6   :  { %v7967_v58 = vpop.f32.mrf.mxu1  ;;  %v8241_v2 = vadd.f32 %v8147_v4, %v16595_v49 }
 0x4b7   :  { %v16648_v25 = vadd.f32 %v7967_v58, %v7615_v57  ;;  %v12385_v1 = vpop.f32.mrf.mxu0 }
 0x4b8   :  { %v12372_v46 = vpop.f32.mrf.mxu1  ;;  %v8244_v19 = vadd.f32 %v12385_v1, %v16598_v53 }
 0x4b9   :  { %v16651_v33 = vadd.f32 %v12372_v46, %v7620_v44  ;;  %v8150_v21 = vpop.f32.mrf.mxu0 }
 0x4ba   :  { %v7980_v6 = vpop.f32.mrf.mxu1  ;;  %v8242_v63 = vadd.f32 %v8150_v21, %v16601_v47 }
 0x4bb   :  { %v16654_v32 = vadd.f32 %v7980_v6, %v7618_v26  ;;  %v12388_v13 = vpop.f32.mrf.mxu0 }
 0x4bc   :  { %v12373_v17 = vpop.f32.mrf.mxu1  ;;  %v8247_v38 = vadd.f32 %v12388_v13, %v16604_v3 }
 0x4bd   :  { %v8163_v62 = vpop.f32.mrf.mxu0 }
 0x4be   :  { %v7983_v49 = vpop.f32.mrf.mxu1  ;;  %v8245_v57 = vadd.f32 %v8163_v62, %v16607_v55 }
 0x4bf   :  { %v16658_v22 = vadd.f32 %v7983_v49, %v7619_v11  ;;  %v12389_v4 = vpop.f32.mrf.mxu0 }
 0x4c0   :  { %v12416_v53 = vpop.f32.mrf.mxu1  ;;  %v8248_v44 = vadd.f32 %v12389_v4, %v16610_v14 }
 0x4c1   :  { %v16661_v58 = vadd.f32 %v12416_v53, %v8243_v7  ;;  %v8166_v1 = vpop.f32.mrf.mxu0 }
 0x4c2   :  { %v8428_v47 = vpop.f32.mrf.mxu1  ;;  %v8246_v26 = vadd.f32 %v8166_v1, %v16613_v42 }
 0x4c3   :  { %v16664_v46 = vadd.f32 %v8428_v47, %v8241_v2  ;;  %v12392_v21 = vpop.f32.mrf.mxu0 }
 0x4c4   :  { %v12417_v3 = vpop.f32.mrf.mxu1  ;;  %v8251_v6 = vadd.f32 %v12392_v21, %v16616_v15 }
 0x4c5   :  { %v16667_v13 = vadd.f32 %v12417_v3, %v8244_v19  ;;  %v8179_v55 = vpop.f32.mrf.mxu0 }
 0x4c6   :  { %v8431_v11 = vpop.f32.mrf.mxu1  ;;  %v8249_v17 = vadd.f32 %v8179_v55, %v16619_v35 }
 0x4c7   :  { %v16670_v62 = vadd.f32 %v8431_v11, %v8242_v63  ;;  %v12393_v14 = vpop.f32.mrf.mxu0 }
 0x4c8   :  { %v12420_v7 = vpop.f32.mrf.mxu1  ;;  %v8252_v49 = vadd.f32 %v12393_v14, %v16622_v36 }
 0x4c9   :  { %v16673_v4 = vadd.f32 %v12420_v7, %v8247_v38  ;;  %v8182_v42 = vpop.f32.mrf.mxu0 }
 0x4ca   :  { %v8444_v2 = vpop.f32.mrf.mxu1  ;;  %v8250_v53 = vadd.f32 %v8182_v42, %v16625_v39 }
 0x4cb   :  { %v16676_v1 = vadd.f32 %v8444_v2, %v8245_v57  ;;  %v12396_v15 = vpop.f32.mrf.mxu0 }
 0x4cc   :  { %v12421_v19 = vpop.f32.mrf.mxu1  ;;  %v8255_v47 = vadd.f32 %v12396_v15, %v16628_v61 }
 0x4cd   :  { %v16679_v21 = vadd.f32 %v12421_v19, %v8248_v44  ;;  %v8195_v35 = vpop.f32.mrf.mxu0 }
 0x4ce   :  { %v8447_v63 = vpop.f32.mrf.mxu1  ;;  %v8253_v3 = vadd.f32 %v8195_v35, %v16631_v52 }
 0x4cf   :  { %v16682_v55 = vadd.f32 %v8447_v63, %v8246_v26  ;;  %v12397_v36 = vpop.f32.mrf.mxu0 }
 0x4d0   :  { %v12424_v38 = vpop.f32.mrf.mxu1  ;;  %v8256_v11 = vadd.f32 %v12397_v36, %v16634_v41 }
 0x4d1   :  { %v16685_v14 = vadd.f32 %v12424_v38, %v8251_v6  ;;  %v8198_v39 = vpop.f32.mrf.mxu0 }
 0x4d2   :  { %v8460_v57 = vpop.f32.mrf.mxu1  ;;  %v8254_v7 = vadd.f32 %v8198_v39, %v16637_v59 }
 0x4d3   :  { %v16688_v42 = vadd.f32 %v8460_v57, %v8249_v17  ;;  %v12400_v61 = vpop.f32.mrf.mxu0 }
 0x4d4   :  { %v12425_v44 = vpop.f32.mrf.mxu1  ;;  %v8259_v2 = vadd.f32 %v12400_v61, %v16639_v28 }
 0x4d5   :  { %v16691_v15 = vadd.f32 %v12425_v44, %v8252_v49  ;;  %v8211_v52 = vpop.f32.mrf.mxu0 }
 0x4d6   :  { %v8463_v26 = vpop.f32.mrf.mxu1  ;;  %v8257_v19 = vadd.f32 %v8211_v52, %v16642_v24 }
 0x4d7   :  { %v16694_v35 = vadd.f32 %v8463_v26, %v8250_v53  ;;  %v12401_v41 = vpop.f32.mrf.mxu0 }
 0x4d8   :  { %v12428_v6 = vpop.f32.mrf.mxu1  ;;  %v8260_v63 = vadd.f32 %v12401_v41, %v16645_v23 }
 0x4d9   :  { %v16697_v36 = vadd.f32 %v12428_v6, %v8255_v47  ;;  %v8214_v59 = vpop.f32.mrf.mxu0 }
 0x4da   :  { %v8476_v17 = vpop.f32.mrf.mxu1  ;;  %v8258_v38 = vadd.f32 %v8214_v59, %v16648_v25 }
 0x4db   :  { %v16700_v39 = vadd.f32 %v8476_v17, %v8253_v3  ;;  %v12404_v28 = vpop.f32.mrf.mxu0 }
 0x4dc   :  { %v12429_v49 = vpop.f32.mrf.mxu1  ;;  %v8263_v57 = vadd.f32 %v12404_v28, %v16651_v33 }
 0x4dd   :  { %v16703_v61 = vadd.f32 %v12429_v49, %v8256_v11  ;;  %v8227_v24 = vpop.f32.mrf.mxu0  ;;  %v17158_v11 = vmov 0.0  }
 0x4de   :  { %v8479_v53 = vpop.f32.mrf.mxu1  ;;  %v8261_v44 = vadd.f32 %v8227_v24, %v16654_v32  ;;  %10012 = vmatprep.subr.mxu1 %v17158_v11 }
 0x4df   :  { %v16706_v52 = vadd.f32 %v8479_v53, %v8254_v7  ;;  %v12405_v23 = vpop.f32.mrf.mxu0 }
 0x4e0   :  { %v12432_v47 = vpop.f32.mrf.mxu1 }
 0x4e1   :  { %17438 = vst [vmem:[#allocation41_spill] sm:$0xff] %v16706_v52  ;;  %v16708_v26 = vadd.f32 %v12432_v47, %v8259_v2  ;;  %v8230_v41 = vpop.f32.mrf.mxu0 }
 0x4e2   :  { %v8492_v25 = vpop.f32.mrf.mxu1  ;;  %v8262_v3 = vadd.f32 %v8230_v41, %v16658_v22 }
 0x4e3   :  { %17439 = vst [vmem:[#allocation13_spill] sm:$0xff] %v16708_v26  ;;  %v16711_v6 = vadd.f32 %v8492_v25, %v8257_v19  ;;  %v12448_v59 = vpop.f32.mrf.mxu0 }
 0x4e4   :  { %v12433_v33 = vpop.f32.mrf.mxu1  ;;  %v8932_v37 = vadd.f32 %v12448_v59, %v16661_v58 }
 0x4e5   :  { %17440 = vst [vmem:[#allocation42_spill] sm:$0xff] %v16711_v6  ;;  %v16714_v17 = vadd.f32 %v12433_v33, %v8260_v63  ;;  %v8836_v32 = vpop.f32.mrf.mxu0 }
 0x4e6   :  { %v8495_v7 = vpop.f32.mrf.mxu1 }
 0x4e7   :  { %17441 = vst [vmem:[#allocation43_spill] sm:$0xff] %v16714_v17  ;;  %v16716_v28 = vadd.f32 %v8495_v7, %v8258_v38  ;;  %v12449_v49 = vpop.f32.mrf.mxu0 }
 0x4e8   :  { %v12436_v2 = vpop.f32.mrf.mxu1 }
 0x4e9   :  { %17442 = vst [vmem:[#allocation45_spill] sm:$0xff] %v16716_v28  ;;  %v8544_v24 = vadd.f32 %v12436_v2, %v8263_v57  ;;  %v8839_v53 = vpop.f32.mrf.mxu0  ;;  %v8933_v28 = vadd.f32 %v12449_v49, %v16667_v13 }
 0x4ea   :  { %v8508_v23 = vpop.f32.mrf.mxu1  ;;  %v8931_v17 = vadd.f32 %v8839_v53, %v16670_v62 }
 0x4eb   :  { %v16718_v47 = vadd.f32 %v8508_v23, %v8261_v44  ;;  %v12452_v22 = vpop.f32.mrf.mxu0 }
 0x4ec   :  { %v12437_v19 = vpop.f32.mrf.mxu1  ;;  %v8936_v29 = vadd.f32 %v12452_v22, %v16673_v4 }
 0x4ed   :  { %17443 = vst [vmem:[#allocation14_spill] sm:$0xff] %v16718_v47  ;;  %v8852_v41 = vpop.f32.mrf.mxu0  ;;  %v8930_v47 = vadd.f32 %v8836_v32, %v16664_v46 }
 0x4ee   :  { %v8511_v25 = vpop.f32.mrf.mxu1  ;;  %v8934_v52 = vadd.f32 %v8852_v41, %v16676_v1 }
 0x4ef   :  { %v16720_v51 = vadd.f32 %v8511_v25, %v8262_v3  ;;  %v12453_v11 = vpop.f32.mrf.mxu0 }
 0x4f0   :  { %v12480_v63 = vpop.f32.mrf.mxu1  ;;  %v8937_v48 = vadd.f32 %v12453_v11, %v16679_v21  ;;  %v17451_v22 = vld [vmem:[#allocation45_spill] sm:$0xff] }
 0x4f1   :  { %17444 = vst [vmem:[#allocation44_spill] sm:$0xff] %v16720_v51  ;;  %v8855_v33 = vpop.f32.mrf.mxu0  ;;  %v9179_v26 = vadd.f32 %v12480_v63, %v8932_v37 }
 0x4f2   :  { %v9083_v10 = vpop.f32.mrf.mxu1  ;;  %v8935_v58 = vadd.f32 %v8855_v33, %v16682_v55 }
 0x4f3   :  { %v12456_v8 = vpop.f32.mrf.mxu0 }
 0x4f4   :  { %v12481_v38 = vpop.f32.mrf.mxu1  ;;  %v8940_v59 = vadd.f32 %v12456_v8, %v16685_v14  ;;  %v16751_v8 = vld [vmem:[%s17057_s2 + $0x2] ss:$0 sm:$0xff] }
 0x4f5   :  { %v8868_v7 = vpop.f32.mrf.mxu0 }
 0x4f6   :  { %v9086_v31 = vpop.f32.mrf.mxu1  ;;  %v8938_v62 = vadd.f32 %v8868_v7, %v16688_v42 }
 0x4f7   :  { %v12457_v30 = vpop.f32.mrf.mxu0  ;;  %v9178_v32 = vadd.f32 %v9086_v31, %v8931_v17  ;;  %v16766_v17 = vld [vmem:[%s17058_s3 + $0x2] ss:$0 sm:$0xff] }
 0x4f8   :  { %v12484_v57 = vpop.f32.mrf.mxu1  ;;  %v8941_v37 = vadd.f32 %v12457_v30, %v16691_v15  ;;  %v17447_v15 = vld [vmem:[#allocation41_spill] sm:$0xff] }
 0x4f9   :  { %v8871_v2 = vpop.f32.mrf.mxu0  ;;  %v9183_v13 = vadd.f32 %v12484_v57, %v8936_v29 }
 0x4fa   :  { %v9099_v16 = vpop.f32.mrf.mxu1  ;;  %v8939_v21 = vadd.f32 %v8871_v2, %v16694_v35 }
 0x4fb   :  { %v12460_v44 = vpop.f32.mrf.mxu0  ;;  %v16742_v4 = vadd.f32 %v9099_v16, %v8934_v52 }
 0x4fc   :  { %v12485_v23 = vpop.f32.mrf.mxu1 }
 0x4fd   :  { %v8884_v56 = vpop.f32.mrf.mxu0  ;;  %v16744_v1 = vadd.f32 %v12485_v23, %v8937_v48 }
 0x4fe   :  { %v9102_v19 = vpop.f32.mrf.mxu1  ;;  %v8942_v31 = vadd.f32 %v8884_v56, %v16700_v39  ;;  %v17449_v56 = vld [vmem:[#allocation42_spill] sm:$0xff] }
 0x4ff   :  { %v12461_v9 = vpop.f32.mrf.mxu0  ;;  %v16753_v29 = vadd.f32 %v9102_v19, %v8935_v58 }
 0x500   :  { %v12488_v18 = vpop.f32.mrf.mxu1  ;;  %v8945_v30 = vadd.f32 %v12461_v9, %v16703_v61 }
 0x501   :  { %v8887_v3 = vpop.f32.mrf.mxu0  ;;  %v16757_v14 = vadd.f32 %v12488_v18, %v8940_v59 }
 0x502   :  { %v9115_v25 = vpop.f32.mrf.mxu1  ;;  %v8943_v35 = vadd.f32 %v8887_v3, %v17447_v15 }
 0x503   :  { %v12464_v0 = vpop.f32.mrf.mxu0  ;;  %v16759_v42 = vadd.f32 %v9115_v25, %v8938_v62  ;;  %v17454_v62 = vld [vmem:[#allocation34_spill] sm:$0xff] }
 0x504   :  { %v12489_v12 = vpop.f32.mrf.mxu1  ;;  %vm17455_vm10 = vcmp.eq.s32.totalorder %v17454_v62, 1 }
 0x505   :  { %v8900_v5 = vpop.f32.mrf.mxu0  ;;  %v16768_v49 = vadd.f32 %v12489_v12, %v8941_v37 }
 0x506   :  { %v9118_v34 = vpop.f32.mrf.mxu1  ;;  %v8946_v9 = vadd.f32 %v8900_v5, %v17449_v56 }
 0x507   :  { %v12465_v60 = vpop.f32.mrf.mxu0 }
 0x508   :  { %v12492_v40 = vpop.f32.mrf.mxu1 }
 0x509   :  { %v8903_v45 = vpop.f32.mrf.mxu0 }
 0x50a   :  { %v9131_v43 = vpop.f32.mrf.mxu1  ;;  %v8947_v41 = vadd.f32 %v8903_v45, %v17451_v22 }
 0x50b   :  { %v12468_v27 = vpop.f32.mrf.mxu0  ;;  %v16778_v33 = vadd.f32 %v9131_v43, %v8942_v31 }
 0x50c   :  { %v12493_v54 = vpop.f32.mrf.mxu1  ;;  %v16729_v50 = vadd.f32 %v12468_v27, %v8544_v24  ;;  %v9177_v24 = vadd.f32 %v9083_v10, %v8930_v47  ;;  %v8944_v10 = vadd.f32 %v12460_v44, %v16697_v36  ;;  %v17448_v36 = vld [vmem:[#allocation13_spill] sm:$0xff]  ;;  %v17450_v47 = vld [vmem:[#allocation43_spill] sm:$0xff] }
 0x50d   :  { %v8916_v20 = vpop.f32.mrf.mxu0  ;;  %v8948_v52 = vadd.f32 %v12464_v0, %v17448_v36  ;;  %v8949_v0 = vadd.f32 %v12465_v60, %v17450_v47  ;;  %v16782_v57 = vadd.f32 %v12493_v54, %v8945_v30  ;;  %v17453_v54 = vld [vmem:[#allocation44_spill] sm:$0xff] }
 0x50e   :  { %17446 = vst [vmem:[#allocation46_spill] sm:$0xff] %v16729_v50  ;;  %v9134_v51 = vpop.f32.mrf.mxu1  ;;  %v9180_v50 = vadd.f32 %v12481_v38, %v8933_v28  ;;  %v16774_v53 = vadd.f32 %v12492_v40, %v8944_v10  ;;  %v17452_v40 = vld [vmem:[#allocation14_spill] sm:$0xff] }
 0x50f   :  { %v12469_v6 = vpop.f32.mrf.mxu0  ;;  %v16784_v2 = vadd.f32 %v9134_v51, %v8943_v35  ;;  %v16789_v44 = vadd.f32 %v8916_v20, %v17452_v40 }
 0x510   :  { %v12496_v27 = vpop.f32.mrf.mxu1 }
 0x511   :  { %v8919_v46 = vpop.f32.mrf.mxu0 }
 0x512   :  { %v9147_v6 = vpop.f32.mrf.mxu1  ;;  %v16800_v51 = vadd.f32 %v8919_v46, %v17453_v54 }
 0x513   :  { %v12512_v11 = vpop.f32.mrf.mxu0  ;;  %v16795_v3 = vadd.f32 %v9147_v6, %v8946_v9  ;;  %v17459_v9 = vld [vmem:[#allocation17_spill] sm:$0xff] }
 0x514   :  { %v12497_v16 = vpop.f32.mrf.mxu1  ;;  %v9590_v55 = vadd.f32 %v12512_v11, %v9179_v26  ;;  %v16772_v26 = vadd.f32 %v9118_v34, %v8939_v21  ;;  %v16786_v34 = vadd.f32 %v12496_v27, %v8948_v52  ;;  %vm17460_vm4 = vcmp.eq.s32.totalorder %v17459_v9, 1 }
 0x515   :  { %v9494_v28 = vpop.f32.mrf.mxu0  ;;  %v17456_v31 = vld [vmem:[#allocation46_spill] sm:$0xff] }
 0x516   :  { %v9150_v39 = vpop.f32.mrf.mxu1  ;;  %v9621_v18 = vmul.f32 %v16751_v8, %v9590_v55  ;;  %v9588_v61 = vadd.f32 %v9494_v28, %v9177_v24 }
 0x517   :  { %v12513_v63 = vpop.f32.mrf.mxu0  ;;  %v16803_v59 = vadd.f32 %v9150_v39, %v8947_v41 }
 0x518   :  { %v12500_v38 = vpop.f32.mrf.mxu1  ;;  %v9652_v12 = vadd.f32 %v16766_v17, %v9621_v18  ;;  %v9619_v5 = vmul.f32 %v16751_v8, %v9588_v61  ;;  %v9591_v7 = vadd.f32 %v12513_v63, %v9180_v50  ;;  %v16797_v50 = vadd.f32 %v12497_v16, %v8949_v0  ;;  %v17457_v16 = vld [vmem:[#allocation32_spill] sm:$0xff] }
 0x519   :  { %v9497_v60 = vpop.f32.mrf.mxu0  ;;  %v16809_v30 = vadd.f32 %v12500_v38, %v17456_v31  ;;  %vm17458_vm11 = vcmp.eq.s32.totalorder %v17457_v16, 1 }
 0x51a   :  { %vm9675_vm2 = vcmp.gt.f32.partialorder %v9652_v12, 0.0  ;;  %v9698_v45 = vmul.f32 0.1, %v9652_v12  ;;  %v16791_v43 = vpop.f32.mrf.mxu1  ;;  %v9650_v23 = vadd.f32 %v16766_v17, %v9619_v5  ;;  %v9622_v19 = vmul.f32 %v16751_v8, %v9591_v7 }
 0x51b   :  { %v9589_v25 = vadd.f32 %v9497_v60, %v9178_v32  ;;  %v12516_v48 = vpop.f32.mrf.mxu0  ;;  %v17462_v60 = vld [vmem:[#allocation33_spill] sm:$0xff] }
 0x51c   :  { %v9721_v20 = vsel %vm9675_vm2, %v9652_v12, %v9698_v45  ;;  %vm9673_vm5 = vcmp.gt.f32.partialorder %v9650_v23, 0.0  ;;  %v9696_v27 = vmul.f32 0.1, %v9650_v23  ;;  %v12501_v24 = vpop.f32.mrf.mxu1  ;;  %v9653_v58 = vadd.f32 %v16766_v17, %v9622_v19 }
 0x51d   :  { %v9744_v37 = vsel %vm17455_vm10, %v9721_v20, 0.0  ;;  %v9620_v6 = vmul.f32 %v16751_v8, %v9589_v25  ;;  %v9594_v21 = vadd.f32 %v12516_v48, %v9183_v13  ;;  %v9510_v10 = vpop.f32.mrf.mxu0  ;;  %vm17461_vm2 = vcmask 519169  }
 0x51e   :  { %v11148_v11 = vpack.c.bf16 %v9744_v37, %v9744_v37  ;;  %v9719_v46 = vsel %vm9673_vm5, %v9650_v23, %v9696_v27  ;;  %vm9676_vm3 = vcmp.gt.f32.partialorder %v9653_v58, 0.0  ;;  %v9699_v32 = vmul.f32 0.1, %v9653_v58 }
 0x51f   :  { %v9742_v55 = vsel %vm17458_vm11, %v9719_v46, 0.0  ;;  %v9651_v15 = vadd.f32 %v16766_v17, %v9620_v6  ;;  %v9625_v35 = vmul.f32 %v16751_v8, %v9594_v21  ;;  %v12517_v36 = vpop.f32.mrf.mxu0  ;;  %v9592_v13 = vadd.f32 %v9510_v10, %v16742_v4 }
 0x520   :  { %v9840_v52 = vrot.slane %v11148_v11, 7  ;;  %v11146_v28 = vpack.c.bf16 %v9742_v55, %v9742_v55  ;;  %v9722_v56 = vsel %vm9676_vm3, %v9653_v58, %v9699_v32  ;;  %v9595_v5 = vadd.f32 %v12517_v36, %v16744_v1  ;;  %v17465_v58 = vld [vmem:[#allocation18_spill] sm:$0xff] }
 0x521   :  { %v9745_v39 = vsel %vm17460_vm4, %v9722_v56, 0.0  ;;  %vm9674_vm7 = vcmp.gt.f32.partialorder %v9651_v15, 0.0  ;;  %v9697_v18 = vmul.f32 0.1, %v9651_v15  ;;  %v9656_v61 = vadd.f32 %v16766_v17, %v9625_v35  ;;  %v9513_v47 = vpop.f32.mrf.mxu0 }
 0x522   :  { %v9842_v0 = vrot.slane %v9840_v52, 4  ;;  %v9835_v22 = vrot.slane %v11146_v28, 7  ;;  %v11149_v41 = vpack.c.bf16 %v9745_v39, %v9745_v39  ;;  %v9623_v63 = vmul.f32 %v16751_v8, %v9592_v13  ;;  %v17467_v28 = vld [vmem:[#allocation16_spill] sm:$0xff] }
 0x523   :  { %v9720_v38 = vsel %vm9674_vm7, %v9651_v15, %v9697_v18  ;;  %vm9679_vm8 = vcmp.gt.f32.partialorder %v9656_v61, 0.0  ;;  %v9702_v12 = vmul.f32 0.1, %v9656_v61  ;;  %v12520_v7 = vpop.f32.mrf.mxu0  ;;  %vm17463_vm5 = vcmp.eq.s32.totalorder %v17462_v60, 1 }
 0x524   :  { %v9836_v4 = vrot.slane %v9835_v22, 4  ;;  %9925 = vst.msk [vmem:[#allocation2 + $0xc] sm:$0xe] %vm17461_vm2, %v9835_v22  ;;  %v9843_v40 = vrot.slane %v11149_v41, 7  ;;  %v9743_v45 = vsel %vm17463_vm5, %v9720_v38, 0.0  ;;  %v9654_v23 = vadd.f32 %v16766_v17, %v9623_v63  ;;  %v17469_v41 = vld [vmem:[#allocation19_spill] sm:$0xff] }
 0x525   :  { %v11147_v19 = vpack.c.bf16 %v9743_v45, %v9743_v45  ;;  %v9725_v54 = vsel %vm9679_vm8, %v9656_v61, %v9702_v12  ;;  %v9626_v25 = vmul.f32 %v16751_v8, %v9595_v5  ;;  %v9593_v48 = vadd.f32 %v9513_v47, %v16753_v29  ;;  %v9526_v20 = vpop.f32.mrf.mxu0 }
 0x526   :  { %v9844_v1 = vsel %vm14427_vm9, %v9842_v0, %v9843_v40  ;;  %v9845_v24 = vrot.slane %v9843_v40, 4  ;;  %vm17466_vm10 = vcmp.eq.s32.totalorder %v17465_v58, 1  ;;  %vm9677_vm3 = vcmp.gt.f32.partialorder %v9654_v23, 0.0 }
 0x527   :  { %v9748_v62 = vsel %vm17466_vm10, %v9725_v54, 0.0  ;;  %9928 = vst.msk [vmem:[#allocation2 + $0x18] sm:$0xf] %vm56_vm0, %v9844_v1  ;;  %v9837_v37 = vrot.slane %v11147_v19, 7  ;;  %v9700_v21 = vmul.f32 0.1, %v9654_v23  ;;  %v9657_v10 = vadd.f32 %v16766_v17, %v9626_v25  ;;  %v12521_v11 = vpop.f32.mrf.mxu0 }
 0x528   :  { %v11152_v6 = vpack.c.bf16 %v9748_v62, %v9748_v62  ;;  %v9624_v46 = vmul.f32 %v16751_v8, %v9593_v48  ;;  %v9598_v29 = vadd.f32 %v12520_v7, %v16757_v14  ;;  %v9596_v32 = vadd.f32 %v9526_v20, %v16759_v42 }
 0x529   :  { %v9599_v31 = vadd.f32 %v12521_v11, %v16768_v49  ;;  %v9838_v16 = vsel %vm14427_vm9, %v9836_v4, %v9837_v37  ;;  %v9839_v55 = vrot.slane %v9837_v37, 4  ;;  %v9723_v35 = vsel %vm9677_vm3, %v9654_v23, %v9700_v21  ;;  %v9529_v36 = vpop.f32.mrf.mxu0  ;;  %v17471_v23 = vld [vmem:[#allocation6_spill] sm:$0xff]  ;;  %v17473_v11 = vld [vmem:[#allocation8_spill] sm:$0xff] }
 0x52a   :  { %v16839_v15 = vrot.slane %v11152_v6, 7  ;;  %9926 = vst.msk [vmem:[#allocation2 + $0x10] sm:$0xf] %vm56_vm0, %v9838_v16  ;;  %vm17468_vm11 = vcmp.eq.s32.totalorder %v17467_v28, 1  ;;  %vm9680_vm4 = vcmp.gt.f32.partialorder %v9657_v10, 0.0  ;;  %v9655_v14 = vadd.f32 %v16766_v17, %v9624_v46 }
 0x52b   :  { %v9746_v56 = vsel %vm17468_vm11, %v9723_v35, 0.0  ;;  %v9703_v13 = vmul.f32 0.1, %v9657_v10  ;;  %v9841_v42 = vsel %vm14427_vm9, %v9839_v55, %v9840_v52  ;;  %v9629_v39 = vmul.f32 %v16751_v8, %v9598_v29  ;;  %v12524_v18 = vpop.f32.mrf.mxu0  ;;  %v17475_v35 = vld [vmem:[#allocation21_spill] sm:$0xff] }
 0x52c   :  { %v9854_v49 = vrot.slane %v16839_v15, 4  ;;  %v11150_v9 = vpack.c.bf16 %v9746_v56, %v9746_v56  ;;  %9927 = vst.msk [vmem:[#allocation2 + $0x14] sm:$0xf] %vm56_vm0, %v9841_v42  ;;  %vm9678_vm7 = vcmp.gt.f32.partialorder %v9655_v14, 0.0  ;;  %v9701_v47 = vmul.f32 0.1, %v9655_v14 }
 0x52d   :  { %v9726_v61 = vsel %vm9680_vm4, %v9657_v10, %v9703_v13  ;;  %v9627_v0 = vmul.f32 %v16751_v8, %v9596_v32  ;;  %vm17470_vm8 = vcmp.eq.s32.totalorder %v17469_v41, 1  ;;  %v9660_v38 = vadd.f32 %v16766_v17, %v9629_v39  ;;  %v9542_v12 = vpop.f32.mrf.mxu0  ;;  %v17477_v39 = vld [vmem:[#allocation22_spill] sm:$0xff] }
 0x52e   :  { %v9846_v22 = vrot.slane %v11150_v9, 7  ;;  %v9749_v63 = vsel %vm17470_vm8, %v9726_v61, 0.0  ;;  %v9630_v52 = vmul.f32 %v16751_v8, %v9599_v31  ;;  %v9724_v7 = vsel %vm9678_vm7, %v9655_v14, %v9701_v47 }
 0x52f   :  { %v11153_v5 = vpack.c.bf16 %v9749_v63, %v9749_v63  ;;  %v9658_v4 = vadd.f32 %v16766_v17, %v9627_v0  ;;  %v9597_v40 = vadd.f32 %v9529_v36, %v16772_v26  ;;  %vm17472_vm2 = vcmp.eq.s32.totalorder %v17471_v23, 1  ;;  %v12525_v54 = vpop.f32.mrf.mxu0 }
 0x530   :  { %v9847_v60 = vsel %vm14427_vm9, %v9845_v24, %v9846_v22  ;;  %v9848_v45 = vrot.slane %v9846_v22, 4  ;;  %v9747_v19 = vsel %vm17472_vm2, %v9724_v7, 0.0  ;;  %vm9683_vm5 = vcmp.gt.f32.partialorder %v9660_v38, 0.0 }
 0x531   :  { %9929 = vst.msk [vmem:[#allocation2 + $0x1c] sm:$0xf] %vm56_vm0, %v9847_v60  ;;  %v9855_v25 = vrot.slane %v11153_v5, 7  ;;  %v11151_v48 = vpack.c.bf16 %v9747_v19, %v9747_v19  ;;  %v9706_v20 = vmul.f32 0.1, %v9660_v38  ;;  %vm9681_vm10 = vcmp.gt.f32.partialorder %v9658_v4, 0.0  ;;  %v9545_v24 = vpop.f32.mrf.mxu0 }
 0x532   :  { %v9704_v1 = vmul.f32 0.1, %v9658_v4  ;;  %v9661_v58 = vadd.f32 %v16766_v17, %v9630_v52  ;;  %v9628_v26 = vmul.f32 %v16751_v8, %v9597_v40  ;;  %v9602_v62 = vadd.f32 %v12524_v18, %v16774_v53  ;;  %v17479_v40 = vld [vmem:[#allocation23_spill] sm:$0xff] }
 0x533   :  { %v9856_v37 = vsel %vm14427_vm9, %v9854_v49, %v9855_v25  ;;  %v9857_v6 = vrot.slane %v9855_v25, 4  ;;  %v9849_v21 = vrot.slane %v11151_v48, 7  ;;  %v9729_v10 = vsel %vm9683_vm5, %v9660_v38, %v9706_v20  ;;  %v12528_v31 = vpop.f32.mrf.mxu0 }
 0x534   :  { %9932 = vst.msk [vmem:[#allocation2 + $0x28] sm:$0xf] %vm56_vm0, %v9856_v37  ;;  %vm17474_vm3 = vcmp.eq.s32.totalorder %v17473_v11, 1  ;;  %v9727_v29 = vsel %vm9681_vm10, %v9658_v4, %v9704_v1  ;;  %vm9684_vm11 = vcmp.gt.f32.partialorder %v9661_v58, 0.0  ;;  %v9707_v32 = vmul.f32 0.1, %v9661_v58 }
 0x535   :  { %v9752_v46 = vsel %vm17474_vm3, %v9729_v10, 0.0  ;;  %v9850_v16 = vsel %vm14427_vm9, %v9848_v45, %v9849_v21  ;;  %v9851_v53 = vrot.slane %v9849_v21, 4  ;;  %vm17476_vm4 = vcmp.eq.s32.totalorder %v17475_v35, 1  ;;  %v9558_v42 = vpop.f32.mrf.mxu0 }
 0x536   :  { %v11156_v55 = vpack.c.bf16 %v9752_v46, %v9752_v46  ;;  %v9750_v36 = vsel %vm17476_vm4, %v9727_v29, 0.0  ;;  %9930 = vst.msk [vmem:[#allocation2 + $0x20] sm:$0xf] %vm56_vm0, %v9850_v16  ;;  %v9730_v56 = vsel %vm9684_vm11, %v9661_v58, %v9707_v32  ;;  %v9659_v13 = vadd.f32 %v16766_v17, %v9628_v26  ;;  %v17481_v58 = vld [vmem:[#allocation24_spill] sm:$0xff] }
 0x537   :  { %v11154_v28 = vpack.c.bf16 %v9750_v36, %v9750_v36  ;;  %v9633_v14 = vmul.f32 %v16751_v8, %v9602_v62  ;;  %v9853_v49 = vsel %vm14427_vm9, %v9851_v53, %v16839_v15  ;;  %vm17478_vm7 = vcmp.eq.s32.totalorder %v17477_v39, 1  ;;  %v12529_v41 = vpop.f32.mrf.mxu0 }
 0x538   :  { %v9864_v9 = vrot.slane %v11156_v55, 7  ;;  %v9753_v18 = vsel %vm17478_vm7, %v9730_v56, 0.0  ;;  %v9600_v61 = vadd.f32 %v9542_v12, %v16778_v33  ;;  %9931 = vst.msk [vmem:[#allocation2 + $0x24] sm:$0xf] %vm56_vm0, %v9853_v49  ;;  %vm9682_vm8 = vcmp.gt.f32.partialorder %v9659_v13, 0.0 }
 0x539   :  { %v9858_v47 = vrot.slane %v11154_v28, 7  ;;  %v11157_v0 = vpack.c.bf16 %v9753_v18, %v9753_v18  ;;  %v9705_v22 = vmul.f32 0.1, %v9659_v13  ;;  %v16886_v63 = vadd.f32 %v16791_v43, %v16789_v44  ;;  %v16893_v4 = vpop.f32.mrf.mxu0 }
 0x53a   :  { %v9664_v38 = vadd.f32 %v16766_v17, %v9633_v14  ;;  %v9631_v15 = vmul.f32 %v16751_v8, %v9600_v61  ;;  %v9603_v52 = vadd.f32 %v12525_v54, %v16782_v57  ;;  %v9866_v5 = vrot.slane %v9864_v9, 4 }
 0x53b   :  { %v9859_v33 = vsel %vm14427_vm9, %v9857_v6, %v9858_v47  ;;  %v9867_v12 = vrot.slane %v11157_v0, 7  ;;  %v9728_v7 = vsel %vm9682_vm8, %v9659_v13, %v9705_v22  ;;  %vm17480_vm2 = vcmp.eq.s32.totalorder %v17479_v40, 1  ;;  %v12532_v54 = vpop.f32.mrf.mxu0 }
 0x53c   :  { %9933 = vst.msk [vmem:[#allocation2 + $0x2c] sm:$0xf] %vm56_vm0, %v9859_v33  ;;  %v9751_v44 = vsel %vm17480_vm2, %v9728_v7, 0.0  ;;  %vm9687_vm5 = vcmp.gt.f32.partialorder %v9664_v38, 0.0  ;;  %v9710_v43 = vmul.f32 0.1, %v9664_v38  ;;  %v9662_v60 = vadd.f32 %v16766_v17, %v9631_v15 }
 0x53d   :  { %v9860_v45 = vrot.slane %v9858_v47, 4  ;;  %v9868_v57 = vsel %vm14427_vm9, %v9866_v5, %v9867_v12  ;;  %v11155_v23 = vpack.c.bf16 %v9751_v44, %v9751_v44  ;;  %v9634_v19 = vmul.f32 %v16751_v8, %v9603_v52  ;;  %v9574_v6 = vpop.f32.mrf.mxu0  ;;  %v17486_v15 = vld [vmem:[#allocation9_spill] sm:$0xff] }
 0x53e   :  { %9936 = vst.msk [vmem:[#allocation2 + $0x38] sm:$0xf] %vm56_vm0, %v9868_v57  ;;  %v9733_v25 = vsel %vm9687_vm5, %v9664_v38, %v9710_v43  ;;  %vm9685_vm10 = vcmp.gt.f32.partialorder %v9662_v60, 0.0  ;;  %v9708_v48 = vmul.f32 0.1, %v9662_v60  ;;  %v9601_v20 = vadd.f32 %v9545_v24, %v16784_v2  ;;  %v17483_v2 = vld [vmem:[#allocation25_spill] sm:$0xff] }
 0x53f   :  { %v9861_v1 = vrot.slane %v11155_v23, 7  ;;  %vm17482_vm3 = vcmp.eq.s32.totalorder %v17481_v58, 1  ;;  %v9665_v62 = vadd.f32 %v16766_v17, %v9634_v19  ;;  %v9606_v37 = vadd.f32 %v12528_v31, %v16786_v34  ;;  %v12533_v16 = vpop.f32.mrf.mxu0 }
 0x540   :  { %v9756_v26 = vsel %vm17482_vm3, %v9733_v25, 0.0  ;;  %v9731_v10 = vsel %vm9685_vm10, %v9662_v60, %v9708_v48  ;;  %v9632_v11 = vmul.f32 %v16751_v8, %v9601_v20  ;;  %v9604_v46 = vadd.f32 %v9558_v42, %v16795_v3  ;;  %v17490_v48 = vld [vmem:[#allocation10_spill] sm:$0xff] }
 0x541   :  { %v11160_v21 = vpack.c.bf16 %v9756_v26, %v9756_v26  ;;  %v9862_v29 = vsel %vm14427_vm9, %v9860_v45, %v9861_v1  ;;  %v9863_v32 = vrot.slane %v9861_v1, 4  ;;  %vm17484_vm11 = vcmp.eq.s32.totalorder %v17483_v2, 1  ;;  %v17488_v45 = vld [vmem:[#allocation26_spill] sm:$0xff]  ;;  %v9166_v1 = vpop.f32.mrf.mxu1  ;;  %v17492_v2 = vld [vmem:[#allocation11_spill] sm:$0xff] }
 0x542   :  { %v9754_v24 = vsel %vm17484_vm11, %v9731_v10, 0.0  ;;  %vm9688_vm4 = vcmp.gt.f32.partialorder %v9665_v62, 0.0  ;;  %9934 = vst.msk [vmem:[#allocation2 + $0x30] sm:$0xf] %vm56_vm0, %v9862_v29  ;;  %v9711_v31 = vmul.f32 0.1, %v9665_v62  ;;  %v9663_v55 = vadd.f32 %v16766_v17, %v9632_v11 }
 0x543   :  { %v9876_v53 = vrot.slane %v11160_v21, 7  ;;  %v11158_v34 = vpack.c.bf16 %v9754_v24, %v9754_v24  ;;  %v9865_v35 = vsel %vm14427_vm9, %v9863_v32, %v9864_v9  ;;  %v9637_v3 = vmul.f32 %v16751_v8, %v9606_v37 }
 0x544   :  { %v9635_v36 = vmul.f32 %v16751_v8, %v9604_v46  ;;  %v9607_v28 = vadd.f32 %v12529_v41, %v16797_v50  ;;  %v9869_v56 = vrot.slane %v9867_v12, 4  ;;  %9935 = vst.msk [vmem:[#allocation2 + $0x34] sm:$0xf] %vm56_vm0, %v9865_v35  ;;  %v9734_v14 = vsel %vm9688_vm4, %v9665_v62, %v9711_v31 }
 0x545   :  { %v9870_v13 = vrot.slane %v11158_v34, 7  ;;  %vm9686_vm7 = vcmp.gt.f32.partialorder %v9663_v55, 0.0  ;;  %v9757_v49 = vsel %vm3265_vm13, %v9734_v14, 0.0  ;;  %v9709_v39 = vmul.f32 0.1, %v9663_v55  ;;  %v9577_v34 = vpop.f32.mrf.mxu0 }
 0x546   :  { %v9668_v18 = vadd.f32 %v16766_v17, %v9637_v3  ;;  %v9666_v9 = vadd.f32 %v16766_v17, %v9635_v36  ;;  %v9878_v61 = vrot.slane %v9876_v53, 4  ;;  %v11161_v0 = vpack.c.bf16 %v9757_v49, %v9757_v49 }
 0x547   :  { %v9871_v47 = vsel %vm14427_vm9, %v9869_v56, %v9870_v13  ;;  %v9638_v50 = vmul.f32 %v16751_v8, %v9607_v28  ;;  %v9732_v22 = vsel %vm9686_vm7, %v9663_v55, %v9709_v39  ;;  %vm17487_vm13 = vcmp.eq.s32.totalorder %v17486_v15, 1 }
 0x548   :  { %9937 = vst.msk [vmem:[#allocation2 + $0x3c] sm:$0xf] %vm56_vm0, %v9871_v47  ;;  %vm9691_vm8 = vcmp.gt.f32.partialorder %v9668_v18, 0.0  ;;  %v9714_v41 = vmul.f32 0.1, %v9668_v18  ;;  %vm9689_vm2 = vcmp.gt.f32.partialorder %v9666_v9, 0.0  ;;  %v9605_v40 = vadd.f32 %v16893_v4, %v16803_v59 }
 0x549   :  { %v9879_v38 = vrot.slane %v11161_v0, 7  ;;  %v9755_v52 = vsel %vm17487_vm13, %v9732_v22, 0.0  ;;  %v9712_v5 = vmul.f32 0.1, %v9666_v9  ;;  %v9669_v33 = vadd.f32 %v16766_v17, %v9638_v50 }
 0x54a   :  { %v11159_v12 = vpack.c.bf16 %v9755_v52, %v9755_v52  ;;  %v9737_v7 = vsel %vm9691_vm8, %v9668_v18, %v9714_v41  ;;  %v9610_v44 = vadd.f32 %v12532_v54, %v16809_v30  ;;  %v9872_v43 = vrot.slane %v9870_v13, 4 }
 0x54b   :  { %v9880_v60 = vsel %vm14427_vm9, %v9878_v61, %v9879_v38  ;;  %vm17489_vm5 = vcmp.eq.s32.totalorder %v17488_v45, 1  ;;  %v9735_v23 = vsel %vm9689_vm2, %v9666_v9, %v9712_v5  ;;  %vm17491_vm10 = vcmp.eq.s32.totalorder %v17490_v48, 1  ;;  %v11222_v48 = vld [vmem:[#allocation2 + $0x30] sm:$0xff]  }
 0x54c   :  { %v9760_v57 = vsel %vm17489_vm5, %v9737_v7, 0.0  ;;  %9940 = vst.msk [vmem:[#allocation2 + $0x48] sm:$0xf] %vm56_vm0, %v9880_v60  ;;  %v9873_v19 = vrot.slane %v11159_v12, 7  ;;  %v9758_v20 = vsel %vm17491_vm10, %v9735_v23, 0.0  ;;  %vm9692_vm3 = vcmp.gt.f32.partialorder %v9669_v33, 0.0 }
 0x54d   :  { %v11164_v25 = vpack.c.bf16 %v9760_v57, %v9760_v57  ;;  %v11162_v59 = vpack.c.bf16 %v9758_v20, %v9758_v20  ;;  %v9715_v4 = vmul.f32 0.1, %v9669_v33  ;;  %v9636_v30 = vmul.f32 %v16751_v8, %v9605_v40 }
 0x54e   :  { %v9641_v54 = vmul.f32 %v16751_v8, %v9610_v44  ;;  %v9881_v58 = vrot.slane %v9879_v38, 4  ;;  %v9874_v26 = vsel %vm14427_vm9, %v9872_v43, %v9873_v19  ;;  %v9875_v62 = vrot.slane %v9873_v19, 4 }
 0x54f   :  { %v9608_v37 = vadd.f32 %v9574_v6, %v16886_v63  ;;  %9938 = vst.msk [vmem:[#allocation2 + $0x40] sm:$0xf] %vm56_vm0, %v9874_v26  ;;  %v9888_v21 = vrot.slane %v11164_v25, 7  ;;  %v9882_v10 = vrot.slane %v11162_v59, 7  ;;  %v9738_v11 = vsel %vm9692_vm3, %v9669_v33, %v9715_v4  ;;  %v11223_v7 = vld [vmem:[#allocation2 + $0x38] sm:$0xff]  }
 0x550   :  { %v9667_v46 = vadd.f32 %v16766_v17, %v9636_v30  ;;  %v9198_v29 = vadd.f32 %v9166_v1, %v16800_v51  ;;  %v9877_v32 = vsel %vm14427_vm9, %v9875_v62, %v9876_v53  ;;  %vm17493_vm11 = vcmp.eq.s32.totalorder %v17492_v2, 1  ;;  %v11219_v2 = vld [vmem:[#allocation2 + $0x18] sm:$0xff]  }
 0x551   :  { %v9761_v24 = vsel %vm17493_vm11, %v9738_v11, 0.0  ;;  %v9639_v16 = vmul.f32 %v16751_v8, %v9608_v37  ;;  %9939 = vst.msk [vmem:[#allocation2 + $0x44] sm:$0xf] %vm56_vm0, %v9877_v32  ;;  %v9883_v63 = vsel %vm14427_vm9, %v9881_v58, %v9882_v10  ;;  %v9672_v31 = vadd.f32 %v16766_v17, %v9641_v54  ;;  %v11221_v58 = vld [vmem:[#allocation2 + $0x28] sm:$0xff]  }
 0x552   :  { %v11165_v6 = vpack.c.bf16 %v9761_v24, %v9761_v24  ;;  %vm9690_vm4 = vcmp.gt.f32.partialorder %v9667_v46, 0.0  ;;  %9941 = vst.msk [vmem:[#allocation2 + $0x4c] sm:$0xf] %vm56_vm0, %v9883_v63  ;;  %v9713_v51 = vmul.f32 0.1, %v9667_v46  ;;  %v9890_v55 = vrot.slane %v9888_v21, 4 }
 0x553   :  { %v9670_v53 = vadd.f32 %v16766_v17, %v9639_v16  ;;  %v9609_v3 = vadd.f32 %v9577_v34, %v9198_v29  ;;  %v9718_v42 = vmul.f32 0.1, %v9672_v31  ;;  %vm9695_vm8 = vcmp.gt.f32.partialorder %v9672_v31, 0.0  ;;  %v11218_v16 = vld [vmem:[#allocation2 + $0x10] sm:$0xff]  }
 0x554   :  { %v9891_v35 = vrot.slane %v11165_v6, 7  ;;  %v9736_v36 = vsel %vm9690_vm4, %v9667_v46, %v9713_v51  ;;  %v9884_v47 = vrot.slane %v9882_v10, 4  ;;  %v17498_v45 = vmov 0.0   ;;  %v11220_v46 = vld [vmem:[#allocation2 + $0x20] sm:$0xff]   ;;  %v11217_v6 = vld [vmem:[#allocation2 + $0x8] sm:$0xff]  }
 0x555   :  { %vm9693_vm7 = vcmp.gt.f32.partialorder %v9670_v53, 0.0  ;;  %v9716_v28 = vmul.f32 0.1, %v9670_v53  ;;  %v9759_v14 = vsel %vm3267_vm6, %v9736_v36, 0.0  ;;  %v9640_v18 = vmul.f32 %v16751_v8, %v9609_v3  ;;  %v9972_v51 = vld [vmem:[#allocation2 + $0x68] sm:$0xf] }
 0x556   :  { %v9892_v56 = vsel %vm14427_vm9, %v9890_v55, %v9891_v35  ;;  %v11163_v49 = vpack.c.bf16 %v9759_v14, %v9759_v14  ;;  %v9893_v38 = vrot.slane %v9891_v35, 4  ;;  %v9741_v15 = vsel %vm9695_vm8, %v9672_v31, %v9718_v42 }
 0x557   :  { %9944 = vst.msk [vmem:[#allocation2 + $0x58] sm:$0xf] %vm56_vm0, %v9892_v56  ;;  %v9739_v39 = vsel %vm9693_vm7, %v9670_v53, %v9716_v28  ;;  %v9671_v22 = vadd.f32 %v16766_v17, %v9640_v18  ;;  %v17496_v17 = vld [vmem:[#allocation31_spill] sm:$0xff]  ;;  %v11196_v23 = vunpack.c.h.bf16 %v11223_v7  ;;  %v11195_v59 = vunpack.c.l.bf16 %v11223_v7 }
 0x558   :  { %v9762_v61 = vsel %vm3270_vm15, %v9739_v39, 0.0  ;;  %v9885_v0 = vrot.slane %v11163_v49, 7  ;;  %v11224_v41 = vld [vmem:[#allocation2 + $0x40] sm:$0xff]   ;;  %vm17497_vm15 = vcmp.eq.s32.totalorder %v17496_v17, 1  ;;  %v11192_v54 = vunpack.c.h.bf16 %v11222_v48 }
 0x559   :  { %v11166_v50 = vpack.c.bf16 %v9762_v61, %v9762_v61  ;;  %v11200_v52 = vunpack.c.h.bf16 %v11224_v41  ;;  %vm9694_vm6 = vcmp.gt.f32.partialorder %v9671_v22, 0.0  ;;  %v9717_v8 = vmul.f32 0.1, %v9671_v22  ;;  %v11225_v39 = vld [vmem:[#allocation2 + $0x48] sm:$0xff]   ;;  %v11098_v7 = vld [vmem:[%s17062_s7] ss:$0 sm:$0xff] }
 0x55a   :  { %v9886_v5 = vsel %vm14427_vm9, %v9884_v47, %v9885_v0  ;;  %v9887_v33 = vrot.slane %v9885_v0, 4  ;;  %v11199_v40 = vunpack.c.l.bf16 %v11224_v41  ;;  %v9764_v43 = vsel %vm17497_vm15, %v9741_v15, 0.0  ;;  %v10089_v47 = vld [vmem:[%s17061_s6 + $0x38] sm:$0xff]  ;;  %v10086_v41 = vld [vmem:[%s17061_s6 + $0x20] sm:$0xff]  ;;  %v10084_v15 = vld [vmem:[%s17061_s6 + $0x10] sm:$0xff] }
 0x55b   :  { %v9894_v12 = vrot.slane %v11166_v50, 7  ;;  %9942 = vst.msk [vmem:[#allocation2 + $0x50] sm:$0xf] %vm56_vm0, %v9886_v5  ;;  %10013 = vmatpush1.msra.mxu1 %v11200_v52  ;;  %v9740_v57 = vsel %vm9694_vm6, %v9671_v22, %v9717_v8  ;;  %v11168_v20 = vpack.c.bf16 %v9764_v43, %v9764_v43  ;;  %v11188_v11 = vunpack.c.h.bf16 %v11221_v58  ;;  %v17500_v0 = vld [vmem:[#allocation15_spill] sm:$0xff]  ;;  %v10088_v50 = vld [vmem:[%s17061_s6 + $0x30] sm:$0xff]  ;;  %v10087_v22 = vld [vmem:[%s17061_s6 + $0x28] sm:$0xff] }
 0x55c   :  { %v9889_v44 = vsel %vm14427_vm9, %v9887_v33, %v9888_v21  ;;  %10014 = vmatprep.subr.mxu1 %v17498_v45  ;;  %v9763_v25 = vsel %vm3271_vm12, %v9740_v57, 0.0  ;;  %v11191_v21 = vunpack.c.l.bf16 %v11222_v48  ;;  %v11187_v29 = vunpack.c.l.bf16 %v11221_v58  ;;  %v10083_v52 = vld [vmem:[%s17061_s6 + $0x8] sm:$0xff]  ;;  %v10082_v5 = vld [vmem:[%s17061_s6] sm:$0xff] }
 0x55d   :  { %v9895_v60 = vsel %vm14427_vm9, %v9893_v38, %v9894_v12  ;;  %9943 = vst.msk [vmem:[#allocation2 + $0x54] sm:$0xf] %vm56_vm0, %v9889_v44  ;;  %10015 = vmatpush1.msra.mxu1 %v11199_v40  ;;  %v11167_v1 = vpack.c.bf16 %v9763_v25, %v9763_v25  ;;  %v9896_v4 = vrot.slane %v9894_v12, 4  ;;  %v9900_v26 = vrot.slane %v11168_v20, 7  ;;  %v10085_v38 = vld [vmem:[%s17061_s6 + $0x18] sm:$0xff]  ;;  %s12830_s6 = scalar_lea.vmem %s10178_s21, 32 }
 0x55e   :  { %9945 = vst.msk [vmem:[#allocation2 + $0x5c] sm:$0xf] %vm56_vm0, %v9895_v60  ;;  %10016 = vmatprep.subr.mxu1 %v17498_v45  ;;  %v11184_v32 = vunpack.c.h.bf16 %v11220_v46  ;;  %v11183_v24 = vunpack.c.l.bf16 %v11220_v46  ;;  %v11180_v27 = vunpack.c.h.bf16 %v11219_v2  ;;  %v11179_v34 = vunpack.c.l.bf16 %v11219_v2  ;;  %p12831_p0 = scmp.ne.s32.totalorder %s10178_s21, %s12830_s6  ;;  %p12836_p2 = scmp.lt.s32.totalorder %s12830_s6, %s12830_s6 }
 0x55f   :  { %10017 = vmatpush1.msra.mxu1 %v11196_v23  ;;  %v9897_v30 = vrot.slane %v11167_v1, 7  ;;  %v11176_v63 = vunpack.c.h.bf16 %v11218_v16  ;;  %v11175_v31 = vunpack.c.l.bf16 %v11218_v16  ;;  %v11172_v53 = vunpack.c.h.bf16 %v11217_v6 }
 0x560   :  { %10018 = vmatprep.subr.mxu1 %v17498_v45  ;;  %v11171_v55 = vunpack.c.l.bf16 %v11217_v6  ;;  %v9997_v35 = vunpack.c.l.bf16 %v9972_v51  ;;  %v11204_v9 = vunpack.c.h.bf16 %v11225_v39  ;;  %v11203_v61 = vunpack.c.l.bf16 %v11225_v39  ;;  %p12837_p3 = por %p12836_p2, %p12835_p1 }
 0x561   :  { %10019 = vmatpush1.msra.mxu1 %v11195_v59  ;;  %v9898_v62 = vsel %vm14427_vm9, %v9896_v4, %v9897_v30  ;;  %v9899_v37 = vrot.slane %v9897_v30, 4 }
 0x562   :  { %10020 = vmatprep.subr.mxu1 %v17498_v45  ;;  %9946 = vst.msk [vmem:[#allocation2 + $0x60] sm:$0xf] %vm56_vm0, %v9898_v62  ;;  %vm12854_vm0 = vmmov 0   ;;  %p12838_p4 = pnand %p12837_p3, %p12831_p0 }
 0x563   :  { %10021 = vmatpush1.msra.mxu1 %v11192_v54  ;;  %v9901_v10 = vsel %vm14427_vm9, %v9899_v37, %v9900_v26 }
 0x564   :  { %10022 = vmatprep.subr.mxu1 %v17498_v45  ;;  %9947 = vst.msk [vmem:[#allocation2 + $0x64] sm:$0x7] %vm3482_vm14, %v9901_v10  ;;  %v11226_v14 = vld [vmem:[#allocation2 + $0x50] sm:$0xff]  }
 0x565   :  { %10023 = vmatpush1.msra.mxu1 %v11191_v21  ;;  %v11227_v28 = vld [vmem:[#allocation2 + $0x58] sm:$0xff]   ;;  %v11208_v49 = vunpack.c.h.bf16 %v11226_v14  ;;  %v11207_v18 = vunpack.c.l.bf16 %v11226_v14 }
 0x566   :  { %10024 = vmatprep.subr.mxu1 %v17498_v45  ;;  %v11212_v13 = vunpack.c.h.bf16 %v11227_v28  ;;  %v11211_v42 = vunpack.c.l.bf16 %v11227_v28 }
 0x567   :  { %10025 = vmatpush1.msra.mxu1 %v11188_v11 }
 0x568   :  { %10026 = vmatprep.subr.mxu1 %v17498_v45 }
 0x569   :  { %10027 = vmatpush1.msra.mxu1 %v11187_v29 }
 0x56a   :  { %10028 = vmatprep.subr.mxu1 %v17498_v45 }
 0x56b   :  { %10029 = vmatpush1.msra.mxu1 %v11184_v32  ;;  %v11228_v3 = vld [vmem:[#allocation2 + $0x60] sm:$0xff]  }
 0x56c   :  { %10030 = vmatprep.subr.mxu1 %v17498_v45  ;;  %v11216_v36 = vunpack.c.h.bf16 %v11228_v3  ;;  %v11215_v56 = vunpack.c.l.bf16 %v11228_v3 }
 0x56d   :  { %10031 = vmatpush1.msra.mxu1 %v11183_v24 }
 0x56e   :  { %10032 = vmatprep.subr.mxu1 %v17498_v45 }
 0x56f   :  { %10033 = vmatpush1.msra.mxu1 %v11180_v27 }
 0x570   :  { %10034 = vmatprep.subr.mxu1 %v17498_v45 }
 0x571   :  { %10035 = vmatpush1.msra.mxu1 %v11179_v34 }
 0x572   :  { %10036 = vmatprep.subr.mxu1 %v17498_v45 }
 0x573   :  { %10037 = vmatpush1.msra.mxu1 %v11176_v63 }
 0x574   :  { %10038 = vmatprep.subr.mxu1 %v17498_v45 }
 0x575   :  { %10039 = vmatpush1.msra.mxu1 %v11175_v31 }
 0x576   :  { %10040 = vmatprep.subr.mxu1 %v17498_v45 }
 0x577   :  { %10041 = vmatpush1.msra.mxu1 %v11172_v53 }
 0x578   :  { %10042 = vmatprep.subr.mxu1 %v17498_v45 }
 0x579   :  { %10043 = vmatpush1.msra.mxu1 %v11171_v55 }
 0x57a   :  { %10058 = vmatprep.subr.mxu1 %v17498_v45 }
 0x57b   :  { %10059 = vmatpush2.msra.mxu1 %v9997_v35 }
 0x57c   :  { %10060 = vmatprep.subr.mxu1 %v17498_v45 }
 0x57d   :  { %10061 = vmatpush2.msra.mxu1 %v11216_v36 }
 0x57e   :  { %10062 = vmatprep.subr.mxu1 %v17498_v45 }
 0x57f   :  { %10063 = vmatpush2.msra.mxu1 %v11215_v56 }
 0x580   :  { %10064 = vmatprep.subr.mxu1 %v17498_v45 }
 0x581   :  { %10065 = vmatpush2.msra.mxu1 %v11212_v13 }
 0x582   :  { %10066 = vmatprep.subr.mxu1 %v17498_v45 }
 0x583   :  { %10067 = vmatpush2.msra.mxu1 %v11211_v42 }
 0x584   :  { %10068 = vmatprep.subr.mxu1 %v17498_v45 }
 0x585   :  { %10069 = vmatpush2.msra.mxu1 %v11208_v49 }
 0x586   :  { %10070 = vmatprep.subr.mxu1 %v17498_v45 }
 0x587   :  { %10071 = vmatpush2.msra.mxu1 %v11207_v18 }
 0x588   :  { %10072 = vmatprep.subr.mxu1 %v17498_v45 }
 0x589   :  { %10073 = vmatpush2.msra.mxu1 %v11204_v9 }
 0x58a   :  { %10074 = vmatprep.subr.mxu1 %v17498_v45 }
 0x58b   :  { %10075 = vmatpush2.msra.mxu1 %v11203_v61 }
 0x58c   :  { %10077 = vmatmul.mubr.f32.vlgmr.msra.gmra.mxu1 %v17500_v0  ;;  %12534 = vmatprep.subr.mxu1 %v17498_v45 }
 0x58d   :  { %12535 = vmatpush3.msra.mxu1 %v10089_v47  ;;  %12550 = vmatprep.mubr.msk.f32.mxu1 %vm12854_vm0, %v17498_v45 }
 0x58e   :  { %12536 = vmatprep.subr.mxu1 %v17498_v45 }
 0x58f   :  { %12537 = vmatpush3.msra.mxu1 %v10088_v50 }
 0x590   :  { %12538 = vmatprep.subr.mxu1 %v17498_v45 }
 0x591   :  { %12539 = vmatpush3.msra.mxu1 %v10087_v22 }
 0x592   :  { %12540 = vmatprep.subr.mxu1 %v17498_v45 }
 0x593   :  { %12541 = vmatpush3.msra.mxu1 %v10086_v41 }
 0x594   :  { %12542 = vmatprep.subr.mxu1 %v17498_v45 }
 0x595   :  { %12543 = vmatpush3.msra.mxu1 %v10085_v38 }
 0x596   :  { %12544 = vmatprep.subr.mxu1 %v17498_v45 }
 0x597   :  { %12545 = vmatpush3.msra.mxu1 %v10084_v15 }
 0x598   :  { %12546 = vmatprep.subr.mxu1 %v17498_v45 }
 0x599   :  { %12547 = vmatpush3.msra.mxu1 %v10083_v52 }
 0x59a   :  { %12548 = vmatprep.subr.mxu1 %v17498_v45 }
 0x59b   :  { %12549 = vmatpush3.msra.mxu1 %v10082_v5 }
 0x64c   :  { %v10078_v33 = vpop.f32.mrf.mxu1 }
 0x64d   :  { %12551 = vmatmul.mubr.msk.f32.vlgmr.msra.gmra.mxu1 %vm251_vm1, %v10078_v33 }
 0x64e   :  { %v10080_v12 = vpop.f32.mrf.mxu1 }
 0x70d   :  { %v10166_v8 = vpop.f32.mrf.mxu1 }
 0x70e   :  { %v10167_v40 = vadd.f32 %v11098_v7, %v10166_v8 }
 0x70f   :  { %v12552_v44 = vpop.f32.mrf.mxu1 }
 0x710   :  { %10170 = vst [vmem:[#allocation3] sm:$0x3] %v10167_v40 }
 0x711   :  { %12841 = shalt.err (!%p12838_p4)
}
 0x712   :  { %10180 = dma.vmem_to_hbm [thread:$0]  %s10178_s21, 32, %s17063_s8, [#allocation4]  }
 0x713   :  { %12850 = dma.done.wait [#allocation4], 32  }
 0x714   :  { %12851 = vsyncadd [#allocation4], 4294967264 }
 0x715   :  { %10184 = vsyncpa [#allocation4], 1 }

</bundles_post_ra>
